<compile_context>
chip_gen: v6e
topology: v6e:2x2x1
jax: 0.10.0
libtpu: 0.0.40
codegen_flags: <defaults>
</compile_context>

<pallas_src>
import functools

import jax
import jax.numpy as jnp
from jax import lax
from jax.experimental import pallas as pl
from jax.experimental.pallas import tpu as pltpu

CH = 5  # the reference module hard-codes 5 in/out channels in every block


def weight_norm(v, g):
    """PyTorch weight_norm (dim=0): w = g * v / ||v||, norm over (cin, kh, kw)."""
    norm = jnp.sqrt(jnp.sum(v * v, axis=(1, 2, 3), keepdims=True))
    return (g.reshape(-1, 1, 1, 1) / norm) * v


def _conv(wb_ref, w_off, b_off, src_ref, *, kh, kw, dh, dw, p,
          R0, C0, H, Wc, activation, res=None):
    """Dilated conv over the self-padded slab `src_ref`.

    src_ref : (CH, RA, CA) VMEM ref; batch-stripe b's data lives at rows
              [R0, R0+H), cols [b*stride + C0, ...); everything else is zero,
              so the halo/gaps ARE the conv padding.
    Returns CH activated values of shape (H, Wc) covering slab cols [C0, C0+Wc).
    Weights/biases are SMEM scalars at static offsets; each tap slice is loaded
    once and reused by all 5 output channels.
    """
    r_base = R0 - p      # causal top padding in H (== symmetric pad + Chomp1d)
    c_base = C0 - p      # symmetric left padding in W
    csz = CH * kh * kw
    accs = [None] * CH
    for ci in range(CH):
        for ih in range(kh):
            r = r_base + ih * dh
            for iw in range(kw):
                c = c_base + iw * dw
                patch = src_ref[ci, r:r + H, c:c + Wc]   # one shifted ref-slice / tap
                base = (ci * kh + ih) * kw + iw
                for co in range(CH):
                    w = wb_ref[w_off + co * csz + base]   # SMEM scalar weight
                    term = w * patch
                    accs[co] = term if accs[co] is None else accs[co] + term
    outs = []
    for co in range(CH):
        a = accs[co] + wb_ref[b_off + co]                 # scalar bias add
        if res is not None:
            a = a + res[co]
        outs.append(jnp.tanh(a) if activation == "tanh" else jnp.maximum(a, 0.0))
    return outs


def _store_striped(dst_ref, vals, *, R0, C0, stride, bpg, w_out, H):
    """Write exactly w_out valid columns per batch stripe.

    Writing only the valid width keeps the zero gaps between stripes intact,
    which is what lets the next conv read its padding straight from the buffer
    (no staging copies, no re-zeroing between convs).
    """
    for co in range(CH):
        for b in range(bpg):
            c = b * stride
            dst_ref[co, R0:R0 + H, c + C0:c + C0 + w_out] = vals[co][:, c:c + w_out]


def _tcn_kernel(wb_ref, x_ref, out_ref, act_ref, t1_ref, *,
                W, k, num_levels, layout, R0, C0, stride, bpg, w_final):
    """Fused forward of the full TemporalConvNet for one group of bpg batches."""
    H = x_ref.shape[1]
    RA, CA = act_ref.shape[1], act_ref.shape[2]
    Wc = CA - C0                    # conv compute width (all stripes at once)

    # t1 is re-zeroed once per step: the previous step left wider dirty stripes
    # than level 0 overwrites, and conv2 consumes those columns as zero padding.
    t1_ref[...] = jnp.zeros_like(t1_ref)
    # act's halo rows are never touched by the striped stores; zero them and
    # refresh the interior with this step's (already zero-gapped) input slab.
    if R0 > 0:
        act_ref[:, 0:R0, :] = jnp.zeros((CH, R0, CA), jnp.float32)
    if RA - R0 - H > 0:
        act_ref[:, R0 + H:RA, :] = jnp.zeros((CH, RA - R0 - H, CA), jnp.float32)
    act_ref[:, R0:R0 + H, :] = x_ref[...]

    cur_w = W
    for lvl in range(num_levels):
        d = 2 ** lvl
        p = (k - 1) * d
        w1o, b1o, w2o, b2o, wdo, bdo = layout[lvl]
        last = lvl == num_levels - 1

        # conv1 -> Chomp1d -> Tanh  ==  causal-H-padded dilated conv + fused tanh
        a1 = _conv(wb_ref, w1o, b1o, act_ref, kh=k, kw=k, dh=d, dw=d, p=p,
                   R0=R0, C0=C0, H=H, Wc=Wc, activation="tanh")
        w1 = cur_w + p
        _store_striped(t1_ref, a1, R0=R0, C0=C0, stride=stride, bpg=bpg,
                       w_out=w1, H=H)

        # conv2 -> Chomp1d -> Tanh (kept live in vregs; only used as residual add)
        a2 = _conv(wb_ref, w2o, b2o, t1_ref, kh=k, kw=k, dh=d, dw=d, p=p,
                   R0=R0, C0=C0, H=H, Wc=Wc, activation="tanh")

        # ReLU(net(x) + downsample(x)); downsample = (2p+1,1) conv, pad (p, p)
        w2 = cur_w + 2 * p
        a3 = _conv(wb_ref, wdo, bdo, act_ref, kh=2 * p + 1, kw=1, dh=1, dw=1, p=p,
                   R0=R0, C0=C0, H=H, Wc=Wc, activation="relu", res=a2)

        if last:
            # Final level writes the compact lane-dense output slab directly.
            for co in range(CH):
                for b in range(bpg):
                    out_ref[co, :, b * w_final:(b + 1) * w_final] = \
                        a3[co][:, b * stride:b * stride + w_final]
        else:
            _store_striped(act_ref, a3, R0=R0, C0=C0, stride=stride, bpg=bpg,
                           w_out=w2, H=H)
        cur_w = w2


def _pack_params(params):
    """Apply weight_norm and flatten all conv weights/biases into one f32 vector."""
    flat, layout, off = [], [], 0

    def push(a):
        nonlocal off
        a = jnp.asarray(a, jnp.float32).reshape(-1)
        flat.append(a)
        start = off
        off += a.size
        return start

    for blk in params:
        w1 = weight_norm(blk["conv1_v"], blk["conv1_g"])
        w2 = weight_norm(blk["conv2_v"], blk["conv2_g"])
        layout.append((push(w1), push(blk["conv1_b"]),
                       push(w2), push(blk["conv2_b"]),
                       push(blk["down_w"]), push(blk["down_b"])))
    return jnp.concatenate(flat), tuple(layout)


def _cdiv(a, b):
    return -(-a // b)


def _chip_has_two_tensorcores():
    """Best effort: v7x has 2 TensorCores per chip; v5e/v6e have 1."""
    try:
        kind = jax.devices()[0].device_kind.lower()
    except Exception:
        return False
    return "7x" in kind or "v7" in kind


def temporal_conv_net(x, params, kernel_size, batches_per_step=None):
    """Forward of the whole TCN: (N, 5, H, W) -> (N, 5, H, W + 2*sum(p_i))."""
    n, c, H, W = x.shape
    assert c == CH
    num_levels = len(params)
    wb, layout = _pack_params(params)

    pads = [(kernel_size - 1) * (2 ** i) for i in range(num_levels)]
    p_last = pads[-1]
    w_final = W + 2 * sum(pads)

    # Slab geometry: batch stripe b sits at columns [b*stride + C0, ...); the C0
    # columns on its left (i.e. the zero tail of the previous stripe) provide the
    # W padding, and R0 / p_last halo rows provide the H padding.
    C0 = p_last
    R0 = ((p_last + 7) // 8) * 8 if p_last > 0 else 0
    stride = C0 + w_final
    RA = R0 + H + p_last

    if batches_per_step is None:
        # Fold as many batch elements into the lane axis as reasonable (caps the
        # slab at ~4 lane tiles, so scratch stays tiny on v7x's 64 MiB VMEM);
        # on v7x also keep >= 2 parallel grid steps so both TensorCores get work.
        bpg_max = max(1, min(n, 512 // max(stride, 1)))
        G = _cdiv(n, bpg_max)
        if _chip_has_two_tensorcores() and G < 2 and n >= 2:
            G = 2
        batches_per_step = _cdiv(n, G)
    bpg = batches_per_step
    G = _cdiv(n, bpg)
    n_pad = G * bpg
    CA = bpg * stride

    # Lane-dense, zero-gapped input slab: (G, CH, H, bpg*stride); batch b of a
    # group occupies columns [b*stride + C0, b*stride + C0 + W), gaps are zero.
    xp = jnp.pad(x.astype(jnp.float32),
                 ((0, n_pad - n), (0, 0), (0, 0), (C0, stride - C0 - W)))
    x_slab = (xp.reshape(G, bpg, CH, H, stride)
              .transpose(0, 2, 3, 1, 4)
              .reshape(G, CH, H, CA))

    kern = functools.partial(
        _tcn_kernel, W=W, k=kernel_size, num_levels=num_levels, layout=layout,
        R0=R0, C0=C0, stride=stride, bpg=bpg, w_final=w_final)

    out = pl.pallas_call(
        kern,
        grid=(G,),
        in_specs=[
            pl.BlockSpec(memory_space=pltpu.SMEM),                    # packed weights
            pl.BlockSpec((None, CH, H, CA), lambda i: (i, 0, 0, 0)),  # input slab
        ],
        out_specs=pl.BlockSpec((None, CH, H, bpg * w_final),
                               lambda i: (i, 0, 0, 0)),
        out_shape=jax.ShapeDtypeStruct((G, CH, H, bpg * w_final), jnp.float32),
        scratch_shapes=[
            pltpu.VMEM((CH, RA, CA), jnp.float32),   # running activation (self-padded)
            pltpu.VMEM((CH, RA, CA), jnp.float32),   # conv1 output (self-padded)
        ],
        compiler_params=pltpu.CompilerParams(dimension_semantics=("parallel",)),
    )(wb, x_slab)

    y = (out.reshape(G, CH, H, bpg, w_final)
         .transpose(0, 3, 1, 2, 4)
         .reshape(n_pad, CH, H, w_final))
    return y[:n]


def init_params(key, num_levels, kernel_size):
    params = []
    for i in range(num_levels):
        p = (kernel_size - 1) * (2 ** i)
        keys = jax.random.split(jax.random.fold_in(key, i), 8)
        params.append({
            "conv1_v": 0.01 * jax.random.normal(keys[0], (CH, CH, kernel_size, kernel_size), jnp.float32),
            "conv1_g": 1.0 + 0.1 * jax.random.normal(keys[1], (CH,), jnp.float32),
            "conv1_b": 0.01 * jax.random.normal(keys[2], (CH,), jnp.float32),
            "conv2_v": 0.01 * jax.random.normal(keys[3], (CH, CH, kernel_size, kernel_size), jnp.float32),
            "conv2_g": 1.0 + 0.1 * jax.random.normal(keys[4], (CH,), jnp.float32),
            "conv2_b": 0.01 * jax.random.normal(keys[5], (CH,), jnp.float32),
            "down_w": 0.01 * jax.random.normal(keys[6], (CH, CH, 2 * p + 1, 1), jnp.float32),
            "down_b": 0.01 * jax.random.normal(keys[7], (CH,), jnp.float32),
        })
    return params


def reference_forward(x, params, kernel_size):
    """Pure-XLA replica of the PyTorch forward (symmetric pad + Chomp1d)."""
    def conv(z, w, b, pad, dil):
        y = lax.conv_general_dilated(
            z, w, window_strides=(1, 1),
            padding=((pad, pad), (pad, pad)),
            rhs_dilation=(dil, dil),
            dimension_numbers=("NCHW", "OIHW", "NCHW"),
            precision=lax.Precision.HIGHEST)
        return y + b.reshape(1, -1, 1, 1)

    for i, blk in enumerate(params):
        d = 2 ** i
        p = (kernel_size - 1) * d
        w1 = weight_norm(blk["conv1_v"], blk["conv1_g"])
        w2 = weight_norm(blk["conv2_v"], blk["conv2_g"])
        out = jnp.tanh(conv(x, w1, blk["conv1_b"], p, d)[:, :, :-p])    # chomp H
        out = jnp.tanh(conv(out, w2, blk["conv2_b"], p, d)[:, :, :-p])  # chomp H
        res = conv(x, blk["down_w"], blk["down_b"], p, 1)
        x = jax.nn.relu(out + res)
    return x


if __name__ == "__main__":
    key = jax.random.PRNGKey(0)
    kx, kp = jax.random.split(key)

    # Input: NCHW; the torch module hard-codes 5 channels in every block.
    N, C, H, W = 2, 5, 8, 8
    kernel_size = 2
    num_channels = [5, 5]   # 2 TCN levels (dilations 1, 2) — channel width fixed at 5

    x = jax.random.normal(kx, (N, C, H, W), dtype=jnp.float32)
    params = init_params(kp, len(num_channels), kernel_size)

    y = temporal_conv_net(x, params, kernel_size)
    y = jax.block_until_ready(y)

    expected_w = W + 2 * sum((kernel_size - 1) * (2 ** i) for i in range(len(num_channels)))
    assert y.shape == (N, CH, H, expected_w), y.shape
    assert bool(jnp.all(jnp.isfinite(y)))

    # Validate against a pure-XLA replica of the PyTorch forward.
    y_ref = reference_forward(x, params, kernel_size)
    assert bool(jnp.allclose(y, y_ref, atol=1e-3, rtol=1e-3)), \
        float(jnp.max(jnp.abs(y - y_ref)))

    print("KERNEL_OK")
</pallas_src>

<mosaic_0001>
module attributes {stable_mosaic.version = 11 : i64} {
  func.func @_tcn_kernel(%arg0: i32, %arg1: memref<630xf32, #tpu.memory_space<smem>>, %arg2: memref<1x5x8x32xf32, #tpu.memory_space<vmem>>, %arg3: memref<1x5x8x28xf32, #tpu.memory_space<vmem>>, %arg4: memref<5x18x32xf32, #tpu.memory_space<vmem>>, %arg5: memref<5x18x32xf32, #tpu.memory_space<vmem>>) attributes {dimension_semantics = [#tpu.dimension_semantics<parallel>], iteration_bounds = array<i64: 1>, scalar_prefetch = 0 : i64, scratch_operands = 2 : i64, tpu.core_type = #tpu.core_type<tc>, window_params = [{transform_indices = @transform_0, window_bounds = array<i64: 630>}, {transform_indices = @transform_1, window_bounds = array<i64: 1, 5, 8, 32>}, {transform_indices = @transform_2, window_bounds = array<i64: 1, 5, 8, 28>}]} {
    %cst = arith.constant 0.000000e+00 : f32
    %0 = vector.broadcast %cst : f32 to vector<5x18x32xf32>
    %c0 = arith.constant 0 : index
    %c0_0 = arith.constant 0 : index
    %c0_1 = arith.constant 0 : index
    %1 = vector.load %arg5[%c0, %c0_0, %c0_1] : memref<5x18x32xf32, #tpu.memory_space<vmem>>, vector<5x18x32xf32>
    tpu.vector_store %arg5[%c0, %c0_0, %c0_1], %0 {strides = array<i32>} : memref<5x18x32xf32, #tpu.memory_space<vmem>>, vector<5x18x32xf32>,
    %cst_2 = arith.constant 0.000000e+00 : f32
    %2 = vector.broadcast %cst_2 : f32 to vector<5x8x32xf32>
    %c0_3 = arith.constant 0 : index
    %c0_4 = arith.constant 0 : index
    %c0_5 = arith.constant 0 : index
    %3 = vector.load %arg4[%c0_3, %c0_4, %c0_5] : memref<5x18x32xf32, #tpu.memory_space<vmem>>, vector<5x8x32xf32>
    tpu.vector_store %arg4[%c0_3, %c0_4, %c0_5], %2 {strides = array<i32>} : memref<5x18x32xf32, #tpu.memory_space<vmem>>, vector<5x8x32xf32>,
    %cst_6 = arith.constant 0.000000e+00 : f32
    %4 = vector.broadcast %cst_6 : f32 to vector<5x2x32xf32>
    %c0_7 = arith.constant 0 : index
    %c16 = arith.constant 16 : index
    %c0_8 = arith.constant 0 : index
    %5 = vector.load %arg4[%c0_7, %c16, %c0_8] : memref<5x18x32xf32, #tpu.memory_space<vmem>>, vector<5x2x32xf32>
    tpu.vector_store %arg4[%c0_7, %c16, %c0_8], %4 {strides = array<i32>} : memref<5x18x32xf32, #tpu.memory_space<vmem>>, vector<5x2x32xf32>,
    %c0_9 = arith.constant 0 : index
    %c0_10 = arith.constant 0 : index
    %c0_11 = arith.constant 0 : index
    %c0_12 = arith.constant 0 : index
    %6 = vector.load %arg2[%c0_9, %c0_10, %c0_11, %c0_12] : memref<1x5x8x32xf32, #tpu.memory_space<vmem>>, vector<1x5x8x32xf32>
    %7 = vector.shape_cast %6 : vector<1x5x8x32xf32> to vector<5x8x32xf32>
    %c0_13 = arith.constant 0 : index
    %c8 = arith.constant 8 : index
    %c0_14 = arith.constant 0 : index
    %8 = vector.load %arg4[%c0_13, %c8, %c0_14] : memref<5x18x32xf32, #tpu.memory_space<vmem>>, vector<5x8x32xf32>
    tpu.vector_store %arg4[%c0_13, %c8, %c0_14], %7 {strides = array<i32>} : memref<5x18x32xf32, #tpu.memory_space<vmem>>, vector<5x8x32xf32>,
    %c0_15 = arith.constant 0 : index
    %c7 = arith.constant 7 : index
    %c1 = arith.constant 1 : index
    %9 = vector.load %arg4[%c0_15, %c7, %c1] : memref<5x18x32xf32, #tpu.memory_space<vmem>>, vector<1x8x30xf32>
    %10 = vector.shape_cast %9 : vector<1x8x30xf32> to vector<8x30xf32>
    %c0_16 = arith.constant 0 : index
    %11 = memref.load %arg1[%c0_16] : memref<630xf32, #tpu.memory_space<smem>>
    %12 = vector.broadcast %11 : f32 to vector<8x30xf32>
    %13 = arith.mulf %12, %10 : vector<8x30xf32>
    %c20 = arith.constant 20 : index
    %14 = memref.load %arg1[%c20] : memref<630xf32, #tpu.memory_space<smem>>
    %15 = vector.broadcast %14 : f32 to vector<8x30xf32>
    %16 = arith.mulf %15, %10 : vector<8x30xf32>
    %c40 = arith.constant 40 : index
    %17 = memref.load %arg1[%c40] : memref<630xf32, #tpu.memory_space<smem>>
    %18 = vector.broadcast %17 : f32 to vector<8x30xf32>
    %19 = arith.mulf %18, %10 : vector<8x30xf32>
    %c60 = arith.constant 60 : index
    %20 = memref.load %arg1[%c60] : memref<630xf32, #tpu.memory_space<smem>>
    %21 = vector.broadcast %20 : f32 to vector<8x30xf32>
    %22 = arith.mulf %21, %10 : vector<8x30xf32>
    %c80 = arith.constant 80 : index
    %23 = memref.load %arg1[%c80] : memref<630xf32, #tpu.memory_space<smem>>
    %24 = vector.broadcast %23 : f32 to vector<8x30xf32>
    %25 = arith.mulf %24, %10 : vector<8x30xf32>
    %c0_17 = arith.constant 0 : index
    %c7_18 = arith.constant 7 : index
    %c2 = arith.constant 2 : index
    %26 = vector.load %arg4[%c0_17, %c7_18, %c2] : memref<5x18x32xf32, #tpu.memory_space<vmem>>, vector<1x8x30xf32>
    %27 = vector.shape_cast %26 : vector<1x8x30xf32> to vector<8x30xf32>
    %c1_19 = arith.constant 1 : index
    %28 = memref.load %arg1[%c1_19] : memref<630xf32, #tpu.memory_space<smem>>
    %29 = vector.broadcast %28 : f32 to vector<8x30xf32>
    %30 = arith.mulf %29, %27 : vector<8x30xf32>
    %31 = arith.addf %13, %30 : vector<8x30xf32>
    %c21 = arith.constant 21 : index
    %32 = memref.load %arg1[%c21] : memref<630xf32, #tpu.memory_space<smem>>
    %33 = vector.broadcast %32 : f32 to vector<8x30xf32>
    %34 = arith.mulf %33, %27 : vector<8x30xf32>
    %35 = arith.addf %16, %34 : vector<8x30xf32>
    %c41 = arith.constant 41 : index
    %36 = memref.load %arg1[%c41] : memref<630xf32, #tpu.memory_space<smem>>
    %37 = vector.broadcast %36 : f32 to vector<8x30xf32>
    %38 = arith.mulf %37, %27 : vector<8x30xf32>
    %39 = arith.addf %19, %38 : vector<8x30xf32>
    %c61 = arith.constant 61 : index
    %40 = memref.load %arg1[%c61] : memref<630xf32, #tpu.memory_space<smem>>
    %41 = vector.broadcast %40 : f32 to vector<8x30xf32>
    %42 = arith.mulf %41, %27 : vector<8x30xf32>
    %43 = arith.addf %22, %42 : vector<8x30xf32>
    %c81 = arith.constant 81 : index
    %44 = memref.load %arg1[%c81] : memref<630xf32, #tpu.memory_space<smem>>
    %45 = vector.broadcast %44 : f32 to vector<8x30xf32>
    %46 = arith.mulf %45, %27 : vector<8x30xf32>
    %47 = arith.addf %25, %46 : vector<8x30xf32>
    %c0_20 = arith.constant 0 : index
    %c8_21 = arith.constant 8 : index
    %c1_22 = arith.constant 1 : index
    %48 = vector.load %arg4[%c0_20, %c8_21, %c1_22] : memref<5x18x32xf32, #tpu.memory_space<vmem>>, vector<1x8x30xf32>
    %49 = vector.shape_cast %48 : vector<1x8x30xf32> to vector<8x30xf32>
    %c2_23 = arith.constant 2 : index
    %50 = memref.load %arg1[%c2_23] : memref<630xf32, #tpu.memory_space<smem>>
    %51 = vector.broadcast %50 : f32 to vector<8x30xf32>
    %52 = arith.mulf %51, %49 : vector<8x30xf32>
    %53 = arith.addf %31, %52 : vector<8x30xf32>
    %c22 = arith.constant 22 : index
    %54 = memref.load %arg1[%c22] : memref<630xf32, #tpu.memory_space<smem>>
    %55 = vector.broadcast %54 : f32 to vector<8x30xf32>
    %56 = arith.mulf %55, %49 : vector<8x30xf32>
    %57 = arith.addf %35, %56 : vector<8x30xf32>
    %c42 = arith.constant 42 : index
    %58 = memref.load %arg1[%c42] : memref<630xf32, #tpu.memory_space<smem>>
    %59 = vector.broadcast %58 : f32 to vector<8x30xf32>
    %60 = arith.mulf %59, %49 : vector<8x30xf32>
    %61 = arith.addf %39, %60 : vector<8x30xf32>
    %c62 = arith.constant 62 : index
    %62 = memref.load %arg1[%c62] : memref<630xf32, #tpu.memory_space<smem>>
    %63 = vector.broadcast %62 : f32 to vector<8x30xf32>
    %64 = arith.mulf %63, %49 : vector<8x30xf32>
    %65 = arith.addf %43, %64 : vector<8x30xf32>
    %c82 = arith.constant 82 : index
    %66 = memref.load %arg1[%c82] : memref<630xf32, #tpu.memory_space<smem>>
    %67 = vector.broadcast %66 : f32 to vector<8x30xf32>
    %68 = arith.mulf %67, %49 : vector<8x30xf32>
    %69 = arith.addf %47, %68 : vector<8x30xf32>
    %c0_24 = arith.constant 0 : index
    %c8_25 = arith.constant 8 : index
    %c2_26 = arith.constant 2 : index
    %70 = vector.load %arg4[%c0_24, %c8_25, %c2_26] : memref<5x18x32xf32, #tpu.memory_space<vmem>>, vector<1x8x30xf32>
    %71 = vector.shape_cast %70 : vector<1x8x30xf32> to vector<8x30xf32>
    %c3 = arith.constant 3 : index
    %72 = memref.load %arg1[%c3] : memref<630xf32, #tpu.memory_space<smem>>
    %73 = vector.broadcast %72 : f32 to vector<8x30xf32>
    %74 = arith.mulf %73, %71 : vector<8x30xf32>
    %75 = arith.addf %53, %74 : vector<8x30xf32>
    %c23 = arith.constant 23 : index
    %76 = memref.load %arg1[%c23] : memref<630xf32, #tpu.memory_space<smem>>
    %77 = vector.broadcast %76 : f32 to vector<8x30xf32>
    %78 = arith.mulf %77, %71 : vector<8x30xf32>
    %79 = arith.addf %57, %78 : vector<8x30xf32>
    %c43 = arith.constant 43 : index
    %80 = memref.load %arg1[%c43] : memref<630xf32, #tpu.memory_space<smem>>
    %81 = vector.broadcast %80 : f32 to vector<8x30xf32>
    %82 = arith.mulf %81, %71 : vector<8x30xf32>
    %83 = arith.addf %61, %82 : vector<8x30xf32>
    %c63 = arith.constant 63 : index
    %84 = memref.load %arg1[%c63] : memref<630xf32, #tpu.memory_space<smem>>
    %85 = vector.broadcast %84 : f32 to vector<8x30xf32>
    %86 = arith.mulf %85, %71 : vector<8x30xf32>
    %87 = arith.addf %65, %86 : vector<8x30xf32>
    %c83 = arith.constant 83 : index
    %88 = memref.load %arg1[%c83] : memref<630xf32, #tpu.memory_space<smem>>
    %89 = vector.broadcast %88 : f32 to vector<8x30xf32>
    %90 = arith.mulf %89, %71 : vector<8x30xf32>
    %91 = arith.addf %69, %90 : vector<8x30xf32>
    %c1_27 = arith.constant 1 : index
    %c7_28 = arith.constant 7 : index
    %c1_29 = arith.constant 1 : index
    %92 = vector.load %arg4[%c1_27, %c7_28, %c1_29] : memref<5x18x32xf32, #tpu.memory_space<vmem>>, vector<1x8x30xf32>
    %93 = vector.shape_cast %92 : vector<1x8x30xf32> to vector<8x30xf32>
    %c4 = arith.constant 4 : index
    %94 = memref.load %arg1[%c4] : memref<630xf32, #tpu.memory_space<smem>>
    %95 = vector.broadcast %94 : f32 to vector<8x30xf32>
    %96 = arith.mulf %95, %93 : vector<8x30xf32>
    %97 = arith.addf %75, %96 : vector<8x30xf32>
    %c24 = arith.constant 24 : index
    %98 = memref.load %arg1[%c24] : memref<630xf32, #tpu.memory_space<smem>>
    %99 = vector.broadcast %98 : f32 to vector<8x30xf32>
    %100 = arith.mulf %99, %93 : vector<8x30xf32>
    %101 = arith.addf %79, %100 : vector<8x30xf32>
    %c44 = arith.constant 44 : index
    %102 = memref.load %arg1[%c44] : memref<630xf32, #tpu.memory_space<smem>>
    %103 = vector.broadcast %102 : f32 to vector<8x30xf32>
    %104 = arith.mulf %103, %93 : vector<8x30xf32>
    %105 = arith.addf %83, %104 : vector<8x30xf32>
    %c64 = arith.constant 64 : index
    %106 = memref.load %arg1[%c64] : memref<630xf32, #tpu.memory_space<smem>>
    %107 = vector.broadcast %106 : f32 to vector<8x30xf32>
    %108 = arith.mulf %107, %93 : vector<8x30xf32>
    %109 = arith.addf %87, %108 : vector<8x30xf32>
    %c84 = arith.constant 84 : index
    %110 = memref.load %arg1[%c84] : memref<630xf32, #tpu.memory_space<smem>>
    %111 = vector.broadcast %110 : f32 to vector<8x30xf32>
    %112 = arith.mulf %111, %93 : vector<8x30xf32>
    %113 = arith.addf %91, %112 : vector<8x30xf32>
    %c1_30 = arith.constant 1 : index
    %c7_31 = arith.constant 7 : index
    %c2_32 = arith.constant 2 : index
    %114 = vector.load %arg4[%c1_30, %c7_31, %c2_32] : memref<5x18x32xf32, #tpu.memory_space<vmem>>, vector<1x8x30xf32>
    %115 = vector.shape_cast %114 : vector<1x8x30xf32> to vector<8x30xf32>
    %c5 = arith.constant 5 : index
    %116 = memref.load %arg1[%c5] : memref<630xf32, #tpu.memory_space<smem>>
    %117 = vector.broadcast %116 : f32 to vector<8x30xf32>
    %118 = arith.mulf %117, %115 : vector<8x30xf32>
    %119 = arith.addf %97, %118 : vector<8x30xf32>
    %c25 = arith.constant 25 : index
    %120 = memref.load %arg1[%c25] : memref<630xf32, #tpu.memory_space<smem>>
    %121 = vector.broadcast %120 : f32 to vector<8x30xf32>
    %122 = arith.mulf %121, %115 : vector<8x30xf32>
    %123 = arith.addf %101, %122 : vector<8x30xf32>
    %c45 = arith.constant 45 : index
    %124 = memref.load %arg1[%c45] : memref<630xf32, #tpu.memory_space<smem>>
    %125 = vector.broadcast %124 : f32 to vector<8x30xf32>
    %126 = arith.mulf %125, %115 : vector<8x30xf32>
    %127 = arith.addf %105, %126 : vector<8x30xf32>
    %c65 = arith.constant 65 : index
    %128 = memref.load %arg1[%c65] : memref<630xf32, #tpu.memory_space<smem>>
    %129 = vector.broadcast %128 : f32 to vector<8x30xf32>
    %130 = arith.mulf %129, %115 : vector<8x30xf32>
    %131 = arith.addf %109, %130 : vector<8x30xf32>
    %c85 = arith.constant 85 : index
    %132 = memref.load %arg1[%c85] : memref<630xf32, #tpu.memory_space<smem>>
    %133 = vector.broadcast %132 : f32 to vector<8x30xf32>
    %134 = arith.mulf %133, %115 : vector<8x30xf32>
    %135 = arith.addf %113, %134 : vector<8x30xf32>
    %c1_33 = arith.constant 1 : index
    %c8_34 = arith.constant 8 : index
    %c1_35 = arith.constant 1 : index
    %136 = vector.load %arg4[%c1_33, %c8_34, %c1_35] : memref<5x18x32xf32, #tpu.memory_space<vmem>>, vector<1x8x30xf32>
    %137 = vector.shape_cast %136 : vector<1x8x30xf32> to vector<8x30xf32>
    %c6 = arith.constant 6 : index
    %138 = memref.load %arg1[%c6] : memref<630xf32, #tpu.memory_space<smem>>
    %139 = vector.broadcast %138 : f32 to vector<8x30xf32>
    %140 = arith.mulf %139, %137 : vector<8x30xf32>
    %141 = arith.addf %119, %140 : vector<8x30xf32>
    %c26 = arith.constant 26 : index
    %142 = memref.load %arg1[%c26] : memref<630xf32, #tpu.memory_space<smem>>
    %143 = vector.broadcast %142 : f32 to vector<8x30xf32>
    %144 = arith.mulf %143, %137 : vector<8x30xf32>
    %145 = arith.addf %123, %144 : vector<8x30xf32>
    %c46 = arith.constant 46 : index
    %146 = memref.load %arg1[%c46] : memref<630xf32, #tpu.memory_space<smem>>
    %147 = vector.broadcast %146 : f32 to vector<8x30xf32>
    %148 = arith.mulf %147, %137 : vector<8x30xf32>
    %149 = arith.addf %127, %148 : vector<8x30xf32>
    %c66 = arith.constant 66 : index
    %150 = memref.load %arg1[%c66] : memref<630xf32, #tpu.memory_space<smem>>
    %151 = vector.broadcast %150 : f32 to vector<8x30xf32>
    %152 = arith.mulf %151, %137 : vector<8x30xf32>
    %153 = arith.addf %131, %152 : vector<8x30xf32>
    %c86 = arith.constant 86 : index
    %154 = memref.load %arg1[%c86] : memref<630xf32, #tpu.memory_space<smem>>
    %155 = vector.broadcast %154 : f32 to vector<8x30xf32>
    %156 = arith.mulf %155, %137 : vector<8x30xf32>
    %157 = arith.addf %135, %156 : vector<8x30xf32>
    %c1_36 = arith.constant 1 : index
    %c8_37 = arith.constant 8 : index
    %c2_38 = arith.constant 2 : index
    %158 = vector.load %arg4[%c1_36, %c8_37, %c2_38] : memref<5x18x32xf32, #tpu.memory_space<vmem>>, vector<1x8x30xf32>
    %159 = vector.shape_cast %158 : vector<1x8x30xf32> to vector<8x30xf32>
    %c7_39 = arith.constant 7 : index
    %160 = memref.load %arg1[%c7_39] : memref<630xf32, #tpu.memory_space<smem>>
    %161 = vector.broadcast %160 : f32 to vector<8x30xf32>
    %162 = arith.mulf %161, %159 : vector<8x30xf32>
    %163 = arith.addf %141, %162 : vector<8x30xf32>
    %c27 = arith.constant 27 : index
    %164 = memref.load %arg1[%c27] : memref<630xf32, #tpu.memory_space<smem>>
    %165 = vector.broadcast %164 : f32 to vector<8x30xf32>
    %166 = arith.mulf %165, %159 : vector<8x30xf32>
    %167 = arith.addf %145, %166 : vector<8x30xf32>
    %c47 = arith.constant 47 : index
    %168 = memref.load %arg1[%c47] : memref<630xf32, #tpu.memory_space<smem>>
    %169 = vector.broadcast %168 : f32 to vector<8x30xf32>
    %170 = arith.mulf %169, %159 : vector<8x30xf32>
    %171 = arith.addf %149, %170 : vector<8x30xf32>
    %c67 = arith.constant 67 : index
    %172 = memref.load %arg1[%c67] : memref<630xf32, #tpu.memory_space<smem>>
    %173 = vector.broadcast %172 : f32 to vector<8x30xf32>
    %174 = arith.mulf %173, %159 : vector<8x30xf32>
    %175 = arith.addf %153, %174 : vector<8x30xf32>
    %c87 = arith.constant 87 : index
    %176 = memref.load %arg1[%c87] : memref<630xf32, #tpu.memory_space<smem>>
    %177 = vector.broadcast %176 : f32 to vector<8x30xf32>
    %178 = arith.mulf %177, %159 : vector<8x30xf32>
    %179 = arith.addf %157, %178 : vector<8x30xf32>
    %c2_40 = arith.constant 2 : index
    %c7_41 = arith.constant 7 : index
    %c1_42 = arith.constant 1 : index
    %180 = vector.load %arg4[%c2_40, %c7_41, %c1_42] : memref<5x18x32xf32, #tpu.memory_space<vmem>>, vector<1x8x30xf32>
    %181 = vector.shape_cast %180 : vector<1x8x30xf32> to vector<8x30xf32>
    %c8_43 = arith.constant 8 : index
    %182 = memref.load %arg1[%c8_43] : memref<630xf32, #tpu.memory_space<smem>>
    %183 = vector.broadcast %182 : f32 to vector<8x30xf32>
    %184 = arith.mulf %183, %181 : vector<8x30xf32>
    %185 = arith.addf %163, %184 : vector<8x30xf32>
    %c28 = arith.constant 28 : index
    %186 = memref.load %arg1[%c28] : memref<630xf32, #tpu.memory_space<smem>>
    %187 = vector.broadcast %186 : f32 to vector<8x30xf32>
    %188 = arith.mulf %187, %181 : vector<8x30xf32>
    %189 = arith.addf %167, %188 : vector<8x30xf32>
    %c48 = arith.constant 48 : index
    %190 = memref.load %arg1[%c48] : memref<630xf32, #tpu.memory_space<smem>>
    %191 = vector.broadcast %190 : f32 to vector<8x30xf32>
    %192 = arith.mulf %191, %181 : vector<8x30xf32>
    %193 = arith.addf %171, %192 : vector<8x30xf32>
    %c68 = arith.constant 68 : index
    %194 = memref.load %arg1[%c68] : memref<630xf32, #tpu.memory_space<smem>>
    %195 = vector.broadcast %194 : f32 to vector<8x30xf32>
    %196 = arith.mulf %195, %181 : vector<8x30xf32>
    %197 = arith.addf %175, %196 : vector<8x30xf32>
    %c88 = arith.constant 88 : index
    %198 = memref.load %arg1[%c88] : memref<630xf32, #tpu.memory_space<smem>>
    %199 = vector.broadcast %198 : f32 to vector<8x30xf32>
    %200 = arith.mulf %199, %181 : vector<8x30xf32>
    %201 = arith.addf %179, %200 : vector<8x30xf32>
    %c2_44 = arith.constant 2 : index
    %c7_45 = arith.constant 7 : index
    %c2_46 = arith.constant 2 : index
    %202 = vector.load %arg4[%c2_44, %c7_45, %c2_46] : memref<5x18x32xf32, #tpu.memory_space<vmem>>, vector<1x8x30xf32>
    %203 = vector.shape_cast %202 : vector<1x8x30xf32> to vector<8x30xf32>
    %c9 = arith.constant 9 : index
    %204 = memref.load %arg1[%c9] : memref<630xf32, #tpu.memory_space<smem>>
    %205 = vector.broadcast %204 : f32 to vector<8x30xf32>
    %206 = arith.mulf %205, %203 : vector<8x30xf32>
    %207 = arith.addf %185, %206 : vector<8x30xf32>
    %c29 = arith.constant 29 : index
    %208 = memref.load %arg1[%c29] : memref<630xf32, #tpu.memory_space<smem>>
    %209 = vector.broadcast %208 : f32 to vector<8x30xf32>
    %210 = arith.mulf %209, %203 : vector<8x30xf32>
    %211 = arith.addf %189, %210 : vector<8x30xf32>
    %c49 = arith.constant 49 : index
    %212 = memref.load %arg1[%c49] : memref<630xf32, #tpu.memory_space<smem>>
    %213 = vector.broadcast %212 : f32 to vector<8x30xf32>
    %214 = arith.mulf %213, %203 : vector<8x30xf32>
    %215 = arith.addf %193, %214 : vector<8x30xf32>
    %c69 = arith.constant 69 : index
    %216 = memref.load %arg1[%c69] : memref<630xf32, #tpu.memory_space<smem>>
    %217 = vector.broadcast %216 : f32 to vector<8x30xf32>
    %218 = arith.mulf %217, %203 : vector<8x30xf32>
    %219 = arith.addf %197, %218 : vector<8x30xf32>
    %c89 = arith.constant 89 : index
    %220 = memref.load %arg1[%c89] : memref<630xf32, #tpu.memory_space<smem>>
    %221 = vector.broadcast %220 : f32 to vector<8x30xf32>
    %222 = arith.mulf %221, %203 : vector<8x30xf32>
    %223 = arith.addf %201, %222 : vector<8x30xf32>
    %c2_47 = arith.constant 2 : index
    %c8_48 = arith.constant 8 : index
    %c1_49 = arith.constant 1 : index
    %224 = vector.load %arg4[%c2_47, %c8_48, %c1_49] : memref<5x18x32xf32, #tpu.memory_space<vmem>>, vector<1x8x30xf32>
    %225 = vector.shape_cast %224 : vector<1x8x30xf32> to vector<8x30xf32>
    %c10 = arith.constant 10 : index
    %226 = memref.load %arg1[%c10] : memref<630xf32, #tpu.memory_space<smem>>
    %227 = vector.broadcast %226 : f32 to vector<8x30xf32>
    %228 = arith.mulf %227, %225 : vector<8x30xf32>
    %229 = arith.addf %207, %228 : vector<8x30xf32>
    %c30 = arith.constant 30 : index
    %230 = memref.load %arg1[%c30] : memref<630xf32, #tpu.memory_space<smem>>
    %231 = vector.broadcast %230 : f32 to vector<8x30xf32>
    %232 = arith.mulf %231, %225 : vector<8x30xf32>
    %233 = arith.addf %211, %232 : vector<8x30xf32>
    %c50 = arith.constant 50 : index
    %234 = memref.load %arg1[%c50] : memref<630xf32, #tpu.memory_space<smem>>
    %235 = vector.broadcast %234 : f32 to vector<8x30xf32>
    %236 = arith.mulf %235, %225 : vector<8x30xf32>
    %237 = arith.addf %215, %236 : vector<8x30xf32>
    %c70 = arith.constant 70 : index
    %238 = memref.load %arg1[%c70] : memref<630xf32, #tpu.memory_space<smem>>
    %239 = vector.broadcast %238 : f32 to vector<8x30xf32>
    %240 = arith.mulf %239, %225 : vector<8x30xf32>
    %241 = arith.addf %219, %240 : vector<8x30xf32>
    %c90 = arith.constant 90 : index
    %242 = memref.load %arg1[%c90] : memref<630xf32, #tpu.memory_space<smem>>
    %243 = vector.broadcast %242 : f32 to vector<8x30xf32>
    %244 = arith.mulf %243, %225 : vector<8x30xf32>
    %245 = arith.addf %223, %244 : vector<8x30xf32>
    %c2_50 = arith.constant 2 : index
    %c8_51 = arith.constant 8 : index
    %c2_52 = arith.constant 2 : index
    %246 = vector.load %arg4[%c2_50, %c8_51, %c2_52] : memref<5x18x32xf32, #tpu.memory_space<vmem>>, vector<1x8x30xf32>
    %247 = vector.shape_cast %246 : vector<1x8x30xf32> to vector<8x30xf32>
    %c11 = arith.constant 11 : index
    %248 = memref.load %arg1[%c11] : memref<630xf32, #tpu.memory_space<smem>>
    %249 = vector.broadcast %248 : f32 to vector<8x30xf32>
    %250 = arith.mulf %249, %247 : vector<8x30xf32>
    %251 = arith.addf %229, %250 : vector<8x30xf32>
    %c31 = arith.constant 31 : index
    %252 = memref.load %arg1[%c31] : memref<630xf32, #tpu.memory_space<smem>>
    %253 = vector.broadcast %252 : f32 to vector<8x30xf32>
    %254 = arith.mulf %253, %247 : vector<8x30xf32>
    %255 = arith.addf %233, %254 : vector<8x30xf32>
    %c51 = arith.constant 51 : index
    %256 = memref.load %arg1[%c51] : memref<630xf32, #tpu.memory_space<smem>>
    %257 = vector.broadcast %256 : f32 to vector<8x30xf32>
    %258 = arith.mulf %257, %247 : vector<8x30xf32>
    %259 = arith.addf %237, %258 : vector<8x30xf32>
    %c71 = arith.constant 71 : index
    %260 = memref.load %arg1[%c71] : memref<630xf32, #tpu.memory_space<smem>>
    %261 = vector.broadcast %260 : f32 to vector<8x30xf32>
    %262 = arith.mulf %261, %247 : vector<8x30xf32>
    %263 = arith.addf %241, %262 : vector<8x30xf32>
    %c91 = arith.constant 91 : index
    %264 = memref.load %arg1[%c91] : memref<630xf32, #tpu.memory_space<smem>>
    %265 = vector.broadcast %264 : f32 to vector<8x30xf32>
    %266 = arith.mulf %265, %247 : vector<8x30xf32>
    %267 = arith.addf %245, %266 : vector<8x30xf32>
    %c3_53 = arith.constant 3 : index
    %c7_54 = arith.constant 7 : index
    %c1_55 = arith.constant 1 : index
    %268 = vector.load %arg4[%c3_53, %c7_54, %c1_55] : memref<5x18x32xf32, #tpu.memory_space<vmem>>, vector<1x8x30xf32>
    %269 = vector.shape_cast %268 : vector<1x8x30xf32> to vector<8x30xf32>
    %c12 = arith.constant 12 : index
    %270 = memref.load %arg1[%c12] : memref<630xf32, #tpu.memory_space<smem>>
    %271 = vector.broadcast %270 : f32 to vector<8x30xf32>
    %272 = arith.mulf %271, %269 : vector<8x30xf32>
    %273 = arith.addf %251, %272 : vector<8x30xf32>
    %c32 = arith.constant 32 : index
    %274 = memref.load %arg1[%c32] : memref<630xf32, #tpu.memory_space<smem>>
    %275 = vector.broadcast %274 : f32 to vector<8x30xf32>
    %276 = arith.mulf %275, %269 : vector<8x30xf32>
    %277 = arith.addf %255, %276 : vector<8x30xf32>
    %c52 = arith.constant 52 : index
    %278 = memref.load %arg1[%c52] : memref<630xf32, #tpu.memory_space<smem>>
    %279 = vector.broadcast %278 : f32 to vector<8x30xf32>
    %280 = arith.mulf %279, %269 : vector<8x30xf32>
    %281 = arith.addf %259, %280 : vector<8x30xf32>
    %c72 = arith.constant 72 : index
    %282 = memref.load %arg1[%c72] : memref<630xf32, #tpu.memory_space<smem>>
    %283 = vector.broadcast %282 : f32 to vector<8x30xf32>
    %284 = arith.mulf %283, %269 : vector<8x30xf32>
    %285 = arith.addf %263, %284 : vector<8x30xf32>
    %c92 = arith.constant 92 : index
    %286 = memref.load %arg1[%c92] : memref<630xf32, #tpu.memory_space<smem>>
    %287 = vector.broadcast %286 : f32 to vector<8x30xf32>
    %288 = arith.mulf %287, %269 : vector<8x30xf32>
    %289 = arith.addf %267, %288 : vector<8x30xf32>
    %c3_56 = arith.constant 3 : index
    %c7_57 = arith.constant 7 : index
    %c2_58 = arith.constant 2 : index
    %290 = vector.load %arg4[%c3_56, %c7_57, %c2_58] : memref<5x18x32xf32, #tpu.memory_space<vmem>>, vector<1x8x30xf32>
    %291 = vector.shape_cast %290 : vector<1x8x30xf32> to vector<8x30xf32>
    %c13 = arith.constant 13 : index
    %292 = memref.load %arg1[%c13] : memref<630xf32, #tpu.memory_space<smem>>
    %293 = vector.broadcast %292 : f32 to vector<8x30xf32>
    %294 = arith.mulf %293, %291 : vector<8x30xf32>
    %295 = arith.addf %273, %294 : vector<8x30xf32>
    %c33 = arith.constant 33 : index
    %296 = memref.load %arg1[%c33] : memref<630xf32, #tpu.memory_space<smem>>
    %297 = vector.broadcast %296 : f32 to vector<8x30xf32>
    %298 = arith.mulf %297, %291 : vector<8x30xf32>
    %299 = arith.addf %277, %298 : vector<8x30xf32>
    %c53 = arith.constant 53 : index
    %300 = memref.load %arg1[%c53] : memref<630xf32, #tpu.memory_space<smem>>
    %301 = vector.broadcast %300 : f32 to vector<8x30xf32>
    %302 = arith.mulf %301, %291 : vector<8x30xf32>
    %303 = arith.addf %281, %302 : vector<8x30xf32>
    %c73 = arith.constant 73 : index
    %304 = memref.load %arg1[%c73] : memref<630xf32, #tpu.memory_space<smem>>
    %305 = vector.broadcast %304 : f32 to vector<8x30xf32>
    %306 = arith.mulf %305, %291 : vector<8x30xf32>
    %307 = arith.addf %285, %306 : vector<8x30xf32>
    %c93 = arith.constant 93 : index
    %308 = memref.load %arg1[%c93] : memref<630xf32, #tpu.memory_space<smem>>
    %309 = vector.broadcast %308 : f32 to vector<8x30xf32>
    %310 = arith.mulf %309, %291 : vector<8x30xf32>
    %311 = arith.addf %289, %310 : vector<8x30xf32>
    %c3_59 = arith.constant 3 : index
    %c8_60 = arith.constant 8 : index
    %c1_61 = arith.constant 1 : index
    %312 = vector.load %arg4[%c3_59, %c8_60, %c1_61] : memref<5x18x32xf32, #tpu.memory_space<vmem>>, vector<1x8x30xf32>
    %313 = vector.shape_cast %312 : vector<1x8x30xf32> to vector<8x30xf32>
    %c14 = arith.constant 14 : index
    %314 = memref.load %arg1[%c14] : memref<630xf32, #tpu.memory_space<smem>>
    %315 = vector.broadcast %314 : f32 to vector<8x30xf32>
    %316 = arith.mulf %315, %313 : vector<8x30xf32>
    %317 = arith.addf %295, %316 : vector<8x30xf32>
    %c34 = arith.constant 34 : index
    %318 = memref.load %arg1[%c34] : memref<630xf32, #tpu.memory_space<smem>>
    %319 = vector.broadcast %318 : f32 to vector<8x30xf32>
    %320 = arith.mulf %319, %313 : vector<8x30xf32>
    %321 = arith.addf %299, %320 : vector<8x30xf32>
    %c54 = arith.constant 54 : index
    %322 = memref.load %arg1[%c54] : memref<630xf32, #tpu.memory_space<smem>>
    %323 = vector.broadcast %322 : f32 to vector<8x30xf32>
    %324 = arith.mulf %323, %313 : vector<8x30xf32>
    %325 = arith.addf %303, %324 : vector<8x30xf32>
    %c74 = arith.constant 74 : index
    %326 = memref.load %arg1[%c74] : memref<630xf32, #tpu.memory_space<smem>>
    %327 = vector.broadcast %326 : f32 to vector<8x30xf32>
    %328 = arith.mulf %327, %313 : vector<8x30xf32>
    %329 = arith.addf %307, %328 : vector<8x30xf32>
    %c94 = arith.constant 94 : index
    %330 = memref.load %arg1[%c94] : memref<630xf32, #tpu.memory_space<smem>>
    %331 = vector.broadcast %330 : f32 to vector<8x30xf32>
    %332 = arith.mulf %331, %313 : vector<8x30xf32>
    %333 = arith.addf %311, %332 : vector<8x30xf32>
    %c3_62 = arith.constant 3 : index
    %c8_63 = arith.constant 8 : index
    %c2_64 = arith.constant 2 : index
    %334 = vector.load %arg4[%c3_62, %c8_63, %c2_64] : memref<5x18x32xf32, #tpu.memory_space<vmem>>, vector<1x8x30xf32>
    %335 = vector.shape_cast %334 : vector<1x8x30xf32> to vector<8x30xf32>
    %c15 = arith.constant 15 : index
    %336 = memref.load %arg1[%c15] : memref<630xf32, #tpu.memory_space<smem>>
    %337 = vector.broadcast %336 : f32 to vector<8x30xf32>
    %338 = arith.mulf %337, %335 : vector<8x30xf32>
    %339 = arith.addf %317, %338 : vector<8x30xf32>
    %c35 = arith.constant 35 : index
    %340 = memref.load %arg1[%c35] : memref<630xf32, #tpu.memory_space<smem>>
    %341 = vector.broadcast %340 : f32 to vector<8x30xf32>
    %342 = arith.mulf %341, %335 : vector<8x30xf32>
    %343 = arith.addf %321, %342 : vector<8x30xf32>
    %c55 = arith.constant 55 : index
    %344 = memref.load %arg1[%c55] : memref<630xf32, #tpu.memory_space<smem>>
    %345 = vector.broadcast %344 : f32 to vector<8x30xf32>
    %346 = arith.mulf %345, %335 : vector<8x30xf32>
    %347 = arith.addf %325, %346 : vector<8x30xf32>
    %c75 = arith.constant 75 : index
    %348 = memref.load %arg1[%c75] : memref<630xf32, #tpu.memory_space<smem>>
    %349 = vector.broadcast %348 : f32 to vector<8x30xf32>
    %350 = arith.mulf %349, %335 : vector<8x30xf32>
    %351 = arith.addf %329, %350 : vector<8x30xf32>
    %c95 = arith.constant 95 : index
    %352 = memref.load %arg1[%c95] : memref<630xf32, #tpu.memory_space<smem>>
    %353 = vector.broadcast %352 : f32 to vector<8x30xf32>
    %354 = arith.mulf %353, %335 : vector<8x30xf32>
    %355 = arith.addf %333, %354 : vector<8x30xf32>
    %c4_65 = arith.constant 4 : index
    %c7_66 = arith.constant 7 : index
    %c1_67 = arith.constant 1 : index
    %356 = vector.load %arg4[%c4_65, %c7_66, %c1_67] : memref<5x18x32xf32, #tpu.memory_space<vmem>>, vector<1x8x30xf32>
    %357 = vector.shape_cast %356 : vector<1x8x30xf32> to vector<8x30xf32>
    %c16_68 = arith.constant 16 : index
    %358 = memref.load %arg1[%c16_68] : memref<630xf32, #tpu.memory_space<smem>>
    %359 = vector.broadcast %358 : f32 to vector<8x30xf32>
    %360 = arith.mulf %359, %357 : vector<8x30xf32>
    %361 = arith.addf %339, %360 : vector<8x30xf32>
    %c36 = arith.constant 36 : index
    %362 = memref.load %arg1[%c36] : memref<630xf32, #tpu.memory_space<smem>>
    %363 = vector.broadcast %362 : f32 to vector<8x30xf32>
    %364 = arith.mulf %363, %357 : vector<8x30xf32>
    %365 = arith.addf %343, %364 : vector<8x30xf32>
    %c56 = arith.constant 56 : index
    %366 = memref.load %arg1[%c56] : memref<630xf32, #tpu.memory_space<smem>>
    %367 = vector.broadcast %366 : f32 to vector<8x30xf32>
    %368 = arith.mulf %367, %357 : vector<8x30xf32>
    %369 = arith.addf %347, %368 : vector<8x30xf32>
    %c76 = arith.constant 76 : index
    %370 = memref.load %arg1[%c76] : memref<630xf32, #tpu.memory_space<smem>>
    %371 = vector.broadcast %370 : f32 to vector<8x30xf32>
    %372 = arith.mulf %371, %357 : vector<8x30xf32>
    %373 = arith.addf %351, %372 : vector<8x30xf32>
    %c96 = arith.constant 96 : index
    %374 = memref.load %arg1[%c96] : memref<630xf32, #tpu.memory_space<smem>>
    %375 = vector.broadcast %374 : f32 to vector<8x30xf32>
    %376 = arith.mulf %375, %357 : vector<8x30xf32>
    %377 = arith.addf %355, %376 : vector<8x30xf32>
    %c4_69 = arith.constant 4 : index
    %c7_70 = arith.constant 7 : index
    %c2_71 = arith.constant 2 : index
    %378 = vector.load %arg4[%c4_69, %c7_70, %c2_71] : memref<5x18x32xf32, #tpu.memory_space<vmem>>, vector<1x8x30xf32>
    %379 = vector.shape_cast %378 : vector<1x8x30xf32> to vector<8x30xf32>
    %c17 = arith.constant 17 : index
    %380 = memref.load %arg1[%c17] : memref<630xf32, #tpu.memory_space<smem>>
    %381 = vector.broadcast %380 : f32 to vector<8x30xf32>
    %382 = arith.mulf %381, %379 : vector<8x30xf32>
    %383 = arith.addf %361, %382 : vector<8x30xf32>
    %c37 = arith.constant 37 : index
    %384 = memref.load %arg1[%c37] : memref<630xf32, #tpu.memory_space<smem>>
    %385 = vector.broadcast %384 : f32 to vector<8x30xf32>
    %386 = arith.mulf %385, %379 : vector<8x30xf32>
    %387 = arith.addf %365, %386 : vector<8x30xf32>
    %c57 = arith.constant 57 : index
    %388 = memref.load %arg1[%c57] : memref<630xf32, #tpu.memory_space<smem>>
    %389 = vector.broadcast %388 : f32 to vector<8x30xf32>
    %390 = arith.mulf %389, %379 : vector<8x30xf32>
    %391 = arith.addf %369, %390 : vector<8x30xf32>
    %c77 = arith.constant 77 : index
    %392 = memref.load %arg1[%c77] : memref<630xf32, #tpu.memory_space<smem>>
    %393 = vector.broadcast %392 : f32 to vector<8x30xf32>
    %394 = arith.mulf %393, %379 : vector<8x30xf32>
    %395 = arith.addf %373, %394 : vector<8x30xf32>
    %c97 = arith.constant 97 : index
    %396 = memref.load %arg1[%c97] : memref<630xf32, #tpu.memory_space<smem>>
    %397 = vector.broadcast %396 : f32 to vector<8x30xf32>
    %398 = arith.mulf %397, %379 : vector<8x30xf32>
    %399 = arith.addf %377, %398 : vector<8x30xf32>
    %c4_72 = arith.constant 4 : index
    %c8_73 = arith.constant 8 : index
    %c1_74 = arith.constant 1 : index
    %400 = vector.load %arg4[%c4_72, %c8_73, %c1_74] : memref<5x18x32xf32, #tpu.memory_space<vmem>>, vector<1x8x30xf32>
    %401 = vector.shape_cast %400 : vector<1x8x30xf32> to vector<8x30xf32>
    %c18 = arith.constant 18 : index
    %402 = memref.load %arg1[%c18] : memref<630xf32, #tpu.memory_space<smem>>
    %403 = vector.broadcast %402 : f32 to vector<8x30xf32>
    %404 = arith.mulf %403, %401 : vector<8x30xf32>
    %405 = arith.addf %383, %404 : vector<8x30xf32>
    %c38 = arith.constant 38 : index
    %406 = memref.load %arg1[%c38] : memref<630xf32, #tpu.memory_space<smem>>
    %407 = vector.broadcast %406 : f32 to vector<8x30xf32>
    %408 = arith.mulf %407, %401 : vector<8x30xf32>
    %409 = arith.addf %387, %408 : vector<8x30xf32>
    %c58 = arith.constant 58 : index
    %410 = memref.load %arg1[%c58] : memref<630xf32, #tpu.memory_space<smem>>
    %411 = vector.broadcast %410 : f32 to vector<8x30xf32>
    %412 = arith.mulf %411, %401 : vector<8x30xf32>
    %413 = arith.addf %391, %412 : vector<8x30xf32>
    %c78 = arith.constant 78 : index
    %414 = memref.load %arg1[%c78] : memref<630xf32, #tpu.memory_space<smem>>
    %415 = vector.broadcast %414 : f32 to vector<8x30xf32>
    %416 = arith.mulf %415, %401 : vector<8x30xf32>
    %417 = arith.addf %395, %416 : vector<8x30xf32>
    %c98 = arith.constant 98 : index
    %418 = memref.load %arg1[%c98] : memref<630xf32, #tpu.memory_space<smem>>
    %419 = vector.broadcast %418 : f32 to vector<8x30xf32>
    %420 = arith.mulf %419, %401 : vector<8x30xf32>
    %421 = arith.addf %399, %420 : vector<8x30xf32>
    %c4_75 = arith.constant 4 : index
    %c8_76 = arith.constant 8 : index
    %c2_77 = arith.constant 2 : index
    %422 = vector.load %arg4[%c4_75, %c8_76, %c2_77] : memref<5x18x32xf32, #tpu.memory_space<vmem>>, vector<1x8x30xf32>
    %423 = vector.shape_cast %422 : vector<1x8x30xf32> to vector<8x30xf32>
    %c19 = arith.constant 19 : index
    %424 = memref.load %arg1[%c19] : memref<630xf32, #tpu.memory_space<smem>>
    %425 = vector.broadcast %424 : f32 to vector<8x30xf32>
    %426 = arith.mulf %425, %423 : vector<8x30xf32>
    %427 = arith.addf %405, %426 : vector<8x30xf32>
    %c39 = arith.constant 39 : index
    %428 = memref.load %arg1[%c39] : memref<630xf32, #tpu.memory_space<smem>>
    %429 = vector.broadcast %428 : f32 to vector<8x30xf32>
    %430 = arith.mulf %429, %423 : vector<8x30xf32>
    %431 = arith.addf %409, %430 : vector<8x30xf32>
    %c59 = arith.constant 59 : index
    %432 = memref.load %arg1[%c59] : memref<630xf32, #tpu.memory_space<smem>>
    %433 = vector.broadcast %432 : f32 to vector<8x30xf32>
    %434 = arith.mulf %433, %423 : vector<8x30xf32>
    %435 = arith.addf %413, %434 : vector<8x30xf32>
    %c79 = arith.constant 79 : index
    %436 = memref.load %arg1[%c79] : memref<630xf32, #tpu.memory_space<smem>>
    %437 = vector.broadcast %436 : f32 to vector<8x30xf32>
    %438 = arith.mulf %437, %423 : vector<8x30xf32>
    %439 = arith.addf %417, %438 : vector<8x30xf32>
    %c99 = arith.constant 99 : index
    %440 = memref.load %arg1[%c99] : memref<630xf32, #tpu.memory_space<smem>>
    %441 = vector.broadcast %440 : f32 to vector<8x30xf32>
    %442 = arith.mulf %441, %423 : vector<8x30xf32>
    %443 = arith.addf %421, %442 : vector<8x30xf32>
    %c100 = arith.constant 100 : index
    %444 = memref.load %arg1[%c100] : memref<630xf32, #tpu.memory_space<smem>>
    %445 = vector.broadcast %444 : f32 to vector<8x30xf32>
    %446 = arith.addf %427, %445 : vector<8x30xf32>
    %447 = math.tanh %446 : vector<8x30xf32>
    %c101 = arith.constant 101 : index
    %448 = memref.load %arg1[%c101] : memref<630xf32, #tpu.memory_space<smem>>
    %449 = vector.broadcast %448 : f32 to vector<8x30xf32>
    %450 = arith.addf %431, %449 : vector<8x30xf32>
    %451 = math.tanh %450 : vector<8x30xf32>
    %c102 = arith.constant 102 : index
    %452 = memref.load %arg1[%c102] : memref<630xf32, #tpu.memory_space<smem>>
    %453 = vector.broadcast %452 : f32 to vector<8x30xf32>
    %454 = arith.addf %435, %453 : vector<8x30xf32>
    %455 = math.tanh %454 : vector<8x30xf32>
    %c103 = arith.constant 103 : index
    %456 = memref.load %arg1[%c103] : memref<630xf32, #tpu.memory_space<smem>>
    %457 = vector.broadcast %456 : f32 to vector<8x30xf32>
    %458 = arith.addf %439, %457 : vector<8x30xf32>
    %459 = math.tanh %458 : vector<8x30xf32>
    %c104 = arith.constant 104 : index
    %460 = memref.load %arg1[%c104] : memref<630xf32, #tpu.memory_space<smem>>
    %461 = vector.broadcast %460 : f32 to vector<8x30xf32>
    %462 = arith.addf %443, %461 : vector<8x30xf32>
    %463 = math.tanh %462 : vector<8x30xf32>
    %464 = vector.extract_strided_slice %447 {offsets = [0, 0], sizes = [8, 9], strides = [1, 1]} : vector<8x30xf32> to vector<8x9xf32>
    %c0_78 = arith.constant 0 : index
    %c8_79 = arith.constant 8 : index
    %c2_80 = arith.constant 2 : index
    %465 = vector.load %arg5[%c0_78, %c8_79, %c2_80] : memref<5x18x32xf32, #tpu.memory_space<vmem>>, vector<1x8x9xf32>
    %466 = vector.shape_cast %465 : vector<1x8x9xf32> to vector<8x9xf32>
    %467 = vector.shape_cast %464 : vector<8x9xf32> to vector<1x8x9xf32>
    tpu.vector_store %arg5[%c0_78, %c8_79, %c2_80], %467 {strides = array<i32>} : memref<5x18x32xf32, #tpu.memory_space<vmem>>, vector<1x8x9xf32>,
    %468 = vector.extract_strided_slice %447 {offsets = [0, 16], sizes = [8, 9], strides = [1, 1]} : vector<8x30xf32> to vector<8x9xf32>
    %c0_81 = arith.constant 0 : index
    %c8_82 = arith.constant 8 : index
    %c18_83 = arith.constant 18 : index
    %469 = vector.load %arg5[%c0_81, %c8_82, %c18_83] : memref<5x18x32xf32, #tpu.memory_space<vmem>>, vector<1x8x9xf32>
    %470 = vector.shape_cast %469 : vector<1x8x9xf32> to vector<8x9xf32>
    %471 = vector.shape_cast %468 : vector<8x9xf32> to vector<1x8x9xf32>
    tpu.vector_store %arg5[%c0_81, %c8_82, %c18_83], %471 {strides = array<i32>} : memref<5x18x32xf32, #tpu.memory_space<vmem>>, vector<1x8x9xf32>,
    %472 = vector.extract_strided_slice %451 {offsets = [0, 0], sizes = [8, 9], strides = [1, 1]} : vector<8x30xf32> to vector<8x9xf32>
    %c1_84 = arith.constant 1 : index
    %c8_85 = arith.constant 8 : index
    %c2_86 = arith.constant 2 : index
    %473 = vector.load %arg5[%c1_84, %c8_85, %c2_86] : memref<5x18x32xf32, #tpu.memory_space<vmem>>, vector<1x8x9xf32>
    %474 = vector.shape_cast %473 : vector<1x8x9xf32> to vector<8x9xf32>
    %475 = vector.shape_cast %472 : vector<8x9xf32> to vector<1x8x9xf32>
    tpu.vector_store %arg5[%c1_84, %c8_85, %c2_86], %475 {strides = array<i32>} : memref<5x18x32xf32, #tpu.memory_space<vmem>>, vector<1x8x9xf32>,
    %476 = vector.extract_strided_slice %451 {offsets = [0, 16], sizes = [8, 9], strides = [1, 1]} : vector<8x30xf32> to vector<8x9xf32>
    %c1_87 = arith.constant 1 : index
    %c8_88 = arith.constant 8 : index
    %c18_89 = arith.constant 18 : index
    %477 = vector.load %arg5[%c1_87, %c8_88, %c18_89] : memref<5x18x32xf32, #tpu.memory_space<vmem>>, vector<1x8x9xf32>
    %478 = vector.shape_cast %477 : vector<1x8x9xf32> to vector<8x9xf32>
    %479 = vector.shape_cast %476 : vector<8x9xf32> to vector<1x8x9xf32>
    tpu.vector_store %arg5[%c1_87, %c8_88, %c18_89], %479 {strides = array<i32>} : memref<5x18x32xf32, #tpu.memory_space<vmem>>, vector<1x8x9xf32>,
    %480 = vector.extract_strided_slice %455 {offsets = [0, 0], sizes = [8, 9], strides = [1, 1]} : vector<8x30xf32> to vector<8x9xf32>
    %c2_90 = arith.constant 2 : index
    %c8_91 = arith.constant 8 : index
    %c2_92 = arith.constant 2 : index
    %481 = vector.load %arg5[%c2_90, %c8_91, %c2_92] : memref<5x18x32xf32, #tpu.memory_space<vmem>>, vector<1x8x9xf32>
    %482 = vector.shape_cast %481 : vector<1x8x9xf32> to vector<8x9xf32>
    %483 = vector.shape_cast %480 : vector<8x9xf32> to vector<1x8x9xf32>
    tpu.vector_store %arg5[%c2_90, %c8_91, %c2_92], %483 {strides = array<i32>} : memref<5x18x32xf32, #tpu.memory_space<vmem>>, vector<1x8x9xf32>,
    %484 = vector.extract_strided_slice %455 {offsets = [0, 16], sizes = [8, 9], strides = [1, 1]} : vector<8x30xf32> to vector<8x9xf32>
    %c2_93 = arith.constant 2 : index
    %c8_94 = arith.constant 8 : index
    %c18_95 = arith.constant 18 : index
    %485 = vector.load %arg5[%c2_93, %c8_94, %c18_95] : memref<5x18x32xf32, #tpu.memory_space<vmem>>, vector<1x8x9xf32>
    %486 = vector.shape_cast %485 : vector<1x8x9xf32> to vector<8x9xf32>
    %487 = vector.shape_cast %484 : vector<8x9xf32> to vector<1x8x9xf32>
    tpu.vector_store %arg5[%c2_93, %c8_94, %c18_95], %487 {strides = array<i32>} : memref<5x18x32xf32, #tpu.memory_space<vmem>>, vector<1x8x9xf32>,
    %488 = vector.extract_strided_slice %459 {offsets = [0, 0], sizes = [8, 9], strides = [1, 1]} : vector<8x30xf32> to vector<8x9xf32>
    %c3_96 = arith.constant 3 : index
    %c8_97 = arith.constant 8 : index
    %c2_98 = arith.constant 2 : index
    %489 = vector.load %arg5[%c3_96, %c8_97, %c2_98] : memref<5x18x32xf32, #tpu.memory_space<vmem>>, vector<1x8x9xf32>
    %490 = vector.shape_cast %489 : vector<1x8x9xf32> to vector<8x9xf32>
    %491 = vector.shape_cast %488 : vector<8x9xf32> to vector<1x8x9xf32>
    tpu.vector_store %arg5[%c3_96, %c8_97, %c2_98], %491 {strides = array<i32>} : memref<5x18x32xf32, #tpu.memory_space<vmem>>, vector<1x8x9xf32>,
    %492 = vector.extract_strided_slice %459 {offsets = [0, 16], sizes = [8, 9], strides = [1, 1]} : vector<8x30xf32> to vector<8x9xf32>
    %c3_99 = arith.constant 3 : index
    %c8_100 = arith.constant 8 : index
    %c18_101 = arith.constant 18 : index
    %493 = vector.load %arg5[%c3_99, %c8_100, %c18_101] : memref<5x18x32xf32, #tpu.memory_space<vmem>>, vector<1x8x9xf32>
    %494 = vector.shape_cast %493 : vector<1x8x9xf32> to vector<8x9xf32>
    %495 = vector.shape_cast %492 : vector<8x9xf32> to vector<1x8x9xf32>
    tpu.vector_store %arg5[%c3_99, %c8_100, %c18_101], %495 {strides = array<i32>} : memref<5x18x32xf32, #tpu.memory_space<vmem>>, vector<1x8x9xf32>,
    %496 = vector.extract_strided_slice %463 {offsets = [0, 0], sizes = [8, 9], strides = [1, 1]} : vector<8x30xf32> to vector<8x9xf32>
    %c4_102 = arith.constant 4 : index
    %c8_103 = arith.constant 8 : index
    %c2_104 = arith.constant 2 : index
    %497 = vector.load %arg5[%c4_102, %c8_103, %c2_104] : memref<5x18x32xf32, #tpu.memory_space<vmem>>, vector<1x8x9xf32>
    %498 = vector.shape_cast %497 : vector<1x8x9xf32> to vector<8x9xf32>
    %499 = vector.shape_cast %496 : vector<8x9xf32> to vector<1x8x9xf32>
    tpu.vector_store %arg5[%c4_102, %c8_103, %c2_104], %499 {strides = array<i32>} : memref<5x18x32xf32, #tpu.memory_space<vmem>>, vector<1x8x9xf32>,
    %500 = vector.extract_strided_slice %463 {offsets = [0, 16], sizes = [8, 9], strides = [1, 1]} : vector<8x30xf32> to vector<8x9xf32>
    %c4_105 = arith.constant 4 : index
    %c8_106 = arith.constant 8 : index
    %c18_107 = arith.constant 18 : index
    %501 = vector.load %arg5[%c4_105, %c8_106, %c18_107] : memref<5x18x32xf32, #tpu.memory_space<vmem>>, vector<1x8x9xf32>
    %502 = vector.shape_cast %501 : vector<1x8x9xf32> to vector<8x9xf32>
    %503 = vector.shape_cast %500 : vector<8x9xf32> to vector<1x8x9xf32>
    tpu.vector_store %arg5[%c4_105, %c8_106, %c18_107], %503 {strides = array<i32>} : memref<5x18x32xf32, #tpu.memory_space<vmem>>, vector<1x8x9xf32>,
    %c0_108 = arith.constant 0 : index
    %c7_109 = arith.constant 7 : index
    %c1_110 = arith.constant 1 : index
    %504 = vector.load %arg5[%c0_108, %c7_109, %c1_110] : memref<5x18x32xf32, #tpu.memory_space<vmem>>, vector<1x8x30xf32>
    %505 = vector.shape_cast %504 : vector<1x8x30xf32> to vector<8x30xf32>
    %c105 = arith.constant 105 : index
    %506 = memref.load %arg1[%c105] : memref<630xf32, #tpu.memory_space<smem>>
    %507 = vector.broadcast %506 : f32 to vector<8x30xf32>
    %508 = arith.mulf %507, %505 : vector<8x30xf32>
    %c125 = arith.constant 125 : index
    %509 = memref.load %arg1[%c125] : memref<630xf32, #tpu.memory_space<smem>>
    %510 = vector.broadcast %509 : f32 to vector<8x30xf32>
    %511 = arith.mulf %510, %505 : vector<8x30xf32>
    %c145 = arith.constant 145 : index
    %512 = memref.load %arg1[%c145] : memref<630xf32, #tpu.memory_space<smem>>
    %513 = vector.broadcast %512 : f32 to vector<8x30xf32>
    %514 = arith.mulf %513, %505 : vector<8x30xf32>
    %c165 = arith.constant 165 : index
    %515 = memref.load %arg1[%c165] : memref<630xf32, #tpu.memory_space<smem>>
    %516 = vector.broadcast %515 : f32 to vector<8x30xf32>
    %517 = arith.mulf %516, %505 : vector<8x30xf32>
    %c185 = arith.constant 185 : index
    %518 = memref.load %arg1[%c185] : memref<630xf32, #tpu.memory_space<smem>>
    %519 = vector.broadcast %518 : f32 to vector<8x30xf32>
    %520 = arith.mulf %519, %505 : vector<8x30xf32>
    %c0_111 = arith.constant 0 : index
    %c7_112 = arith.constant 7 : index
    %c2_113 = arith.constant 2 : index
    %521 = vector.load %arg5[%c0_111, %c7_112, %c2_113] : memref<5x18x32xf32, #tpu.memory_space<vmem>>, vector<1x8x30xf32>
    %522 = vector.shape_cast %521 : vector<1x8x30xf32> to vector<8x30xf32>
    %c106 = arith.constant 106 : index
    %523 = memref.load %arg1[%c106] : memref<630xf32, #tpu.memory_space<smem>>
    %524 = vector.broadcast %523 : f32 to vector<8x30xf32>
    %525 = arith.mulf %524, %522 : vector<8x30xf32>
    %526 = arith.addf %508, %525 : vector<8x30xf32>
    %c126 = arith.constant 126 : index
    %527 = memref.load %arg1[%c126] : memref<630xf32, #tpu.memory_space<smem>>
    %528 = vector.broadcast %527 : f32 to vector<8x30xf32>
    %529 = arith.mulf %528, %522 : vector<8x30xf32>
    %530 = arith.addf %511, %529 : vector<8x30xf32>
    %c146 = arith.constant 146 : index
    %531 = memref.load %arg1[%c146] : memref<630xf32, #tpu.memory_space<smem>>
    %532 = vector.broadcast %531 : f32 to vector<8x30xf32>
    %533 = arith.mulf %532, %522 : vector<8x30xf32>
    %534 = arith.addf %514, %533 : vector<8x30xf32>
    %c166 = arith.constant 166 : index
    %535 = memref.load %arg1[%c166] : memref<630xf32, #tpu.memory_space<smem>>
    %536 = vector.broadcast %535 : f32 to vector<8x30xf32>
    %537 = arith.mulf %536, %522 : vector<8x30xf32>
    %538 = arith.addf %517, %537 : vector<8x30xf32>
    %c186 = arith.constant 186 : index
    %539 = memref.load %arg1[%c186] : memref<630xf32, #tpu.memory_space<smem>>
    %540 = vector.broadcast %539 : f32 to vector<8x30xf32>
    %541 = arith.mulf %540, %522 : vector<8x30xf32>
    %542 = arith.addf %520, %541 : vector<8x30xf32>
    %c0_114 = arith.constant 0 : index
    %c8_115 = arith.constant 8 : index
    %c1_116 = arith.constant 1 : index
    %543 = vector.load %arg5[%c0_114, %c8_115, %c1_116] : memref<5x18x32xf32, #tpu.memory_space<vmem>>, vector<1x8x30xf32>
    %544 = vector.shape_cast %543 : vector<1x8x30xf32> to vector<8x30xf32>
    %c107 = arith.constant 107 : index
    %545 = memref.load %arg1[%c107] : memref<630xf32, #tpu.memory_space<smem>>
    %546 = vector.broadcast %545 : f32 to vector<8x30xf32>
    %547 = arith.mulf %546, %544 : vector<8x30xf32>
    %548 = arith.addf %526, %547 : vector<8x30xf32>
    %c127 = arith.constant 127 : index
    %549 = memref.load %arg1[%c127] : memref<630xf32, #tpu.memory_space<smem>>
    %550 = vector.broadcast %549 : f32 to vector<8x30xf32>
    %551 = arith.mulf %550, %544 : vector<8x30xf32>
    %552 = arith.addf %530, %551 : vector<8x30xf32>
    %c147 = arith.constant 147 : index
    %553 = memref.load %arg1[%c147] : memref<630xf32, #tpu.memory_space<smem>>
    %554 = vector.broadcast %553 : f32 to vector<8x30xf32>
    %555 = arith.mulf %554, %544 : vector<8x30xf32>
    %556 = arith.addf %534, %555 : vector<8x30xf32>
    %c167 = arith.constant 167 : index
    %557 = memref.load %arg1[%c167] : memref<630xf32, #tpu.memory_space<smem>>
    %558 = vector.broadcast %557 : f32 to vector<8x30xf32>
    %559 = arith.mulf %558, %544 : vector<8x30xf32>
    %560 = arith.addf %538, %559 : vector<8x30xf32>
    %c187 = arith.constant 187 : index
    %561 = memref.load %arg1[%c187] : memref<630xf32, #tpu.memory_space<smem>>
    %562 = vector.broadcast %561 : f32 to vector<8x30xf32>
    %563 = arith.mulf %562, %544 : vector<8x30xf32>
    %564 = arith.addf %542, %563 : vector<8x30xf32>
    %c0_117 = arith.constant 0 : index
    %c8_118 = arith.constant 8 : index
    %c2_119 = arith.constant 2 : index
    %565 = vector.load %arg5[%c0_117, %c8_118, %c2_119] : memref<5x18x32xf32, #tpu.memory_space<vmem>>, vector<1x8x30xf32>
    %566 = vector.shape_cast %565 : vector<1x8x30xf32> to vector<8x30xf32>
    %c108 = arith.constant 108 : index
    %567 = memref.load %arg1[%c108] : memref<630xf32, #tpu.memory_space<smem>>
    %568 = vector.broadcast %567 : f32 to vector<8x30xf32>
    %569 = arith.mulf %568, %566 : vector<8x30xf32>
    %570 = arith.addf %548, %569 : vector<8x30xf32>
    %c128 = arith.constant 128 : index
    %571 = memref.load %arg1[%c128] : memref<630xf32, #tpu.memory_space<smem>>
    %572 = vector.broadcast %571 : f32 to vector<8x30xf32>
    %573 = arith.mulf %572, %566 : vector<8x30xf32>
    %574 = arith.addf %552, %573 : vector<8x30xf32>
    %c148 = arith.constant 148 : index
    %575 = memref.load %arg1[%c148] : memref<630xf32, #tpu.memory_space<smem>>
    %576 = vector.broadcast %575 : f32 to vector<8x30xf32>
    %577 = arith.mulf %576, %566 : vector<8x30xf32>
    %578 = arith.addf %556, %577 : vector<8x30xf32>
    %c168 = arith.constant 168 : index
    %579 = memref.load %arg1[%c168] : memref<630xf32, #tpu.memory_space<smem>>
    %580 = vector.broadcast %579 : f32 to vector<8x30xf32>
    %581 = arith.mulf %580, %566 : vector<8x30xf32>
    %582 = arith.addf %560, %581 : vector<8x30xf32>
    %c188 = arith.constant 188 : index
    %583 = memref.load %arg1[%c188] : memref<630xf32, #tpu.memory_space<smem>>
    %584 = vector.broadcast %583 : f32 to vector<8x30xf32>
    %585 = arith.mulf %584, %566 : vector<8x30xf32>
    %586 = arith.addf %564, %585 : vector<8x30xf32>
    %c1_120 = arith.constant 1 : index
    %c7_121 = arith.constant 7 : index
    %c1_122 = arith.constant 1 : index
    %587 = vector.load %arg5[%c1_120, %c7_121, %c1_122] : memref<5x18x32xf32, #tpu.memory_space<vmem>>, vector<1x8x30xf32>
    %588 = vector.shape_cast %587 : vector<1x8x30xf32> to vector<8x30xf32>
    %c109 = arith.constant 109 : index
    %589 = memref.load %arg1[%c109] : memref<630xf32, #tpu.memory_space<smem>>
    %590 = vector.broadcast %589 : f32 to vector<8x30xf32>
    %591 = arith.mulf %590, %588 : vector<8x30xf32>
    %592 = arith.addf %570, %591 : vector<8x30xf32>
    %c129 = arith.constant 129 : index
    %593 = memref.load %arg1[%c129] : memref<630xf32, #tpu.memory_space<smem>>
    %594 = vector.broadcast %593 : f32 to vector<8x30xf32>
    %595 = arith.mulf %594, %588 : vector<8x30xf32>
    %596 = arith.addf %574, %595 : vector<8x30xf32>
    %c149 = arith.constant 149 : index
    %597 = memref.load %arg1[%c149] : memref<630xf32, #tpu.memory_space<smem>>
    %598 = vector.broadcast %597 : f32 to vector<8x30xf32>
    %599 = arith.mulf %598, %588 : vector<8x30xf32>
    %600 = arith.addf %578, %599 : vector<8x30xf32>
    %c169 = arith.constant 169 : index
    %601 = memref.load %arg1[%c169] : memref<630xf32, #tpu.memory_space<smem>>
    %602 = vector.broadcast %601 : f32 to vector<8x30xf32>
    %603 = arith.mulf %602, %588 : vector<8x30xf32>
    %604 = arith.addf %582, %603 : vector<8x30xf32>
    %c189 = arith.constant 189 : index
    %605 = memref.load %arg1[%c189] : memref<630xf32, #tpu.memory_space<smem>>
    %606 = vector.broadcast %605 : f32 to vector<8x30xf32>
    %607 = arith.mulf %606, %588 : vector<8x30xf32>
    %608 = arith.addf %586, %607 : vector<8x30xf32>
    %c1_123 = arith.constant 1 : index
    %c7_124 = arith.constant 7 : index
    %c2_125 = arith.constant 2 : index
    %609 = vector.load %arg5[%c1_123, %c7_124, %c2_125] : memref<5x18x32xf32, #tpu.memory_space<vmem>>, vector<1x8x30xf32>
    %610 = vector.shape_cast %609 : vector<1x8x30xf32> to vector<8x30xf32>
    %c110 = arith.constant 110 : index
    %611 = memref.load %arg1[%c110] : memref<630xf32, #tpu.memory_space<smem>>
    %612 = vector.broadcast %611 : f32 to vector<8x30xf32>
    %613 = arith.mulf %612, %610 : vector<8x30xf32>
    %614 = arith.addf %592, %613 : vector<8x30xf32>
    %c130 = arith.constant 130 : index
    %615 = memref.load %arg1[%c130] : memref<630xf32, #tpu.memory_space<smem>>
    %616 = vector.broadcast %615 : f32 to vector<8x30xf32>
    %617 = arith.mulf %616, %610 : vector<8x30xf32>
    %618 = arith.addf %596, %617 : vector<8x30xf32>
    %c150 = arith.constant 150 : index
    %619 = memref.load %arg1[%c150] : memref<630xf32, #tpu.memory_space<smem>>
    %620 = vector.broadcast %619 : f32 to vector<8x30xf32>
    %621 = arith.mulf %620, %610 : vector<8x30xf32>
    %622 = arith.addf %600, %621 : vector<8x30xf32>
    %c170 = arith.constant 170 : index
    %623 = memref.load %arg1[%c170] : memref<630xf32, #tpu.memory_space<smem>>
    %624 = vector.broadcast %623 : f32 to vector<8x30xf32>
    %625 = arith.mulf %624, %610 : vector<8x30xf32>
    %626 = arith.addf %604, %625 : vector<8x30xf32>
    %c190 = arith.constant 190 : index
    %627 = memref.load %arg1[%c190] : memref<630xf32, #tpu.memory_space<smem>>
    %628 = vector.broadcast %627 : f32 to vector<8x30xf32>
    %629 = arith.mulf %628, %610 : vector<8x30xf32>
    %630 = arith.addf %608, %629 : vector<8x30xf32>
    %c1_126 = arith.constant 1 : index
    %c8_127 = arith.constant 8 : index
    %c1_128 = arith.constant 1 : index
    %631 = vector.load %arg5[%c1_126, %c8_127, %c1_128] : memref<5x18x32xf32, #tpu.memory_space<vmem>>, vector<1x8x30xf32>
    %632 = vector.shape_cast %631 : vector<1x8x30xf32> to vector<8x30xf32>
    %c111 = arith.constant 111 : index
    %633 = memref.load %arg1[%c111] : memref<630xf32, #tpu.memory_space<smem>>
    %634 = vector.broadcast %633 : f32 to vector<8x30xf32>
    %635 = arith.mulf %634, %632 : vector<8x30xf32>
    %636 = arith.addf %614, %635 : vector<8x30xf32>
    %c131 = arith.constant 131 : index
    %637 = memref.load %arg1[%c131] : memref<630xf32, #tpu.memory_space<smem>>
    %638 = vector.broadcast %637 : f32 to vector<8x30xf32>
    %639 = arith.mulf %638, %632 : vector<8x30xf32>
    %640 = arith.addf %618, %639 : vector<8x30xf32>
    %c151 = arith.constant 151 : index
    %641 = memref.load %arg1[%c151] : memref<630xf32, #tpu.memory_space<smem>>
    %642 = vector.broadcast %641 : f32 to vector<8x30xf32>
    %643 = arith.mulf %642, %632 : vector<8x30xf32>
    %644 = arith.addf %622, %643 : vector<8x30xf32>
    %c171 = arith.constant 171 : index
    %645 = memref.load %arg1[%c171] : memref<630xf32, #tpu.memory_space<smem>>
    %646 = vector.broadcast %645 : f32 to vector<8x30xf32>
    %647 = arith.mulf %646, %632 : vector<8x30xf32>
    %648 = arith.addf %626, %647 : vector<8x30xf32>
    %c191 = arith.constant 191 : index
    %649 = memref.load %arg1[%c191] : memref<630xf32, #tpu.memory_space<smem>>
    %650 = vector.broadcast %649 : f32 to vector<8x30xf32>
    %651 = arith.mulf %650, %632 : vector<8x30xf32>
    %652 = arith.addf %630, %651 : vector<8x30xf32>
    %c1_129 = arith.constant 1 : index
    %c8_130 = arith.constant 8 : index
    %c2_131 = arith.constant 2 : index
    %653 = vector.load %arg5[%c1_129, %c8_130, %c2_131] : memref<5x18x32xf32, #tpu.memory_space<vmem>>, vector<1x8x30xf32>
    %654 = vector.shape_cast %653 : vector<1x8x30xf32> to vector<8x30xf32>
    %c112 = arith.constant 112 : index
    %655 = memref.load %arg1[%c112] : memref<630xf32, #tpu.memory_space<smem>>
    %656 = vector.broadcast %655 : f32 to vector<8x30xf32>
    %657 = arith.mulf %656, %654 : vector<8x30xf32>
    %658 = arith.addf %636, %657 : vector<8x30xf32>
    %c132 = arith.constant 132 : index
    %659 = memref.load %arg1[%c132] : memref<630xf32, #tpu.memory_space<smem>>
    %660 = vector.broadcast %659 : f32 to vector<8x30xf32>
    %661 = arith.mulf %660, %654 : vector<8x30xf32>
    %662 = arith.addf %640, %661 : vector<8x30xf32>
    %c152 = arith.constant 152 : index
    %663 = memref.load %arg1[%c152] : memref<630xf32, #tpu.memory_space<smem>>
    %664 = vector.broadcast %663 : f32 to vector<8x30xf32>
    %665 = arith.mulf %664, %654 : vector<8x30xf32>
    %666 = arith.addf %644, %665 : vector<8x30xf32>
    %c172 = arith.constant 172 : index
    %667 = memref.load %arg1[%c172] : memref<630xf32, #tpu.memory_space<smem>>
    %668 = vector.broadcast %667 : f32 to vector<8x30xf32>
    %669 = arith.mulf %668, %654 : vector<8x30xf32>
    %670 = arith.addf %648, %669 : vector<8x30xf32>
    %c192 = arith.constant 192 : index
    %671 = memref.load %arg1[%c192] : memref<630xf32, #tpu.memory_space<smem>>
    %672 = vector.broadcast %671 : f32 to vector<8x30xf32>
    %673 = arith.mulf %672, %654 : vector<8x30xf32>
    %674 = arith.addf %652, %673 : vector<8x30xf32>
    %c2_132 = arith.constant 2 : index
    %c7_133 = arith.constant 7 : index
    %c1_134 = arith.constant 1 : index
    %675 = vector.load %arg5[%c2_132, %c7_133, %c1_134] : memref<5x18x32xf32, #tpu.memory_space<vmem>>, vector<1x8x30xf32>
    %676 = vector.shape_cast %675 : vector<1x8x30xf32> to vector<8x30xf32>
    %c113 = arith.constant 113 : index
    %677 = memref.load %arg1[%c113] : memref<630xf32, #tpu.memory_space<smem>>
    %678 = vector.broadcast %677 : f32 to vector<8x30xf32>
    %679 = arith.mulf %678, %676 : vector<8x30xf32>
    %680 = arith.addf %658, %679 : vector<8x30xf32>
    %c133 = arith.constant 133 : index
    %681 = memref.load %arg1[%c133] : memref<630xf32, #tpu.memory_space<smem>>
    %682 = vector.broadcast %681 : f32 to vector<8x30xf32>
    %683 = arith.mulf %682, %676 : vector<8x30xf32>
    %684 = arith.addf %662, %683 : vector<8x30xf32>
    %c153 = arith.constant 153 : index
    %685 = memref.load %arg1[%c153] : memref<630xf32, #tpu.memory_space<smem>>
    %686 = vector.broadcast %685 : f32 to vector<8x30xf32>
    %687 = arith.mulf %686, %676 : vector<8x30xf32>
    %688 = arith.addf %666, %687 : vector<8x30xf32>
    %c173 = arith.constant 173 : index
    %689 = memref.load %arg1[%c173] : memref<630xf32, #tpu.memory_space<smem>>
    %690 = vector.broadcast %689 : f32 to vector<8x30xf32>
    %691 = arith.mulf %690, %676 : vector<8x30xf32>
    %692 = arith.addf %670, %691 : vector<8x30xf32>
    %c193 = arith.constant 193 : index
    %693 = memref.load %arg1[%c193] : memref<630xf32, #tpu.memory_space<smem>>
    %694 = vector.broadcast %693 : f32 to vector<8x30xf32>
    %695 = arith.mulf %694, %676 : vector<8x30xf32>
    %696 = arith.addf %674, %695 : vector<8x30xf32>
    %c2_135 = arith.constant 2 : index
    %c7_136 = arith.constant 7 : index
    %c2_137 = arith.constant 2 : index
    %697 = vector.load %arg5[%c2_135, %c7_136, %c2_137] : memref<5x18x32xf32, #tpu.memory_space<vmem>>, vector<1x8x30xf32>
    %698 = vector.shape_cast %697 : vector<1x8x30xf32> to vector<8x30xf32>
    %c114 = arith.constant 114 : index
    %699 = memref.load %arg1[%c114] : memref<630xf32, #tpu.memory_space<smem>>
    %700 = vector.broadcast %699 : f32 to vector<8x30xf32>
    %701 = arith.mulf %700, %698 : vector<8x30xf32>
    %702 = arith.addf %680, %701 : vector<8x30xf32>
    %c134 = arith.constant 134 : index
    %703 = memref.load %arg1[%c134] : memref<630xf32, #tpu.memory_space<smem>>
    %704 = vector.broadcast %703 : f32 to vector<8x30xf32>
    %705 = arith.mulf %704, %698 : vector<8x30xf32>
    %706 = arith.addf %684, %705 : vector<8x30xf32>
    %c154 = arith.constant 154 : index
    %707 = memref.load %arg1[%c154] : memref<630xf32, #tpu.memory_space<smem>>
    %708 = vector.broadcast %707 : f32 to vector<8x30xf32>
    %709 = arith.mulf %708, %698 : vector<8x30xf32>
    %710 = arith.addf %688, %709 : vector<8x30xf32>
    %c174 = arith.constant 174 : index
    %711 = memref.load %arg1[%c174] : memref<630xf32, #tpu.memory_space<smem>>
    %712 = vector.broadcast %711 : f32 to vector<8x30xf32>
    %713 = arith.mulf %712, %698 : vector<8x30xf32>
    %714 = arith.addf %692, %713 : vector<8x30xf32>
    %c194 = arith.constant 194 : index
    %715 = memref.load %arg1[%c194] : memref<630xf32, #tpu.memory_space<smem>>
    %716 = vector.broadcast %715 : f32 to vector<8x30xf32>
    %717 = arith.mulf %716, %698 : vector<8x30xf32>
    %718 = arith.addf %696, %717 : vector<8x30xf32>
    %c2_138 = arith.constant 2 : index
    %c8_139 = arith.constant 8 : index
    %c1_140 = arith.constant 1 : index
    %719 = vector.load %arg5[%c2_138, %c8_139, %c1_140] : memref<5x18x32xf32, #tpu.memory_space<vmem>>, vector<1x8x30xf32>
    %720 = vector.shape_cast %719 : vector<1x8x30xf32> to vector<8x30xf32>
    %c115 = arith.constant 115 : index
    %721 = memref.load %arg1[%c115] : memref<630xf32, #tpu.memory_space<smem>>
    %722 = vector.broadcast %721 : f32 to vector<8x30xf32>
    %723 = arith.mulf %722, %720 : vector<8x30xf32>
    %724 = arith.addf %702, %723 : vector<8x30xf32>
    %c135 = arith.constant 135 : index
    %725 = memref.load %arg1[%c135] : memref<630xf32, #tpu.memory_space<smem>>
    %726 = vector.broadcast %725 : f32 to vector<8x30xf32>
    %727 = arith.mulf %726, %720 : vector<8x30xf32>
    %728 = arith.addf %706, %727 : vector<8x30xf32>
    %c155 = arith.constant 155 : index
    %729 = memref.load %arg1[%c155] : memref<630xf32, #tpu.memory_space<smem>>
    %730 = vector.broadcast %729 : f32 to vector<8x30xf32>
    %731 = arith.mulf %730, %720 : vector<8x30xf32>
    %732 = arith.addf %710, %731 : vector<8x30xf32>
    %c175 = arith.constant 175 : index
    %733 = memref.load %arg1[%c175] : memref<630xf32, #tpu.memory_space<smem>>
    %734 = vector.broadcast %733 : f32 to vector<8x30xf32>
    %735 = arith.mulf %734, %720 : vector<8x30xf32>
    %736 = arith.addf %714, %735 : vector<8x30xf32>
    %c195 = arith.constant 195 : index
    %737 = memref.load %arg1[%c195] : memref<630xf32, #tpu.memory_space<smem>>
    %738 = vector.broadcast %737 : f32 to vector<8x30xf32>
    %739 = arith.mulf %738, %720 : vector<8x30xf32>
    %740 = arith.addf %718, %739 : vector<8x30xf32>
    %c2_141 = arith.constant 2 : index
    %c8_142 = arith.constant 8 : index
    %c2_143 = arith.constant 2 : index
    %741 = vector.load %arg5[%c2_141, %c8_142, %c2_143] : memref<5x18x32xf32, #tpu.memory_space<vmem>>, vector<1x8x30xf32>
    %742 = vector.shape_cast %741 : vector<1x8x30xf32> to vector<8x30xf32>
    %c116 = arith.constant 116 : index
    %743 = memref.load %arg1[%c116] : memref<630xf32, #tpu.memory_space<smem>>
    %744 = vector.broadcast %743 : f32 to vector<8x30xf32>
    %745 = arith.mulf %744, %742 : vector<8x30xf32>
    %746 = arith.addf %724, %745 : vector<8x30xf32>
    %c136 = arith.constant 136 : index
    %747 = memref.load %arg1[%c136] : memref<630xf32, #tpu.memory_space<smem>>
    %748 = vector.broadcast %747 : f32 to vector<8x30xf32>
    %749 = arith.mulf %748, %742 : vector<8x30xf32>
    %750 = arith.addf %728, %749 : vector<8x30xf32>
    %c156 = arith.constant 156 : index
    %751 = memref.load %arg1[%c156] : memref<630xf32, #tpu.memory_space<smem>>
    %752 = vector.broadcast %751 : f32 to vector<8x30xf32>
    %753 = arith.mulf %752, %742 : vector<8x30xf32>
    %754 = arith.addf %732, %753 : vector<8x30xf32>
    %c176 = arith.constant 176 : index
    %755 = memref.load %arg1[%c176] : memref<630xf32, #tpu.memory_space<smem>>
    %756 = vector.broadcast %755 : f32 to vector<8x30xf32>
    %757 = arith.mulf %756, %742 : vector<8x30xf32>
    %758 = arith.addf %736, %757 : vector<8x30xf32>
    %c196 = arith.constant 196 : index
    %759 = memref.load %arg1[%c196] : memref<630xf32, #tpu.memory_space<smem>>
    %760 = vector.broadcast %759 : f32 to vector<8x30xf32>
    %761 = arith.mulf %760, %742 : vector<8x30xf32>
    %762 = arith.addf %740, %761 : vector<8x30xf32>
    %c3_144 = arith.constant 3 : index
    %c7_145 = arith.constant 7 : index
    %c1_146 = arith.constant 1 : index
    %763 = vector.load %arg5[%c3_144, %c7_145, %c1_146] : memref<5x18x32xf32, #tpu.memory_space<vmem>>, vector<1x8x30xf32>
    %764 = vector.shape_cast %763 : vector<1x8x30xf32> to vector<8x30xf32>
    %c117 = arith.constant 117 : index
    %765 = memref.load %arg1[%c117] : memref<630xf32, #tpu.memory_space<smem>>
    %766 = vector.broadcast %765 : f32 to vector<8x30xf32>
    %767 = arith.mulf %766, %764 : vector<8x30xf32>
    %768 = arith.addf %746, %767 : vector<8x30xf32>
    %c137 = arith.constant 137 : index
    %769 = memref.load %arg1[%c137] : memref<630xf32, #tpu.memory_space<smem>>
    %770 = vector.broadcast %769 : f32 to vector<8x30xf32>
    %771 = arith.mulf %770, %764 : vector<8x30xf32>
    %772 = arith.addf %750, %771 : vector<8x30xf32>
    %c157 = arith.constant 157 : index
    %773 = memref.load %arg1[%c157] : memref<630xf32, #tpu.memory_space<smem>>
    %774 = vector.broadcast %773 : f32 to vector<8x30xf32>
    %775 = arith.mulf %774, %764 : vector<8x30xf32>
    %776 = arith.addf %754, %775 : vector<8x30xf32>
    %c177 = arith.constant 177 : index
    %777 = memref.load %arg1[%c177] : memref<630xf32, #tpu.memory_space<smem>>
    %778 = vector.broadcast %777 : f32 to vector<8x30xf32>
    %779 = arith.mulf %778, %764 : vector<8x30xf32>
    %780 = arith.addf %758, %779 : vector<8x30xf32>
    %c197 = arith.constant 197 : index
    %781 = memref.load %arg1[%c197] : memref<630xf32, #tpu.memory_space<smem>>
    %782 = vector.broadcast %781 : f32 to vector<8x30xf32>
    %783 = arith.mulf %782, %764 : vector<8x30xf32>
    %784 = arith.addf %762, %783 : vector<8x30xf32>
    %c3_147 = arith.constant 3 : index
    %c7_148 = arith.constant 7 : index
    %c2_149 = arith.constant 2 : index
    %785 = vector.load %arg5[%c3_147, %c7_148, %c2_149] : memref<5x18x32xf32, #tpu.memory_space<vmem>>, vector<1x8x30xf32>
    %786 = vector.shape_cast %785 : vector<1x8x30xf32> to vector<8x30xf32>
    %c118 = arith.constant 118 : index
    %787 = memref.load %arg1[%c118] : memref<630xf32, #tpu.memory_space<smem>>
    %788 = vector.broadcast %787 : f32 to vector<8x30xf32>
    %789 = arith.mulf %788, %786 : vector<8x30xf32>
    %790 = arith.addf %768, %789 : vector<8x30xf32>
    %c138 = arith.constant 138 : index
    %791 = memref.load %arg1[%c138] : memref<630xf32, #tpu.memory_space<smem>>
    %792 = vector.broadcast %791 : f32 to vector<8x30xf32>
    %793 = arith.mulf %792, %786 : vector<8x30xf32>
    %794 = arith.addf %772, %793 : vector<8x30xf32>
    %c158 = arith.constant 158 : index
    %795 = memref.load %arg1[%c158] : memref<630xf32, #tpu.memory_space<smem>>
    %796 = vector.broadcast %795 : f32 to vector<8x30xf32>
    %797 = arith.mulf %796, %786 : vector<8x30xf32>
    %798 = arith.addf %776, %797 : vector<8x30xf32>
    %c178 = arith.constant 178 : index
    %799 = memref.load %arg1[%c178] : memref<630xf32, #tpu.memory_space<smem>>
    %800 = vector.broadcast %799 : f32 to vector<8x30xf32>
    %801 = arith.mulf %800, %786 : vector<8x30xf32>
    %802 = arith.addf %780, %801 : vector<8x30xf32>
    %c198 = arith.constant 198 : index
    %803 = memref.load %arg1[%c198] : memref<630xf32, #tpu.memory_space<smem>>
    %804 = vector.broadcast %803 : f32 to vector<8x30xf32>
    %805 = arith.mulf %804, %786 : vector<8x30xf32>
    %806 = arith.addf %784, %805 : vector<8x30xf32>
    %c3_150 = arith.constant 3 : index
    %c8_151 = arith.constant 8 : index
    %c1_152 = arith.constant 1 : index
    %807 = vector.load %arg5[%c3_150, %c8_151, %c1_152] : memref<5x18x32xf32, #tpu.memory_space<vmem>>, vector<1x8x30xf32>
    %808 = vector.shape_cast %807 : vector<1x8x30xf32> to vector<8x30xf32>
    %c119 = arith.constant 119 : index
    %809 = memref.load %arg1[%c119] : memref<630xf32, #tpu.memory_space<smem>>
    %810 = vector.broadcast %809 : f32 to vector<8x30xf32>
    %811 = arith.mulf %810, %808 : vector<8x30xf32>
    %812 = arith.addf %790, %811 : vector<8x30xf32>
    %c139 = arith.constant 139 : index
    %813 = memref.load %arg1[%c139] : memref<630xf32, #tpu.memory_space<smem>>
    %814 = vector.broadcast %813 : f32 to vector<8x30xf32>
    %815 = arith.mulf %814, %808 : vector<8x30xf32>
    %816 = arith.addf %794, %815 : vector<8x30xf32>
    %c159 = arith.constant 159 : index
    %817 = memref.load %arg1[%c159] : memref<630xf32, #tpu.memory_space<smem>>
    %818 = vector.broadcast %817 : f32 to vector<8x30xf32>
    %819 = arith.mulf %818, %808 : vector<8x30xf32>
    %820 = arith.addf %798, %819 : vector<8x30xf32>
    %c179 = arith.constant 179 : index
    %821 = memref.load %arg1[%c179] : memref<630xf32, #tpu.memory_space<smem>>
    %822 = vector.broadcast %821 : f32 to vector<8x30xf32>
    %823 = arith.mulf %822, %808 : vector<8x30xf32>
    %824 = arith.addf %802, %823 : vector<8x30xf32>
    %c199 = arith.constant 199 : index
    %825 = memref.load %arg1[%c199] : memref<630xf32, #tpu.memory_space<smem>>
    %826 = vector.broadcast %825 : f32 to vector<8x30xf32>
    %827 = arith.mulf %826, %808 : vector<8x30xf32>
    %828 = arith.addf %806, %827 : vector<8x30xf32>
    %c3_153 = arith.constant 3 : index
    %c8_154 = arith.constant 8 : index
    %c2_155 = arith.constant 2 : index
    %829 = vector.load %arg5[%c3_153, %c8_154, %c2_155] : memref<5x18x32xf32, #tpu.memory_space<vmem>>, vector<1x8x30xf32>
    %830 = vector.shape_cast %829 : vector<1x8x30xf32> to vector<8x30xf32>
    %c120 = arith.constant 120 : index
    %831 = memref.load %arg1[%c120] : memref<630xf32, #tpu.memory_space<smem>>
    %832 = vector.broadcast %831 : f32 to vector<8x30xf32>
    %833 = arith.mulf %832, %830 : vector<8x30xf32>
    %834 = arith.addf %812, %833 : vector<8x30xf32>
    %c140 = arith.constant 140 : index
    %835 = memref.load %arg1[%c140] : memref<630xf32, #tpu.memory_space<smem>>
    %836 = vector.broadcast %835 : f32 to vector<8x30xf32>
    %837 = arith.mulf %836, %830 : vector<8x30xf32>
    %838 = arith.addf %816, %837 : vector<8x30xf32>
    %c160 = arith.constant 160 : index
    %839 = memref.load %arg1[%c160] : memref<630xf32, #tpu.memory_space<smem>>
    %840 = vector.broadcast %839 : f32 to vector<8x30xf32>
    %841 = arith.mulf %840, %830 : vector<8x30xf32>
    %842 = arith.addf %820, %841 : vector<8x30xf32>
    %c180 = arith.constant 180 : index
    %843 = memref.load %arg1[%c180] : memref<630xf32, #tpu.memory_space<smem>>
    %844 = vector.broadcast %843 : f32 to vector<8x30xf32>
    %845 = arith.mulf %844, %830 : vector<8x30xf32>
    %846 = arith.addf %824, %845 : vector<8x30xf32>
    %c200 = arith.constant 200 : index
    %847 = memref.load %arg1[%c200] : memref<630xf32, #tpu.memory_space<smem>>
    %848 = vector.broadcast %847 : f32 to vector<8x30xf32>
    %849 = arith.mulf %848, %830 : vector<8x30xf32>
    %850 = arith.addf %828, %849 : vector<8x30xf32>
    %c4_156 = arith.constant 4 : index
    %c7_157 = arith.constant 7 : index
    %c1_158 = arith.constant 1 : index
    %851 = vector.load %arg5[%c4_156, %c7_157, %c1_158] : memref<5x18x32xf32, #tpu.memory_space<vmem>>, vector<1x8x30xf32>
    %852 = vector.shape_cast %851 : vector<1x8x30xf32> to vector<8x30xf32>
    %c121 = arith.constant 121 : index
    %853 = memref.load %arg1[%c121] : memref<630xf32, #tpu.memory_space<smem>>
    %854 = vector.broadcast %853 : f32 to vector<8x30xf32>
    %855 = arith.mulf %854, %852 : vector<8x30xf32>
    %856 = arith.addf %834, %855 : vector<8x30xf32>
    %c141 = arith.constant 141 : index
    %857 = memref.load %arg1[%c141] : memref<630xf32, #tpu.memory_space<smem>>
    %858 = vector.broadcast %857 : f32 to vector<8x30xf32>
    %859 = arith.mulf %858, %852 : vector<8x30xf32>
    %860 = arith.addf %838, %859 : vector<8x30xf32>
    %c161 = arith.constant 161 : index
    %861 = memref.load %arg1[%c161] : memref<630xf32, #tpu.memory_space<smem>>
    %862 = vector.broadcast %861 : f32 to vector<8x30xf32>
    %863 = arith.mulf %862, %852 : vector<8x30xf32>
    %864 = arith.addf %842, %863 : vector<8x30xf32>
    %c181 = arith.constant 181 : index
    %865 = memref.load %arg1[%c181] : memref<630xf32, #tpu.memory_space<smem>>
    %866 = vector.broadcast %865 : f32 to vector<8x30xf32>
    %867 = arith.mulf %866, %852 : vector<8x30xf32>
    %868 = arith.addf %846, %867 : vector<8x30xf32>
    %c201 = arith.constant 201 : index
    %869 = memref.load %arg1[%c201] : memref<630xf32, #tpu.memory_space<smem>>
    %870 = vector.broadcast %869 : f32 to vector<8x30xf32>
    %871 = arith.mulf %870, %852 : vector<8x30xf32>
    %872 = arith.addf %850, %871 : vector<8x30xf32>
    %c4_159 = arith.constant 4 : index
    %c7_160 = arith.constant 7 : index
    %c2_161 = arith.constant 2 : index
    %873 = vector.load %arg5[%c4_159, %c7_160, %c2_161] : memref<5x18x32xf32, #tpu.memory_space<vmem>>, vector<1x8x30xf32>
    %874 = vector.shape_cast %873 : vector<1x8x30xf32> to vector<8x30xf32>
    %c122 = arith.constant 122 : index
    %875 = memref.load %arg1[%c122] : memref<630xf32, #tpu.memory_space<smem>>
    %876 = vector.broadcast %875 : f32 to vector<8x30xf32>
    %877 = arith.mulf %876, %874 : vector<8x30xf32>
    %878 = arith.addf %856, %877 : vector<8x30xf32>
    %c142 = arith.constant 142 : index
    %879 = memref.load %arg1[%c142] : memref<630xf32, #tpu.memory_space<smem>>
    %880 = vector.broadcast %879 : f32 to vector<8x30xf32>
    %881 = arith.mulf %880, %874 : vector<8x30xf32>
    %882 = arith.addf %860, %881 : vector<8x30xf32>
    %c162 = arith.constant 162 : index
    %883 = memref.load %arg1[%c162] : memref<630xf32, #tpu.memory_space<smem>>
    %884 = vector.broadcast %883 : f32 to vector<8x30xf32>
    %885 = arith.mulf %884, %874 : vector<8x30xf32>
    %886 = arith.addf %864, %885 : vector<8x30xf32>
    %c182 = arith.constant 182 : index
    %887 = memref.load %arg1[%c182] : memref<630xf32, #tpu.memory_space<smem>>
    %888 = vector.broadcast %887 : f32 to vector<8x30xf32>
    %889 = arith.mulf %888, %874 : vector<8x30xf32>
    %890 = arith.addf %868, %889 : vector<8x30xf32>
    %c202 = arith.constant 202 : index
    %891 = memref.load %arg1[%c202] : memref<630xf32, #tpu.memory_space<smem>>
    %892 = vector.broadcast %891 : f32 to vector<8x30xf32>
    %893 = arith.mulf %892, %874 : vector<8x30xf32>
    %894 = arith.addf %872, %893 : vector<8x30xf32>
    %c4_162 = arith.constant 4 : index
    %c8_163 = arith.constant 8 : index
    %c1_164 = arith.constant 1 : index
    %895 = vector.load %arg5[%c4_162, %c8_163, %c1_164] : memref<5x18x32xf32, #tpu.memory_space<vmem>>, vector<1x8x30xf32>
    %896 = vector.shape_cast %895 : vector<1x8x30xf32> to vector<8x30xf32>
    %c123 = arith.constant 123 : index
    %897 = memref.load %arg1[%c123] : memref<630xf32, #tpu.memory_space<smem>>
    %898 = vector.broadcast %897 : f32 to vector<8x30xf32>
    %899 = arith.mulf %898, %896 : vector<8x30xf32>
    %900 = arith.addf %878, %899 : vector<8x30xf32>
    %c143 = arith.constant 143 : index
    %901 = memref.load %arg1[%c143] : memref<630xf32, #tpu.memory_space<smem>>
    %902 = vector.broadcast %901 : f32 to vector<8x30xf32>
    %903 = arith.mulf %902, %896 : vector<8x30xf32>
    %904 = arith.addf %882, %903 : vector<8x30xf32>
    %c163 = arith.constant 163 : index
    %905 = memref.load %arg1[%c163] : memref<630xf32, #tpu.memory_space<smem>>
    %906 = vector.broadcast %905 : f32 to vector<8x30xf32>
    %907 = arith.mulf %906, %896 : vector<8x30xf32>
    %908 = arith.addf %886, %907 : vector<8x30xf32>
    %c183 = arith.constant 183 : index
    %909 = memref.load %arg1[%c183] : memref<630xf32, #tpu.memory_space<smem>>
    %910 = vector.broadcast %909 : f32 to vector<8x30xf32>
    %911 = arith.mulf %910, %896 : vector<8x30xf32>
    %912 = arith.addf %890, %911 : vector<8x30xf32>
    %c203 = arith.constant 203 : index
    %913 = memref.load %arg1[%c203] : memref<630xf32, #tpu.memory_space<smem>>
    %914 = vector.broadcast %913 : f32 to vector<8x30xf32>
    %915 = arith.mulf %914, %896 : vector<8x30xf32>
    %916 = arith.addf %894, %915 : vector<8x30xf32>
    %c4_165 = arith.constant 4 : index
    %c8_166 = arith.constant 8 : index
    %c2_167 = arith.constant 2 : index
    %917 = vector.load %arg5[%c4_165, %c8_166, %c2_167] : memref<5x18x32xf32, #tpu.memory_space<vmem>>, vector<1x8x30xf32>
    %918 = vector.shape_cast %917 : vector<1x8x30xf32> to vector<8x30xf32>
    %c124 = arith.constant 124 : index
    %919 = memref.load %arg1[%c124] : memref<630xf32, #tpu.memory_space<smem>>
    %920 = vector.broadcast %919 : f32 to vector<8x30xf32>
    %921 = arith.mulf %920, %918 : vector<8x30xf32>
    %922 = arith.addf %900, %921 : vector<8x30xf32>
    %c144 = arith.constant 144 : index
    %923 = memref.load %arg1[%c144] : memref<630xf32, #tpu.memory_space<smem>>
    %924 = vector.broadcast %923 : f32 to vector<8x30xf32>
    %925 = arith.mulf %924, %918 : vector<8x30xf32>
    %926 = arith.addf %904, %925 : vector<8x30xf32>
    %c164 = arith.constant 164 : index
    %927 = memref.load %arg1[%c164] : memref<630xf32, #tpu.memory_space<smem>>
    %928 = vector.broadcast %927 : f32 to vector<8x30xf32>
    %929 = arith.mulf %928, %918 : vector<8x30xf32>
    %930 = arith.addf %908, %929 : vector<8x30xf32>
    %c184 = arith.constant 184 : index
    %931 = memref.load %arg1[%c184] : memref<630xf32, #tpu.memory_space<smem>>
    %932 = vector.broadcast %931 : f32 to vector<8x30xf32>
    %933 = arith.mulf %932, %918 : vector<8x30xf32>
    %934 = arith.addf %912, %933 : vector<8x30xf32>
    %c204 = arith.constant 204 : index
    %935 = memref.load %arg1[%c204] : memref<630xf32, #tpu.memory_space<smem>>
    %936 = vector.broadcast %935 : f32 to vector<8x30xf32>
    %937 = arith.mulf %936, %918 : vector<8x30xf32>
    %938 = arith.addf %916, %937 : vector<8x30xf32>
    %c205 = arith.constant 205 : index
    %939 = memref.load %arg1[%c205] : memref<630xf32, #tpu.memory_space<smem>>
    %940 = vector.broadcast %939 : f32 to vector<8x30xf32>
    %941 = arith.addf %922, %940 : vector<8x30xf32>
    %942 = math.tanh %941 : vector<8x30xf32>
    %c206 = arith.constant 206 : index
    %943 = memref.load %arg1[%c206] : memref<630xf32, #tpu.memory_space<smem>>
    %944 = vector.broadcast %943 : f32 to vector<8x30xf32>
    %945 = arith.addf %926, %944 : vector<8x30xf32>
    %946 = math.tanh %945 : vector<8x30xf32>
    %c207 = arith.constant 207 : index
    %947 = memref.load %arg1[%c207] : memref<630xf32, #tpu.memory_space<smem>>
    %948 = vector.broadcast %947 : f32 to vector<8x30xf32>
    %949 = arith.addf %930, %948 : vector<8x30xf32>
    %950 = math.tanh %949 : vector<8x30xf32>
    %c208 = arith.constant 208 : index
    %951 = memref.load %arg1[%c208] : memref<630xf32, #tpu.memory_space<smem>>
    %952 = vector.broadcast %951 : f32 to vector<8x30xf32>
    %953 = arith.addf %934, %952 : vector<8x30xf32>
    %954 = math.tanh %953 : vector<8x30xf32>
    %c209 = arith.constant 209 : index
    %955 = memref.load %arg1[%c209] : memref<630xf32, #tpu.memory_space<smem>>
    %956 = vector.broadcast %955 : f32 to vector<8x30xf32>
    %957 = arith.addf %938, %956 : vector<8x30xf32>
    %958 = math.tanh %957 : vector<8x30xf32>
    %c0_168 = arith.constant 0 : index
    %c7_169 = arith.constant 7 : index
    %c1_170 = arith.constant 1 : index
    %959 = vector.load %arg4[%c0_168, %c7_169, %c1_170] : memref<5x18x32xf32, #tpu.memory_space<vmem>>, vector<1x8x30xf32>
    %960 = vector.shape_cast %959 : vector<1x8x30xf32> to vector<8x30xf32>
    %c210 = arith.constant 210 : index
    %961 = memref.load %arg1[%c210] : memref<630xf32, #tpu.memory_space<smem>>
    %962 = vector.broadcast %961 : f32 to vector<8x30xf32>
    %963 = arith.mulf %962, %960 : vector<8x30xf32>
    %c225 = arith.constant 225 : index
    %964 = memref.load %arg1[%c225] : memref<630xf32, #tpu.memory_space<smem>>
    %965 = vector.broadcast %964 : f32 to vector<8x30xf32>
    %966 = arith.mulf %965, %960 : vector<8x30xf32>
    %c240 = arith.constant 240 : index
    %967 = memref.load %arg1[%c240] : memref<630xf32, #tpu.memory_space<smem>>
    %968 = vector.broadcast %967 : f32 to vector<8x30xf32>
    %969 = arith.mulf %968, %960 : vector<8x30xf32>
    %c255 = arith.constant 255 : index
    %970 = memref.load %arg1[%c255] : memref<630xf32, #tpu.memory_space<smem>>
    %971 = vector.broadcast %970 : f32 to vector<8x30xf32>
    %972 = arith.mulf %971, %960 : vector<8x30xf32>
    %c270 = arith.constant 270 : index
    %973 = memref.load %arg1[%c270] : memref<630xf32, #tpu.memory_space<smem>>
    %974 = vector.broadcast %973 : f32 to vector<8x30xf32>
    %975 = arith.mulf %974, %960 : vector<8x30xf32>
    %c0_171 = arith.constant 0 : index
    %c8_172 = arith.constant 8 : index
    %c1_173 = arith.constant 1 : index
    %976 = vector.load %arg4[%c0_171, %c8_172, %c1_173] : memref<5x18x32xf32, #tpu.memory_space<vmem>>, vector<1x8x30xf32>
    %977 = vector.shape_cast %976 : vector<1x8x30xf32> to vector<8x30xf32>
    %c211 = arith.constant 211 : index
    %978 = memref.load %arg1[%c211] : memref<630xf32, #tpu.memory_space<smem>>
    %979 = vector.broadcast %978 : f32 to vector<8x30xf32>
    %980 = arith.mulf %979, %977 : vector<8x30xf32>
    %981 = arith.addf %963, %980 : vector<8x30xf32>
    %c226 = arith.constant 226 : index
    %982 = memref.load %arg1[%c226] : memref<630xf32, #tpu.memory_space<smem>>
    %983 = vector.broadcast %982 : f32 to vector<8x30xf32>
    %984 = arith.mulf %983, %977 : vector<8x30xf32>
    %985 = arith.addf %966, %984 : vector<8x30xf32>
    %c241 = arith.constant 241 : index
    %986 = memref.load %arg1[%c241] : memref<630xf32, #tpu.memory_space<smem>>
    %987 = vector.broadcast %986 : f32 to vector<8x30xf32>
    %988 = arith.mulf %987, %977 : vector<8x30xf32>
    %989 = arith.addf %969, %988 : vector<8x30xf32>
    %c256 = arith.constant 256 : index
    %990 = memref.load %arg1[%c256] : memref<630xf32, #tpu.memory_space<smem>>
    %991 = vector.broadcast %990 : f32 to vector<8x30xf32>
    %992 = arith.mulf %991, %977 : vector<8x30xf32>
    %993 = arith.addf %972, %992 : vector<8x30xf32>
    %c271 = arith.constant 271 : index
    %994 = memref.load %arg1[%c271] : memref<630xf32, #tpu.memory_space<smem>>
    %995 = vector.broadcast %994 : f32 to vector<8x30xf32>
    %996 = arith.mulf %995, %977 : vector<8x30xf32>
    %997 = arith.addf %975, %996 : vector<8x30xf32>
    %c0_174 = arith.constant 0 : index
    %c9_175 = arith.constant 9 : index
    %c1_176 = arith.constant 1 : index
    %998 = vector.load %arg4[%c0_174, %c9_175, %c1_176] : memref<5x18x32xf32, #tpu.memory_space<vmem>>, vector<1x8x30xf32>
    %999 = vector.shape_cast %998 : vector<1x8x30xf32> to vector<8x30xf32>
    %c212 = arith.constant 212 : index
    %1000 = memref.load %arg1[%c212] : memref<630xf32, #tpu.memory_space<smem>>
    %1001 = vector.broadcast %1000 : f32 to vector<8x30xf32>
    %1002 = arith.mulf %1001, %999 : vector<8x30xf32>
    %1003 = arith.addf %981, %1002 : vector<8x30xf32>
    %c227 = arith.constant 227 : index
    %1004 = memref.load %arg1[%c227] : memref<630xf32, #tpu.memory_space<smem>>
    %1005 = vector.broadcast %1004 : f32 to vector<8x30xf32>
    %1006 = arith.mulf %1005, %999 : vector<8x30xf32>
    %1007 = arith.addf %985, %1006 : vector<8x30xf32>
    %c242 = arith.constant 242 : index
    %1008 = memref.load %arg1[%c242] : memref<630xf32, #tpu.memory_space<smem>>
    %1009 = vector.broadcast %1008 : f32 to vector<8x30xf32>
    %1010 = arith.mulf %1009, %999 : vector<8x30xf32>
    %1011 = arith.addf %989, %1010 : vector<8x30xf32>
    %c257 = arith.constant 257 : index
    %1012 = memref.load %arg1[%c257] : memref<630xf32, #tpu.memory_space<smem>>
    %1013 = vector.broadcast %1012 : f32 to vector<8x30xf32>
    %1014 = arith.mulf %1013, %999 : vector<8x30xf32>
    %1015 = arith.addf %993, %1014 : vector<8x30xf32>
    %c272 = arith.constant 272 : index
    %1016 = memref.load %arg1[%c272] : memref<630xf32, #tpu.memory_space<smem>>
    %1017 = vector.broadcast %1016 : f32 to vector<8x30xf32>
    %1018 = arith.mulf %1017, %999 : vector<8x30xf32>
    %1019 = arith.addf %997, %1018 : vector<8x30xf32>
    %c1_177 = arith.constant 1 : index
    %c7_178 = arith.constant 7 : index
    %c1_179 = arith.constant 1 : index
    %1020 = vector.load %arg4[%c1_177, %c7_178, %c1_179] : memref<5x18x32xf32, #tpu.memory_space<vmem>>, vector<1x8x30xf32>
    %1021 = vector.shape_cast %1020 : vector<1x8x30xf32> to vector<8x30xf32>
    %c213 = arith.constant 213 : index
    %1022 = memref.load %arg1[%c213] : memref<630xf32, #tpu.memory_space<smem>>
    %1023 = vector.broadcast %1022 : f32 to vector<8x30xf32>
    %1024 = arith.mulf %1023, %1021 : vector<8x30xf32>
    %1025 = arith.addf %1003, %1024 : vector<8x30xf32>
    %c228 = arith.constant 228 : index
    %1026 = memref.load %arg1[%c228] : memref<630xf32, #tpu.memory_space<smem>>
    %1027 = vector.broadcast %1026 : f32 to vector<8x30xf32>
    %1028 = arith.mulf %1027, %1021 : vector<8x30xf32>
    %1029 = arith.addf %1007, %1028 : vector<8x30xf32>
    %c243 = arith.constant 243 : index
    %1030 = memref.load %arg1[%c243] : memref<630xf32, #tpu.memory_space<smem>>
    %1031 = vector.broadcast %1030 : f32 to vector<8x30xf32>
    %1032 = arith.mulf %1031, %1021 : vector<8x30xf32>
    %1033 = arith.addf %1011, %1032 : vector<8x30xf32>
    %c258 = arith.constant 258 : index
    %1034 = memref.load %arg1[%c258] : memref<630xf32, #tpu.memory_space<smem>>
    %1035 = vector.broadcast %1034 : f32 to vector<8x30xf32>
    %1036 = arith.mulf %1035, %1021 : vector<8x30xf32>
    %1037 = arith.addf %1015, %1036 : vector<8x30xf32>
    %c273 = arith.constant 273 : index
    %1038 = memref.load %arg1[%c273] : memref<630xf32, #tpu.memory_space<smem>>
    %1039 = vector.broadcast %1038 : f32 to vector<8x30xf32>
    %1040 = arith.mulf %1039, %1021 : vector<8x30xf32>
    %1041 = arith.addf %1019, %1040 : vector<8x30xf32>
    %c1_180 = arith.constant 1 : index
    %c8_181 = arith.constant 8 : index
    %c1_182 = arith.constant 1 : index
    %1042 = vector.load %arg4[%c1_180, %c8_181, %c1_182] : memref<5x18x32xf32, #tpu.memory_space<vmem>>, vector<1x8x30xf32>
    %1043 = vector.shape_cast %1042 : vector<1x8x30xf32> to vector<8x30xf32>
    %c214 = arith.constant 214 : index
    %1044 = memref.load %arg1[%c214] : memref<630xf32, #tpu.memory_space<smem>>
    %1045 = vector.broadcast %1044 : f32 to vector<8x30xf32>
    %1046 = arith.mulf %1045, %1043 : vector<8x30xf32>
    %1047 = arith.addf %1025, %1046 : vector<8x30xf32>
    %c229 = arith.constant 229 : index
    %1048 = memref.load %arg1[%c229] : memref<630xf32, #tpu.memory_space<smem>>
    %1049 = vector.broadcast %1048 : f32 to vector<8x30xf32>
    %1050 = arith.mulf %1049, %1043 : vector<8x30xf32>
    %1051 = arith.addf %1029, %1050 : vector<8x30xf32>
    %c244 = arith.constant 244 : index
    %1052 = memref.load %arg1[%c244] : memref<630xf32, #tpu.memory_space<smem>>
    %1053 = vector.broadcast %1052 : f32 to vector<8x30xf32>
    %1054 = arith.mulf %1053, %1043 : vector<8x30xf32>
    %1055 = arith.addf %1033, %1054 : vector<8x30xf32>
    %c259 = arith.constant 259 : index
    %1056 = memref.load %arg1[%c259] : memref<630xf32, #tpu.memory_space<smem>>
    %1057 = vector.broadcast %1056 : f32 to vector<8x30xf32>
    %1058 = arith.mulf %1057, %1043 : vector<8x30xf32>
    %1059 = arith.addf %1037, %1058 : vector<8x30xf32>
    %c274 = arith.constant 274 : index
    %1060 = memref.load %arg1[%c274] : memref<630xf32, #tpu.memory_space<smem>>
    %1061 = vector.broadcast %1060 : f32 to vector<8x30xf32>
    %1062 = arith.mulf %1061, %1043 : vector<8x30xf32>
    %1063 = arith.addf %1041, %1062 : vector<8x30xf32>
    %c1_183 = arith.constant 1 : index
    %c9_184 = arith.constant 9 : index
    %c1_185 = arith.constant 1 : index
    %1064 = vector.load %arg4[%c1_183, %c9_184, %c1_185] : memref<5x18x32xf32, #tpu.memory_space<vmem>>, vector<1x8x30xf32>
    %1065 = vector.shape_cast %1064 : vector<1x8x30xf32> to vector<8x30xf32>
    %c215 = arith.constant 215 : index
    %1066 = memref.load %arg1[%c215] : memref<630xf32, #tpu.memory_space<smem>>
    %1067 = vector.broadcast %1066 : f32 to vector<8x30xf32>
    %1068 = arith.mulf %1067, %1065 : vector<8x30xf32>
    %1069 = arith.addf %1047, %1068 : vector<8x30xf32>
    %c230 = arith.constant 230 : index
    %1070 = memref.load %arg1[%c230] : memref<630xf32, #tpu.memory_space<smem>>
    %1071 = vector.broadcast %1070 : f32 to vector<8x30xf32>
    %1072 = arith.mulf %1071, %1065 : vector<8x30xf32>
    %1073 = arith.addf %1051, %1072 : vector<8x30xf32>
    %c245 = arith.constant 245 : index
    %1074 = memref.load %arg1[%c245] : memref<630xf32, #tpu.memory_space<smem>>
    %1075 = vector.broadcast %1074 : f32 to vector<8x30xf32>
    %1076 = arith.mulf %1075, %1065 : vector<8x30xf32>
    %1077 = arith.addf %1055, %1076 : vector<8x30xf32>
    %c260 = arith.constant 260 : index
    %1078 = memref.load %arg1[%c260] : memref<630xf32, #tpu.memory_space<smem>>
    %1079 = vector.broadcast %1078 : f32 to vector<8x30xf32>
    %1080 = arith.mulf %1079, %1065 : vector<8x30xf32>
    %1081 = arith.addf %1059, %1080 : vector<8x30xf32>
    %c275 = arith.constant 275 : index
    %1082 = memref.load %arg1[%c275] : memref<630xf32, #tpu.memory_space<smem>>
    %1083 = vector.broadcast %1082 : f32 to vector<8x30xf32>
    %1084 = arith.mulf %1083, %1065 : vector<8x30xf32>
    %1085 = arith.addf %1063, %1084 : vector<8x30xf32>
    %c2_186 = arith.constant 2 : index
    %c7_187 = arith.constant 7 : index
    %c1_188 = arith.constant 1 : index
    %1086 = vector.load %arg4[%c2_186, %c7_187, %c1_188] : memref<5x18x32xf32, #tpu.memory_space<vmem>>, vector<1x8x30xf32>
    %1087 = vector.shape_cast %1086 : vector<1x8x30xf32> to vector<8x30xf32>
    %c216 = arith.constant 216 : index
    %1088 = memref.load %arg1[%c216] : memref<630xf32, #tpu.memory_space<smem>>
    %1089 = vector.broadcast %1088 : f32 to vector<8x30xf32>
    %1090 = arith.mulf %1089, %1087 : vector<8x30xf32>
    %1091 = arith.addf %1069, %1090 : vector<8x30xf32>
    %c231 = arith.constant 231 : index
    %1092 = memref.load %arg1[%c231] : memref<630xf32, #tpu.memory_space<smem>>
    %1093 = vector.broadcast %1092 : f32 to vector<8x30xf32>
    %1094 = arith.mulf %1093, %1087 : vector<8x30xf32>
    %1095 = arith.addf %1073, %1094 : vector<8x30xf32>
    %c246 = arith.constant 246 : index
    %1096 = memref.load %arg1[%c246] : memref<630xf32, #tpu.memory_space<smem>>
    %1097 = vector.broadcast %1096 : f32 to vector<8x30xf32>
    %1098 = arith.mulf %1097, %1087 : vector<8x30xf32>
    %1099 = arith.addf %1077, %1098 : vector<8x30xf32>
    %c261 = arith.constant 261 : index
    %1100 = memref.load %arg1[%c261] : memref<630xf32, #tpu.memory_space<smem>>
    %1101 = vector.broadcast %1100 : f32 to vector<8x30xf32>
    %1102 = arith.mulf %1101, %1087 : vector<8x30xf32>
    %1103 = arith.addf %1081, %1102 : vector<8x30xf32>
    %c276 = arith.constant 276 : index
    %1104 = memref.load %arg1[%c276] : memref<630xf32, #tpu.memory_space<smem>>
    %1105 = vector.broadcast %1104 : f32 to vector<8x30xf32>
    %1106 = arith.mulf %1105, %1087 : vector<8x30xf32>
    %1107 = arith.addf %1085, %1106 : vector<8x30xf32>
    %c2_189 = arith.constant 2 : index
    %c8_190 = arith.constant 8 : index
    %c1_191 = arith.constant 1 : index
    %1108 = vector.load %arg4[%c2_189, %c8_190, %c1_191] : memref<5x18x32xf32, #tpu.memory_space<vmem>>, vector<1x8x30xf32>
    %1109 = vector.shape_cast %1108 : vector<1x8x30xf32> to vector<8x30xf32>
    %c217 = arith.constant 217 : index
    %1110 = memref.load %arg1[%c217] : memref<630xf32, #tpu.memory_space<smem>>
    %1111 = vector.broadcast %1110 : f32 to vector<8x30xf32>
    %1112 = arith.mulf %1111, %1109 : vector<8x30xf32>
    %1113 = arith.addf %1091, %1112 : vector<8x30xf32>
    %c232 = arith.constant 232 : index
    %1114 = memref.load %arg1[%c232] : memref<630xf32, #tpu.memory_space<smem>>
    %1115 = vector.broadcast %1114 : f32 to vector<8x30xf32>
    %1116 = arith.mulf %1115, %1109 : vector<8x30xf32>
    %1117 = arith.addf %1095, %1116 : vector<8x30xf32>
    %c247 = arith.constant 247 : index
    %1118 = memref.load %arg1[%c247] : memref<630xf32, #tpu.memory_space<smem>>
    %1119 = vector.broadcast %1118 : f32 to vector<8x30xf32>
    %1120 = arith.mulf %1119, %1109 : vector<8x30xf32>
    %1121 = arith.addf %1099, %1120 : vector<8x30xf32>
    %c262 = arith.constant 262 : index
    %1122 = memref.load %arg1[%c262] : memref<630xf32, #tpu.memory_space<smem>>
    %1123 = vector.broadcast %1122 : f32 to vector<8x30xf32>
    %1124 = arith.mulf %1123, %1109 : vector<8x30xf32>
    %1125 = arith.addf %1103, %1124 : vector<8x30xf32>
    %c277 = arith.constant 277 : index
    %1126 = memref.load %arg1[%c277] : memref<630xf32, #tpu.memory_space<smem>>
    %1127 = vector.broadcast %1126 : f32 to vector<8x30xf32>
    %1128 = arith.mulf %1127, %1109 : vector<8x30xf32>
    %1129 = arith.addf %1107, %1128 : vector<8x30xf32>
    %c2_192 = arith.constant 2 : index
    %c9_193 = arith.constant 9 : index
    %c1_194 = arith.constant 1 : index
    %1130 = vector.load %arg4[%c2_192, %c9_193, %c1_194] : memref<5x18x32xf32, #tpu.memory_space<vmem>>, vector<1x8x30xf32>
    %1131 = vector.shape_cast %1130 : vector<1x8x30xf32> to vector<8x30xf32>
    %c218 = arith.constant 218 : index
    %1132 = memref.load %arg1[%c218] : memref<630xf32, #tpu.memory_space<smem>>
    %1133 = vector.broadcast %1132 : f32 to vector<8x30xf32>
    %1134 = arith.mulf %1133, %1131 : vector<8x30xf32>
    %1135 = arith.addf %1113, %1134 : vector<8x30xf32>
    %c233 = arith.constant 233 : index
    %1136 = memref.load %arg1[%c233] : memref<630xf32, #tpu.memory_space<smem>>
    %1137 = vector.broadcast %1136 : f32 to vector<8x30xf32>
    %1138 = arith.mulf %1137, %1131 : vector<8x30xf32>
    %1139 = arith.addf %1117, %1138 : vector<8x30xf32>
    %c248 = arith.constant 248 : index
    %1140 = memref.load %arg1[%c248] : memref<630xf32, #tpu.memory_space<smem>>
    %1141 = vector.broadcast %1140 : f32 to vector<8x30xf32>
    %1142 = arith.mulf %1141, %1131 : vector<8x30xf32>
    %1143 = arith.addf %1121, %1142 : vector<8x30xf32>
    %c263 = arith.constant 263 : index
    %1144 = memref.load %arg1[%c263] : memref<630xf32, #tpu.memory_space<smem>>
    %1145 = vector.broadcast %1144 : f32 to vector<8x30xf32>
    %1146 = arith.mulf %1145, %1131 : vector<8x30xf32>
    %1147 = arith.addf %1125, %1146 : vector<8x30xf32>
    %c278 = arith.constant 278 : index
    %1148 = memref.load %arg1[%c278] : memref<630xf32, #tpu.memory_space<smem>>
    %1149 = vector.broadcast %1148 : f32 to vector<8x30xf32>
    %1150 = arith.mulf %1149, %1131 : vector<8x30xf32>
    %1151 = arith.addf %1129, %1150 : vector<8x30xf32>
    %c3_195 = arith.constant 3 : index
    %c7_196 = arith.constant 7 : index
    %c1_197 = arith.constant 1 : index
    %1152 = vector.load %arg4[%c3_195, %c7_196, %c1_197] : memref<5x18x32xf32, #tpu.memory_space<vmem>>, vector<1x8x30xf32>
    %1153 = vector.shape_cast %1152 : vector<1x8x30xf32> to vector<8x30xf32>
    %c219 = arith.constant 219 : index
    %1154 = memref.load %arg1[%c219] : memref<630xf32, #tpu.memory_space<smem>>
    %1155 = vector.broadcast %1154 : f32 to vector<8x30xf32>
    %1156 = arith.mulf %1155, %1153 : vector<8x30xf32>
    %1157 = arith.addf %1135, %1156 : vector<8x30xf32>
    %c234 = arith.constant 234 : index
    %1158 = memref.load %arg1[%c234] : memref<630xf32, #tpu.memory_space<smem>>
    %1159 = vector.broadcast %1158 : f32 to vector<8x30xf32>
    %1160 = arith.mulf %1159, %1153 : vector<8x30xf32>
    %1161 = arith.addf %1139, %1160 : vector<8x30xf32>
    %c249 = arith.constant 249 : index
    %1162 = memref.load %arg1[%c249] : memref<630xf32, #tpu.memory_space<smem>>
    %1163 = vector.broadcast %1162 : f32 to vector<8x30xf32>
    %1164 = arith.mulf %1163, %1153 : vector<8x30xf32>
    %1165 = arith.addf %1143, %1164 : vector<8x30xf32>
    %c264 = arith.constant 264 : index
    %1166 = memref.load %arg1[%c264] : memref<630xf32, #tpu.memory_space<smem>>
    %1167 = vector.broadcast %1166 : f32 to vector<8x30xf32>
    %1168 = arith.mulf %1167, %1153 : vector<8x30xf32>
    %1169 = arith.addf %1147, %1168 : vector<8x30xf32>
    %c279 = arith.constant 279 : index
    %1170 = memref.load %arg1[%c279] : memref<630xf32, #tpu.memory_space<smem>>
    %1171 = vector.broadcast %1170 : f32 to vector<8x30xf32>
    %1172 = arith.mulf %1171, %1153 : vector<8x30xf32>
    %1173 = arith.addf %1151, %1172 : vector<8x30xf32>
    %c3_198 = arith.constant 3 : index
    %c8_199 = arith.constant 8 : index
    %c1_200 = arith.constant 1 : index
    %1174 = vector.load %arg4[%c3_198, %c8_199, %c1_200] : memref<5x18x32xf32, #tpu.memory_space<vmem>>, vector<1x8x30xf32>
    %1175 = vector.shape_cast %1174 : vector<1x8x30xf32> to vector<8x30xf32>
    %c220 = arith.constant 220 : index
    %1176 = memref.load %arg1[%c220] : memref<630xf32, #tpu.memory_space<smem>>
    %1177 = vector.broadcast %1176 : f32 to vector<8x30xf32>
    %1178 = arith.mulf %1177, %1175 : vector<8x30xf32>
    %1179 = arith.addf %1157, %1178 : vector<8x30xf32>
    %c235 = arith.constant 235 : index
    %1180 = memref.load %arg1[%c235] : memref<630xf32, #tpu.memory_space<smem>>
    %1181 = vector.broadcast %1180 : f32 to vector<8x30xf32>
    %1182 = arith.mulf %1181, %1175 : vector<8x30xf32>
    %1183 = arith.addf %1161, %1182 : vector<8x30xf32>
    %c250 = arith.constant 250 : index
    %1184 = memref.load %arg1[%c250] : memref<630xf32, #tpu.memory_space<smem>>
    %1185 = vector.broadcast %1184 : f32 to vector<8x30xf32>
    %1186 = arith.mulf %1185, %1175 : vector<8x30xf32>
    %1187 = arith.addf %1165, %1186 : vector<8x30xf32>
    %c265 = arith.constant 265 : index
    %1188 = memref.load %arg1[%c265] : memref<630xf32, #tpu.memory_space<smem>>
    %1189 = vector.broadcast %1188 : f32 to vector<8x30xf32>
    %1190 = arith.mulf %1189, %1175 : vector<8x30xf32>
    %1191 = arith.addf %1169, %1190 : vector<8x30xf32>
    %c280 = arith.constant 280 : index
    %1192 = memref.load %arg1[%c280] : memref<630xf32, #tpu.memory_space<smem>>
    %1193 = vector.broadcast %1192 : f32 to vector<8x30xf32>
    %1194 = arith.mulf %1193, %1175 : vector<8x30xf32>
    %1195 = arith.addf %1173, %1194 : vector<8x30xf32>
    %c3_201 = arith.constant 3 : index
    %c9_202 = arith.constant 9 : index
    %c1_203 = arith.constant 1 : index
    %1196 = vector.load %arg4[%c3_201, %c9_202, %c1_203] : memref<5x18x32xf32, #tpu.memory_space<vmem>>, vector<1x8x30xf32>
    %1197 = vector.shape_cast %1196 : vector<1x8x30xf32> to vector<8x30xf32>
    %c221 = arith.constant 221 : index
    %1198 = memref.load %arg1[%c221] : memref<630xf32, #tpu.memory_space<smem>>
    %1199 = vector.broadcast %1198 : f32 to vector<8x30xf32>
    %1200 = arith.mulf %1199, %1197 : vector<8x30xf32>
    %1201 = arith.addf %1179, %1200 : vector<8x30xf32>
    %c236 = arith.constant 236 : index
    %1202 = memref.load %arg1[%c236] : memref<630xf32, #tpu.memory_space<smem>>
    %1203 = vector.broadcast %1202 : f32 to vector<8x30xf32>
    %1204 = arith.mulf %1203, %1197 : vector<8x30xf32>
    %1205 = arith.addf %1183, %1204 : vector<8x30xf32>
    %c251 = arith.constant 251 : index
    %1206 = memref.load %arg1[%c251] : memref<630xf32, #tpu.memory_space<smem>>
    %1207 = vector.broadcast %1206 : f32 to vector<8x30xf32>
    %1208 = arith.mulf %1207, %1197 : vector<8x30xf32>
    %1209 = arith.addf %1187, %1208 : vector<8x30xf32>
    %c266 = arith.constant 266 : index
    %1210 = memref.load %arg1[%c266] : memref<630xf32, #tpu.memory_space<smem>>
    %1211 = vector.broadcast %1210 : f32 to vector<8x30xf32>
    %1212 = arith.mulf %1211, %1197 : vector<8x30xf32>
    %1213 = arith.addf %1191, %1212 : vector<8x30xf32>
    %c281 = arith.constant 281 : index
    %1214 = memref.load %arg1[%c281] : memref<630xf32, #tpu.memory_space<smem>>
    %1215 = vector.broadcast %1214 : f32 to vector<8x30xf32>
    %1216 = arith.mulf %1215, %1197 : vector<8x30xf32>
    %1217 = arith.addf %1195, %1216 : vector<8x30xf32>
    %c4_204 = arith.constant 4 : index
    %c7_205 = arith.constant 7 : index
    %c1_206 = arith.constant 1 : index
    %1218 = vector.load %arg4[%c4_204, %c7_205, %c1_206] : memref<5x18x32xf32, #tpu.memory_space<vmem>>, vector<1x8x30xf32>
    %1219 = vector.shape_cast %1218 : vector<1x8x30xf32> to vector<8x30xf32>
    %c222 = arith.constant 222 : index
    %1220 = memref.load %arg1[%c222] : memref<630xf32, #tpu.memory_space<smem>>
    %1221 = vector.broadcast %1220 : f32 to vector<8x30xf32>
    %1222 = arith.mulf %1221, %1219 : vector<8x30xf32>
    %1223 = arith.addf %1201, %1222 : vector<8x30xf32>
    %c237 = arith.constant 237 : index
    %1224 = memref.load %arg1[%c237] : memref<630xf32, #tpu.memory_space<smem>>
    %1225 = vector.broadcast %1224 : f32 to vector<8x30xf32>
    %1226 = arith.mulf %1225, %1219 : vector<8x30xf32>
    %1227 = arith.addf %1205, %1226 : vector<8x30xf32>
    %c252 = arith.constant 252 : index
    %1228 = memref.load %arg1[%c252] : memref<630xf32, #tpu.memory_space<smem>>
    %1229 = vector.broadcast %1228 : f32 to vector<8x30xf32>
    %1230 = arith.mulf %1229, %1219 : vector<8x30xf32>
    %1231 = arith.addf %1209, %1230 : vector<8x30xf32>
    %c267 = arith.constant 267 : index
    %1232 = memref.load %arg1[%c267] : memref<630xf32, #tpu.memory_space<smem>>
    %1233 = vector.broadcast %1232 : f32 to vector<8x30xf32>
    %1234 = arith.mulf %1233, %1219 : vector<8x30xf32>
    %1235 = arith.addf %1213, %1234 : vector<8x30xf32>
    %c282 = arith.constant 282 : index
    %1236 = memref.load %arg1[%c282] : memref<630xf32, #tpu.memory_space<smem>>
    %1237 = vector.broadcast %1236 : f32 to vector<8x30xf32>
    %1238 = arith.mulf %1237, %1219 : vector<8x30xf32>
    %1239 = arith.addf %1217, %1238 : vector<8x30xf32>
    %c4_207 = arith.constant 4 : index
    %c8_208 = arith.constant 8 : index
    %c1_209 = arith.constant 1 : index
    %1240 = vector.load %arg4[%c4_207, %c8_208, %c1_209] : memref<5x18x32xf32, #tpu.memory_space<vmem>>, vector<1x8x30xf32>
    %1241 = vector.shape_cast %1240 : vector<1x8x30xf32> to vector<8x30xf32>
    %c223 = arith.constant 223 : index
    %1242 = memref.load %arg1[%c223] : memref<630xf32, #tpu.memory_space<smem>>
    %1243 = vector.broadcast %1242 : f32 to vector<8x30xf32>
    %1244 = arith.mulf %1243, %1241 : vector<8x30xf32>
    %1245 = arith.addf %1223, %1244 : vector<8x30xf32>
    %c238 = arith.constant 238 : index
    %1246 = memref.load %arg1[%c238] : memref<630xf32, #tpu.memory_space<smem>>
    %1247 = vector.broadcast %1246 : f32 to vector<8x30xf32>
    %1248 = arith.mulf %1247, %1241 : vector<8x30xf32>
    %1249 = arith.addf %1227, %1248 : vector<8x30xf32>
    %c253 = arith.constant 253 : index
    %1250 = memref.load %arg1[%c253] : memref<630xf32, #tpu.memory_space<smem>>
    %1251 = vector.broadcast %1250 : f32 to vector<8x30xf32>
    %1252 = arith.mulf %1251, %1241 : vector<8x30xf32>
    %1253 = arith.addf %1231, %1252 : vector<8x30xf32>
    %c268 = arith.constant 268 : index
    %1254 = memref.load %arg1[%c268] : memref<630xf32, #tpu.memory_space<smem>>
    %1255 = vector.broadcast %1254 : f32 to vector<8x30xf32>
    %1256 = arith.mulf %1255, %1241 : vector<8x30xf32>
    %1257 = arith.addf %1235, %1256 : vector<8x30xf32>
    %c283 = arith.constant 283 : index
    %1258 = memref.load %arg1[%c283] : memref<630xf32, #tpu.memory_space<smem>>
    %1259 = vector.broadcast %1258 : f32 to vector<8x30xf32>
    %1260 = arith.mulf %1259, %1241 : vector<8x30xf32>
    %1261 = arith.addf %1239, %1260 : vector<8x30xf32>
    %c4_210 = arith.constant 4 : index
    %c9_211 = arith.constant 9 : index
    %c1_212 = arith.constant 1 : index
    %1262 = vector.load %arg4[%c4_210, %c9_211, %c1_212] : memref<5x18x32xf32, #tpu.memory_space<vmem>>, vector<1x8x30xf32>
    %1263 = vector.shape_cast %1262 : vector<1x8x30xf32> to vector<8x30xf32>
    %c224 = arith.constant 224 : index
    %1264 = memref.load %arg1[%c224] : memref<630xf32, #tpu.memory_space<smem>>
    %1265 = vector.broadcast %1264 : f32 to vector<8x30xf32>
    %1266 = arith.mulf %1265, %1263 : vector<8x30xf32>
    %1267 = arith.addf %1245, %1266 : vector<8x30xf32>
    %c239 = arith.constant 239 : index
    %1268 = memref.load %arg1[%c239] : memref<630xf32, #tpu.memory_space<smem>>
    %1269 = vector.broadcast %1268 : f32 to vector<8x30xf32>
    %1270 = arith.mulf %1269, %1263 : vector<8x30xf32>
    %1271 = arith.addf %1249, %1270 : vector<8x30xf32>
    %c254 = arith.constant 254 : index
    %1272 = memref.load %arg1[%c254] : memref<630xf32, #tpu.memory_space<smem>>
    %1273 = vector.broadcast %1272 : f32 to vector<8x30xf32>
    %1274 = arith.mulf %1273, %1263 : vector<8x30xf32>
    %1275 = arith.addf %1253, %1274 : vector<8x30xf32>
    %c269 = arith.constant 269 : index
    %1276 = memref.load %arg1[%c269] : memref<630xf32, #tpu.memory_space<smem>>
    %1277 = vector.broadcast %1276 : f32 to vector<8x30xf32>
    %1278 = arith.mulf %1277, %1263 : vector<8x30xf32>
    %1279 = arith.addf %1257, %1278 : vector<8x30xf32>
    %c284 = arith.constant 284 : index
    %1280 = memref.load %arg1[%c284] : memref<630xf32, #tpu.memory_space<smem>>
    %1281 = vector.broadcast %1280 : f32 to vector<8x30xf32>
    %1282 = arith.mulf %1281, %1263 : vector<8x30xf32>
    %1283 = arith.addf %1261, %1282 : vector<8x30xf32>
    %c285 = arith.constant 285 : index
    %1284 = memref.load %arg1[%c285] : memref<630xf32, #tpu.memory_space<smem>>
    %1285 = vector.broadcast %1284 : f32 to vector<8x30xf32>
    %1286 = arith.addf %1267, %1285 : vector<8x30xf32>
    %1287 = arith.addf %1286, %942 : vector<8x30xf32>
    %cst_213 = arith.constant 0.000000e+00 : f32
    %1288 = vector.broadcast %cst_213 : f32 to vector<8x30xf32>
    %1289 = arith.maximumf %1287, %1288 : vector<8x30xf32>
    %c286 = arith.constant 286 : index
    %1290 = memref.load %arg1[%c286] : memref<630xf32, #tpu.memory_space<smem>>
    %1291 = vector.broadcast %1290 : f32 to vector<8x30xf32>
    %1292 = arith.addf %1271, %1291 : vector<8x30xf32>
    %1293 = arith.addf %1292, %946 : vector<8x30xf32>
    %cst_214 = arith.constant 0.000000e+00 : f32
    %1294 = vector.broadcast %cst_214 : f32 to vector<8x30xf32>
    %1295 = arith.maximumf %1293, %1294 : vector<8x30xf32>
    %c287 = arith.constant 287 : index
    %1296 = memref.load %arg1[%c287] : memref<630xf32, #tpu.memory_space<smem>>
    %1297 = vector.broadcast %1296 : f32 to vector<8x30xf32>
    %1298 = arith.addf %1275, %1297 : vector<8x30xf32>
    %1299 = arith.addf %1298, %950 : vector<8x30xf32>
    %cst_215 = arith.constant 0.000000e+00 : f32
    %1300 = vector.broadcast %cst_215 : f32 to vector<8x30xf32>
    %1301 = arith.maximumf %1299, %1300 : vector<8x30xf32>
    %c288 = arith.constant 288 : index
    %1302 = memref.load %arg1[%c288] : memref<630xf32, #tpu.memory_space<smem>>
    %1303 = vector.broadcast %1302 : f32 to vector<8x30xf32>
    %1304 = arith.addf %1279, %1303 : vector<8x30xf32>
    %1305 = arith.addf %1304, %954 : vector<8x30xf32>
    %cst_216 = arith.constant 0.000000e+00 : f32
    %1306 = vector.broadcast %cst_216 : f32 to vector<8x30xf32>
    %1307 = arith.maximumf %1305, %1306 : vector<8x30xf32>
    %c289 = arith.constant 289 : index
    %1308 = memref.load %arg1[%c289] : memref<630xf32, #tpu.memory_space<smem>>
    %1309 = vector.broadcast %1308 : f32 to vector<8x30xf32>
    %1310 = arith.addf %1283, %1309 : vector<8x30xf32>
    %1311 = arith.addf %1310, %958 : vector<8x30xf32>
    %cst_217 = arith.constant 0.000000e+00 : f32
    %1312 = vector.broadcast %cst_217 : f32 to vector<8x30xf32>
    %1313 = arith.maximumf %1311, %1312 : vector<8x30xf32>
    %1314 = vector.extract_strided_slice %1289 {offsets = [0, 0], sizes = [8, 10], strides = [1, 1]} : vector<8x30xf32> to vector<8x10xf32>
    %c0_218 = arith.constant 0 : index
    %c8_219 = arith.constant 8 : index
    %c2_220 = arith.constant 2 : index
    %1315 = vector.load %arg4[%c0_218, %c8_219, %c2_220] : memref<5x18x32xf32, #tpu.memory_space<vmem>>, vector<1x8x10xf32>
    %1316 = vector.shape_cast %1315 : vector<1x8x10xf32> to vector<8x10xf32>
    %1317 = vector.shape_cast %1314 : vector<8x10xf32> to vector<1x8x10xf32>
    tpu.vector_store %arg4[%c0_218, %c8_219, %c2_220], %1317 {strides = array<i32>} : memref<5x18x32xf32, #tpu.memory_space<vmem>>, vector<1x8x10xf32>,
    %1318 = vector.extract_strided_slice %1289 {offsets = [0, 16], sizes = [8, 10], strides = [1, 1]} : vector<8x30xf32> to vector<8x10xf32>
    %c0_221 = arith.constant 0 : index
    %c8_222 = arith.constant 8 : index
    %c18_223 = arith.constant 18 : index
    %1319 = vector.load %arg4[%c0_221, %c8_222, %c18_223] : memref<5x18x32xf32, #tpu.memory_space<vmem>>, vector<1x8x10xf32>
    %1320 = vector.shape_cast %1319 : vector<1x8x10xf32> to vector<8x10xf32>
    %1321 = vector.shape_cast %1318 : vector<8x10xf32> to vector<1x8x10xf32>
    tpu.vector_store %arg4[%c0_221, %c8_222, %c18_223], %1321 {strides = array<i32>} : memref<5x18x32xf32, #tpu.memory_space<vmem>>, vector<1x8x10xf32>,
    %1322 = vector.extract_strided_slice %1295 {offsets = [0, 0], sizes = [8, 10], strides = [1, 1]} : vector<8x30xf32> to vector<8x10xf32>
    %c1_224 = arith.constant 1 : index
    %c8_225 = arith.constant 8 : index
    %c2_226 = arith.constant 2 : index
    %1323 = vector.load %arg4[%c1_224, %c8_225, %c2_226] : memref<5x18x32xf32, #tpu.memory_space<vmem>>, vector<1x8x10xf32>
    %1324 = vector.shape_cast %1323 : vector<1x8x10xf32> to vector<8x10xf32>
    %1325 = vector.shape_cast %1322 : vector<8x10xf32> to vector<1x8x10xf32>
    tpu.vector_store %arg4[%c1_224, %c8_225, %c2_226], %1325 {strides = array<i32>} : memref<5x18x32xf32, #tpu.memory_space<vmem>>, vector<1x8x10xf32>,
    %1326 = vector.extract_strided_slice %1295 {offsets = [0, 16], sizes = [8, 10], strides = [1, 1]} : vector<8x30xf32> to vector<8x10xf32>
    %c1_227 = arith.constant 1 : index
    %c8_228 = arith.constant 8 : index
    %c18_229 = arith.constant 18 : index
    %1327 = vector.load %arg4[%c1_227, %c8_228, %c18_229] : memref<5x18x32xf32, #tpu.memory_space<vmem>>, vector<1x8x10xf32>
    %1328 = vector.shape_cast %1327 : vector<1x8x10xf32> to vector<8x10xf32>
    %1329 = vector.shape_cast %1326 : vector<8x10xf32> to vector<1x8x10xf32>
    tpu.vector_store %arg4[%c1_227, %c8_228, %c18_229], %1329 {strides = array<i32>} : memref<5x18x32xf32, #tpu.memory_space<vmem>>, vector<1x8x10xf32>,
    %1330 = vector.extract_strided_slice %1301 {offsets = [0, 0], sizes = [8, 10], strides = [1, 1]} : vector<8x30xf32> to vector<8x10xf32>
    %c2_230 = arith.constant 2 : index
    %c8_231 = arith.constant 8 : index
    %c2_232 = arith.constant 2 : index
    %1331 = vector.load %arg4[%c2_230, %c8_231, %c2_232] : memref<5x18x32xf32, #tpu.memory_space<vmem>>, vector<1x8x10xf32>
    %1332 = vector.shape_cast %1331 : vector<1x8x10xf32> to vector<8x10xf32>
    %1333 = vector.shape_cast %1330 : vector<8x10xf32> to vector<1x8x10xf32>
    tpu.vector_store %arg4[%c2_230, %c8_231, %c2_232], %1333 {strides = array<i32>} : memref<5x18x32xf32, #tpu.memory_space<vmem>>, vector<1x8x10xf32>,
    %1334 = vector.extract_strided_slice %1301 {offsets = [0, 16], sizes = [8, 10], strides = [1, 1]} : vector<8x30xf32> to vector<8x10xf32>
    %c2_233 = arith.constant 2 : index
    %c8_234 = arith.constant 8 : index
    %c18_235 = arith.constant 18 : index
    %1335 = vector.load %arg4[%c2_233, %c8_234, %c18_235] : memref<5x18x32xf32, #tpu.memory_space<vmem>>, vector<1x8x10xf32>
    %1336 = vector.shape_cast %1335 : vector<1x8x10xf32> to vector<8x10xf32>
    %1337 = vector.shape_cast %1334 : vector<8x10xf32> to vector<1x8x10xf32>
    tpu.vector_store %arg4[%c2_233, %c8_234, %c18_235], %1337 {strides = array<i32>} : memref<5x18x32xf32, #tpu.memory_space<vmem>>, vector<1x8x10xf32>,
    %1338 = vector.extract_strided_slice %1307 {offsets = [0, 0], sizes = [8, 10], strides = [1, 1]} : vector<8x30xf32> to vector<8x10xf32>
    %c3_236 = arith.constant 3 : index
    %c8_237 = arith.constant 8 : index
    %c2_238 = arith.constant 2 : index
    %1339 = vector.load %arg4[%c3_236, %c8_237, %c2_238] : memref<5x18x32xf32, #tpu.memory_space<vmem>>, vector<1x8x10xf32>
    %1340 = vector.shape_cast %1339 : vector<1x8x10xf32> to vector<8x10xf32>
    %1341 = vector.shape_cast %1338 : vector<8x10xf32> to vector<1x8x10xf32>
    tpu.vector_store %arg4[%c3_236, %c8_237, %c2_238], %1341 {strides = array<i32>} : memref<5x18x32xf32, #tpu.memory_space<vmem>>, vector<1x8x10xf32>,
    %1342 = vector.extract_strided_slice %1307 {offsets = [0, 16], sizes = [8, 10], strides = [1, 1]} : vector<8x30xf32> to vector<8x10xf32>
    %c3_239 = arith.constant 3 : index
    %c8_240 = arith.constant 8 : index
    %c18_241 = arith.constant 18 : index
    %1343 = vector.load %arg4[%c3_239, %c8_240, %c18_241] : memref<5x18x32xf32, #tpu.memory_space<vmem>>, vector<1x8x10xf32>
    %1344 = vector.shape_cast %1343 : vector<1x8x10xf32> to vector<8x10xf32>
    %1345 = vector.shape_cast %1342 : vector<8x10xf32> to vector<1x8x10xf32>
    tpu.vector_store %arg4[%c3_239, %c8_240, %c18_241], %1345 {strides = array<i32>} : memref<5x18x32xf32, #tpu.memory_space<vmem>>, vector<1x8x10xf32>,
    %1346 = vector.extract_strided_slice %1313 {offsets = [0, 0], sizes = [8, 10], strides = [1, 1]} : vector<8x30xf32> to vector<8x10xf32>
    %c4_242 = arith.constant 4 : index
    %c8_243 = arith.constant 8 : index
    %c2_244 = arith.constant 2 : index
    %1347 = vector.load %arg4[%c4_242, %c8_243, %c2_244] : memref<5x18x32xf32, #tpu.memory_space<vmem>>, vector<1x8x10xf32>
    %1348 = vector.shape_cast %1347 : vector<1x8x10xf32> to vector<8x10xf32>
    %1349 = vector.shape_cast %1346 : vector<8x10xf32> to vector<1x8x10xf32>
    tpu.vector_store %arg4[%c4_242, %c8_243, %c2_244], %1349 {strides = array<i32>} : memref<5x18x32xf32, #tpu.memory_space<vmem>>, vector<1x8x10xf32>,
    %1350 = vector.extract_strided_slice %1313 {offsets = [0, 16], sizes = [8, 10], strides = [1, 1]} : vector<8x30xf32> to vector<8x10xf32>
    %c4_245 = arith.constant 4 : index
    %c8_246 = arith.constant 8 : index
    %c18_247 = arith.constant 18 : index
    %1351 = vector.load %arg4[%c4_245, %c8_246, %c18_247] : memref<5x18x32xf32, #tpu.memory_space<vmem>>, vector<1x8x10xf32>
    %1352 = vector.shape_cast %1351 : vector<1x8x10xf32> to vector<8x10xf32>
    %1353 = vector.shape_cast %1350 : vector<8x10xf32> to vector<1x8x10xf32>
    tpu.vector_store %arg4[%c4_245, %c8_246, %c18_247], %1353 {strides = array<i32>} : memref<5x18x32xf32, #tpu.memory_space<vmem>>, vector<1x8x10xf32>,
    %c0_248 = arith.constant 0 : index
    %c6_249 = arith.constant 6 : index
    %c0_250 = arith.constant 0 : index
    %1354 = vector.load %arg4[%c0_248, %c6_249, %c0_250] : memref<5x18x32xf32, #tpu.memory_space<vmem>>, vector<1x8x30xf32>
    %1355 = vector.shape_cast %1354 : vector<1x8x30xf32> to vector<8x30xf32>
    %c290 = arith.constant 290 : index
    %1356 = memref.load %arg1[%c290] : memref<630xf32, #tpu.memory_space<smem>>
    %1357 = vector.broadcast %1356 : f32 to vector<8x30xf32>
    %1358 = arith.mulf %1357, %1355 : vector<8x30xf32>
    %c310 = arith.constant 310 : index
    %1359 = memref.load %arg1[%c310] : memref<630xf32, #tpu.memory_space<smem>>
    %1360 = vector.broadcast %1359 : f32 to vector<8x30xf32>
    %1361 = arith.mulf %1360, %1355 : vector<8x30xf32>
    %c330 = arith.constant 330 : index
    %1362 = memref.load %arg1[%c330] : memref<630xf32, #tpu.memory_space<smem>>
    %1363 = vector.broadcast %1362 : f32 to vector<8x30xf32>
    %1364 = arith.mulf %1363, %1355 : vector<8x30xf32>
    %c350 = arith.constant 350 : index
    %1365 = memref.load %arg1[%c350] : memref<630xf32, #tpu.memory_space<smem>>
    %1366 = vector.broadcast %1365 : f32 to vector<8x30xf32>
    %1367 = arith.mulf %1366, %1355 : vector<8x30xf32>
    %c370 = arith.constant 370 : index
    %1368 = memref.load %arg1[%c370] : memref<630xf32, #tpu.memory_space<smem>>
    %1369 = vector.broadcast %1368 : f32 to vector<8x30xf32>
    %1370 = arith.mulf %1369, %1355 : vector<8x30xf32>
    %c0_251 = arith.constant 0 : index
    %c6_252 = arith.constant 6 : index
    %c2_253 = arith.constant 2 : index
    %1371 = vector.load %arg4[%c0_251, %c6_252, %c2_253] : memref<5x18x32xf32, #tpu.memory_space<vmem>>, vector<1x8x30xf32>
    %1372 = vector.shape_cast %1371 : vector<1x8x30xf32> to vector<8x30xf32>
    %c291 = arith.constant 291 : index
    %1373 = memref.load %arg1[%c291] : memref<630xf32, #tpu.memory_space<smem>>
    %1374 = vector.broadcast %1373 : f32 to vector<8x30xf32>
    %1375 = arith.mulf %1374, %1372 : vector<8x30xf32>
    %1376 = arith.addf %1358, %1375 : vector<8x30xf32>
    %c311 = arith.constant 311 : index
    %1377 = memref.load %arg1[%c311] : memref<630xf32, #tpu.memory_space<smem>>
    %1378 = vector.broadcast %1377 : f32 to vector<8x30xf32>
    %1379 = arith.mulf %1378, %1372 : vector<8x30xf32>
    %1380 = arith.addf %1361, %1379 : vector<8x30xf32>
    %c331 = arith.constant 331 : index
    %1381 = memref.load %arg1[%c331] : memref<630xf32, #tpu.memory_space<smem>>
    %1382 = vector.broadcast %1381 : f32 to vector<8x30xf32>
    %1383 = arith.mulf %1382, %1372 : vector<8x30xf32>
    %1384 = arith.addf %1364, %1383 : vector<8x30xf32>
    %c351 = arith.constant 351 : index
    %1385 = memref.load %arg1[%c351] : memref<630xf32, #tpu.memory_space<smem>>
    %1386 = vector.broadcast %1385 : f32 to vector<8x30xf32>
    %1387 = arith.mulf %1386, %1372 : vector<8x30xf32>
    %1388 = arith.addf %1367, %1387 : vector<8x30xf32>
    %c371 = arith.constant 371 : index
    %1389 = memref.load %arg1[%c371] : memref<630xf32, #tpu.memory_space<smem>>
    %1390 = vector.broadcast %1389 : f32 to vector<8x30xf32>
    %1391 = arith.mulf %1390, %1372 : vector<8x30xf32>
    %1392 = arith.addf %1370, %1391 : vector<8x30xf32>
    %c0_254 = arith.constant 0 : index
    %c8_255 = arith.constant 8 : index
    %c0_256 = arith.constant 0 : index
    %1393 = vector.load %arg4[%c0_254, %c8_255, %c0_256] : memref<5x18x32xf32, #tpu.memory_space<vmem>>, vector<1x8x30xf32>
    %1394 = vector.shape_cast %1393 : vector<1x8x30xf32> to vector<8x30xf32>
    %c292 = arith.constant 292 : index
    %1395 = memref.load %arg1[%c292] : memref<630xf32, #tpu.memory_space<smem>>
    %1396 = vector.broadcast %1395 : f32 to vector<8x30xf32>
    %1397 = arith.mulf %1396, %1394 : vector<8x30xf32>
    %1398 = arith.addf %1376, %1397 : vector<8x30xf32>
    %c312 = arith.constant 312 : index
    %1399 = memref.load %arg1[%c312] : memref<630xf32, #tpu.memory_space<smem>>
    %1400 = vector.broadcast %1399 : f32 to vector<8x30xf32>
    %1401 = arith.mulf %1400, %1394 : vector<8x30xf32>
    %1402 = arith.addf %1380, %1401 : vector<8x30xf32>
    %c332 = arith.constant 332 : index
    %1403 = memref.load %arg1[%c332] : memref<630xf32, #tpu.memory_space<smem>>
    %1404 = vector.broadcast %1403 : f32 to vector<8x30xf32>
    %1405 = arith.mulf %1404, %1394 : vector<8x30xf32>
    %1406 = arith.addf %1384, %1405 : vector<8x30xf32>
    %c352 = arith.constant 352 : index
    %1407 = memref.load %arg1[%c352] : memref<630xf32, #tpu.memory_space<smem>>
    %1408 = vector.broadcast %1407 : f32 to vector<8x30xf32>
    %1409 = arith.mulf %1408, %1394 : vector<8x30xf32>
    %1410 = arith.addf %1388, %1409 : vector<8x30xf32>
    %c372 = arith.constant 372 : index
    %1411 = memref.load %arg1[%c372] : memref<630xf32, #tpu.memory_space<smem>>
    %1412 = vector.broadcast %1411 : f32 to vector<8x30xf32>
    %1413 = arith.mulf %1412, %1394 : vector<8x30xf32>
    %1414 = arith.addf %1392, %1413 : vector<8x30xf32>
    %c0_257 = arith.constant 0 : index
    %c8_258 = arith.constant 8 : index
    %c2_259 = arith.constant 2 : index
    %1415 = vector.load %arg4[%c0_257, %c8_258, %c2_259] : memref<5x18x32xf32, #tpu.memory_space<vmem>>, vector<1x8x30xf32>
    %1416 = vector.shape_cast %1415 : vector<1x8x30xf32> to vector<8x30xf32>
    %c293 = arith.constant 293 : index
    %1417 = memref.load %arg1[%c293] : memref<630xf32, #tpu.memory_space<smem>>
    %1418 = vector.broadcast %1417 : f32 to vector<8x30xf32>
    %1419 = arith.mulf %1418, %1416 : vector<8x30xf32>
    %1420 = arith.addf %1398, %1419 : vector<8x30xf32>
    %c313 = arith.constant 313 : index
    %1421 = memref.load %arg1[%c313] : memref<630xf32, #tpu.memory_space<smem>>
    %1422 = vector.broadcast %1421 : f32 to vector<8x30xf32>
    %1423 = arith.mulf %1422, %1416 : vector<8x30xf32>
    %1424 = arith.addf %1402, %1423 : vector<8x30xf32>
    %c333 = arith.constant 333 : index
    %1425 = memref.load %arg1[%c333] : memref<630xf32, #tpu.memory_space<smem>>
    %1426 = vector.broadcast %1425 : f32 to vector<8x30xf32>
    %1427 = arith.mulf %1426, %1416 : vector<8x30xf32>
    %1428 = arith.addf %1406, %1427 : vector<8x30xf32>
    %c353 = arith.constant 353 : index
    %1429 = memref.load %arg1[%c353] : memref<630xf32, #tpu.memory_space<smem>>
    %1430 = vector.broadcast %1429 : f32 to vector<8x30xf32>
    %1431 = arith.mulf %1430, %1416 : vector<8x30xf32>
    %1432 = arith.addf %1410, %1431 : vector<8x30xf32>
    %c373 = arith.constant 373 : index
    %1433 = memref.load %arg1[%c373] : memref<630xf32, #tpu.memory_space<smem>>
    %1434 = vector.broadcast %1433 : f32 to vector<8x30xf32>
    %1435 = arith.mulf %1434, %1416 : vector<8x30xf32>
    %1436 = arith.addf %1414, %1435 : vector<8x30xf32>
    %c1_260 = arith.constant 1 : index
    %c6_261 = arith.constant 6 : index
    %c0_262 = arith.constant 0 : index
    %1437 = vector.load %arg4[%c1_260, %c6_261, %c0_262] : memref<5x18x32xf32, #tpu.memory_space<vmem>>, vector<1x8x30xf32>
    %1438 = vector.shape_cast %1437 : vector<1x8x30xf32> to vector<8x30xf32>
    %c294 = arith.constant 294 : index
    %1439 = memref.load %arg1[%c294] : memref<630xf32, #tpu.memory_space<smem>>
    %1440 = vector.broadcast %1439 : f32 to vector<8x30xf32>
    %1441 = arith.mulf %1440, %1438 : vector<8x30xf32>
    %1442 = arith.addf %1420, %1441 : vector<8x30xf32>
    %c314 = arith.constant 314 : index
    %1443 = memref.load %arg1[%c314] : memref<630xf32, #tpu.memory_space<smem>>
    %1444 = vector.broadcast %1443 : f32 to vector<8x30xf32>
    %1445 = arith.mulf %1444, %1438 : vector<8x30xf32>
    %1446 = arith.addf %1424, %1445 : vector<8x30xf32>
    %c334 = arith.constant 334 : index
    %1447 = memref.load %arg1[%c334] : memref<630xf32, #tpu.memory_space<smem>>
    %1448 = vector.broadcast %1447 : f32 to vector<8x30xf32>
    %1449 = arith.mulf %1448, %1438 : vector<8x30xf32>
    %1450 = arith.addf %1428, %1449 : vector<8x30xf32>
    %c354 = arith.constant 354 : index
    %1451 = memref.load %arg1[%c354] : memref<630xf32, #tpu.memory_space<smem>>
    %1452 = vector.broadcast %1451 : f32 to vector<8x30xf32>
    %1453 = arith.mulf %1452, %1438 : vector<8x30xf32>
    %1454 = arith.addf %1432, %1453 : vector<8x30xf32>
    %c374 = arith.constant 374 : index
    %1455 = memref.load %arg1[%c374] : memref<630xf32, #tpu.memory_space<smem>>
    %1456 = vector.broadcast %1455 : f32 to vector<8x30xf32>
    %1457 = arith.mulf %1456, %1438 : vector<8x30xf32>
    %1458 = arith.addf %1436, %1457 : vector<8x30xf32>
    %c1_263 = arith.constant 1 : index
    %c6_264 = arith.constant 6 : index
    %c2_265 = arith.constant 2 : index
    %1459 = vector.load %arg4[%c1_263, %c6_264, %c2_265] : memref<5x18x32xf32, #tpu.memory_space<vmem>>, vector<1x8x30xf32>
    %1460 = vector.shape_cast %1459 : vector<1x8x30xf32> to vector<8x30xf32>
    %c295 = arith.constant 295 : index
    %1461 = memref.load %arg1[%c295] : memref<630xf32, #tpu.memory_space<smem>>
    %1462 = vector.broadcast %1461 : f32 to vector<8x30xf32>
    %1463 = arith.mulf %1462, %1460 : vector<8x30xf32>
    %1464 = arith.addf %1442, %1463 : vector<8x30xf32>
    %c315 = arith.constant 315 : index
    %1465 = memref.load %arg1[%c315] : memref<630xf32, #tpu.memory_space<smem>>
    %1466 = vector.broadcast %1465 : f32 to vector<8x30xf32>
    %1467 = arith.mulf %1466, %1460 : vector<8x30xf32>
    %1468 = arith.addf %1446, %1467 : vector<8x30xf32>
    %c335 = arith.constant 335 : index
    %1469 = memref.load %arg1[%c335] : memref<630xf32, #tpu.memory_space<smem>>
    %1470 = vector.broadcast %1469 : f32 to vector<8x30xf32>
    %1471 = arith.mulf %1470, %1460 : vector<8x30xf32>
    %1472 = arith.addf %1450, %1471 : vector<8x30xf32>
    %c355 = arith.constant 355 : index
    %1473 = memref.load %arg1[%c355] : memref<630xf32, #tpu.memory_space<smem>>
    %1474 = vector.broadcast %1473 : f32 to vector<8x30xf32>
    %1475 = arith.mulf %1474, %1460 : vector<8x30xf32>
    %1476 = arith.addf %1454, %1475 : vector<8x30xf32>
    %c375 = arith.constant 375 : index
    %1477 = memref.load %arg1[%c375] : memref<630xf32, #tpu.memory_space<smem>>
    %1478 = vector.broadcast %1477 : f32 to vector<8x30xf32>
    %1479 = arith.mulf %1478, %1460 : vector<8x30xf32>
    %1480 = arith.addf %1458, %1479 : vector<8x30xf32>
    %c1_266 = arith.constant 1 : index
    %c8_267 = arith.constant 8 : index
    %c0_268 = arith.constant 0 : index
    %1481 = vector.load %arg4[%c1_266, %c8_267, %c0_268] : memref<5x18x32xf32, #tpu.memory_space<vmem>>, vector<1x8x30xf32>
    %1482 = vector.shape_cast %1481 : vector<1x8x30xf32> to vector<8x30xf32>
    %c296 = arith.constant 296 : index
    %1483 = memref.load %arg1[%c296] : memref<630xf32, #tpu.memory_space<smem>>
    %1484 = vector.broadcast %1483 : f32 to vector<8x30xf32>
    %1485 = arith.mulf %1484, %1482 : vector<8x30xf32>
    %1486 = arith.addf %1464, %1485 : vector<8x30xf32>
    %c316 = arith.constant 316 : index
    %1487 = memref.load %arg1[%c316] : memref<630xf32, #tpu.memory_space<smem>>
    %1488 = vector.broadcast %1487 : f32 to vector<8x30xf32>
    %1489 = arith.mulf %1488, %1482 : vector<8x30xf32>
    %1490 = arith.addf %1468, %1489 : vector<8x30xf32>
    %c336 = arith.constant 336 : index
    %1491 = memref.load %arg1[%c336] : memref<630xf32, #tpu.memory_space<smem>>
    %1492 = vector.broadcast %1491 : f32 to vector<8x30xf32>
    %1493 = arith.mulf %1492, %1482 : vector<8x30xf32>
    %1494 = arith.addf %1472, %1493 : vector<8x30xf32>
    %c356 = arith.constant 356 : index
    %1495 = memref.load %arg1[%c356] : memref<630xf32, #tpu.memory_space<smem>>
    %1496 = vector.broadcast %1495 : f32 to vector<8x30xf32>
    %1497 = arith.mulf %1496, %1482 : vector<8x30xf32>
    %1498 = arith.addf %1476, %1497 : vector<8x30xf32>
    %c376 = arith.constant 376 : index
    %1499 = memref.load %arg1[%c376] : memref<630xf32, #tpu.memory_space<smem>>
    %1500 = vector.broadcast %1499 : f32 to vector<8x30xf32>
    %1501 = arith.mulf %1500, %1482 : vector<8x30xf32>
    %1502 = arith.addf %1480, %1501 : vector<8x30xf32>
    %c1_269 = arith.constant 1 : index
    %c8_270 = arith.constant 8 : index
    %c2_271 = arith.constant 2 : index
    %1503 = vector.load %arg4[%c1_269, %c8_270, %c2_271] : memref<5x18x32xf32, #tpu.memory_space<vmem>>, vector<1x8x30xf32>
    %1504 = vector.shape_cast %1503 : vector<1x8x30xf32> to vector<8x30xf32>
    %c297 = arith.constant 297 : index
    %1505 = memref.load %arg1[%c297] : memref<630xf32, #tpu.memory_space<smem>>
    %1506 = vector.broadcast %1505 : f32 to vector<8x30xf32>
    %1507 = arith.mulf %1506, %1504 : vector<8x30xf32>
    %1508 = arith.addf %1486, %1507 : vector<8x30xf32>
    %c317 = arith.constant 317 : index
    %1509 = memref.load %arg1[%c317] : memref<630xf32, #tpu.memory_space<smem>>
    %1510 = vector.broadcast %1509 : f32 to vector<8x30xf32>
    %1511 = arith.mulf %1510, %1504 : vector<8x30xf32>
    %1512 = arith.addf %1490, %1511 : vector<8x30xf32>
    %c337 = arith.constant 337 : index
    %1513 = memref.load %arg1[%c337] : memref<630xf32, #tpu.memory_space<smem>>
    %1514 = vector.broadcast %1513 : f32 to vector<8x30xf32>
    %1515 = arith.mulf %1514, %1504 : vector<8x30xf32>
    %1516 = arith.addf %1494, %1515 : vector<8x30xf32>
    %c357 = arith.constant 357 : index
    %1517 = memref.load %arg1[%c357] : memref<630xf32, #tpu.memory_space<smem>>
    %1518 = vector.broadcast %1517 : f32 to vector<8x30xf32>
    %1519 = arith.mulf %1518, %1504 : vector<8x30xf32>
    %1520 = arith.addf %1498, %1519 : vector<8x30xf32>
    %c377 = arith.constant 377 : index
    %1521 = memref.load %arg1[%c377] : memref<630xf32, #tpu.memory_space<smem>>
    %1522 = vector.broadcast %1521 : f32 to vector<8x30xf32>
    %1523 = arith.mulf %1522, %1504 : vector<8x30xf32>
    %1524 = arith.addf %1502, %1523 : vector<8x30xf32>
    %c2_272 = arith.constant 2 : index
    %c6_273 = arith.constant 6 : index
    %c0_274 = arith.constant 0 : index
    %1525 = vector.load %arg4[%c2_272, %c6_273, %c0_274] : memref<5x18x32xf32, #tpu.memory_space<vmem>>, vector<1x8x30xf32>
    %1526 = vector.shape_cast %1525 : vector<1x8x30xf32> to vector<8x30xf32>
    %c298 = arith.constant 298 : index
    %1527 = memref.load %arg1[%c298] : memref<630xf32, #tpu.memory_space<smem>>
    %1528 = vector.broadcast %1527 : f32 to vector<8x30xf32>
    %1529 = arith.mulf %1528, %1526 : vector<8x30xf32>
    %1530 = arith.addf %1508, %1529 : vector<8x30xf32>
    %c318 = arith.constant 318 : index
    %1531 = memref.load %arg1[%c318] : memref<630xf32, #tpu.memory_space<smem>>
    %1532 = vector.broadcast %1531 : f32 to vector<8x30xf32>
    %1533 = arith.mulf %1532, %1526 : vector<8x30xf32>
    %1534 = arith.addf %1512, %1533 : vector<8x30xf32>
    %c338 = arith.constant 338 : index
    %1535 = memref.load %arg1[%c338] : memref<630xf32, #tpu.memory_space<smem>>
    %1536 = vector.broadcast %1535 : f32 to vector<8x30xf32>
    %1537 = arith.mulf %1536, %1526 : vector<8x30xf32>
    %1538 = arith.addf %1516, %1537 : vector<8x30xf32>
    %c358 = arith.constant 358 : index
    %1539 = memref.load %arg1[%c358] : memref<630xf32, #tpu.memory_space<smem>>
    %1540 = vector.broadcast %1539 : f32 to vector<8x30xf32>
    %1541 = arith.mulf %1540, %1526 : vector<8x30xf32>
    %1542 = arith.addf %1520, %1541 : vector<8x30xf32>
    %c378 = arith.constant 378 : index
    %1543 = memref.load %arg1[%c378] : memref<630xf32, #tpu.memory_space<smem>>
    %1544 = vector.broadcast %1543 : f32 to vector<8x30xf32>
    %1545 = arith.mulf %1544, %1526 : vector<8x30xf32>
    %1546 = arith.addf %1524, %1545 : vector<8x30xf32>
    %c2_275 = arith.constant 2 : index
    %c6_276 = arith.constant 6 : index
    %c2_277 = arith.constant 2 : index
    %1547 = vector.load %arg4[%c2_275, %c6_276, %c2_277] : memref<5x18x32xf32, #tpu.memory_space<vmem>>, vector<1x8x30xf32>
    %1548 = vector.shape_cast %1547 : vector<1x8x30xf32> to vector<8x30xf32>
    %c299 = arith.constant 299 : index
    %1549 = memref.load %arg1[%c299] : memref<630xf32, #tpu.memory_space<smem>>
    %1550 = vector.broadcast %1549 : f32 to vector<8x30xf32>
    %1551 = arith.mulf %1550, %1548 : vector<8x30xf32>
    %1552 = arith.addf %1530, %1551 : vector<8x30xf32>
    %c319 = arith.constant 319 : index
    %1553 = memref.load %arg1[%c319] : memref<630xf32, #tpu.memory_space<smem>>
    %1554 = vector.broadcast %1553 : f32 to vector<8x30xf32>
    %1555 = arith.mulf %1554, %1548 : vector<8x30xf32>
    %1556 = arith.addf %1534, %1555 : vector<8x30xf32>
    %c339 = arith.constant 339 : index
    %1557 = memref.load %arg1[%c339] : memref<630xf32, #tpu.memory_space<smem>>
    %1558 = vector.broadcast %1557 : f32 to vector<8x30xf32>
    %1559 = arith.mulf %1558, %1548 : vector<8x30xf32>
    %1560 = arith.addf %1538, %1559 : vector<8x30xf32>
    %c359 = arith.constant 359 : index
    %1561 = memref.load %arg1[%c359] : memref<630xf32, #tpu.memory_space<smem>>
    %1562 = vector.broadcast %1561 : f32 to vector<8x30xf32>
    %1563 = arith.mulf %1562, %1548 : vector<8x30xf32>
    %1564 = arith.addf %1542, %1563 : vector<8x30xf32>
    %c379 = arith.constant 379 : index
    %1565 = memref.load %arg1[%c379] : memref<630xf32, #tpu.memory_space<smem>>
    %1566 = vector.broadcast %1565 : f32 to vector<8x30xf32>
    %1567 = arith.mulf %1566, %1548 : vector<8x30xf32>
    %1568 = arith.addf %1546, %1567 : vector<8x30xf32>
    %c2_278 = arith.constant 2 : index
    %c8_279 = arith.constant 8 : index
    %c0_280 = arith.constant 0 : index
    %1569 = vector.load %arg4[%c2_278, %c8_279, %c0_280] : memref<5x18x32xf32, #tpu.memory_space<vmem>>, vector<1x8x30xf32>
    %1570 = vector.shape_cast %1569 : vector<1x8x30xf32> to vector<8x30xf32>
    %c300 = arith.constant 300 : index
    %1571 = memref.load %arg1[%c300] : memref<630xf32, #tpu.memory_space<smem>>
    %1572 = vector.broadcast %1571 : f32 to vector<8x30xf32>
    %1573 = arith.mulf %1572, %1570 : vector<8x30xf32>
    %1574 = arith.addf %1552, %1573 : vector<8x30xf32>
    %c320 = arith.constant 320 : index
    %1575 = memref.load %arg1[%c320] : memref<630xf32, #tpu.memory_space<smem>>
    %1576 = vector.broadcast %1575 : f32 to vector<8x30xf32>
    %1577 = arith.mulf %1576, %1570 : vector<8x30xf32>
    %1578 = arith.addf %1556, %1577 : vector<8x30xf32>
    %c340 = arith.constant 340 : index
    %1579 = memref.load %arg1[%c340] : memref<630xf32, #tpu.memory_space<smem>>
    %1580 = vector.broadcast %1579 : f32 to vector<8x30xf32>
    %1581 = arith.mulf %1580, %1570 : vector<8x30xf32>
    %1582 = arith.addf %1560, %1581 : vector<8x30xf32>
    %c360 = arith.constant 360 : index
    %1583 = memref.load %arg1[%c360] : memref<630xf32, #tpu.memory_space<smem>>
    %1584 = vector.broadcast %1583 : f32 to vector<8x30xf32>
    %1585 = arith.mulf %1584, %1570 : vector<8x30xf32>
    %1586 = arith.addf %1564, %1585 : vector<8x30xf32>
    %c380 = arith.constant 380 : index
    %1587 = memref.load %arg1[%c380] : memref<630xf32, #tpu.memory_space<smem>>
    %1588 = vector.broadcast %1587 : f32 to vector<8x30xf32>
    %1589 = arith.mulf %1588, %1570 : vector<8x30xf32>
    %1590 = arith.addf %1568, %1589 : vector<8x30xf32>
    %c2_281 = arith.constant 2 : index
    %c8_282 = arith.constant 8 : index
    %c2_283 = arith.constant 2 : index
    %1591 = vector.load %arg4[%c2_281, %c8_282, %c2_283] : memref<5x18x32xf32, #tpu.memory_space<vmem>>, vector<1x8x30xf32>
    %1592 = vector.shape_cast %1591 : vector<1x8x30xf32> to vector<8x30xf32>
    %c301 = arith.constant 301 : index
    %1593 = memref.load %arg1[%c301] : memref<630xf32, #tpu.memory_space<smem>>
    %1594 = vector.broadcast %1593 : f32 to vector<8x30xf32>
    %1595 = arith.mulf %1594, %1592 : vector<8x30xf32>
    %1596 = arith.addf %1574, %1595 : vector<8x30xf32>
    %c321 = arith.constant 321 : index
    %1597 = memref.load %arg1[%c321] : memref<630xf32, #tpu.memory_space<smem>>
    %1598 = vector.broadcast %1597 : f32 to vector<8x30xf32>
    %1599 = arith.mulf %1598, %1592 : vector<8x30xf32>
    %1600 = arith.addf %1578, %1599 : vector<8x30xf32>
    %c341 = arith.constant 341 : index
    %1601 = memref.load %arg1[%c341] : memref<630xf32, #tpu.memory_space<smem>>
    %1602 = vector.broadcast %1601 : f32 to vector<8x30xf32>
    %1603 = arith.mulf %1602, %1592 : vector<8x30xf32>
    %1604 = arith.addf %1582, %1603 : vector<8x30xf32>
    %c361 = arith.constant 361 : index
    %1605 = memref.load %arg1[%c361] : memref<630xf32, #tpu.memory_space<smem>>
    %1606 = vector.broadcast %1605 : f32 to vector<8x30xf32>
    %1607 = arith.mulf %1606, %1592 : vector<8x30xf32>
    %1608 = arith.addf %1586, %1607 : vector<8x30xf32>
    %c381 = arith.constant 381 : index
    %1609 = memref.load %arg1[%c381] : memref<630xf32, #tpu.memory_space<smem>>
    %1610 = vector.broadcast %1609 : f32 to vector<8x30xf32>
    %1611 = arith.mulf %1610, %1592 : vector<8x30xf32>
    %1612 = arith.addf %1590, %1611 : vector<8x30xf32>
    %c3_284 = arith.constant 3 : index
    %c6_285 = arith.constant 6 : index
    %c0_286 = arith.constant 0 : index
    %1613 = vector.load %arg4[%c3_284, %c6_285, %c0_286] : memref<5x18x32xf32, #tpu.memory_space<vmem>>, vector<1x8x30xf32>
    %1614 = vector.shape_cast %1613 : vector<1x8x30xf32> to vector<8x30xf32>
    %c302 = arith.constant 302 : index
    %1615 = memref.load %arg1[%c302] : memref<630xf32, #tpu.memory_space<smem>>
    %1616 = vector.broadcast %1615 : f32 to vector<8x30xf32>
    %1617 = arith.mulf %1616, %1614 : vector<8x30xf32>
    %1618 = arith.addf %1596, %1617 : vector<8x30xf32>
    %c322 = arith.constant 322 : index
    %1619 = memref.load %arg1[%c322] : memref<630xf32, #tpu.memory_space<smem>>
    %1620 = vector.broadcast %1619 : f32 to vector<8x30xf32>
    %1621 = arith.mulf %1620, %1614 : vector<8x30xf32>
    %1622 = arith.addf %1600, %1621 : vector<8x30xf32>
    %c342 = arith.constant 342 : index
    %1623 = memref.load %arg1[%c342] : memref<630xf32, #tpu.memory_space<smem>>
    %1624 = vector.broadcast %1623 : f32 to vector<8x30xf32>
    %1625 = arith.mulf %1624, %1614 : vector<8x30xf32>
    %1626 = arith.addf %1604, %1625 : vector<8x30xf32>
    %c362 = arith.constant 362 : index
    %1627 = memref.load %arg1[%c362] : memref<630xf32, #tpu.memory_space<smem>>
    %1628 = vector.broadcast %1627 : f32 to vector<8x30xf32>
    %1629 = arith.mulf %1628, %1614 : vector<8x30xf32>
    %1630 = arith.addf %1608, %1629 : vector<8x30xf32>
    %c382 = arith.constant 382 : index
    %1631 = memref.load %arg1[%c382] : memref<630xf32, #tpu.memory_space<smem>>
    %1632 = vector.broadcast %1631 : f32 to vector<8x30xf32>
    %1633 = arith.mulf %1632, %1614 : vector<8x30xf32>
    %1634 = arith.addf %1612, %1633 : vector<8x30xf32>
    %c3_287 = arith.constant 3 : index
    %c6_288 = arith.constant 6 : index
    %c2_289 = arith.constant 2 : index
    %1635 = vector.load %arg4[%c3_287, %c6_288, %c2_289] : memref<5x18x32xf32, #tpu.memory_space<vmem>>, vector<1x8x30xf32>
    %1636 = vector.shape_cast %1635 : vector<1x8x30xf32> to vector<8x30xf32>
    %c303 = arith.constant 303 : index
    %1637 = memref.load %arg1[%c303] : memref<630xf32, #tpu.memory_space<smem>>
    %1638 = vector.broadcast %1637 : f32 to vector<8x30xf32>
    %1639 = arith.mulf %1638, %1636 : vector<8x30xf32>
    %1640 = arith.addf %1618, %1639 : vector<8x30xf32>
    %c323 = arith.constant 323 : index
    %1641 = memref.load %arg1[%c323] : memref<630xf32, #tpu.memory_space<smem>>
    %1642 = vector.broadcast %1641 : f32 to vector<8x30xf32>
    %1643 = arith.mulf %1642, %1636 : vector<8x30xf32>
    %1644 = arith.addf %1622, %1643 : vector<8x30xf32>
    %c343 = arith.constant 343 : index
    %1645 = memref.load %arg1[%c343] : memref<630xf32, #tpu.memory_space<smem>>
    %1646 = vector.broadcast %1645 : f32 to vector<8x30xf32>
    %1647 = arith.mulf %1646, %1636 : vector<8x30xf32>
    %1648 = arith.addf %1626, %1647 : vector<8x30xf32>
    %c363 = arith.constant 363 : index
    %1649 = memref.load %arg1[%c363] : memref<630xf32, #tpu.memory_space<smem>>
    %1650 = vector.broadcast %1649 : f32 to vector<8x30xf32>
    %1651 = arith.mulf %1650, %1636 : vector<8x30xf32>
    %1652 = arith.addf %1630, %1651 : vector<8x30xf32>
    %c383 = arith.constant 383 : index
    %1653 = memref.load %arg1[%c383] : memref<630xf32, #tpu.memory_space<smem>>
    %1654 = vector.broadcast %1653 : f32 to vector<8x30xf32>
    %1655 = arith.mulf %1654, %1636 : vector<8x30xf32>
    %1656 = arith.addf %1634, %1655 : vector<8x30xf32>
    %c3_290 = arith.constant 3 : index
    %c8_291 = arith.constant 8 : index
    %c0_292 = arith.constant 0 : index
    %1657 = vector.load %arg4[%c3_290, %c8_291, %c0_292] : memref<5x18x32xf32, #tpu.memory_space<vmem>>, vector<1x8x30xf32>
    %1658 = vector.shape_cast %1657 : vector<1x8x30xf32> to vector<8x30xf32>
    %c304 = arith.constant 304 : index
    %1659 = memref.load %arg1[%c304] : memref<630xf32, #tpu.memory_space<smem>>
    %1660 = vector.broadcast %1659 : f32 to vector<8x30xf32>
    %1661 = arith.mulf %1660, %1658 : vector<8x30xf32>
    %1662 = arith.addf %1640, %1661 : vector<8x30xf32>
    %c324 = arith.constant 324 : index
    %1663 = memref.load %arg1[%c324] : memref<630xf32, #tpu.memory_space<smem>>
    %1664 = vector.broadcast %1663 : f32 to vector<8x30xf32>
    %1665 = arith.mulf %1664, %1658 : vector<8x30xf32>
    %1666 = arith.addf %1644, %1665 : vector<8x30xf32>
    %c344 = arith.constant 344 : index
    %1667 = memref.load %arg1[%c344] : memref<630xf32, #tpu.memory_space<smem>>
    %1668 = vector.broadcast %1667 : f32 to vector<8x30xf32>
    %1669 = arith.mulf %1668, %1658 : vector<8x30xf32>
    %1670 = arith.addf %1648, %1669 : vector<8x30xf32>
    %c364 = arith.constant 364 : index
    %1671 = memref.load %arg1[%c364] : memref<630xf32, #tpu.memory_space<smem>>
    %1672 = vector.broadcast %1671 : f32 to vector<8x30xf32>
    %1673 = arith.mulf %1672, %1658 : vector<8x30xf32>
    %1674 = arith.addf %1652, %1673 : vector<8x30xf32>
    %c384 = arith.constant 384 : index
    %1675 = memref.load %arg1[%c384] : memref<630xf32, #tpu.memory_space<smem>>
    %1676 = vector.broadcast %1675 : f32 to vector<8x30xf32>
    %1677 = arith.mulf %1676, %1658 : vector<8x30xf32>
    %1678 = arith.addf %1656, %1677 : vector<8x30xf32>
    %c3_293 = arith.constant 3 : index
    %c8_294 = arith.constant 8 : index
    %c2_295 = arith.constant 2 : index
    %1679 = vector.load %arg4[%c3_293, %c8_294, %c2_295] : memref<5x18x32xf32, #tpu.memory_space<vmem>>, vector<1x8x30xf32>
    %1680 = vector.shape_cast %1679 : vector<1x8x30xf32> to vector<8x30xf32>
    %c305 = arith.constant 305 : index
    %1681 = memref.load %arg1[%c305] : memref<630xf32, #tpu.memory_space<smem>>
    %1682 = vector.broadcast %1681 : f32 to vector<8x30xf32>
    %1683 = arith.mulf %1682, %1680 : vector<8x30xf32>
    %1684 = arith.addf %1662, %1683 : vector<8x30xf32>
    %c325 = arith.constant 325 : index
    %1685 = memref.load %arg1[%c325] : memref<630xf32, #tpu.memory_space<smem>>
    %1686 = vector.broadcast %1685 : f32 to vector<8x30xf32>
    %1687 = arith.mulf %1686, %1680 : vector<8x30xf32>
    %1688 = arith.addf %1666, %1687 : vector<8x30xf32>
    %c345 = arith.constant 345 : index
    %1689 = memref.load %arg1[%c345] : memref<630xf32, #tpu.memory_space<smem>>
    %1690 = vector.broadcast %1689 : f32 to vector<8x30xf32>
    %1691 = arith.mulf %1690, %1680 : vector<8x30xf32>
    %1692 = arith.addf %1670, %1691 : vector<8x30xf32>
    %c365 = arith.constant 365 : index
    %1693 = memref.load %arg1[%c365] : memref<630xf32, #tpu.memory_space<smem>>
    %1694 = vector.broadcast %1693 : f32 to vector<8x30xf32>
    %1695 = arith.mulf %1694, %1680 : vector<8x30xf32>
    %1696 = arith.addf %1674, %1695 : vector<8x30xf32>
    %c385 = arith.constant 385 : index
    %1697 = memref.load %arg1[%c385] : memref<630xf32, #tpu.memory_space<smem>>
    %1698 = vector.broadcast %1697 : f32 to vector<8x30xf32>
    %1699 = arith.mulf %1698, %1680 : vector<8x30xf32>
    %1700 = arith.addf %1678, %1699 : vector<8x30xf32>
    %c4_296 = arith.constant 4 : index
    %c6_297 = arith.constant 6 : index
    %c0_298 = arith.constant 0 : index
    %1701 = vector.load %arg4[%c4_296, %c6_297, %c0_298] : memref<5x18x32xf32, #tpu.memory_space<vmem>>, vector<1x8x30xf32>
    %1702 = vector.shape_cast %1701 : vector<1x8x30xf32> to vector<8x30xf32>
    %c306 = arith.constant 306 : index
    %1703 = memref.load %arg1[%c306] : memref<630xf32, #tpu.memory_space<smem>>
    %1704 = vector.broadcast %1703 : f32 to vector<8x30xf32>
    %1705 = arith.mulf %1704, %1702 : vector<8x30xf32>
    %1706 = arith.addf %1684, %1705 : vector<8x30xf32>
    %c326 = arith.constant 326 : index
    %1707 = memref.load %arg1[%c326] : memref<630xf32, #tpu.memory_space<smem>>
    %1708 = vector.broadcast %1707 : f32 to vector<8x30xf32>
    %1709 = arith.mulf %1708, %1702 : vector<8x30xf32>
    %1710 = arith.addf %1688, %1709 : vector<8x30xf32>
    %c346 = arith.constant 346 : index
    %1711 = memref.load %arg1[%c346] : memref<630xf32, #tpu.memory_space<smem>>
    %1712 = vector.broadcast %1711 : f32 to vector<8x30xf32>
    %1713 = arith.mulf %1712, %1702 : vector<8x30xf32>
    %1714 = arith.addf %1692, %1713 : vector<8x30xf32>
    %c366 = arith.constant 366 : index
    %1715 = memref.load %arg1[%c366] : memref<630xf32, #tpu.memory_space<smem>>
    %1716 = vector.broadcast %1715 : f32 to vector<8x30xf32>
    %1717 = arith.mulf %1716, %1702 : vector<8x30xf32>
    %1718 = arith.addf %1696, %1717 : vector<8x30xf32>
    %c386 = arith.constant 386 : index
    %1719 = memref.load %arg1[%c386] : memref<630xf32, #tpu.memory_space<smem>>
    %1720 = vector.broadcast %1719 : f32 to vector<8x30xf32>
    %1721 = arith.mulf %1720, %1702 : vector<8x30xf32>
    %1722 = arith.addf %1700, %1721 : vector<8x30xf32>
    %c4_299 = arith.constant 4 : index
    %c6_300 = arith.constant 6 : index
    %c2_301 = arith.constant 2 : index
    %1723 = vector.load %arg4[%c4_299, %c6_300, %c2_301] : memref<5x18x32xf32, #tpu.memory_space<vmem>>, vector<1x8x30xf32>
    %1724 = vector.shape_cast %1723 : vector<1x8x30xf32> to vector<8x30xf32>
    %c307 = arith.constant 307 : index
    %1725 = memref.load %arg1[%c307] : memref<630xf32, #tpu.memory_space<smem>>
    %1726 = vector.broadcast %1725 : f32 to vector<8x30xf32>
    %1727 = arith.mulf %1726, %1724 : vector<8x30xf32>
    %1728 = arith.addf %1706, %1727 : vector<8x30xf32>
    %c327 = arith.constant 327 : index
    %1729 = memref.load %arg1[%c327] : memref<630xf32, #tpu.memory_space<smem>>
    %1730 = vector.broadcast %1729 : f32 to vector<8x30xf32>
    %1731 = arith.mulf %1730, %1724 : vector<8x30xf32>
    %1732 = arith.addf %1710, %1731 : vector<8x30xf32>
    %c347 = arith.constant 347 : index
    %1733 = memref.load %arg1[%c347] : memref<630xf32, #tpu.memory_space<smem>>
    %1734 = vector.broadcast %1733 : f32 to vector<8x30xf32>
    %1735 = arith.mulf %1734, %1724 : vector<8x30xf32>
    %1736 = arith.addf %1714, %1735 : vector<8x30xf32>
    %c367 = arith.constant 367 : index
    %1737 = memref.load %arg1[%c367] : memref<630xf32, #tpu.memory_space<smem>>
    %1738 = vector.broadcast %1737 : f32 to vector<8x30xf32>
    %1739 = arith.mulf %1738, %1724 : vector<8x30xf32>
    %1740 = arith.addf %1718, %1739 : vector<8x30xf32>
    %c387 = arith.constant 387 : index
    %1741 = memref.load %arg1[%c387] : memref<630xf32, #tpu.memory_space<smem>>
    %1742 = vector.broadcast %1741 : f32 to vector<8x30xf32>
    %1743 = arith.mulf %1742, %1724 : vector<8x30xf32>
    %1744 = arith.addf %1722, %1743 : vector<8x30xf32>
    %c4_302 = arith.constant 4 : index
    %c8_303 = arith.constant 8 : index
    %c0_304 = arith.constant 0 : index
    %1745 = vector.load %arg4[%c4_302, %c8_303, %c0_304] : memref<5x18x32xf32, #tpu.memory_space<vmem>>, vector<1x8x30xf32>
    %1746 = vector.shape_cast %1745 : vector<1x8x30xf32> to vector<8x30xf32>
    %c308 = arith.constant 308 : index
    %1747 = memref.load %arg1[%c308] : memref<630xf32, #tpu.memory_space<smem>>
    %1748 = vector.broadcast %1747 : f32 to vector<8x30xf32>
    %1749 = arith.mulf %1748, %1746 : vector<8x30xf32>
    %1750 = arith.addf %1728, %1749 : vector<8x30xf32>
    %c328 = arith.constant 328 : index
    %1751 = memref.load %arg1[%c328] : memref<630xf32, #tpu.memory_space<smem>>
    %1752 = vector.broadcast %1751 : f32 to vector<8x30xf32>
    %1753 = arith.mulf %1752, %1746 : vector<8x30xf32>
    %1754 = arith.addf %1732, %1753 : vector<8x30xf32>
    %c348 = arith.constant 348 : index
    %1755 = memref.load %arg1[%c348] : memref<630xf32, #tpu.memory_space<smem>>
    %1756 = vector.broadcast %1755 : f32 to vector<8x30xf32>
    %1757 = arith.mulf %1756, %1746 : vector<8x30xf32>
    %1758 = arith.addf %1736, %1757 : vector<8x30xf32>
    %c368 = arith.constant 368 : index
    %1759 = memref.load %arg1[%c368] : memref<630xf32, #tpu.memory_space<smem>>
    %1760 = vector.broadcast %1759 : f32 to vector<8x30xf32>
    %1761 = arith.mulf %1760, %1746 : vector<8x30xf32>
    %1762 = arith.addf %1740, %1761 : vector<8x30xf32>
    %c388 = arith.constant 388 : index
    %1763 = memref.load %arg1[%c388] : memref<630xf32, #tpu.memory_space<smem>>
    %1764 = vector.broadcast %1763 : f32 to vector<8x30xf32>
    %1765 = arith.mulf %1764, %1746 : vector<8x30xf32>
    %1766 = arith.addf %1744, %1765 : vector<8x30xf32>
    %c4_305 = arith.constant 4 : index
    %c8_306 = arith.constant 8 : index
    %c2_307 = arith.constant 2 : index
    %1767 = vector.load %arg4[%c4_305, %c8_306, %c2_307] : memref<5x18x32xf32, #tpu.memory_space<vmem>>, vector<1x8x30xf32>
    %1768 = vector.shape_cast %1767 : vector<1x8x30xf32> to vector<8x30xf32>
    %c309 = arith.constant 309 : index
    %1769 = memref.load %arg1[%c309] : memref<630xf32, #tpu.memory_space<smem>>
    %1770 = vector.broadcast %1769 : f32 to vector<8x30xf32>
    %1771 = arith.mulf %1770, %1768 : vector<8x30xf32>
    %1772 = arith.addf %1750, %1771 : vector<8x30xf32>
    %c329 = arith.constant 329 : index
    %1773 = memref.load %arg1[%c329] : memref<630xf32, #tpu.memory_space<smem>>
    %1774 = vector.broadcast %1773 : f32 to vector<8x30xf32>
    %1775 = arith.mulf %1774, %1768 : vector<8x30xf32>
    %1776 = arith.addf %1754, %1775 : vector<8x30xf32>
    %c349 = arith.constant 349 : index
    %1777 = memref.load %arg1[%c349] : memref<630xf32, #tpu.memory_space<smem>>
    %1778 = vector.broadcast %1777 : f32 to vector<8x30xf32>
    %1779 = arith.mulf %1778, %1768 : vector<8x30xf32>
    %1780 = arith.addf %1758, %1779 : vector<8x30xf32>
    %c369 = arith.constant 369 : index
    %1781 = memref.load %arg1[%c369] : memref<630xf32, #tpu.memory_space<smem>>
    %1782 = vector.broadcast %1781 : f32 to vector<8x30xf32>
    %1783 = arith.mulf %1782, %1768 : vector<8x30xf32>
    %1784 = arith.addf %1762, %1783 : vector<8x30xf32>
    %c389 = arith.constant 389 : index
    %1785 = memref.load %arg1[%c389] : memref<630xf32, #tpu.memory_space<smem>>
    %1786 = vector.broadcast %1785 : f32 to vector<8x30xf32>
    %1787 = arith.mulf %1786, %1768 : vector<8x30xf32>
    %1788 = arith.addf %1766, %1787 : vector<8x30xf32>
    %c390 = arith.constant 390 : index
    %1789 = memref.load %arg1[%c390] : memref<630xf32, #tpu.memory_space<smem>>
    %1790 = vector.broadcast %1789 : f32 to vector<8x30xf32>
    %1791 = arith.addf %1772, %1790 : vector<8x30xf32>
    %1792 = math.tanh %1791 : vector<8x30xf32>
    %c391 = arith.constant 391 : index
    %1793 = memref.load %arg1[%c391] : memref<630xf32, #tpu.memory_space<smem>>
    %1794 = vector.broadcast %1793 : f32 to vector<8x30xf32>
    %1795 = arith.addf %1776, %1794 : vector<8x30xf32>
    %1796 = math.tanh %1795 : vector<8x30xf32>
    %c392 = arith.constant 392 : index
    %1797 = memref.load %arg1[%c392] : memref<630xf32, #tpu.memory_space<smem>>
    %1798 = vector.broadcast %1797 : f32 to vector<8x30xf32>
    %1799 = arith.addf %1780, %1798 : vector<8x30xf32>
    %1800 = math.tanh %1799 : vector<8x30xf32>
    %c393 = arith.constant 393 : index
    %1801 = memref.load %arg1[%c393] : memref<630xf32, #tpu.memory_space<smem>>
    %1802 = vector.broadcast %1801 : f32 to vector<8x30xf32>
    %1803 = arith.addf %1784, %1802 : vector<8x30xf32>
    %1804 = math.tanh %1803 : vector<8x30xf32>
    %c394 = arith.constant 394 : index
    %1805 = memref.load %arg1[%c394] : memref<630xf32, #tpu.memory_space<smem>>
    %1806 = vector.broadcast %1805 : f32 to vector<8x30xf32>
    %1807 = arith.addf %1788, %1806 : vector<8x30xf32>
    %1808 = math.tanh %1807 : vector<8x30xf32>
    %1809 = vector.extract_strided_slice %1792 {offsets = [0, 0], sizes = [8, 12], strides = [1, 1]} : vector<8x30xf32> to vector<8x12xf32>
    %c0_308 = arith.constant 0 : index
    %c8_309 = arith.constant 8 : index
    %c2_310 = arith.constant 2 : index
    %1810 = vector.load %arg5[%c0_308, %c8_309, %c2_310] : memref<5x18x32xf32, #tpu.memory_space<vmem>>, vector<1x8x12xf32>
    %1811 = vector.shape_cast %1810 : vector<1x8x12xf32> to vector<8x12xf32>
    %1812 = vector.shape_cast %1809 : vector<8x12xf32> to vector<1x8x12xf32>
    tpu.vector_store %arg5[%c0_308, %c8_309, %c2_310], %1812 {strides = array<i32>} : memref<5x18x32xf32, #tpu.memory_space<vmem>>, vector<1x8x12xf32>,
    %1813 = vector.extract_strided_slice %1792 {offsets = [0, 16], sizes = [8, 12], strides = [1, 1]} : vector<8x30xf32> to vector<8x12xf32>
    %c0_311 = arith.constant 0 : index
    %c8_312 = arith.constant 8 : index
    %c18_313 = arith.constant 18 : index
    %1814 = vector.load %arg5[%c0_311, %c8_312, %c18_313] : memref<5x18x32xf32, #tpu.memory_space<vmem>>, vector<1x8x12xf32>
    %1815 = vector.shape_cast %1814 : vector<1x8x12xf32> to vector<8x12xf32>
    %1816 = vector.shape_cast %1813 : vector<8x12xf32> to vector<1x8x12xf32>
    tpu.vector_store %arg5[%c0_311, %c8_312, %c18_313], %1816 {strides = array<i32>} : memref<5x18x32xf32, #tpu.memory_space<vmem>>, vector<1x8x12xf32>,
    %1817 = vector.extract_strided_slice %1796 {offsets = [0, 0], sizes = [8, 12], strides = [1, 1]} : vector<8x30xf32> to vector<8x12xf32>
    %c1_314 = arith.constant 1 : index
    %c8_315 = arith.constant 8 : index
    %c2_316 = arith.constant 2 : index
    %1818 = vector.load %arg5[%c1_314, %c8_315, %c2_316] : memref<5x18x32xf32, #tpu.memory_space<vmem>>, vector<1x8x12xf32>
    %1819 = vector.shape_cast %1818 : vector<1x8x12xf32> to vector<8x12xf32>
    %1820 = vector.shape_cast %1817 : vector<8x12xf32> to vector<1x8x12xf32>
    tpu.vector_store %arg5[%c1_314, %c8_315, %c2_316], %1820 {strides = array<i32>} : memref<5x18x32xf32, #tpu.memory_space<vmem>>, vector<1x8x12xf32>,
    %1821 = vector.extract_strided_slice %1796 {offsets = [0, 16], sizes = [8, 12], strides = [1, 1]} : vector<8x30xf32> to vector<8x12xf32>
    %c1_317 = arith.constant 1 : index
    %c8_318 = arith.constant 8 : index
    %c18_319 = arith.constant 18 : index
    %1822 = vector.load %arg5[%c1_317, %c8_318, %c18_319] : memref<5x18x32xf32, #tpu.memory_space<vmem>>, vector<1x8x12xf32>
    %1823 = vector.shape_cast %1822 : vector<1x8x12xf32> to vector<8x12xf32>
    %1824 = vector.shape_cast %1821 : vector<8x12xf32> to vector<1x8x12xf32>
    tpu.vector_store %arg5[%c1_317, %c8_318, %c18_319], %1824 {strides = array<i32>} : memref<5x18x32xf32, #tpu.memory_space<vmem>>, vector<1x8x12xf32>,
    %1825 = vector.extract_strided_slice %1800 {offsets = [0, 0], sizes = [8, 12], strides = [1, 1]} : vector<8x30xf32> to vector<8x12xf32>
    %c2_320 = arith.constant 2 : index
    %c8_321 = arith.constant 8 : index
    %c2_322 = arith.constant 2 : index
    %1826 = vector.load %arg5[%c2_320, %c8_321, %c2_322] : memref<5x18x32xf32, #tpu.memory_space<vmem>>, vector<1x8x12xf32>
    %1827 = vector.shape_cast %1826 : vector<1x8x12xf32> to vector<8x12xf32>
    %1828 = vector.shape_cast %1825 : vector<8x12xf32> to vector<1x8x12xf32>
    tpu.vector_store %arg5[%c2_320, %c8_321, %c2_322], %1828 {strides = array<i32>} : memref<5x18x32xf32, #tpu.memory_space<vmem>>, vector<1x8x12xf32>,
    %1829 = vector.extract_strided_slice %1800 {offsets = [0, 16], sizes = [8, 12], strides = [1, 1]} : vector<8x30xf32> to vector<8x12xf32>
    %c2_323 = arith.constant 2 : index
    %c8_324 = arith.constant 8 : index
    %c18_325 = arith.constant 18 : index
    %1830 = vector.load %arg5[%c2_323, %c8_324, %c18_325] : memref<5x18x32xf32, #tpu.memory_space<vmem>>, vector<1x8x12xf32>
    %1831 = vector.shape_cast %1830 : vector<1x8x12xf32> to vector<8x12xf32>
    %1832 = vector.shape_cast %1829 : vector<8x12xf32> to vector<1x8x12xf32>
    tpu.vector_store %arg5[%c2_323, %c8_324, %c18_325], %1832 {strides = array<i32>} : memref<5x18x32xf32, #tpu.memory_space<vmem>>, vector<1x8x12xf32>,
    %1833 = vector.extract_strided_slice %1804 {offsets = [0, 0], sizes = [8, 12], strides = [1, 1]} : vector<8x30xf32> to vector<8x12xf32>
    %c3_326 = arith.constant 3 : index
    %c8_327 = arith.constant 8 : index
    %c2_328 = arith.constant 2 : index
    %1834 = vector.load %arg5[%c3_326, %c8_327, %c2_328] : memref<5x18x32xf32, #tpu.memory_space<vmem>>, vector<1x8x12xf32>
    %1835 = vector.shape_cast %1834 : vector<1x8x12xf32> to vector<8x12xf32>
    %1836 = vector.shape_cast %1833 : vector<8x12xf32> to vector<1x8x12xf32>
    tpu.vector_store %arg5[%c3_326, %c8_327, %c2_328], %1836 {strides = array<i32>} : memref<5x18x32xf32, #tpu.memory_space<vmem>>, vector<1x8x12xf32>,
    %1837 = vector.extract_strided_slice %1804 {offsets = [0, 16], sizes = [8, 12], strides = [1, 1]} : vector<8x30xf32> to vector<8x12xf32>
    %c3_329 = arith.constant 3 : index
    %c8_330 = arith.constant 8 : index
    %c18_331 = arith.constant 18 : index
    %1838 = vector.load %arg5[%c3_329, %c8_330, %c18_331] : memref<5x18x32xf32, #tpu.memory_space<vmem>>, vector<1x8x12xf32>
    %1839 = vector.shape_cast %1838 : vector<1x8x12xf32> to vector<8x12xf32>
    %1840 = vector.shape_cast %1837 : vector<8x12xf32> to vector<1x8x12xf32>
    tpu.vector_store %arg5[%c3_329, %c8_330, %c18_331], %1840 {strides = array<i32>} : memref<5x18x32xf32, #tpu.memory_space<vmem>>, vector<1x8x12xf32>,
    %1841 = vector.extract_strided_slice %1808 {offsets = [0, 0], sizes = [8, 12], strides = [1, 1]} : vector<8x30xf32> to vector<8x12xf32>
    %c4_332 = arith.constant 4 : index
    %c8_333 = arith.constant 8 : index
    %c2_334 = arith.constant 2 : index
    %1842 = vector.load %arg5[%c4_332, %c8_333, %c2_334] : memref<5x18x32xf32, #tpu.memory_space<vmem>>, vector<1x8x12xf32>
    %1843 = vector.shape_cast %1842 : vector<1x8x12xf32> to vector<8x12xf32>
    %1844 = vector.shape_cast %1841 : vector<8x12xf32> to vector<1x8x12xf32>
    tpu.vector_store %arg5[%c4_332, %c8_333, %c2_334], %1844 {strides = array<i32>} : memref<5x18x32xf32, #tpu.memory_space<vmem>>, vector<1x8x12xf32>,
    %1845 = vector.extract_strided_slice %1808 {offsets = [0, 16], sizes = [8, 12], strides = [1, 1]} : vector<8x30xf32> to vector<8x12xf32>
    %c4_335 = arith.constant 4 : index
    %c8_336 = arith.constant 8 : index
    %c18_337 = arith.constant 18 : index
    %1846 = vector.load %arg5[%c4_335, %c8_336, %c18_337] : memref<5x18x32xf32, #tpu.memory_space<vmem>>, vector<1x8x12xf32>
    %1847 = vector.shape_cast %1846 : vector<1x8x12xf32> to vector<8x12xf32>
    %1848 = vector.shape_cast %1845 : vector<8x12xf32> to vector<1x8x12xf32>
    tpu.vector_store %arg5[%c4_335, %c8_336, %c18_337], %1848 {strides = array<i32>} : memref<5x18x32xf32, #tpu.memory_space<vmem>>, vector<1x8x12xf32>,
    %c0_338 = arith.constant 0 : index
    %c6_339 = arith.constant 6 : index
    %c0_340 = arith.constant 0 : index
    %1849 = vector.load %arg5[%c0_338, %c6_339, %c0_340] : memref<5x18x32xf32, #tpu.memory_space<vmem>>, vector<1x8x30xf32>
    %1850 = vector.shape_cast %1849 : vector<1x8x30xf32> to vector<8x30xf32>
    %c395 = arith.constant 395 : index
    %1851 = memref.load %arg1[%c395] : memref<630xf32, #tpu.memory_space<smem>>
    %1852 = vector.broadcast %1851 : f32 to vector<8x30xf32>
    %1853 = arith.mulf %1852, %1850 : vector<8x30xf32>
    %c415 = arith.constant 415 : index
    %1854 = memref.load %arg1[%c415] : memref<630xf32, #tpu.memory_space<smem>>
    %1855 = vector.broadcast %1854 : f32 to vector<8x30xf32>
    %1856 = arith.mulf %1855, %1850 : vector<8x30xf32>
    %c435 = arith.constant 435 : index
    %1857 = memref.load %arg1[%c435] : memref<630xf32, #tpu.memory_space<smem>>
    %1858 = vector.broadcast %1857 : f32 to vector<8x30xf32>
    %1859 = arith.mulf %1858, %1850 : vector<8x30xf32>
    %c455 = arith.constant 455 : index
    %1860 = memref.load %arg1[%c455] : memref<630xf32, #tpu.memory_space<smem>>
    %1861 = vector.broadcast %1860 : f32 to vector<8x30xf32>
    %1862 = arith.mulf %1861, %1850 : vector<8x30xf32>
    %c475 = arith.constant 475 : index
    %1863 = memref.load %arg1[%c475] : memref<630xf32, #tpu.memory_space<smem>>
    %1864 = vector.broadcast %1863 : f32 to vector<8x30xf32>
    %1865 = arith.mulf %1864, %1850 : vector<8x30xf32>
    %c0_341 = arith.constant 0 : index
    %c6_342 = arith.constant 6 : index
    %c2_343 = arith.constant 2 : index
    %1866 = vector.load %arg5[%c0_341, %c6_342, %c2_343] : memref<5x18x32xf32, #tpu.memory_space<vmem>>, vector<1x8x30xf32>
    %1867 = vector.shape_cast %1866 : vector<1x8x30xf32> to vector<8x30xf32>
    %c396 = arith.constant 396 : index
    %1868 = memref.load %arg1[%c396] : memref<630xf32, #tpu.memory_space<smem>>
    %1869 = vector.broadcast %1868 : f32 to vector<8x30xf32>
    %1870 = arith.mulf %1869, %1867 : vector<8x30xf32>
    %1871 = arith.addf %1853, %1870 : vector<8x30xf32>
    %c416 = arith.constant 416 : index
    %1872 = memref.load %arg1[%c416] : memref<630xf32, #tpu.memory_space<smem>>
    %1873 = vector.broadcast %1872 : f32 to vector<8x30xf32>
    %1874 = arith.mulf %1873, %1867 : vector<8x30xf32>
    %1875 = arith.addf %1856, %1874 : vector<8x30xf32>
    %c436 = arith.constant 436 : index
    %1876 = memref.load %arg1[%c436] : memref<630xf32, #tpu.memory_space<smem>>
    %1877 = vector.broadcast %1876 : f32 to vector<8x30xf32>
    %1878 = arith.mulf %1877, %1867 : vector<8x30xf32>
    %1879 = arith.addf %1859, %1878 : vector<8x30xf32>
    %c456 = arith.constant 456 : index
    %1880 = memref.load %arg1[%c456] : memref<630xf32, #tpu.memory_space<smem>>
    %1881 = vector.broadcast %1880 : f32 to vector<8x30xf32>
    %1882 = arith.mulf %1881, %1867 : vector<8x30xf32>
    %1883 = arith.addf %1862, %1882 : vector<8x30xf32>
    %c476 = arith.constant 476 : index
    %1884 = memref.load %arg1[%c476] : memref<630xf32, #tpu.memory_space<smem>>
    %1885 = vector.broadcast %1884 : f32 to vector<8x30xf32>
    %1886 = arith.mulf %1885, %1867 : vector<8x30xf32>
    %1887 = arith.addf %1865, %1886 : vector<8x30xf32>
    %c0_344 = arith.constant 0 : index
    %c8_345 = arith.constant 8 : index
    %c0_346 = arith.constant 0 : index
    %1888 = vector.load %arg5[%c0_344, %c8_345, %c0_346] : memref<5x18x32xf32, #tpu.memory_space<vmem>>, vector<1x8x30xf32>
    %1889 = vector.shape_cast %1888 : vector<1x8x30xf32> to vector<8x30xf32>
    %c397 = arith.constant 397 : index
    %1890 = memref.load %arg1[%c397] : memref<630xf32, #tpu.memory_space<smem>>
    %1891 = vector.broadcast %1890 : f32 to vector<8x30xf32>
    %1892 = arith.mulf %1891, %1889 : vector<8x30xf32>
    %1893 = arith.addf %1871, %1892 : vector<8x30xf32>
    %c417 = arith.constant 417 : index
    %1894 = memref.load %arg1[%c417] : memref<630xf32, #tpu.memory_space<smem>>
    %1895 = vector.broadcast %1894 : f32 to vector<8x30xf32>
    %1896 = arith.mulf %1895, %1889 : vector<8x30xf32>
    %1897 = arith.addf %1875, %1896 : vector<8x30xf32>
    %c437 = arith.constant 437 : index
    %1898 = memref.load %arg1[%c437] : memref<630xf32, #tpu.memory_space<smem>>
    %1899 = vector.broadcast %1898 : f32 to vector<8x30xf32>
    %1900 = arith.mulf %1899, %1889 : vector<8x30xf32>
    %1901 = arith.addf %1879, %1900 : vector<8x30xf32>
    %c457 = arith.constant 457 : index
    %1902 = memref.load %arg1[%c457] : memref<630xf32, #tpu.memory_space<smem>>
    %1903 = vector.broadcast %1902 : f32 to vector<8x30xf32>
    %1904 = arith.mulf %1903, %1889 : vector<8x30xf32>
    %1905 = arith.addf %1883, %1904 : vector<8x30xf32>
    %c477 = arith.constant 477 : index
    %1906 = memref.load %arg1[%c477] : memref<630xf32, #tpu.memory_space<smem>>
    %1907 = vector.broadcast %1906 : f32 to vector<8x30xf32>
    %1908 = arith.mulf %1907, %1889 : vector<8x30xf32>
    %1909 = arith.addf %1887, %1908 : vector<8x30xf32>
    %c0_347 = arith.constant 0 : index
    %c8_348 = arith.constant 8 : index
    %c2_349 = arith.constant 2 : index
    %1910 = vector.load %arg5[%c0_347, %c8_348, %c2_349] : memref<5x18x32xf32, #tpu.memory_space<vmem>>, vector<1x8x30xf32>
    %1911 = vector.shape_cast %1910 : vector<1x8x30xf32> to vector<8x30xf32>
    %c398 = arith.constant 398 : index
    %1912 = memref.load %arg1[%c398] : memref<630xf32, #tpu.memory_space<smem>>
    %1913 = vector.broadcast %1912 : f32 to vector<8x30xf32>
    %1914 = arith.mulf %1913, %1911 : vector<8x30xf32>
    %1915 = arith.addf %1893, %1914 : vector<8x30xf32>
    %c418 = arith.constant 418 : index
    %1916 = memref.load %arg1[%c418] : memref<630xf32, #tpu.memory_space<smem>>
    %1917 = vector.broadcast %1916 : f32 to vector<8x30xf32>
    %1918 = arith.mulf %1917, %1911 : vector<8x30xf32>
    %1919 = arith.addf %1897, %1918 : vector<8x30xf32>
    %c438 = arith.constant 438 : index
    %1920 = memref.load %arg1[%c438] : memref<630xf32, #tpu.memory_space<smem>>
    %1921 = vector.broadcast %1920 : f32 to vector<8x30xf32>
    %1922 = arith.mulf %1921, %1911 : vector<8x30xf32>
    %1923 = arith.addf %1901, %1922 : vector<8x30xf32>
    %c458 = arith.constant 458 : index
    %1924 = memref.load %arg1[%c458] : memref<630xf32, #tpu.memory_space<smem>>
    %1925 = vector.broadcast %1924 : f32 to vector<8x30xf32>
    %1926 = arith.mulf %1925, %1911 : vector<8x30xf32>
    %1927 = arith.addf %1905, %1926 : vector<8x30xf32>
    %c478 = arith.constant 478 : index
    %1928 = memref.load %arg1[%c478] : memref<630xf32, #tpu.memory_space<smem>>
    %1929 = vector.broadcast %1928 : f32 to vector<8x30xf32>
    %1930 = arith.mulf %1929, %1911 : vector<8x30xf32>
    %1931 = arith.addf %1909, %1930 : vector<8x30xf32>
    %c1_350 = arith.constant 1 : index
    %c6_351 = arith.constant 6 : index
    %c0_352 = arith.constant 0 : index
    %1932 = vector.load %arg5[%c1_350, %c6_351, %c0_352] : memref<5x18x32xf32, #tpu.memory_space<vmem>>, vector<1x8x30xf32>
    %1933 = vector.shape_cast %1932 : vector<1x8x30xf32> to vector<8x30xf32>
    %c399 = arith.constant 399 : index
    %1934 = memref.load %arg1[%c399] : memref<630xf32, #tpu.memory_space<smem>>
    %1935 = vector.broadcast %1934 : f32 to vector<8x30xf32>
    %1936 = arith.mulf %1935, %1933 : vector<8x30xf32>
    %1937 = arith.addf %1915, %1936 : vector<8x30xf32>
    %c419 = arith.constant 419 : index
    %1938 = memref.load %arg1[%c419] : memref<630xf32, #tpu.memory_space<smem>>
    %1939 = vector.broadcast %1938 : f32 to vector<8x30xf32>
    %1940 = arith.mulf %1939, %1933 : vector<8x30xf32>
    %1941 = arith.addf %1919, %1940 : vector<8x30xf32>
    %c439 = arith.constant 439 : index
    %1942 = memref.load %arg1[%c439] : memref<630xf32, #tpu.memory_space<smem>>
    %1943 = vector.broadcast %1942 : f32 to vector<8x30xf32>
    %1944 = arith.mulf %1943, %1933 : vector<8x30xf32>
    %1945 = arith.addf %1923, %1944 : vector<8x30xf32>
    %c459 = arith.constant 459 : index
    %1946 = memref.load %arg1[%c459] : memref<630xf32, #tpu.memory_space<smem>>
    %1947 = vector.broadcast %1946 : f32 to vector<8x30xf32>
    %1948 = arith.mulf %1947, %1933 : vector<8x30xf32>
    %1949 = arith.addf %1927, %1948 : vector<8x30xf32>
    %c479 = arith.constant 479 : index
    %1950 = memref.load %arg1[%c479] : memref<630xf32, #tpu.memory_space<smem>>
    %1951 = vector.broadcast %1950 : f32 to vector<8x30xf32>
    %1952 = arith.mulf %1951, %1933 : vector<8x30xf32>
    %1953 = arith.addf %1931, %1952 : vector<8x30xf32>
    %c1_353 = arith.constant 1 : index
    %c6_354 = arith.constant 6 : index
    %c2_355 = arith.constant 2 : index
    %1954 = vector.load %arg5[%c1_353, %c6_354, %c2_355] : memref<5x18x32xf32, #tpu.memory_space<vmem>>, vector<1x8x30xf32>
    %1955 = vector.shape_cast %1954 : vector<1x8x30xf32> to vector<8x30xf32>
    %c400 = arith.constant 400 : index
    %1956 = memref.load %arg1[%c400] : memref<630xf32, #tpu.memory_space<smem>>
    %1957 = vector.broadcast %1956 : f32 to vector<8x30xf32>
    %1958 = arith.mulf %1957, %1955 : vector<8x30xf32>
    %1959 = arith.addf %1937, %1958 : vector<8x30xf32>
    %c420 = arith.constant 420 : index
    %1960 = memref.load %arg1[%c420] : memref<630xf32, #tpu.memory_space<smem>>
    %1961 = vector.broadcast %1960 : f32 to vector<8x30xf32>
    %1962 = arith.mulf %1961, %1955 : vector<8x30xf32>
    %1963 = arith.addf %1941, %1962 : vector<8x30xf32>
    %c440 = arith.constant 440 : index
    %1964 = memref.load %arg1[%c440] : memref<630xf32, #tpu.memory_space<smem>>
    %1965 = vector.broadcast %1964 : f32 to vector<8x30xf32>
    %1966 = arith.mulf %1965, %1955 : vector<8x30xf32>
    %1967 = arith.addf %1945, %1966 : vector<8x30xf32>
    %c460 = arith.constant 460 : index
    %1968 = memref.load %arg1[%c460] : memref<630xf32, #tpu.memory_space<smem>>
    %1969 = vector.broadcast %1968 : f32 to vector<8x30xf32>
    %1970 = arith.mulf %1969, %1955 : vector<8x30xf32>
    %1971 = arith.addf %1949, %1970 : vector<8x30xf32>
    %c480 = arith.constant 480 : index
    %1972 = memref.load %arg1[%c480] : memref<630xf32, #tpu.memory_space<smem>>
    %1973 = vector.broadcast %1972 : f32 to vector<8x30xf32>
    %1974 = arith.mulf %1973, %1955 : vector<8x30xf32>
    %1975 = arith.addf %1953, %1974 : vector<8x30xf32>
    %c1_356 = arith.constant 1 : index
    %c8_357 = arith.constant 8 : index
    %c0_358 = arith.constant 0 : index
    %1976 = vector.load %arg5[%c1_356, %c8_357, %c0_358] : memref<5x18x32xf32, #tpu.memory_space<vmem>>, vector<1x8x30xf32>
    %1977 = vector.shape_cast %1976 : vector<1x8x30xf32> to vector<8x30xf32>
    %c401 = arith.constant 401 : index
    %1978 = memref.load %arg1[%c401] : memref<630xf32, #tpu.memory_space<smem>>
    %1979 = vector.broadcast %1978 : f32 to vector<8x30xf32>
    %1980 = arith.mulf %1979, %1977 : vector<8x30xf32>
    %1981 = arith.addf %1959, %1980 : vector<8x30xf32>
    %c421 = arith.constant 421 : index
    %1982 = memref.load %arg1[%c421] : memref<630xf32, #tpu.memory_space<smem>>
    %1983 = vector.broadcast %1982 : f32 to vector<8x30xf32>
    %1984 = arith.mulf %1983, %1977 : vector<8x30xf32>
    %1985 = arith.addf %1963, %1984 : vector<8x30xf32>
    %c441 = arith.constant 441 : index
    %1986 = memref.load %arg1[%c441] : memref<630xf32, #tpu.memory_space<smem>>
    %1987 = vector.broadcast %1986 : f32 to vector<8x30xf32>
    %1988 = arith.mulf %1987, %1977 : vector<8x30xf32>
    %1989 = arith.addf %1967, %1988 : vector<8x30xf32>
    %c461 = arith.constant 461 : index
    %1990 = memref.load %arg1[%c461] : memref<630xf32, #tpu.memory_space<smem>>
    %1991 = vector.broadcast %1990 : f32 to vector<8x30xf32>
    %1992 = arith.mulf %1991, %1977 : vector<8x30xf32>
    %1993 = arith.addf %1971, %1992 : vector<8x30xf32>
    %c481 = arith.constant 481 : index
    %1994 = memref.load %arg1[%c481] : memref<630xf32, #tpu.memory_space<smem>>
    %1995 = vector.broadcast %1994 : f32 to vector<8x30xf32>
    %1996 = arith.mulf %1995, %1977 : vector<8x30xf32>
    %1997 = arith.addf %1975, %1996 : vector<8x30xf32>
    %c1_359 = arith.constant 1 : index
    %c8_360 = arith.constant 8 : index
    %c2_361 = arith.constant 2 : index
    %1998 = vector.load %arg5[%c1_359, %c8_360, %c2_361] : memref<5x18x32xf32, #tpu.memory_space<vmem>>, vector<1x8x30xf32>
    %1999 = vector.shape_cast %1998 : vector<1x8x30xf32> to vector<8x30xf32>
    %c402 = arith.constant 402 : index
    %2000 = memref.load %arg1[%c402] : memref<630xf32, #tpu.memory_space<smem>>
    %2001 = vector.broadcast %2000 : f32 to vector<8x30xf32>
    %2002 = arith.mulf %2001, %1999 : vector<8x30xf32>
    %2003 = arith.addf %1981, %2002 : vector<8x30xf32>
    %c422 = arith.constant 422 : index
    %2004 = memref.load %arg1[%c422] : memref<630xf32, #tpu.memory_space<smem>>
    %2005 = vector.broadcast %2004 : f32 to vector<8x30xf32>
    %2006 = arith.mulf %2005, %1999 : vector<8x30xf32>
    %2007 = arith.addf %1985, %2006 : vector<8x30xf32>
    %c442 = arith.constant 442 : index
    %2008 = memref.load %arg1[%c442] : memref<630xf32, #tpu.memory_space<smem>>
    %2009 = vector.broadcast %2008 : f32 to vector<8x30xf32>
    %2010 = arith.mulf %2009, %1999 : vector<8x30xf32>
    %2011 = arith.addf %1989, %2010 : vector<8x30xf32>
    %c462 = arith.constant 462 : index
    %2012 = memref.load %arg1[%c462] : memref<630xf32, #tpu.memory_space<smem>>
    %2013 = vector.broadcast %2012 : f32 to vector<8x30xf32>
    %2014 = arith.mulf %2013, %1999 : vector<8x30xf32>
    %2015 = arith.addf %1993, %2014 : vector<8x30xf32>
    %c482 = arith.constant 482 : index
    %2016 = memref.load %arg1[%c482] : memref<630xf32, #tpu.memory_space<smem>>
    %2017 = vector.broadcast %2016 : f32 to vector<8x30xf32>
    %2018 = arith.mulf %2017, %1999 : vector<8x30xf32>
    %2019 = arith.addf %1997, %2018 : vector<8x30xf32>
    %c2_362 = arith.constant 2 : index
    %c6_363 = arith.constant 6 : index
    %c0_364 = arith.constant 0 : index
    %2020 = vector.load %arg5[%c2_362, %c6_363, %c0_364] : memref<5x18x32xf32, #tpu.memory_space<vmem>>, vector<1x8x30xf32>
    %2021 = vector.shape_cast %2020 : vector<1x8x30xf32> to vector<8x30xf32>
    %c403 = arith.constant 403 : index
    %2022 = memref.load %arg1[%c403] : memref<630xf32, #tpu.memory_space<smem>>
    %2023 = vector.broadcast %2022 : f32 to vector<8x30xf32>
    %2024 = arith.mulf %2023, %2021 : vector<8x30xf32>
    %2025 = arith.addf %2003, %2024 : vector<8x30xf32>
    %c423 = arith.constant 423 : index
    %2026 = memref.load %arg1[%c423] : memref<630xf32, #tpu.memory_space<smem>>
    %2027 = vector.broadcast %2026 : f32 to vector<8x30xf32>
    %2028 = arith.mulf %2027, %2021 : vector<8x30xf32>
    %2029 = arith.addf %2007, %2028 : vector<8x30xf32>
    %c443 = arith.constant 443 : index
    %2030 = memref.load %arg1[%c443] : memref<630xf32, #tpu.memory_space<smem>>
    %2031 = vector.broadcast %2030 : f32 to vector<8x30xf32>
    %2032 = arith.mulf %2031, %2021 : vector<8x30xf32>
    %2033 = arith.addf %2011, %2032 : vector<8x30xf32>
    %c463 = arith.constant 463 : index
    %2034 = memref.load %arg1[%c463] : memref<630xf32, #tpu.memory_space<smem>>
    %2035 = vector.broadcast %2034 : f32 to vector<8x30xf32>
    %2036 = arith.mulf %2035, %2021 : vector<8x30xf32>
    %2037 = arith.addf %2015, %2036 : vector<8x30xf32>
    %c483 = arith.constant 483 : index
    %2038 = memref.load %arg1[%c483] : memref<630xf32, #tpu.memory_space<smem>>
    %2039 = vector.broadcast %2038 : f32 to vector<8x30xf32>
    %2040 = arith.mulf %2039, %2021 : vector<8x30xf32>
    %2041 = arith.addf %2019, %2040 : vector<8x30xf32>
    %c2_365 = arith.constant 2 : index
    %c6_366 = arith.constant 6 : index
    %c2_367 = arith.constant 2 : index
    %2042 = vector.load %arg5[%c2_365, %c6_366, %c2_367] : memref<5x18x32xf32, #tpu.memory_space<vmem>>, vector<1x8x30xf32>
    %2043 = vector.shape_cast %2042 : vector<1x8x30xf32> to vector<8x30xf32>
    %c404 = arith.constant 404 : index
    %2044 = memref.load %arg1[%c404] : memref<630xf32, #tpu.memory_space<smem>>
    %2045 = vector.broadcast %2044 : f32 to vector<8x30xf32>
    %2046 = arith.mulf %2045, %2043 : vector<8x30xf32>
    %2047 = arith.addf %2025, %2046 : vector<8x30xf32>
    %c424 = arith.constant 424 : index
    %2048 = memref.load %arg1[%c424] : memref<630xf32, #tpu.memory_space<smem>>
    %2049 = vector.broadcast %2048 : f32 to vector<8x30xf32>
    %2050 = arith.mulf %2049, %2043 : vector<8x30xf32>
    %2051 = arith.addf %2029, %2050 : vector<8x30xf32>
    %c444 = arith.constant 444 : index
    %2052 = memref.load %arg1[%c444] : memref<630xf32, #tpu.memory_space<smem>>
    %2053 = vector.broadcast %2052 : f32 to vector<8x30xf32>
    %2054 = arith.mulf %2053, %2043 : vector<8x30xf32>
    %2055 = arith.addf %2033, %2054 : vector<8x30xf32>
    %c464 = arith.constant 464 : index
    %2056 = memref.load %arg1[%c464] : memref<630xf32, #tpu.memory_space<smem>>
    %2057 = vector.broadcast %2056 : f32 to vector<8x30xf32>
    %2058 = arith.mulf %2057, %2043 : vector<8x30xf32>
    %2059 = arith.addf %2037, %2058 : vector<8x30xf32>
    %c484 = arith.constant 484 : index
    %2060 = memref.load %arg1[%c484] : memref<630xf32, #tpu.memory_space<smem>>
    %2061 = vector.broadcast %2060 : f32 to vector<8x30xf32>
    %2062 = arith.mulf %2061, %2043 : vector<8x30xf32>
    %2063 = arith.addf %2041, %2062 : vector<8x30xf32>
    %c2_368 = arith.constant 2 : index
    %c8_369 = arith.constant 8 : index
    %c0_370 = arith.constant 0 : index
    %2064 = vector.load %arg5[%c2_368, %c8_369, %c0_370] : memref<5x18x32xf32, #tpu.memory_space<vmem>>, vector<1x8x30xf32>
    %2065 = vector.shape_cast %2064 : vector<1x8x30xf32> to vector<8x30xf32>
    %c405 = arith.constant 405 : index
    %2066 = memref.load %arg1[%c405] : memref<630xf32, #tpu.memory_space<smem>>
    %2067 = vector.broadcast %2066 : f32 to vector<8x30xf32>
    %2068 = arith.mulf %2067, %2065 : vector<8x30xf32>
    %2069 = arith.addf %2047, %2068 : vector<8x30xf32>
    %c425 = arith.constant 425 : index
    %2070 = memref.load %arg1[%c425] : memref<630xf32, #tpu.memory_space<smem>>
    %2071 = vector.broadcast %2070 : f32 to vector<8x30xf32>
    %2072 = arith.mulf %2071, %2065 : vector<8x30xf32>
    %2073 = arith.addf %2051, %2072 : vector<8x30xf32>
    %c445 = arith.constant 445 : index
    %2074 = memref.load %arg1[%c445] : memref<630xf32, #tpu.memory_space<smem>>
    %2075 = vector.broadcast %2074 : f32 to vector<8x30xf32>
    %2076 = arith.mulf %2075, %2065 : vector<8x30xf32>
    %2077 = arith.addf %2055, %2076 : vector<8x30xf32>
    %c465 = arith.constant 465 : index
    %2078 = memref.load %arg1[%c465] : memref<630xf32, #tpu.memory_space<smem>>
    %2079 = vector.broadcast %2078 : f32 to vector<8x30xf32>
    %2080 = arith.mulf %2079, %2065 : vector<8x30xf32>
    %2081 = arith.addf %2059, %2080 : vector<8x30xf32>
    %c485 = arith.constant 485 : index
    %2082 = memref.load %arg1[%c485] : memref<630xf32, #tpu.memory_space<smem>>
    %2083 = vector.broadcast %2082 : f32 to vector<8x30xf32>
    %2084 = arith.mulf %2083, %2065 : vector<8x30xf32>
    %2085 = arith.addf %2063, %2084 : vector<8x30xf32>
    %c2_371 = arith.constant 2 : index
    %c8_372 = arith.constant 8 : index
    %c2_373 = arith.constant 2 : index
    %2086 = vector.load %arg5[%c2_371, %c8_372, %c2_373] : memref<5x18x32xf32, #tpu.memory_space<vmem>>, vector<1x8x30xf32>
    %2087 = vector.shape_cast %2086 : vector<1x8x30xf32> to vector<8x30xf32>
    %c406 = arith.constant 406 : index
    %2088 = memref.load %arg1[%c406] : memref<630xf32, #tpu.memory_space<smem>>
    %2089 = vector.broadcast %2088 : f32 to vector<8x30xf32>
    %2090 = arith.mulf %2089, %2087 : vector<8x30xf32>
    %2091 = arith.addf %2069, %2090 : vector<8x30xf32>
    %c426 = arith.constant 426 : index
    %2092 = memref.load %arg1[%c426] : memref<630xf32, #tpu.memory_space<smem>>
    %2093 = vector.broadcast %2092 : f32 to vector<8x30xf32>
    %2094 = arith.mulf %2093, %2087 : vector<8x30xf32>
    %2095 = arith.addf %2073, %2094 : vector<8x30xf32>
    %c446 = arith.constant 446 : index
    %2096 = memref.load %arg1[%c446] : memref<630xf32, #tpu.memory_space<smem>>
    %2097 = vector.broadcast %2096 : f32 to vector<8x30xf32>
    %2098 = arith.mulf %2097, %2087 : vector<8x30xf32>
    %2099 = arith.addf %2077, %2098 : vector<8x30xf32>
    %c466 = arith.constant 466 : index
    %2100 = memref.load %arg1[%c466] : memref<630xf32, #tpu.memory_space<smem>>
    %2101 = vector.broadcast %2100 : f32 to vector<8x30xf32>
    %2102 = arith.mulf %2101, %2087 : vector<8x30xf32>
    %2103 = arith.addf %2081, %2102 : vector<8x30xf32>
    %c486 = arith.constant 486 : index
    %2104 = memref.load %arg1[%c486] : memref<630xf32, #tpu.memory_space<smem>>
    %2105 = vector.broadcast %2104 : f32 to vector<8x30xf32>
    %2106 = arith.mulf %2105, %2087 : vector<8x30xf32>
    %2107 = arith.addf %2085, %2106 : vector<8x30xf32>
    %c3_374 = arith.constant 3 : index
    %c6_375 = arith.constant 6 : index
    %c0_376 = arith.constant 0 : index
    %2108 = vector.load %arg5[%c3_374, %c6_375, %c0_376] : memref<5x18x32xf32, #tpu.memory_space<vmem>>, vector<1x8x30xf32>
    %2109 = vector.shape_cast %2108 : vector<1x8x30xf32> to vector<8x30xf32>
    %c407 = arith.constant 407 : index
    %2110 = memref.load %arg1[%c407] : memref<630xf32, #tpu.memory_space<smem>>
    %2111 = vector.broadcast %2110 : f32 to vector<8x30xf32>
    %2112 = arith.mulf %2111, %2109 : vector<8x30xf32>
    %2113 = arith.addf %2091, %2112 : vector<8x30xf32>
    %c427 = arith.constant 427 : index
    %2114 = memref.load %arg1[%c427] : memref<630xf32, #tpu.memory_space<smem>>
    %2115 = vector.broadcast %2114 : f32 to vector<8x30xf32>
    %2116 = arith.mulf %2115, %2109 : vector<8x30xf32>
    %2117 = arith.addf %2095, %2116 : vector<8x30xf32>
    %c447 = arith.constant 447 : index
    %2118 = memref.load %arg1[%c447] : memref<630xf32, #tpu.memory_space<smem>>
    %2119 = vector.broadcast %2118 : f32 to vector<8x30xf32>
    %2120 = arith.mulf %2119, %2109 : vector<8x30xf32>
    %2121 = arith.addf %2099, %2120 : vector<8x30xf32>
    %c467 = arith.constant 467 : index
    %2122 = memref.load %arg1[%c467] : memref<630xf32, #tpu.memory_space<smem>>
    %2123 = vector.broadcast %2122 : f32 to vector<8x30xf32>
    %2124 = arith.mulf %2123, %2109 : vector<8x30xf32>
    %2125 = arith.addf %2103, %2124 : vector<8x30xf32>
    %c487 = arith.constant 487 : index
    %2126 = memref.load %arg1[%c487] : memref<630xf32, #tpu.memory_space<smem>>
    %2127 = vector.broadcast %2126 : f32 to vector<8x30xf32>
    %2128 = arith.mulf %2127, %2109 : vector<8x30xf32>
    %2129 = arith.addf %2107, %2128 : vector<8x30xf32>
    %c3_377 = arith.constant 3 : index
    %c6_378 = arith.constant 6 : index
    %c2_379 = arith.constant 2 : index
    %2130 = vector.load %arg5[%c3_377, %c6_378, %c2_379] : memref<5x18x32xf32, #tpu.memory_space<vmem>>, vector<1x8x30xf32>
    %2131 = vector.shape_cast %2130 : vector<1x8x30xf32> to vector<8x30xf32>
    %c408 = arith.constant 408 : index
    %2132 = memref.load %arg1[%c408] : memref<630xf32, #tpu.memory_space<smem>>
    %2133 = vector.broadcast %2132 : f32 to vector<8x30xf32>
    %2134 = arith.mulf %2133, %2131 : vector<8x30xf32>
    %2135 = arith.addf %2113, %2134 : vector<8x30xf32>
    %c428 = arith.constant 428 : index
    %2136 = memref.load %arg1[%c428] : memref<630xf32, #tpu.memory_space<smem>>
    %2137 = vector.broadcast %2136 : f32 to vector<8x30xf32>
    %2138 = arith.mulf %2137, %2131 : vector<8x30xf32>
    %2139 = arith.addf %2117, %2138 : vector<8x30xf32>
    %c448 = arith.constant 448 : index
    %2140 = memref.load %arg1[%c448] : memref<630xf32, #tpu.memory_space<smem>>
    %2141 = vector.broadcast %2140 : f32 to vector<8x30xf32>
    %2142 = arith.mulf %2141, %2131 : vector<8x30xf32>
    %2143 = arith.addf %2121, %2142 : vector<8x30xf32>
    %c468 = arith.constant 468 : index
    %2144 = memref.load %arg1[%c468] : memref<630xf32, #tpu.memory_space<smem>>
    %2145 = vector.broadcast %2144 : f32 to vector<8x30xf32>
    %2146 = arith.mulf %2145, %2131 : vector<8x30xf32>
    %2147 = arith.addf %2125, %2146 : vector<8x30xf32>
    %c488 = arith.constant 488 : index
    %2148 = memref.load %arg1[%c488] : memref<630xf32, #tpu.memory_space<smem>>
    %2149 = vector.broadcast %2148 : f32 to vector<8x30xf32>
    %2150 = arith.mulf %2149, %2131 : vector<8x30xf32>
    %2151 = arith.addf %2129, %2150 : vector<8x30xf32>
    %c3_380 = arith.constant 3 : index
    %c8_381 = arith.constant 8 : index
    %c0_382 = arith.constant 0 : index
    %2152 = vector.load %arg5[%c3_380, %c8_381, %c0_382] : memref<5x18x32xf32, #tpu.memory_space<vmem>>, vector<1x8x30xf32>
    %2153 = vector.shape_cast %2152 : vector<1x8x30xf32> to vector<8x30xf32>
    %c409 = arith.constant 409 : index
    %2154 = memref.load %arg1[%c409] : memref<630xf32, #tpu.memory_space<smem>>
    %2155 = vector.broadcast %2154 : f32 to vector<8x30xf32>
    %2156 = arith.mulf %2155, %2153 : vector<8x30xf32>
    %2157 = arith.addf %2135, %2156 : vector<8x30xf32>
    %c429 = arith.constant 429 : index
    %2158 = memref.load %arg1[%c429] : memref<630xf32, #tpu.memory_space<smem>>
    %2159 = vector.broadcast %2158 : f32 to vector<8x30xf32>
    %2160 = arith.mulf %2159, %2153 : vector<8x30xf32>
    %2161 = arith.addf %2139, %2160 : vector<8x30xf32>
    %c449 = arith.constant 449 : index
    %2162 = memref.load %arg1[%c449] : memref<630xf32, #tpu.memory_space<smem>>
    %2163 = vector.broadcast %2162 : f32 to vector<8x30xf32>
    %2164 = arith.mulf %2163, %2153 : vector<8x30xf32>
    %2165 = arith.addf %2143, %2164 : vector<8x30xf32>
    %c469 = arith.constant 469 : index
    %2166 = memref.load %arg1[%c469] : memref<630xf32, #tpu.memory_space<smem>>
    %2167 = vector.broadcast %2166 : f32 to vector<8x30xf32>
    %2168 = arith.mulf %2167, %2153 : vector<8x30xf32>
    %2169 = arith.addf %2147, %2168 : vector<8x30xf32>
    %c489 = arith.constant 489 : index
    %2170 = memref.load %arg1[%c489] : memref<630xf32, #tpu.memory_space<smem>>
    %2171 = vector.broadcast %2170 : f32 to vector<8x30xf32>
    %2172 = arith.mulf %2171, %2153 : vector<8x30xf32>
    %2173 = arith.addf %2151, %2172 : vector<8x30xf32>
    %c3_383 = arith.constant 3 : index
    %c8_384 = arith.constant 8 : index
    %c2_385 = arith.constant 2 : index
    %2174 = vector.load %arg5[%c3_383, %c8_384, %c2_385] : memref<5x18x32xf32, #tpu.memory_space<vmem>>, vector<1x8x30xf32>
    %2175 = vector.shape_cast %2174 : vector<1x8x30xf32> to vector<8x30xf32>
    %c410 = arith.constant 410 : index
    %2176 = memref.load %arg1[%c410] : memref<630xf32, #tpu.memory_space<smem>>
    %2177 = vector.broadcast %2176 : f32 to vector<8x30xf32>
    %2178 = arith.mulf %2177, %2175 : vector<8x30xf32>
    %2179 = arith.addf %2157, %2178 : vector<8x30xf32>
    %c430 = arith.constant 430 : index
    %2180 = memref.load %arg1[%c430] : memref<630xf32, #tpu.memory_space<smem>>
    %2181 = vector.broadcast %2180 : f32 to vector<8x30xf32>
    %2182 = arith.mulf %2181, %2175 : vector<8x30xf32>
    %2183 = arith.addf %2161, %2182 : vector<8x30xf32>
    %c450 = arith.constant 450 : index
    %2184 = memref.load %arg1[%c450] : memref<630xf32, #tpu.memory_space<smem>>
    %2185 = vector.broadcast %2184 : f32 to vector<8x30xf32>
    %2186 = arith.mulf %2185, %2175 : vector<8x30xf32>
    %2187 = arith.addf %2165, %2186 : vector<8x30xf32>
    %c470 = arith.constant 470 : index
    %2188 = memref.load %arg1[%c470] : memref<630xf32, #tpu.memory_space<smem>>
    %2189 = vector.broadcast %2188 : f32 to vector<8x30xf32>
    %2190 = arith.mulf %2189, %2175 : vector<8x30xf32>
    %2191 = arith.addf %2169, %2190 : vector<8x30xf32>
    %c490 = arith.constant 490 : index
    %2192 = memref.load %arg1[%c490] : memref<630xf32, #tpu.memory_space<smem>>
    %2193 = vector.broadcast %2192 : f32 to vector<8x30xf32>
    %2194 = arith.mulf %2193, %2175 : vector<8x30xf32>
    %2195 = arith.addf %2173, %2194 : vector<8x30xf32>
    %c4_386 = arith.constant 4 : index
    %c6_387 = arith.constant 6 : index
    %c0_388 = arith.constant 0 : index
    %2196 = vector.load %arg5[%c4_386, %c6_387, %c0_388] : memref<5x18x32xf32, #tpu.memory_space<vmem>>, vector<1x8x30xf32>
    %2197 = vector.shape_cast %2196 : vector<1x8x30xf32> to vector<8x30xf32>
    %c411 = arith.constant 411 : index
    %2198 = memref.load %arg1[%c411] : memref<630xf32, #tpu.memory_space<smem>>
    %2199 = vector.broadcast %2198 : f32 to vector<8x30xf32>
    %2200 = arith.mulf %2199, %2197 : vector<8x30xf32>
    %2201 = arith.addf %2179, %2200 : vector<8x30xf32>
    %c431 = arith.constant 431 : index
    %2202 = memref.load %arg1[%c431] : memref<630xf32, #tpu.memory_space<smem>>
    %2203 = vector.broadcast %2202 : f32 to vector<8x30xf32>
    %2204 = arith.mulf %2203, %2197 : vector<8x30xf32>
    %2205 = arith.addf %2183, %2204 : vector<8x30xf32>
    %c451 = arith.constant 451 : index
    %2206 = memref.load %arg1[%c451] : memref<630xf32, #tpu.memory_space<smem>>
    %2207 = vector.broadcast %2206 : f32 to vector<8x30xf32>
    %2208 = arith.mulf %2207, %2197 : vector<8x30xf32>
    %2209 = arith.addf %2187, %2208 : vector<8x30xf32>
    %c471 = arith.constant 471 : index
    %2210 = memref.load %arg1[%c471] : memref<630xf32, #tpu.memory_space<smem>>
    %2211 = vector.broadcast %2210 : f32 to vector<8x30xf32>
    %2212 = arith.mulf %2211, %2197 : vector<8x30xf32>
    %2213 = arith.addf %2191, %2212 : vector<8x30xf32>
    %c491 = arith.constant 491 : index
    %2214 = memref.load %arg1[%c491] : memref<630xf32, #tpu.memory_space<smem>>
    %2215 = vector.broadcast %2214 : f32 to vector<8x30xf32>
    %2216 = arith.mulf %2215, %2197 : vector<8x30xf32>
    %2217 = arith.addf %2195, %2216 : vector<8x30xf32>
    %c4_389 = arith.constant 4 : index
    %c6_390 = arith.constant 6 : index
    %c2_391 = arith.constant 2 : index
    %2218 = vector.load %arg5[%c4_389, %c6_390, %c2_391] : memref<5x18x32xf32, #tpu.memory_space<vmem>>, vector<1x8x30xf32>
    %2219 = vector.shape_cast %2218 : vector<1x8x30xf32> to vector<8x30xf32>
    %c412 = arith.constant 412 : index
    %2220 = memref.load %arg1[%c412] : memref<630xf32, #tpu.memory_space<smem>>
    %2221 = vector.broadcast %2220 : f32 to vector<8x30xf32>
    %2222 = arith.mulf %2221, %2219 : vector<8x30xf32>
    %2223 = arith.addf %2201, %2222 : vector<8x30xf32>
    %c432 = arith.constant 432 : index
    %2224 = memref.load %arg1[%c432] : memref<630xf32, #tpu.memory_space<smem>>
    %2225 = vector.broadcast %2224 : f32 to vector<8x30xf32>
    %2226 = arith.mulf %2225, %2219 : vector<8x30xf32>
    %2227 = arith.addf %2205, %2226 : vector<8x30xf32>
    %c452 = arith.constant 452 : index
    %2228 = memref.load %arg1[%c452] : memref<630xf32, #tpu.memory_space<smem>>
    %2229 = vector.broadcast %2228 : f32 to vector<8x30xf32>
    %2230 = arith.mulf %2229, %2219 : vector<8x30xf32>
    %2231 = arith.addf %2209, %2230 : vector<8x30xf32>
    %c472 = arith.constant 472 : index
    %2232 = memref.load %arg1[%c472] : memref<630xf32, #tpu.memory_space<smem>>
    %2233 = vector.broadcast %2232 : f32 to vector<8x30xf32>
    %2234 = arith.mulf %2233, %2219 : vector<8x30xf32>
    %2235 = arith.addf %2213, %2234 : vector<8x30xf32>
    %c492 = arith.constant 492 : index
    %2236 = memref.load %arg1[%c492] : memref<630xf32, #tpu.memory_space<smem>>
    %2237 = vector.broadcast %2236 : f32 to vector<8x30xf32>
    %2238 = arith.mulf %2237, %2219 : vector<8x30xf32>
    %2239 = arith.addf %2217, %2238 : vector<8x30xf32>
    %c4_392 = arith.constant 4 : index
    %c8_393 = arith.constant 8 : index
    %c0_394 = arith.constant 0 : index
    %2240 = vector.load %arg5[%c4_392, %c8_393, %c0_394] : memref<5x18x32xf32, #tpu.memory_space<vmem>>, vector<1x8x30xf32>
    %2241 = vector.shape_cast %2240 : vector<1x8x30xf32> to vector<8x30xf32>
    %c413 = arith.constant 413 : index
    %2242 = memref.load %arg1[%c413] : memref<630xf32, #tpu.memory_space<smem>>
    %2243 = vector.broadcast %2242 : f32 to vector<8x30xf32>
    %2244 = arith.mulf %2243, %2241 : vector<8x30xf32>
    %2245 = arith.addf %2223, %2244 : vector<8x30xf32>
    %c433 = arith.constant 433 : index
    %2246 = memref.load %arg1[%c433] : memref<630xf32, #tpu.memory_space<smem>>
    %2247 = vector.broadcast %2246 : f32 to vector<8x30xf32>
    %2248 = arith.mulf %2247, %2241 : vector<8x30xf32>
    %2249 = arith.addf %2227, %2248 : vector<8x30xf32>
    %c453 = arith.constant 453 : index
    %2250 = memref.load %arg1[%c453] : memref<630xf32, #tpu.memory_space<smem>>
    %2251 = vector.broadcast %2250 : f32 to vector<8x30xf32>
    %2252 = arith.mulf %2251, %2241 : vector<8x30xf32>
    %2253 = arith.addf %2231, %2252 : vector<8x30xf32>
    %c473 = arith.constant 473 : index
    %2254 = memref.load %arg1[%c473] : memref<630xf32, #tpu.memory_space<smem>>
    %2255 = vector.broadcast %2254 : f32 to vector<8x30xf32>
    %2256 = arith.mulf %2255, %2241 : vector<8x30xf32>
    %2257 = arith.addf %2235, %2256 : vector<8x30xf32>
    %c493 = arith.constant 493 : index
    %2258 = memref.load %arg1[%c493] : memref<630xf32, #tpu.memory_space<smem>>
    %2259 = vector.broadcast %2258 : f32 to vector<8x30xf32>
    %2260 = arith.mulf %2259, %2241 : vector<8x30xf32>
    %2261 = arith.addf %2239, %2260 : vector<8x30xf32>
    %c4_395 = arith.constant 4 : index
    %c8_396 = arith.constant 8 : index
    %c2_397 = arith.constant 2 : index
    %2262 = vector.load %arg5[%c4_395, %c8_396, %c2_397] : memref<5x18x32xf32, #tpu.memory_space<vmem>>, vector<1x8x30xf32>
    %2263 = vector.shape_cast %2262 : vector<1x8x30xf32> to vector<8x30xf32>
    %c414 = arith.constant 414 : index
    %2264 = memref.load %arg1[%c414] : memref<630xf32, #tpu.memory_space<smem>>
    %2265 = vector.broadcast %2264 : f32 to vector<8x30xf32>
    %2266 = arith.mulf %2265, %2263 : vector<8x30xf32>
    %2267 = arith.addf %2245, %2266 : vector<8x30xf32>
    %c434 = arith.constant 434 : index
    %2268 = memref.load %arg1[%c434] : memref<630xf32, #tpu.memory_space<smem>>
    %2269 = vector.broadcast %2268 : f32 to vector<8x30xf32>
    %2270 = arith.mulf %2269, %2263 : vector<8x30xf32>
    %2271 = arith.addf %2249, %2270 : vector<8x30xf32>
    %c454 = arith.constant 454 : index
    %2272 = memref.load %arg1[%c454] : memref<630xf32, #tpu.memory_space<smem>>
    %2273 = vector.broadcast %2272 : f32 to vector<8x30xf32>
    %2274 = arith.mulf %2273, %2263 : vector<8x30xf32>
    %2275 = arith.addf %2253, %2274 : vector<8x30xf32>
    %c474 = arith.constant 474 : index
    %2276 = memref.load %arg1[%c474] : memref<630xf32, #tpu.memory_space<smem>>
    %2277 = vector.broadcast %2276 : f32 to vector<8x30xf32>
    %2278 = arith.mulf %2277, %2263 : vector<8x30xf32>
    %2279 = arith.addf %2257, %2278 : vector<8x30xf32>
    %c494 = arith.constant 494 : index
    %2280 = memref.load %arg1[%c494] : memref<630xf32, #tpu.memory_space<smem>>
    %2281 = vector.broadcast %2280 : f32 to vector<8x30xf32>
    %2282 = arith.mulf %2281, %2263 : vector<8x30xf32>
    %2283 = arith.addf %2261, %2282 : vector<8x30xf32>
    %c495 = arith.constant 495 : index
    %2284 = memref.load %arg1[%c495] : memref<630xf32, #tpu.memory_space<smem>>
    %2285 = vector.broadcast %2284 : f32 to vector<8x30xf32>
    %2286 = arith.addf %2267, %2285 : vector<8x30xf32>
    %2287 = math.tanh %2286 : vector<8x30xf32>
    %c496 = arith.constant 496 : index
    %2288 = memref.load %arg1[%c496] : memref<630xf32, #tpu.memory_space<smem>>
    %2289 = vector.broadcast %2288 : f32 to vector<8x30xf32>
    %2290 = arith.addf %2271, %2289 : vector<8x30xf32>
    %2291 = math.tanh %2290 : vector<8x30xf32>
    %c497 = arith.constant 497 : index
    %2292 = memref.load %arg1[%c497] : memref<630xf32, #tpu.memory_space<smem>>
    %2293 = vector.broadcast %2292 : f32 to vector<8x30xf32>
    %2294 = arith.addf %2275, %2293 : vector<8x30xf32>
    %2295 = math.tanh %2294 : vector<8x30xf32>
    %c498 = arith.constant 498 : index
    %2296 = memref.load %arg1[%c498] : memref<630xf32, #tpu.memory_space<smem>>
    %2297 = vector.broadcast %2296 : f32 to vector<8x30xf32>
    %2298 = arith.addf %2279, %2297 : vector<8x30xf32>
    %2299 = math.tanh %2298 : vector<8x30xf32>
    %c499 = arith.constant 499 : index
    %2300 = memref.load %arg1[%c499] : memref<630xf32, #tpu.memory_space<smem>>
    %2301 = vector.broadcast %2300 : f32 to vector<8x30xf32>
    %2302 = arith.addf %2283, %2301 : vector<8x30xf32>
    %2303 = math.tanh %2302 : vector<8x30xf32>
    %c0_398 = arith.constant 0 : index
    %c6_399 = arith.constant 6 : index
    %c0_400 = arith.constant 0 : index
    %2304 = vector.load %arg4[%c0_398, %c6_399, %c0_400] : memref<5x18x32xf32, #tpu.memory_space<vmem>>, vector<1x8x30xf32>
    %2305 = vector.shape_cast %2304 : vector<1x8x30xf32> to vector<8x30xf32>
    %c500 = arith.constant 500 : index
    %2306 = memref.load %arg1[%c500] : memref<630xf32, #tpu.memory_space<smem>>
    %2307 = vector.broadcast %2306 : f32 to vector<8x30xf32>
    %2308 = arith.mulf %2307, %2305 : vector<8x30xf32>
    %c525 = arith.constant 525 : index
    %2309 = memref.load %arg1[%c525] : memref<630xf32, #tpu.memory_space<smem>>
    %2310 = vector.broadcast %2309 : f32 to vector<8x30xf32>
    %2311 = arith.mulf %2310, %2305 : vector<8x30xf32>
    %c550 = arith.constant 550 : index
    %2312 = memref.load %arg1[%c550] : memref<630xf32, #tpu.memory_space<smem>>
    %2313 = vector.broadcast %2312 : f32 to vector<8x30xf32>
    %2314 = arith.mulf %2313, %2305 : vector<8x30xf32>
    %c575 = arith.constant 575 : index
    %2315 = memref.load %arg1[%c575] : memref<630xf32, #tpu.memory_space<smem>>
    %2316 = vector.broadcast %2315 : f32 to vector<8x30xf32>
    %2317 = arith.mulf %2316, %2305 : vector<8x30xf32>
    %c600 = arith.constant 600 : index
    %2318 = memref.load %arg1[%c600] : memref<630xf32, #tpu.memory_space<smem>>
    %2319 = vector.broadcast %2318 : f32 to vector<8x30xf32>
    %2320 = arith.mulf %2319, %2305 : vector<8x30xf32>
    %c0_401 = arith.constant 0 : index
    %c7_402 = arith.constant 7 : index
    %c0_403 = arith.constant 0 : index
    %2321 = vector.load %arg4[%c0_401, %c7_402, %c0_403] : memref<5x18x32xf32, #tpu.memory_space<vmem>>, vector<1x8x30xf32>
    %2322 = vector.shape_cast %2321 : vector<1x8x30xf32> to vector<8x30xf32>
    %c501 = arith.constant 501 : index
    %2323 = memref.load %arg1[%c501] : memref<630xf32, #tpu.memory_space<smem>>
    %2324 = vector.broadcast %2323 : f32 to vector<8x30xf32>
    %2325 = arith.mulf %2324, %2322 : vector<8x30xf32>
    %2326 = arith.addf %2308, %2325 : vector<8x30xf32>
    %c526 = arith.constant 526 : index
    %2327 = memref.load %arg1[%c526] : memref<630xf32, #tpu.memory_space<smem>>
    %2328 = vector.broadcast %2327 : f32 to vector<8x30xf32>
    %2329 = arith.mulf %2328, %2322 : vector<8x30xf32>
    %2330 = arith.addf %2311, %2329 : vector<8x30xf32>
    %c551 = arith.constant 551 : index
    %2331 = memref.load %arg1[%c551] : memref<630xf32, #tpu.memory_space<smem>>
    %2332 = vector.broadcast %2331 : f32 to vector<8x30xf32>
    %2333 = arith.mulf %2332, %2322 : vector<8x30xf32>
    %2334 = arith.addf %2314, %2333 : vector<8x30xf32>
    %c576 = arith.constant 576 : index
    %2335 = memref.load %arg1[%c576] : memref<630xf32, #tpu.memory_space<smem>>
    %2336 = vector.broadcast %2335 : f32 to vector<8x30xf32>
    %2337 = arith.mulf %2336, %2322 : vector<8x30xf32>
    %2338 = arith.addf %2317, %2337 : vector<8x30xf32>
    %c601 = arith.constant 601 : index
    %2339 = memref.load %arg1[%c601] : memref<630xf32, #tpu.memory_space<smem>>
    %2340 = vector.broadcast %2339 : f32 to vector<8x30xf32>
    %2341 = arith.mulf %2340, %2322 : vector<8x30xf32>
    %2342 = arith.addf %2320, %2341 : vector<8x30xf32>
    %c0_404 = arith.constant 0 : index
    %c8_405 = arith.constant 8 : index
    %c0_406 = arith.constant 0 : index
    %2343 = vector.load %arg4[%c0_404, %c8_405, %c0_406] : memref<5x18x32xf32, #tpu.memory_space<vmem>>, vector<1x8x30xf32>
    %2344 = vector.shape_cast %2343 : vector<1x8x30xf32> to vector<8x30xf32>
    %c502 = arith.constant 502 : index
    %2345 = memref.load %arg1[%c502] : memref<630xf32, #tpu.memory_space<smem>>
    %2346 = vector.broadcast %2345 : f32 to vector<8x30xf32>
    %2347 = arith.mulf %2346, %2344 : vector<8x30xf32>
    %2348 = arith.addf %2326, %2347 : vector<8x30xf32>
    %c527 = arith.constant 527 : index
    %2349 = memref.load %arg1[%c527] : memref<630xf32, #tpu.memory_space<smem>>
    %2350 = vector.broadcast %2349 : f32 to vector<8x30xf32>
    %2351 = arith.mulf %2350, %2344 : vector<8x30xf32>
    %2352 = arith.addf %2330, %2351 : vector<8x30xf32>
    %c552 = arith.constant 552 : index
    %2353 = memref.load %arg1[%c552] : memref<630xf32, #tpu.memory_space<smem>>
    %2354 = vector.broadcast %2353 : f32 to vector<8x30xf32>
    %2355 = arith.mulf %2354, %2344 : vector<8x30xf32>
    %2356 = arith.addf %2334, %2355 : vector<8x30xf32>
    %c577 = arith.constant 577 : index
    %2357 = memref.load %arg1[%c577] : memref<630xf32, #tpu.memory_space<smem>>
    %2358 = vector.broadcast %2357 : f32 to vector<8x30xf32>
    %2359 = arith.mulf %2358, %2344 : vector<8x30xf32>
    %2360 = arith.addf %2338, %2359 : vector<8x30xf32>
    %c602 = arith.constant 602 : index
    %2361 = memref.load %arg1[%c602] : memref<630xf32, #tpu.memory_space<smem>>
    %2362 = vector.broadcast %2361 : f32 to vector<8x30xf32>
    %2363 = arith.mulf %2362, %2344 : vector<8x30xf32>
    %2364 = arith.addf %2342, %2363 : vector<8x30xf32>
    %c0_407 = arith.constant 0 : index
    %c9_408 = arith.constant 9 : index
    %c0_409 = arith.constant 0 : index
    %2365 = vector.load %arg4[%c0_407, %c9_408, %c0_409] : memref<5x18x32xf32, #tpu.memory_space<vmem>>, vector<1x8x30xf32>
    %2366 = vector.shape_cast %2365 : vector<1x8x30xf32> to vector<8x30xf32>
    %c503 = arith.constant 503 : index
    %2367 = memref.load %arg1[%c503] : memref<630xf32, #tpu.memory_space<smem>>
    %2368 = vector.broadcast %2367 : f32 to vector<8x30xf32>
    %2369 = arith.mulf %2368, %2366 : vector<8x30xf32>
    %2370 = arith.addf %2348, %2369 : vector<8x30xf32>
    %c528 = arith.constant 528 : index
    %2371 = memref.load %arg1[%c528] : memref<630xf32, #tpu.memory_space<smem>>
    %2372 = vector.broadcast %2371 : f32 to vector<8x30xf32>
    %2373 = arith.mulf %2372, %2366 : vector<8x30xf32>
    %2374 = arith.addf %2352, %2373 : vector<8x30xf32>
    %c553 = arith.constant 553 : index
    %2375 = memref.load %arg1[%c553] : memref<630xf32, #tpu.memory_space<smem>>
    %2376 = vector.broadcast %2375 : f32 to vector<8x30xf32>
    %2377 = arith.mulf %2376, %2366 : vector<8x30xf32>
    %2378 = arith.addf %2356, %2377 : vector<8x30xf32>
    %c578 = arith.constant 578 : index
    %2379 = memref.load %arg1[%c578] : memref<630xf32, #tpu.memory_space<smem>>
    %2380 = vector.broadcast %2379 : f32 to vector<8x30xf32>
    %2381 = arith.mulf %2380, %2366 : vector<8x30xf32>
    %2382 = arith.addf %2360, %2381 : vector<8x30xf32>
    %c603 = arith.constant 603 : index
    %2383 = memref.load %arg1[%c603] : memref<630xf32, #tpu.memory_space<smem>>
    %2384 = vector.broadcast %2383 : f32 to vector<8x30xf32>
    %2385 = arith.mulf %2384, %2366 : vector<8x30xf32>
    %2386 = arith.addf %2364, %2385 : vector<8x30xf32>
    %c0_410 = arith.constant 0 : index
    %c10_411 = arith.constant 10 : index
    %c0_412 = arith.constant 0 : index
    %2387 = vector.load %arg4[%c0_410, %c10_411, %c0_412] : memref<5x18x32xf32, #tpu.memory_space<vmem>>, vector<1x8x30xf32>
    %2388 = vector.shape_cast %2387 : vector<1x8x30xf32> to vector<8x30xf32>
    %c504 = arith.constant 504 : index
    %2389 = memref.load %arg1[%c504] : memref<630xf32, #tpu.memory_space<smem>>
    %2390 = vector.broadcast %2389 : f32 to vector<8x30xf32>
    %2391 = arith.mulf %2390, %2388 : vector<8x30xf32>
    %2392 = arith.addf %2370, %2391 : vector<8x30xf32>
    %c529 = arith.constant 529 : index
    %2393 = memref.load %arg1[%c529] : memref<630xf32, #tpu.memory_space<smem>>
    %2394 = vector.broadcast %2393 : f32 to vector<8x30xf32>
    %2395 = arith.mulf %2394, %2388 : vector<8x30xf32>
    %2396 = arith.addf %2374, %2395 : vector<8x30xf32>
    %c554 = arith.constant 554 : index
    %2397 = memref.load %arg1[%c554] : memref<630xf32, #tpu.memory_space<smem>>
    %2398 = vector.broadcast %2397 : f32 to vector<8x30xf32>
    %2399 = arith.mulf %2398, %2388 : vector<8x30xf32>
    %2400 = arith.addf %2378, %2399 : vector<8x30xf32>
    %c579 = arith.constant 579 : index
    %2401 = memref.load %arg1[%c579] : memref<630xf32, #tpu.memory_space<smem>>
    %2402 = vector.broadcast %2401 : f32 to vector<8x30xf32>
    %2403 = arith.mulf %2402, %2388 : vector<8x30xf32>
    %2404 = arith.addf %2382, %2403 : vector<8x30xf32>
    %c604 = arith.constant 604 : index
    %2405 = memref.load %arg1[%c604] : memref<630xf32, #tpu.memory_space<smem>>
    %2406 = vector.broadcast %2405 : f32 to vector<8x30xf32>
    %2407 = arith.mulf %2406, %2388 : vector<8x30xf32>
    %2408 = arith.addf %2386, %2407 : vector<8x30xf32>
    %c1_413 = arith.constant 1 : index
    %c6_414 = arith.constant 6 : index
    %c0_415 = arith.constant 0 : index
    %2409 = vector.load %arg4[%c1_413, %c6_414, %c0_415] : memref<5x18x32xf32, #tpu.memory_space<vmem>>, vector<1x8x30xf32>
    %2410 = vector.shape_cast %2409 : vector<1x8x30xf32> to vector<8x30xf32>
    %c505 = arith.constant 505 : index
    %2411 = memref.load %arg1[%c505] : memref<630xf32, #tpu.memory_space<smem>>
    %2412 = vector.broadcast %2411 : f32 to vector<8x30xf32>
    %2413 = arith.mulf %2412, %2410 : vector<8x30xf32>
    %2414 = arith.addf %2392, %2413 : vector<8x30xf32>
    %c530 = arith.constant 530 : index
    %2415 = memref.load %arg1[%c530] : memref<630xf32, #tpu.memory_space<smem>>
    %2416 = vector.broadcast %2415 : f32 to vector<8x30xf32>
    %2417 = arith.mulf %2416, %2410 : vector<8x30xf32>
    %2418 = arith.addf %2396, %2417 : vector<8x30xf32>
    %c555 = arith.constant 555 : index
    %2419 = memref.load %arg1[%c555] : memref<630xf32, #tpu.memory_space<smem>>
    %2420 = vector.broadcast %2419 : f32 to vector<8x30xf32>
    %2421 = arith.mulf %2420, %2410 : vector<8x30xf32>
    %2422 = arith.addf %2400, %2421 : vector<8x30xf32>
    %c580 = arith.constant 580 : index
    %2423 = memref.load %arg1[%c580] : memref<630xf32, #tpu.memory_space<smem>>
    %2424 = vector.broadcast %2423 : f32 to vector<8x30xf32>
    %2425 = arith.mulf %2424, %2410 : vector<8x30xf32>
    %2426 = arith.addf %2404, %2425 : vector<8x30xf32>
    %c605 = arith.constant 605 : index
    %2427 = memref.load %arg1[%c605] : memref<630xf32, #tpu.memory_space<smem>>
    %2428 = vector.broadcast %2427 : f32 to vector<8x30xf32>
    %2429 = arith.mulf %2428, %2410 : vector<8x30xf32>
    %2430 = arith.addf %2408, %2429 : vector<8x30xf32>
    %c1_416 = arith.constant 1 : index
    %c7_417 = arith.constant 7 : index
    %c0_418 = arith.constant 0 : index
    %2431 = vector.load %arg4[%c1_416, %c7_417, %c0_418] : memref<5x18x32xf32, #tpu.memory_space<vmem>>, vector<1x8x30xf32>
    %2432 = vector.shape_cast %2431 : vector<1x8x30xf32> to vector<8x30xf32>
    %c506 = arith.constant 506 : index
    %2433 = memref.load %arg1[%c506] : memref<630xf32, #tpu.memory_space<smem>>
    %2434 = vector.broadcast %2433 : f32 to vector<8x30xf32>
    %2435 = arith.mulf %2434, %2432 : vector<8x30xf32>
    %2436 = arith.addf %2414, %2435 : vector<8x30xf32>
    %c531 = arith.constant 531 : index
    %2437 = memref.load %arg1[%c531] : memref<630xf32, #tpu.memory_space<smem>>
    %2438 = vector.broadcast %2437 : f32 to vector<8x30xf32>
    %2439 = arith.mulf %2438, %2432 : vector<8x30xf32>
    %2440 = arith.addf %2418, %2439 : vector<8x30xf32>
    %c556 = arith.constant 556 : index
    %2441 = memref.load %arg1[%c556] : memref<630xf32, #tpu.memory_space<smem>>
    %2442 = vector.broadcast %2441 : f32 to vector<8x30xf32>
    %2443 = arith.mulf %2442, %2432 : vector<8x30xf32>
    %2444 = arith.addf %2422, %2443 : vector<8x30xf32>
    %c581 = arith.constant 581 : index
    %2445 = memref.load %arg1[%c581] : memref<630xf32, #tpu.memory_space<smem>>
    %2446 = vector.broadcast %2445 : f32 to vector<8x30xf32>
    %2447 = arith.mulf %2446, %2432 : vector<8x30xf32>
    %2448 = arith.addf %2426, %2447 : vector<8x30xf32>
    %c606 = arith.constant 606 : index
    %2449 = memref.load %arg1[%c606] : memref<630xf32, #tpu.memory_space<smem>>
    %2450 = vector.broadcast %2449 : f32 to vector<8x30xf32>
    %2451 = arith.mulf %2450, %2432 : vector<8x30xf32>
    %2452 = arith.addf %2430, %2451 : vector<8x30xf32>
    %c1_419 = arith.constant 1 : index
    %c8_420 = arith.constant 8 : index
    %c0_421 = arith.constant 0 : index
    %2453 = vector.load %arg4[%c1_419, %c8_420, %c0_421] : memref<5x18x32xf32, #tpu.memory_space<vmem>>, vector<1x8x30xf32>
    %2454 = vector.shape_cast %2453 : vector<1x8x30xf32> to vector<8x30xf32>
    %c507 = arith.constant 507 : index
    %2455 = memref.load %arg1[%c507] : memref<630xf32, #tpu.memory_space<smem>>
    %2456 = vector.broadcast %2455 : f32 to vector<8x30xf32>
    %2457 = arith.mulf %2456, %2454 : vector<8x30xf32>
    %2458 = arith.addf %2436, %2457 : vector<8x30xf32>
    %c532 = arith.constant 532 : index
    %2459 = memref.load %arg1[%c532] : memref<630xf32, #tpu.memory_space<smem>>
    %2460 = vector.broadcast %2459 : f32 to vector<8x30xf32>
    %2461 = arith.mulf %2460, %2454 : vector<8x30xf32>
    %2462 = arith.addf %2440, %2461 : vector<8x30xf32>
    %c557 = arith.constant 557 : index
    %2463 = memref.load %arg1[%c557] : memref<630xf32, #tpu.memory_space<smem>>
    %2464 = vector.broadcast %2463 : f32 to vector<8x30xf32>
    %2465 = arith.mulf %2464, %2454 : vector<8x30xf32>
    %2466 = arith.addf %2444, %2465 : vector<8x30xf32>
    %c582 = arith.constant 582 : index
    %2467 = memref.load %arg1[%c582] : memref<630xf32, #tpu.memory_space<smem>>
    %2468 = vector.broadcast %2467 : f32 to vector<8x30xf32>
    %2469 = arith.mulf %2468, %2454 : vector<8x30xf32>
    %2470 = arith.addf %2448, %2469 : vector<8x30xf32>
    %c607 = arith.constant 607 : index
    %2471 = memref.load %arg1[%c607] : memref<630xf32, #tpu.memory_space<smem>>
    %2472 = vector.broadcast %2471 : f32 to vector<8x30xf32>
    %2473 = arith.mulf %2472, %2454 : vector<8x30xf32>
    %2474 = arith.addf %2452, %2473 : vector<8x30xf32>
    %c1_422 = arith.constant 1 : index
    %c9_423 = arith.constant 9 : index
    %c0_424 = arith.constant 0 : index
    %2475 = vector.load %arg4[%c1_422, %c9_423, %c0_424] : memref<5x18x32xf32, #tpu.memory_space<vmem>>, vector<1x8x30xf32>
    %2476 = vector.shape_cast %2475 : vector<1x8x30xf32> to vector<8x30xf32>
    %c508 = arith.constant 508 : index
    %2477 = memref.load %arg1[%c508] : memref<630xf32, #tpu.memory_space<smem>>
    %2478 = vector.broadcast %2477 : f32 to vector<8x30xf32>
    %2479 = arith.mulf %2478, %2476 : vector<8x30xf32>
    %2480 = arith.addf %2458, %2479 : vector<8x30xf32>
    %c533 = arith.constant 533 : index
    %2481 = memref.load %arg1[%c533] : memref<630xf32, #tpu.memory_space<smem>>
    %2482 = vector.broadcast %2481 : f32 to vector<8x30xf32>
    %2483 = arith.mulf %2482, %2476 : vector<8x30xf32>
    %2484 = arith.addf %2462, %2483 : vector<8x30xf32>
    %c558 = arith.constant 558 : index
    %2485 = memref.load %arg1[%c558] : memref<630xf32, #tpu.memory_space<smem>>
    %2486 = vector.broadcast %2485 : f32 to vector<8x30xf32>
    %2487 = arith.mulf %2486, %2476 : vector<8x30xf32>
    %2488 = arith.addf %2466, %2487 : vector<8x30xf32>
    %c583 = arith.constant 583 : index
    %2489 = memref.load %arg1[%c583] : memref<630xf32, #tpu.memory_space<smem>>
    %2490 = vector.broadcast %2489 : f32 to vector<8x30xf32>
    %2491 = arith.mulf %2490, %2476 : vector<8x30xf32>
    %2492 = arith.addf %2470, %2491 : vector<8x30xf32>
    %c608 = arith.constant 608 : index
    %2493 = memref.load %arg1[%c608] : memref<630xf32, #tpu.memory_space<smem>>
    %2494 = vector.broadcast %2493 : f32 to vector<8x30xf32>
    %2495 = arith.mulf %2494, %2476 : vector<8x30xf32>
    %2496 = arith.addf %2474, %2495 : vector<8x30xf32>
    %c1_425 = arith.constant 1 : index
    %c10_426 = arith.constant 10 : index
    %c0_427 = arith.constant 0 : index
    %2497 = vector.load %arg4[%c1_425, %c10_426, %c0_427] : memref<5x18x32xf32, #tpu.memory_space<vmem>>, vector<1x8x30xf32>
    %2498 = vector.shape_cast %2497 : vector<1x8x30xf32> to vector<8x30xf32>
    %c509 = arith.constant 509 : index
    %2499 = memref.load %arg1[%c509] : memref<630xf32, #tpu.memory_space<smem>>
    %2500 = vector.broadcast %2499 : f32 to vector<8x30xf32>
    %2501 = arith.mulf %2500, %2498 : vector<8x30xf32>
    %2502 = arith.addf %2480, %2501 : vector<8x30xf32>
    %c534 = arith.constant 534 : index
    %2503 = memref.load %arg1[%c534] : memref<630xf32, #tpu.memory_space<smem>>
    %2504 = vector.broadcast %2503 : f32 to vector<8x30xf32>
    %2505 = arith.mulf %2504, %2498 : vector<8x30xf32>
    %2506 = arith.addf %2484, %2505 : vector<8x30xf32>
    %c559 = arith.constant 559 : index
    %2507 = memref.load %arg1[%c559] : memref<630xf32, #tpu.memory_space<smem>>
    %2508 = vector.broadcast %2507 : f32 to vector<8x30xf32>
    %2509 = arith.mulf %2508, %2498 : vector<8x30xf32>
    %2510 = arith.addf %2488, %2509 : vector<8x30xf32>
    %c584 = arith.constant 584 : index
    %2511 = memref.load %arg1[%c584] : memref<630xf32, #tpu.memory_space<smem>>
    %2512 = vector.broadcast %2511 : f32 to vector<8x30xf32>
    %2513 = arith.mulf %2512, %2498 : vector<8x30xf32>
    %2514 = arith.addf %2492, %2513 : vector<8x30xf32>
    %c609 = arith.constant 609 : index
    %2515 = memref.load %arg1[%c609] : memref<630xf32, #tpu.memory_space<smem>>
    %2516 = vector.broadcast %2515 : f32 to vector<8x30xf32>
    %2517 = arith.mulf %2516, %2498 : vector<8x30xf32>
    %2518 = arith.addf %2496, %2517 : vector<8x30xf32>
    %c2_428 = arith.constant 2 : index
    %c6_429 = arith.constant 6 : index
    %c0_430 = arith.constant 0 : index
    %2519 = vector.load %arg4[%c2_428, %c6_429, %c0_430] : memref<5x18x32xf32, #tpu.memory_space<vmem>>, vector<1x8x30xf32>
    %2520 = vector.shape_cast %2519 : vector<1x8x30xf32> to vector<8x30xf32>
    %c510 = arith.constant 510 : index
    %2521 = memref.load %arg1[%c510] : memref<630xf32, #tpu.memory_space<smem>>
    %2522 = vector.broadcast %2521 : f32 to vector<8x30xf32>
    %2523 = arith.mulf %2522, %2520 : vector<8x30xf32>
    %2524 = arith.addf %2502, %2523 : vector<8x30xf32>
    %c535 = arith.constant 535 : index
    %2525 = memref.load %arg1[%c535] : memref<630xf32, #tpu.memory_space<smem>>
    %2526 = vector.broadcast %2525 : f32 to vector<8x30xf32>
    %2527 = arith.mulf %2526, %2520 : vector<8x30xf32>
    %2528 = arith.addf %2506, %2527 : vector<8x30xf32>
    %c560 = arith.constant 560 : index
    %2529 = memref.load %arg1[%c560] : memref<630xf32, #tpu.memory_space<smem>>
    %2530 = vector.broadcast %2529 : f32 to vector<8x30xf32>
    %2531 = arith.mulf %2530, %2520 : vector<8x30xf32>
    %2532 = arith.addf %2510, %2531 : vector<8x30xf32>
    %c585 = arith.constant 585 : index
    %2533 = memref.load %arg1[%c585] : memref<630xf32, #tpu.memory_space<smem>>
    %2534 = vector.broadcast %2533 : f32 to vector<8x30xf32>
    %2535 = arith.mulf %2534, %2520 : vector<8x30xf32>
    %2536 = arith.addf %2514, %2535 : vector<8x30xf32>
    %c610 = arith.constant 610 : index
    %2537 = memref.load %arg1[%c610] : memref<630xf32, #tpu.memory_space<smem>>
    %2538 = vector.broadcast %2537 : f32 to vector<8x30xf32>
    %2539 = arith.mulf %2538, %2520 : vector<8x30xf32>
    %2540 = arith.addf %2518, %2539 : vector<8x30xf32>
    %c2_431 = arith.constant 2 : index
    %c7_432 = arith.constant 7 : index
    %c0_433 = arith.constant 0 : index
    %2541 = vector.load %arg4[%c2_431, %c7_432, %c0_433] : memref<5x18x32xf32, #tpu.memory_space<vmem>>, vector<1x8x30xf32>
    %2542 = vector.shape_cast %2541 : vector<1x8x30xf32> to vector<8x30xf32>
    %c511 = arith.constant 511 : index
    %2543 = memref.load %arg1[%c511] : memref<630xf32, #tpu.memory_space<smem>>
    %2544 = vector.broadcast %2543 : f32 to vector<8x30xf32>
    %2545 = arith.mulf %2544, %2542 : vector<8x30xf32>
    %2546 = arith.addf %2524, %2545 : vector<8x30xf32>
    %c536 = arith.constant 536 : index
    %2547 = memref.load %arg1[%c536] : memref<630xf32, #tpu.memory_space<smem>>
    %2548 = vector.broadcast %2547 : f32 to vector<8x30xf32>
    %2549 = arith.mulf %2548, %2542 : vector<8x30xf32>
    %2550 = arith.addf %2528, %2549 : vector<8x30xf32>
    %c561 = arith.constant 561 : index
    %2551 = memref.load %arg1[%c561] : memref<630xf32, #tpu.memory_space<smem>>
    %2552 = vector.broadcast %2551 : f32 to vector<8x30xf32>
    %2553 = arith.mulf %2552, %2542 : vector<8x30xf32>
    %2554 = arith.addf %2532, %2553 : vector<8x30xf32>
    %c586 = arith.constant 586 : index
    %2555 = memref.load %arg1[%c586] : memref<630xf32, #tpu.memory_space<smem>>
    %2556 = vector.broadcast %2555 : f32 to vector<8x30xf32>
    %2557 = arith.mulf %2556, %2542 : vector<8x30xf32>
    %2558 = arith.addf %2536, %2557 : vector<8x30xf32>
    %c611 = arith.constant 611 : index
    %2559 = memref.load %arg1[%c611] : memref<630xf32, #tpu.memory_space<smem>>
    %2560 = vector.broadcast %2559 : f32 to vector<8x30xf32>
    %2561 = arith.mulf %2560, %2542 : vector<8x30xf32>
    %2562 = arith.addf %2540, %2561 : vector<8x30xf32>
    %c2_434 = arith.constant 2 : index
    %c8_435 = arith.constant 8 : index
    %c0_436 = arith.constant 0 : index
    %2563 = vector.load %arg4[%c2_434, %c8_435, %c0_436] : memref<5x18x32xf32, #tpu.memory_space<vmem>>, vector<1x8x30xf32>
    %2564 = vector.shape_cast %2563 : vector<1x8x30xf32> to vector<8x30xf32>
    %c512 = arith.constant 512 : index
    %2565 = memref.load %arg1[%c512] : memref<630xf32, #tpu.memory_space<smem>>
    %2566 = vector.broadcast %2565 : f32 to vector<8x30xf32>
    %2567 = arith.mulf %2566, %2564 : vector<8x30xf32>
    %2568 = arith.addf %2546, %2567 : vector<8x30xf32>
    %c537 = arith.constant 537 : index
    %2569 = memref.load %arg1[%c537] : memref<630xf32, #tpu.memory_space<smem>>
    %2570 = vector.broadcast %2569 : f32 to vector<8x30xf32>
    %2571 = arith.mulf %2570, %2564 : vector<8x30xf32>
    %2572 = arith.addf %2550, %2571 : vector<8x30xf32>
    %c562 = arith.constant 562 : index
    %2573 = memref.load %arg1[%c562] : memref<630xf32, #tpu.memory_space<smem>>
    %2574 = vector.broadcast %2573 : f32 to vector<8x30xf32>
    %2575 = arith.mulf %2574, %2564 : vector<8x30xf32>
    %2576 = arith.addf %2554, %2575 : vector<8x30xf32>
    %c587 = arith.constant 587 : index
    %2577 = memref.load %arg1[%c587] : memref<630xf32, #tpu.memory_space<smem>>
    %2578 = vector.broadcast %2577 : f32 to vector<8x30xf32>
    %2579 = arith.mulf %2578, %2564 : vector<8x30xf32>
    %2580 = arith.addf %2558, %2579 : vector<8x30xf32>
    %c612 = arith.constant 612 : index
    %2581 = memref.load %arg1[%c612] : memref<630xf32, #tpu.memory_space<smem>>
    %2582 = vector.broadcast %2581 : f32 to vector<8x30xf32>
    %2583 = arith.mulf %2582, %2564 : vector<8x30xf32>
    %2584 = arith.addf %2562, %2583 : vector<8x30xf32>
    %c2_437 = arith.constant 2 : index
    %c9_438 = arith.constant 9 : index
    %c0_439 = arith.constant 0 : index
    %2585 = vector.load %arg4[%c2_437, %c9_438, %c0_439] : memref<5x18x32xf32, #tpu.memory_space<vmem>>, vector<1x8x30xf32>
    %2586 = vector.shape_cast %2585 : vector<1x8x30xf32> to vector<8x30xf32>
    %c513 = arith.constant 513 : index
    %2587 = memref.load %arg1[%c513] : memref<630xf32, #tpu.memory_space<smem>>
    %2588 = vector.broadcast %2587 : f32 to vector<8x30xf32>
    %2589 = arith.mulf %2588, %2586 : vector<8x30xf32>
    %2590 = arith.addf %2568, %2589 : vector<8x30xf32>
    %c538 = arith.constant 538 : index
    %2591 = memref.load %arg1[%c538] : memref<630xf32, #tpu.memory_space<smem>>
    %2592 = vector.broadcast %2591 : f32 to vector<8x30xf32>
    %2593 = arith.mulf %2592, %2586 : vector<8x30xf32>
    %2594 = arith.addf %2572, %2593 : vector<8x30xf32>
    %c563 = arith.constant 563 : index
    %2595 = memref.load %arg1[%c563] : memref<630xf32, #tpu.memory_space<smem>>
    %2596 = vector.broadcast %2595 : f32 to vector<8x30xf32>
    %2597 = arith.mulf %2596, %2586 : vector<8x30xf32>
    %2598 = arith.addf %2576, %2597 : vector<8x30xf32>
    %c588 = arith.constant 588 : index
    %2599 = memref.load %arg1[%c588] : memref<630xf32, #tpu.memory_space<smem>>
    %2600 = vector.broadcast %2599 : f32 to vector<8x30xf32>
    %2601 = arith.mulf %2600, %2586 : vector<8x30xf32>
    %2602 = arith.addf %2580, %2601 : vector<8x30xf32>
    %c613 = arith.constant 613 : index
    %2603 = memref.load %arg1[%c613] : memref<630xf32, #tpu.memory_space<smem>>
    %2604 = vector.broadcast %2603 : f32 to vector<8x30xf32>
    %2605 = arith.mulf %2604, %2586 : vector<8x30xf32>
    %2606 = arith.addf %2584, %2605 : vector<8x30xf32>
    %c2_440 = arith.constant 2 : index
    %c10_441 = arith.constant 10 : index
    %c0_442 = arith.constant 0 : index
    %2607 = vector.load %arg4[%c2_440, %c10_441, %c0_442] : memref<5x18x32xf32, #tpu.memory_space<vmem>>, vector<1x8x30xf32>
    %2608 = vector.shape_cast %2607 : vector<1x8x30xf32> to vector<8x30xf32>
    %c514 = arith.constant 514 : index
    %2609 = memref.load %arg1[%c514] : memref<630xf32, #tpu.memory_space<smem>>
    %2610 = vector.broadcast %2609 : f32 to vector<8x30xf32>
    %2611 = arith.mulf %2610, %2608 : vector<8x30xf32>
    %2612 = arith.addf %2590, %2611 : vector<8x30xf32>
    %c539 = arith.constant 539 : index
    %2613 = memref.load %arg1[%c539] : memref<630xf32, #tpu.memory_space<smem>>
    %2614 = vector.broadcast %2613 : f32 to vector<8x30xf32>
    %2615 = arith.mulf %2614, %2608 : vector<8x30xf32>
    %2616 = arith.addf %2594, %2615 : vector<8x30xf32>
    %c564 = arith.constant 564 : index
    %2617 = memref.load %arg1[%c564] : memref<630xf32, #tpu.memory_space<smem>>
    %2618 = vector.broadcast %2617 : f32 to vector<8x30xf32>
    %2619 = arith.mulf %2618, %2608 : vector<8x30xf32>
    %2620 = arith.addf %2598, %2619 : vector<8x30xf32>
    %c589 = arith.constant 589 : index
    %2621 = memref.load %arg1[%c589] : memref<630xf32, #tpu.memory_space<smem>>
    %2622 = vector.broadcast %2621 : f32 to vector<8x30xf32>
    %2623 = arith.mulf %2622, %2608 : vector<8x30xf32>
    %2624 = arith.addf %2602, %2623 : vector<8x30xf32>
    %c614 = arith.constant 614 : index
    %2625 = memref.load %arg1[%c614] : memref<630xf32, #tpu.memory_space<smem>>
    %2626 = vector.broadcast %2625 : f32 to vector<8x30xf32>
    %2627 = arith.mulf %2626, %2608 : vector<8x30xf32>
    %2628 = arith.addf %2606, %2627 : vector<8x30xf32>
    %c3_443 = arith.constant 3 : index
    %c6_444 = arith.constant 6 : index
    %c0_445 = arith.constant 0 : index
    %2629 = vector.load %arg4[%c3_443, %c6_444, %c0_445] : memref<5x18x32xf32, #tpu.memory_space<vmem>>, vector<1x8x30xf32>
    %2630 = vector.shape_cast %2629 : vector<1x8x30xf32> to vector<8x30xf32>
    %c515 = arith.constant 515 : index
    %2631 = memref.load %arg1[%c515] : memref<630xf32, #tpu.memory_space<smem>>
    %2632 = vector.broadcast %2631 : f32 to vector<8x30xf32>
    %2633 = arith.mulf %2632, %2630 : vector<8x30xf32>
    %2634 = arith.addf %2612, %2633 : vector<8x30xf32>
    %c540 = arith.constant 540 : index
    %2635 = memref.load %arg1[%c540] : memref<630xf32, #tpu.memory_space<smem>>
    %2636 = vector.broadcast %2635 : f32 to vector<8x30xf32>
    %2637 = arith.mulf %2636, %2630 : vector<8x30xf32>
    %2638 = arith.addf %2616, %2637 : vector<8x30xf32>
    %c565 = arith.constant 565 : index
    %2639 = memref.load %arg1[%c565] : memref<630xf32, #tpu.memory_space<smem>>
    %2640 = vector.broadcast %2639 : f32 to vector<8x30xf32>
    %2641 = arith.mulf %2640, %2630 : vector<8x30xf32>
    %2642 = arith.addf %2620, %2641 : vector<8x30xf32>
    %c590 = arith.constant 590 : index
    %2643 = memref.load %arg1[%c590] : memref<630xf32, #tpu.memory_space<smem>>
    %2644 = vector.broadcast %2643 : f32 to vector<8x30xf32>
    %2645 = arith.mulf %2644, %2630 : vector<8x30xf32>
    %2646 = arith.addf %2624, %2645 : vector<8x30xf32>
    %c615 = arith.constant 615 : index
    %2647 = memref.load %arg1[%c615] : memref<630xf32, #tpu.memory_space<smem>>
    %2648 = vector.broadcast %2647 : f32 to vector<8x30xf32>
    %2649 = arith.mulf %2648, %2630 : vector<8x30xf32>
    %2650 = arith.addf %2628, %2649 : vector<8x30xf32>
    %c3_446 = arith.constant 3 : index
    %c7_447 = arith.constant 7 : index
    %c0_448 = arith.constant 0 : index
    %2651 = vector.load %arg4[%c3_446, %c7_447, %c0_448] : memref<5x18x32xf32, #tpu.memory_space<vmem>>, vector<1x8x30xf32>
    %2652 = vector.shape_cast %2651 : vector<1x8x30xf32> to vector<8x30xf32>
    %c516 = arith.constant 516 : index
    %2653 = memref.load %arg1[%c516] : memref<630xf32, #tpu.memory_space<smem>>
    %2654 = vector.broadcast %2653 : f32 to vector<8x30xf32>
    %2655 = arith.mulf %2654, %2652 : vector<8x30xf32>
    %2656 = arith.addf %2634, %2655 : vector<8x30xf32>
    %c541 = arith.constant 541 : index
    %2657 = memref.load %arg1[%c541] : memref<630xf32, #tpu.memory_space<smem>>
    %2658 = vector.broadcast %2657 : f32 to vector<8x30xf32>
    %2659 = arith.mulf %2658, %2652 : vector<8x30xf32>
    %2660 = arith.addf %2638, %2659 : vector<8x30xf32>
    %c566 = arith.constant 566 : index
    %2661 = memref.load %arg1[%c566] : memref<630xf32, #tpu.memory_space<smem>>
    %2662 = vector.broadcast %2661 : f32 to vector<8x30xf32>
    %2663 = arith.mulf %2662, %2652 : vector<8x30xf32>
    %2664 = arith.addf %2642, %2663 : vector<8x30xf32>
    %c591 = arith.constant 591 : index
    %2665 = memref.load %arg1[%c591] : memref<630xf32, #tpu.memory_space<smem>>
    %2666 = vector.broadcast %2665 : f32 to vector<8x30xf32>
    %2667 = arith.mulf %2666, %2652 : vector<8x30xf32>
    %2668 = arith.addf %2646, %2667 : vector<8x30xf32>
    %c616 = arith.constant 616 : index
    %2669 = memref.load %arg1[%c616] : memref<630xf32, #tpu.memory_space<smem>>
    %2670 = vector.broadcast %2669 : f32 to vector<8x30xf32>
    %2671 = arith.mulf %2670, %2652 : vector<8x30xf32>
    %2672 = arith.addf %2650, %2671 : vector<8x30xf32>
    %c3_449 = arith.constant 3 : index
    %c8_450 = arith.constant 8 : index
    %c0_451 = arith.constant 0 : index
    %2673 = vector.load %arg4[%c3_449, %c8_450, %c0_451] : memref<5x18x32xf32, #tpu.memory_space<vmem>>, vector<1x8x30xf32>
    %2674 = vector.shape_cast %2673 : vector<1x8x30xf32> to vector<8x30xf32>
    %c517 = arith.constant 517 : index
    %2675 = memref.load %arg1[%c517] : memref<630xf32, #tpu.memory_space<smem>>
    %2676 = vector.broadcast %2675 : f32 to vector<8x30xf32>
    %2677 = arith.mulf %2676, %2674 : vector<8x30xf32>
    %2678 = arith.addf %2656, %2677 : vector<8x30xf32>
    %c542 = arith.constant 542 : index
    %2679 = memref.load %arg1[%c542] : memref<630xf32, #tpu.memory_space<smem>>
    %2680 = vector.broadcast %2679 : f32 to vector<8x30xf32>
    %2681 = arith.mulf %2680, %2674 : vector<8x30xf32>
    %2682 = arith.addf %2660, %2681 : vector<8x30xf32>
    %c567 = arith.constant 567 : index
    %2683 = memref.load %arg1[%c567] : memref<630xf32, #tpu.memory_space<smem>>
    %2684 = vector.broadcast %2683 : f32 to vector<8x30xf32>
    %2685 = arith.mulf %2684, %2674 : vector<8x30xf32>
    %2686 = arith.addf %2664, %2685 : vector<8x30xf32>
    %c592 = arith.constant 592 : index
    %2687 = memref.load %arg1[%c592] : memref<630xf32, #tpu.memory_space<smem>>
    %2688 = vector.broadcast %2687 : f32 to vector<8x30xf32>
    %2689 = arith.mulf %2688, %2674 : vector<8x30xf32>
    %2690 = arith.addf %2668, %2689 : vector<8x30xf32>
    %c617 = arith.constant 617 : index
    %2691 = memref.load %arg1[%c617] : memref<630xf32, #tpu.memory_space<smem>>
    %2692 = vector.broadcast %2691 : f32 to vector<8x30xf32>
    %2693 = arith.mulf %2692, %2674 : vector<8x30xf32>
    %2694 = arith.addf %2672, %2693 : vector<8x30xf32>
    %c3_452 = arith.constant 3 : index
    %c9_453 = arith.constant 9 : index
    %c0_454 = arith.constant 0 : index
    %2695 = vector.load %arg4[%c3_452, %c9_453, %c0_454] : memref<5x18x32xf32, #tpu.memory_space<vmem>>, vector<1x8x30xf32>
    %2696 = vector.shape_cast %2695 : vector<1x8x30xf32> to vector<8x30xf32>
    %c518 = arith.constant 518 : index
    %2697 = memref.load %arg1[%c518] : memref<630xf32, #tpu.memory_space<smem>>
    %2698 = vector.broadcast %2697 : f32 to vector<8x30xf32>
    %2699 = arith.mulf %2698, %2696 : vector<8x30xf32>
    %2700 = arith.addf %2678, %2699 : vector<8x30xf32>
    %c543 = arith.constant 543 : index
    %2701 = memref.load %arg1[%c543] : memref<630xf32, #tpu.memory_space<smem>>
    %2702 = vector.broadcast %2701 : f32 to vector<8x30xf32>
    %2703 = arith.mulf %2702, %2696 : vector<8x30xf32>
    %2704 = arith.addf %2682, %2703 : vector<8x30xf32>
    %c568 = arith.constant 568 : index
    %2705 = memref.load %arg1[%c568] : memref<630xf32, #tpu.memory_space<smem>>
    %2706 = vector.broadcast %2705 : f32 to vector<8x30xf32>
    %2707 = arith.mulf %2706, %2696 : vector<8x30xf32>
    %2708 = arith.addf %2686, %2707 : vector<8x30xf32>
    %c593 = arith.constant 593 : index
    %2709 = memref.load %arg1[%c593] : memref<630xf32, #tpu.memory_space<smem>>
    %2710 = vector.broadcast %2709 : f32 to vector<8x30xf32>
    %2711 = arith.mulf %2710, %2696 : vector<8x30xf32>
    %2712 = arith.addf %2690, %2711 : vector<8x30xf32>
    %c618 = arith.constant 618 : index
    %2713 = memref.load %arg1[%c618] : memref<630xf32, #tpu.memory_space<smem>>
    %2714 = vector.broadcast %2713 : f32 to vector<8x30xf32>
    %2715 = arith.mulf %2714, %2696 : vector<8x30xf32>
    %2716 = arith.addf %2694, %2715 : vector<8x30xf32>
    %c3_455 = arith.constant 3 : index
    %c10_456 = arith.constant 10 : index
    %c0_457 = arith.constant 0 : index
    %2717 = vector.load %arg4[%c3_455, %c10_456, %c0_457] : memref<5x18x32xf32, #tpu.memory_space<vmem>>, vector<1x8x30xf32>
    %2718 = vector.shape_cast %2717 : vector<1x8x30xf32> to vector<8x30xf32>
    %c519 = arith.constant 519 : index
    %2719 = memref.load %arg1[%c519] : memref<630xf32, #tpu.memory_space<smem>>
    %2720 = vector.broadcast %2719 : f32 to vector<8x30xf32>
    %2721 = arith.mulf %2720, %2718 : vector<8x30xf32>
    %2722 = arith.addf %2700, %2721 : vector<8x30xf32>
    %c544 = arith.constant 544 : index
    %2723 = memref.load %arg1[%c544] : memref<630xf32, #tpu.memory_space<smem>>
    %2724 = vector.broadcast %2723 : f32 to vector<8x30xf32>
    %2725 = arith.mulf %2724, %2718 : vector<8x30xf32>
    %2726 = arith.addf %2704, %2725 : vector<8x30xf32>
    %c569 = arith.constant 569 : index
    %2727 = memref.load %arg1[%c569] : memref<630xf32, #tpu.memory_space<smem>>
    %2728 = vector.broadcast %2727 : f32 to vector<8x30xf32>
    %2729 = arith.mulf %2728, %2718 : vector<8x30xf32>
    %2730 = arith.addf %2708, %2729 : vector<8x30xf32>
    %c594 = arith.constant 594 : index
    %2731 = memref.load %arg1[%c594] : memref<630xf32, #tpu.memory_space<smem>>
    %2732 = vector.broadcast %2731 : f32 to vector<8x30xf32>
    %2733 = arith.mulf %2732, %2718 : vector<8x30xf32>
    %2734 = arith.addf %2712, %2733 : vector<8x30xf32>
    %c619 = arith.constant 619 : index
    %2735 = memref.load %arg1[%c619] : memref<630xf32, #tpu.memory_space<smem>>
    %2736 = vector.broadcast %2735 : f32 to vector<8x30xf32>
    %2737 = arith.mulf %2736, %2718 : vector<8x30xf32>
    %2738 = arith.addf %2716, %2737 : vector<8x30xf32>
    %c4_458 = arith.constant 4 : index
    %c6_459 = arith.constant 6 : index
    %c0_460 = arith.constant 0 : index
    %2739 = vector.load %arg4[%c4_458, %c6_459, %c0_460] : memref<5x18x32xf32, #tpu.memory_space<vmem>>, vector<1x8x30xf32>
    %2740 = vector.shape_cast %2739 : vector<1x8x30xf32> to vector<8x30xf32>
    %c520 = arith.constant 520 : index
    %2741 = memref.load %arg1[%c520] : memref<630xf32, #tpu.memory_space<smem>>
    %2742 = vector.broadcast %2741 : f32 to vector<8x30xf32>
    %2743 = arith.mulf %2742, %2740 : vector<8x30xf32>
    %2744 = arith.addf %2722, %2743 : vector<8x30xf32>
    %c545 = arith.constant 545 : index
    %2745 = memref.load %arg1[%c545] : memref<630xf32, #tpu.memory_space<smem>>
    %2746 = vector.broadcast %2745 : f32 to vector<8x30xf32>
    %2747 = arith.mulf %2746, %2740 : vector<8x30xf32>
    %2748 = arith.addf %2726, %2747 : vector<8x30xf32>
    %c570 = arith.constant 570 : index
    %2749 = memref.load %arg1[%c570] : memref<630xf32, #tpu.memory_space<smem>>
    %2750 = vector.broadcast %2749 : f32 to vector<8x30xf32>
    %2751 = arith.mulf %2750, %2740 : vector<8x30xf32>
    %2752 = arith.addf %2730, %2751 : vector<8x30xf32>
    %c595 = arith.constant 595 : index
    %2753 = memref.load %arg1[%c595] : memref<630xf32, #tpu.memory_space<smem>>
    %2754 = vector.broadcast %2753 : f32 to vector<8x30xf32>
    %2755 = arith.mulf %2754, %2740 : vector<8x30xf32>
    %2756 = arith.addf %2734, %2755 : vector<8x30xf32>
    %c620 = arith.constant 620 : index
    %2757 = memref.load %arg1[%c620] : memref<630xf32, #tpu.memory_space<smem>>
    %2758 = vector.broadcast %2757 : f32 to vector<8x30xf32>
    %2759 = arith.mulf %2758, %2740 : vector<8x30xf32>
    %2760 = arith.addf %2738, %2759 : vector<8x30xf32>
    %c4_461 = arith.constant 4 : index
    %c7_462 = arith.constant 7 : index
    %c0_463 = arith.constant 0 : index
    %2761 = vector.load %arg4[%c4_461, %c7_462, %c0_463] : memref<5x18x32xf32, #tpu.memory_space<vmem>>, vector<1x8x30xf32>
    %2762 = vector.shape_cast %2761 : vector<1x8x30xf32> to vector<8x30xf32>
    %c521 = arith.constant 521 : index
    %2763 = memref.load %arg1[%c521] : memref<630xf32, #tpu.memory_space<smem>>
    %2764 = vector.broadcast %2763 : f32 to vector<8x30xf32>
    %2765 = arith.mulf %2764, %2762 : vector<8x30xf32>
    %2766 = arith.addf %2744, %2765 : vector<8x30xf32>
    %c546 = arith.constant 546 : index
    %2767 = memref.load %arg1[%c546] : memref<630xf32, #tpu.memory_space<smem>>
    %2768 = vector.broadcast %2767 : f32 to vector<8x30xf32>
    %2769 = arith.mulf %2768, %2762 : vector<8x30xf32>
    %2770 = arith.addf %2748, %2769 : vector<8x30xf32>
    %c571 = arith.constant 571 : index
    %2771 = memref.load %arg1[%c571] : memref<630xf32, #tpu.memory_space<smem>>
    %2772 = vector.broadcast %2771 : f32 to vector<8x30xf32>
    %2773 = arith.mulf %2772, %2762 : vector<8x30xf32>
    %2774 = arith.addf %2752, %2773 : vector<8x30xf32>
    %c596 = arith.constant 596 : index
    %2775 = memref.load %arg1[%c596] : memref<630xf32, #tpu.memory_space<smem>>
    %2776 = vector.broadcast %2775 : f32 to vector<8x30xf32>
    %2777 = arith.mulf %2776, %2762 : vector<8x30xf32>
    %2778 = arith.addf %2756, %2777 : vector<8x30xf32>
    %c621 = arith.constant 621 : index
    %2779 = memref.load %arg1[%c621] : memref<630xf32, #tpu.memory_space<smem>>
    %2780 = vector.broadcast %2779 : f32 to vector<8x30xf32>
    %2781 = arith.mulf %2780, %2762 : vector<8x30xf32>
    %2782 = arith.addf %2760, %2781 : vector<8x30xf32>
    %c4_464 = arith.constant 4 : index
    %c8_465 = arith.constant 8 : index
    %c0_466 = arith.constant 0 : index
    %2783 = vector.load %arg4[%c4_464, %c8_465, %c0_466] : memref<5x18x32xf32, #tpu.memory_space<vmem>>, vector<1x8x30xf32>
    %2784 = vector.shape_cast %2783 : vector<1x8x30xf32> to vector<8x30xf32>
    %c522 = arith.constant 522 : index
    %2785 = memref.load %arg1[%c522] : memref<630xf32, #tpu.memory_space<smem>>
    %2786 = vector.broadcast %2785 : f32 to vector<8x30xf32>
    %2787 = arith.mulf %2786, %2784 : vector<8x30xf32>
    %2788 = arith.addf %2766, %2787 : vector<8x30xf32>
    %c547 = arith.constant 547 : index
    %2789 = memref.load %arg1[%c547] : memref<630xf32, #tpu.memory_space<smem>>
    %2790 = vector.broadcast %2789 : f32 to vector<8x30xf32>
    %2791 = arith.mulf %2790, %2784 : vector<8x30xf32>
    %2792 = arith.addf %2770, %2791 : vector<8x30xf32>
    %c572 = arith.constant 572 : index
    %2793 = memref.load %arg1[%c572] : memref<630xf32, #tpu.memory_space<smem>>
    %2794 = vector.broadcast %2793 : f32 to vector<8x30xf32>
    %2795 = arith.mulf %2794, %2784 : vector<8x30xf32>
    %2796 = arith.addf %2774, %2795 : vector<8x30xf32>
    %c597 = arith.constant 597 : index
    %2797 = memref.load %arg1[%c597] : memref<630xf32, #tpu.memory_space<smem>>
    %2798 = vector.broadcast %2797 : f32 to vector<8x30xf32>
    %2799 = arith.mulf %2798, %2784 : vector<8x30xf32>
    %2800 = arith.addf %2778, %2799 : vector<8x30xf32>
    %c622 = arith.constant 622 : index
    %2801 = memref.load %arg1[%c622] : memref<630xf32, #tpu.memory_space<smem>>
    %2802 = vector.broadcast %2801 : f32 to vector<8x30xf32>
    %2803 = arith.mulf %2802, %2784 : vector<8x30xf32>
    %2804 = arith.addf %2782, %2803 : vector<8x30xf32>
    %c4_467 = arith.constant 4 : index
    %c9_468 = arith.constant 9 : index
    %c0_469 = arith.constant 0 : index
    %2805 = vector.load %arg4[%c4_467, %c9_468, %c0_469] : memref<5x18x32xf32, #tpu.memory_space<vmem>>, vector<1x8x30xf32>
    %2806 = vector.shape_cast %2805 : vector<1x8x30xf32> to vector<8x30xf32>
    %c523 = arith.constant 523 : index
    %2807 = memref.load %arg1[%c523] : memref<630xf32, #tpu.memory_space<smem>>
    %2808 = vector.broadcast %2807 : f32 to vector<8x30xf32>
    %2809 = arith.mulf %2808, %2806 : vector<8x30xf32>
    %2810 = arith.addf %2788, %2809 : vector<8x30xf32>
    %c548 = arith.constant 548 : index
    %2811 = memref.load %arg1[%c548] : memref<630xf32, #tpu.memory_space<smem>>
    %2812 = vector.broadcast %2811 : f32 to vector<8x30xf32>
    %2813 = arith.mulf %2812, %2806 : vector<8x30xf32>
    %2814 = arith.addf %2792, %2813 : vector<8x30xf32>
    %c573 = arith.constant 573 : index
    %2815 = memref.load %arg1[%c573] : memref<630xf32, #tpu.memory_space<smem>>
    %2816 = vector.broadcast %2815 : f32 to vector<8x30xf32>
    %2817 = arith.mulf %2816, %2806 : vector<8x30xf32>
    %2818 = arith.addf %2796, %2817 : vector<8x30xf32>
    %c598 = arith.constant 598 : index
    %2819 = memref.load %arg1[%c598] : memref<630xf32, #tpu.memory_space<smem>>
    %2820 = vector.broadcast %2819 : f32 to vector<8x30xf32>
    %2821 = arith.mulf %2820, %2806 : vector<8x30xf32>
    %2822 = arith.addf %2800, %2821 : vector<8x30xf32>
    %c623 = arith.constant 623 : index
    %2823 = memref.load %arg1[%c623] : memref<630xf32, #tpu.memory_space<smem>>
    %2824 = vector.broadcast %2823 : f32 to vector<8x30xf32>
    %2825 = arith.mulf %2824, %2806 : vector<8x30xf32>
    %2826 = arith.addf %2804, %2825 : vector<8x30xf32>
    %c4_470 = arith.constant 4 : index
    %c10_471 = arith.constant 10 : index
    %c0_472 = arith.constant 0 : index
    %2827 = vector.load %arg4[%c4_470, %c10_471, %c0_472] : memref<5x18x32xf32, #tpu.memory_space<vmem>>, vector<1x8x30xf32>
    %2828 = vector.shape_cast %2827 : vector<1x8x30xf32> to vector<8x30xf32>
    %c524 = arith.constant 524 : index
    %2829 = memref.load %arg1[%c524] : memref<630xf32, #tpu.memory_space<smem>>
    %2830 = vector.broadcast %2829 : f32 to vector<8x30xf32>
    %2831 = arith.mulf %2830, %2828 : vector<8x30xf32>
    %2832 = arith.addf %2810, %2831 : vector<8x30xf32>
    %c549 = arith.constant 549 : index
    %2833 = memref.load %arg1[%c549] : memref<630xf32, #tpu.memory_space<smem>>
    %2834 = vector.broadcast %2833 : f32 to vector<8x30xf32>
    %2835 = arith.mulf %2834, %2828 : vector<8x30xf32>
    %2836 = arith.addf %2814, %2835 : vector<8x30xf32>
    %c574 = arith.constant 574 : index
    %2837 = memref.load %arg1[%c574] : memref<630xf32, #tpu.memory_space<smem>>
    %2838 = vector.broadcast %2837 : f32 to vector<8x30xf32>
    %2839 = arith.mulf %2838, %2828 : vector<8x30xf32>
    %2840 = arith.addf %2818, %2839 : vector<8x30xf32>
    %c599 = arith.constant 599 : index
    %2841 = memref.load %arg1[%c599] : memref<630xf32, #tpu.memory_space<smem>>
    %2842 = vector.broadcast %2841 : f32 to vector<8x30xf32>
    %2843 = arith.mulf %2842, %2828 : vector<8x30xf32>
    %2844 = arith.addf %2822, %2843 : vector<8x30xf32>
    %c624 = arith.constant 624 : index
    %2845 = memref.load %arg1[%c624] : memref<630xf32, #tpu.memory_space<smem>>
    %2846 = vector.broadcast %2845 : f32 to vector<8x30xf32>
    %2847 = arith.mulf %2846, %2828 : vector<8x30xf32>
    %2848 = arith.addf %2826, %2847 : vector<8x30xf32>
    %c625 = arith.constant 625 : index
    %2849 = memref.load %arg1[%c625] : memref<630xf32, #tpu.memory_space<smem>>
    %2850 = vector.broadcast %2849 : f32 to vector<8x30xf32>
    %2851 = arith.addf %2832, %2850 : vector<8x30xf32>
    %2852 = arith.addf %2851, %2287 : vector<8x30xf32>
    %cst_473 = arith.constant 0.000000e+00 : f32
    %2853 = vector.broadcast %cst_473 : f32 to vector<8x30xf32>
    %2854 = arith.maximumf %2852, %2853 : vector<8x30xf32>
    %c626 = arith.constant 626 : index
    %2855 = memref.load %arg1[%c626] : memref<630xf32, #tpu.memory_space<smem>>
    %2856 = vector.broadcast %2855 : f32 to vector<8x30xf32>
    %2857 = arith.addf %2836, %2856 : vector<8x30xf32>
    %2858 = arith.addf %2857, %2291 : vector<8x30xf32>
    %cst_474 = arith.constant 0.000000e+00 : f32
    %2859 = vector.broadcast %cst_474 : f32 to vector<8x30xf32>
    %2860 = arith.maximumf %2858, %2859 : vector<8x30xf32>
    %c627 = arith.constant 627 : index
    %2861 = memref.load %arg1[%c627] : memref<630xf32, #tpu.memory_space<smem>>
    %2862 = vector.broadcast %2861 : f32 to vector<8x30xf32>
    %2863 = arith.addf %2840, %2862 : vector<8x30xf32>
    %2864 = arith.addf %2863, %2295 : vector<8x30xf32>
    %cst_475 = arith.constant 0.000000e+00 : f32
    %2865 = vector.broadcast %cst_475 : f32 to vector<8x30xf32>
    %2866 = arith.maximumf %2864, %2865 : vector<8x30xf32>
    %c628 = arith.constant 628 : index
    %2867 = memref.load %arg1[%c628] : memref<630xf32, #tpu.memory_space<smem>>
    %2868 = vector.broadcast %2867 : f32 to vector<8x30xf32>
    %2869 = arith.addf %2844, %2868 : vector<8x30xf32>
    %2870 = arith.addf %2869, %2299 : vector<8x30xf32>
    %cst_476 = arith.constant 0.000000e+00 : f32
    %2871 = vector.broadcast %cst_476 : f32 to vector<8x30xf32>
    %2872 = arith.maximumf %2870, %2871 : vector<8x30xf32>
    %c629 = arith.constant 629 : index
    %2873 = memref.load %arg1[%c629] : memref<630xf32, #tpu.memory_space<smem>>
    %2874 = vector.broadcast %2873 : f32 to vector<8x30xf32>
    %2875 = arith.addf %2848, %2874 : vector<8x30xf32>
    %2876 = arith.addf %2875, %2303 : vector<8x30xf32>
    %cst_477 = arith.constant 0.000000e+00 : f32
    %2877 = vector.broadcast %cst_477 : f32 to vector<8x30xf32>
    %2878 = arith.maximumf %2876, %2877 : vector<8x30xf32>
    %2879 = vector.extract_strided_slice %2854 {offsets = [0, 0], sizes = [8, 14], strides = [1, 1]} : vector<8x30xf32> to vector<8x14xf32>
    %c0_478 = arith.constant 0 : index
    %c0_479 = arith.constant 0 : index
    %c0_480 = arith.constant 0 : index
    %c0_481 = arith.constant 0 : index
    %2880 = vector.load %arg3[%c0_478, %c0_479, %c0_480, %c0_481] : memref<1x5x8x28xf32, #tpu.memory_space<vmem>>, vector<1x1x8x14xf32>
    %2881 = vector.shape_cast %2880 : vector<1x1x8x14xf32> to vector<8x14xf32>
    %2882 = vector.shape_cast %2879 : vector<8x14xf32> to vector<1x1x8x14xf32>
    tpu.vector_store %arg3[%c0_478, %c0_479, %c0_480, %c0_481], %2882 {strides = array<i32>} : memref<1x5x8x28xf32, #tpu.memory_space<vmem>>, vector<1x1x8x14xf32>,
    %2883 = vector.extract_strided_slice %2854 {offsets = [0, 16], sizes = [8, 14], strides = [1, 1]} : vector<8x30xf32> to vector<8x14xf32>
    %c0_482 = arith.constant 0 : index
    %c0_483 = arith.constant 0 : index
    %c0_484 = arith.constant 0 : index
    %c14_485 = arith.constant 14 : index
    %2884 = vector.load %arg3[%c0_482, %c0_483, %c0_484, %c14_485] : memref<1x5x8x28xf32, #tpu.memory_space<vmem>>, vector<1x1x8x14xf32>
    %2885 = vector.shape_cast %2884 : vector<1x1x8x14xf32> to vector<8x14xf32>
    %2886 = vector.shape_cast %2883 : vector<8x14xf32> to vector<1x1x8x14xf32>
    tpu.vector_store %arg3[%c0_482, %c0_483, %c0_484, %c14_485], %2886 {strides = array<i32>} : memref<1x5x8x28xf32, #tpu.memory_space<vmem>>, vector<1x1x8x14xf32>,
    %2887 = vector.extract_strided_slice %2860 {offsets = [0, 0], sizes = [8, 14], strides = [1, 1]} : vector<8x30xf32> to vector<8x14xf32>
    %c0_486 = arith.constant 0 : index
    %c1_487 = arith.constant 1 : index
    %c0_488 = arith.constant 0 : index
    %c0_489 = arith.constant 0 : index
    %2888 = vector.load %arg3[%c0_486, %c1_487, %c0_488, %c0_489] : memref<1x5x8x28xf32, #tpu.memory_space<vmem>>, vector<1x1x8x14xf32>
    %2889 = vector.shape_cast %2888 : vector<1x1x8x14xf32> to vector<8x14xf32>
    %2890 = vector.shape_cast %2887 : vector<8x14xf32> to vector<1x1x8x14xf32>
    tpu.vector_store %arg3[%c0_486, %c1_487, %c0_488, %c0_489], %2890 {strides = array<i32>} : memref<1x5x8x28xf32, #tpu.memory_space<vmem>>, vector<1x1x8x14xf32>,
    %2891 = vector.extract_strided_slice %2860 {offsets = [0, 16], sizes = [8, 14], strides = [1, 1]} : vector<8x30xf32> to vector<8x14xf32>
    %c0_490 = arith.constant 0 : index
    %c1_491 = arith.constant 1 : index
    %c0_492 = arith.constant 0 : index
    %c14_493 = arith.constant 14 : index
    %2892 = vector.load %arg3[%c0_490, %c1_491, %c0_492, %c14_493] : memref<1x5x8x28xf32, #tpu.memory_space<vmem>>, vector<1x1x8x14xf32>
    %2893 = vector.shape_cast %2892 : vector<1x1x8x14xf32> to vector<8x14xf32>
    %2894 = vector.shape_cast %2891 : vector<8x14xf32> to vector<1x1x8x14xf32>
    tpu.vector_store %arg3[%c0_490, %c1_491, %c0_492, %c14_493], %2894 {strides = array<i32>} : memref<1x5x8x28xf32, #tpu.memory_space<vmem>>, vector<1x1x8x14xf32>,
    %2895 = vector.extract_strided_slice %2866 {offsets = [0, 0], sizes = [8, 14], strides = [1, 1]} : vector<8x30xf32> to vector<8x14xf32>
    %c0_494 = arith.constant 0 : index
    %c2_495 = arith.constant 2 : index
    %c0_496 = arith.constant 0 : index
    %c0_497 = arith.constant 0 : index
    %2896 = vector.load %arg3[%c0_494, %c2_495, %c0_496, %c0_497] : memref<1x5x8x28xf32, #tpu.memory_space<vmem>>, vector<1x1x8x14xf32>
    %2897 = vector.shape_cast %2896 : vector<1x1x8x14xf32> to vector<8x14xf32>
    %2898 = vector.shape_cast %2895 : vector<8x14xf32> to vector<1x1x8x14xf32>
    tpu.vector_store %arg3[%c0_494, %c2_495, %c0_496, %c0_497], %2898 {strides = array<i32>} : memref<1x5x8x28xf32, #tpu.memory_space<vmem>>, vector<1x1x8x14xf32>,
    %2899 = vector.extract_strided_slice %2866 {offsets = [0, 16], sizes = [8, 14], strides = [1, 1]} : vector<8x30xf32> to vector<8x14xf32>
    %c0_498 = arith.constant 0 : index
    %c2_499 = arith.constant 2 : index
    %c0_500 = arith.constant 0 : index
    %c14_501 = arith.constant 14 : index
    %2900 = vector.load %arg3[%c0_498, %c2_499, %c0_500, %c14_501] : memref<1x5x8x28xf32, #tpu.memory_space<vmem>>, vector<1x1x8x14xf32>
    %2901 = vector.shape_cast %2900 : vector<1x1x8x14xf32> to vector<8x14xf32>
    %2902 = vector.shape_cast %2899 : vector<8x14xf32> to vector<1x1x8x14xf32>
    tpu.vector_store %arg3[%c0_498, %c2_499, %c0_500, %c14_501], %2902 {strides = array<i32>} : memref<1x5x8x28xf32, #tpu.memory_space<vmem>>, vector<1x1x8x14xf32>,
    %2903 = vector.extract_strided_slice %2872 {offsets = [0, 0], sizes = [8, 14], strides = [1, 1]} : vector<8x30xf32> to vector<8x14xf32>
    %c0_502 = arith.constant 0 : index
    %c3_503 = arith.constant 3 : index
    %c0_504 = arith.constant 0 : index
    %c0_505 = arith.constant 0 : index
    %2904 = vector.load %arg3[%c0_502, %c3_503, %c0_504, %c0_505] : memref<1x5x8x28xf32, #tpu.memory_space<vmem>>, vector<1x1x8x14xf32>
    %2905 = vector.shape_cast %2904 : vector<1x1x8x14xf32> to vector<8x14xf32>
    %2906 = vector.shape_cast %2903 : vector<8x14xf32> to vector<1x1x8x14xf32>
    tpu.vector_store %arg3[%c0_502, %c3_503, %c0_504, %c0_505], %2906 {strides = array<i32>} : memref<1x5x8x28xf32, #tpu.memory_space<vmem>>, vector<1x1x8x14xf32>,
    %2907 = vector.extract_strided_slice %2872 {offsets = [0, 16], sizes = [8, 14], strides = [1, 1]} : vector<8x30xf32> to vector<8x14xf32>
    %c0_506 = arith.constant 0 : index
    %c3_507 = arith.constant 3 : index
    %c0_508 = arith.constant 0 : index
    %c14_509 = arith.constant 14 : index
    %2908 = vector.load %arg3[%c0_506, %c3_507, %c0_508, %c14_509] : memref<1x5x8x28xf32, #tpu.memory_space<vmem>>, vector<1x1x8x14xf32>
    %2909 = vector.shape_cast %2908 : vector<1x1x8x14xf32> to vector<8x14xf32>
    %2910 = vector.shape_cast %2907 : vector<8x14xf32> to vector<1x1x8x14xf32>
    tpu.vector_store %arg3[%c0_506, %c3_507, %c0_508, %c14_509], %2910 {strides = array<i32>} : memref<1x5x8x28xf32, #tpu.memory_space<vmem>>, vector<1x1x8x14xf32>,
    %2911 = vector.extract_strided_slice %2878 {offsets = [0, 0], sizes = [8, 14], strides = [1, 1]} : vector<8x30xf32> to vector<8x14xf32>
    %c0_510 = arith.constant 0 : index
    %c4_511 = arith.constant 4 : index
    %c0_512 = arith.constant 0 : index
    %c0_513 = arith.constant 0 : index
    %2912 = vector.load %arg3[%c0_510, %c4_511, %c0_512, %c0_513] : memref<1x5x8x28xf32, #tpu.memory_space<vmem>>, vector<1x1x8x14xf32>
    %2913 = vector.shape_cast %2912 : vector<1x1x8x14xf32> to vector<8x14xf32>
    %2914 = vector.shape_cast %2911 : vector<8x14xf32> to vector<1x1x8x14xf32>
    tpu.vector_store %arg3[%c0_510, %c4_511, %c0_512, %c0_513], %2914 {strides = array<i32>} : memref<1x5x8x28xf32, #tpu.memory_space<vmem>>, vector<1x1x8x14xf32>,
    %2915 = vector.extract_strided_slice %2878 {offsets = [0, 16], sizes = [8, 14], strides = [1, 1]} : vector<8x30xf32> to vector<8x14xf32>
    %c0_514 = arith.constant 0 : index
    %c4_515 = arith.constant 4 : index
    %c0_516 = arith.constant 0 : index
    %c14_517 = arith.constant 14 : index
    %2916 = vector.load %arg3[%c0_514, %c4_515, %c0_516, %c14_517] : memref<1x5x8x28xf32, #tpu.memory_space<vmem>>, vector<1x1x8x14xf32>
    %2917 = vector.shape_cast %2916 : vector<1x1x8x14xf32> to vector<8x14xf32>
    %2918 = vector.shape_cast %2915 : vector<8x14xf32> to vector<1x1x8x14xf32>
    tpu.vector_store %arg3[%c0_514, %c4_515, %c0_516, %c14_517], %2918 {strides = array<i32>} : memref<1x5x8x28xf32, #tpu.memory_space<vmem>>, vector<1x1x8x14xf32>,
    return
  }
  func.func @transform_0(%arg0: i32) -> i32 {
    %c0_i32 = arith.constant 0 : i32
    %c0_i32_0 = arith.constant 0 : i32
    return %c0_i32 : i32
  }
  func.func @transform_1(%arg0: i32) -> (i32, i32, i32, i32) {
    %c0_i32 = arith.constant 0 : i32
    %c0_i32_0 = arith.constant 0 : i32
    %c0_i32_1 = arith.constant 0 : i32
    %c0_i32_2 = arith.constant 0 : i32
    return %arg0, %c0_i32, %c0_i32_0, %c0_i32_1 : i32, i32, i32, i32
  }
  func.func @transform_2(%arg0: i32) -> (i32, i32, i32, i32) {
    %c0_i32 = arith.constant 0 : i32
    %c0_i32_0 = arith.constant 0 : i32
    %c0_i32_1 = arith.constant 0 : i32
    %c0_i32_2 = arith.constant 0 : i32
    return %arg0, %c0_i32, %c0_i32_0, %c0_i32_1 : i32, i32, i32, i32
  }
}

</mosaic_0001>

<bundles_post_ra>
// kernel: tpu_custom_call.1
= control target key start
LH: loop header
LB: loop body
LE: loop exit
PB: predicated region body
PF: predicated region fallthrough
CT: control target
= control target key end

     0   :  { %s7080_s0 = inlined_call_operand.hbm [shape: f32[630], index: 0, kind: input, shape index: {}]   ;;  %s7081_s1 = inlined_call_operand.hbm [shape: f32[1,5,8,32], index: 1, kind: input, shape index: {}]   ;;  %s7082_s2 = inlined_call_operand.hbm [shape: f32[1,5,8,28], index: 2, kind: output, shape index: {}]  }
   0x1   :  { %7125 = sst [smem:[#allocation61_spill]] %s7082_s2 }
   0x2   :  { %7 = vsyncpa [#allocation7], 0 }
   0x3   :  { %8 = vsyncpa [#allocation5], 0 }
   0x4   :  { %9 = vsyncpa [#allocation6], 0  ;;  %s4359_s9 = smov [#allocation4]   ;;  %s4360_s12 = smov [#allocation8]  }
   0x5   :  { %17 = dma.hbm_to_smem %s7080_s0, 80, %s4359_s9, [#allocation7]  }
   0x6   :  { %s23_s13 = sshll.u32 %s4360_s12, 4  ;;  %s24_s13 = int_to_ptr.vmem [resolvable:$true] %s23_s13 }
   0x7   :  { %s4321_s14 = scalar_lea.vmem %s24_s13, 640  ;;  %p4326_p1 = scmp.lt.s32.totalorder %s24_s13, %s24_s13 }
   0x8   :  { %p4322_p0 = scmp.ne.s32.totalorder %s24_s13, %s4321_s14  ;;  %p4327_p2 = scmp.lt.s32.totalorder %s4321_s14, %s4321_s14 }
   0xa   :  { %p4328_p3 = por %p4327_p2, %p4326_p1 }
   0xc   :  { %p4329_p4 = pnand %p4328_p3, %p4322_p0 }
   0xe   :  { %4332 = shalt.err (!%p4329_p4)
}
   0xf   :  { %s7083_s15 = smov 128   ;;  %s7084_s16 = smov 8  }
  0x10   :  { %29 = dma.hbm_to_vmem [thread:$0]  %s7081_s1, 640, %s24_s13, [#allocation5], %s7083_s15, %s7083_s15, %s7084_s16  }
  0x11   :  { %4353 = dma.done.wait [#allocation7], 80  }
  0x12   :  { %4354 = vsyncadd [#allocation7], 4294967216 }
  0x13   :  { %4355 = dma.done.wait [#allocation5], 640  }
  0x14   :  { %4356 = vsyncadd [#allocation5], 4294966656 }
  0x15   :  { %36 = sfence }
  0x16   :  { %vm37_vm0 = vcmask 261120   ;;  %v64_v0 = vld [vmem:[#allocation8] sm:$0xff]  ;;  %s4393_s0 = sld [smem:[#allocation4 + $0x15]]  ;;  %v4363_v1 = vmov 0.0   ;;  %v65_v2 = vld [vmem:[#allocation8 + $0x8] sm:$0xff]  ;;  %v66_v3 = vld [vmem:[#allocation8 + $0x10] sm:$0xff] }
  0x17   :  { %54 = vst.msk [vmem:[#allocation2] sm:$0xff] %vm37_vm0, %v4363_v1  ;;  %69 = vst.msk [vmem:[#allocation2 + $0x8] sm:$0xff] %vm37_vm0, %v64_v0  ;;  %s3616_s1 = sld [smem:[#allocation4 + $0x1]]  ;;  %v67_v4 = vld [vmem:[#allocation8 + $0x18] sm:$0xff]  ;;  %v68_v5 = vld [vmem:[#allocation8 + $0x20] sm:$0xff]  ;;  %s4364_s25 = smov 127  }
  0x18   :  { %38 = vst.msk [vmem:[#allocation3] sm:$0xff] %vm37_vm0, %v4363_v1  ;;  %39 = vst.msk [vmem:[#allocation3 + $0x8] sm:$0xff] %vm37_vm0, %v4363_v1  ;;  %s3636_s19 = sld [smem:[#allocation4 + $0x5]]  ;;  %vm707_vm1 = vcmask 89104   ;;  %vm709_vm2 = vcmask 220304   ;;  %vm40_vm3 = vcmask 254976  }
  0x19   :  { %42 = vst.msk [vmem:[#allocation3 + $0x18] sm:$0xff] %vm37_vm0, %v4363_v1  ;;  %43 = vst.msk [vmem:[#allocation3 + $0x20] sm:$0xff] %vm37_vm0, %v4363_v1  ;;  %s3626_s20 = sld [smem:[#allocation4 + $0x3]]  ;;  %vm1703_vm4 = vcmask 97296   ;;  %vm1705_vm5 = vcmask 228496   ;;  %vm2360_vm6 = vcmask 113680  }
  0x1a   :  { %45 = vst.msk [vmem:[#allocation3 + $0x30] sm:$0xff] %vm37_vm0, %v4363_v1  ;;  %46 = vst.msk [vmem:[#allocation3 + $0x38] sm:$0xff] %vm37_vm0, %v4363_v1  ;;  %s3646_s21 = sld [smem:[#allocation4 + $0x7]]  ;;  %vm2362_vm7 = vcmask 244880   ;;  %vm3558_vm8 = vcmask 113664   ;;  %vm3564_vm9 = vcmask 228464  }
  0x1b   :  { %48 = vst.msk [vmem:[#allocation3 + $0x48] sm:$0xff] %vm37_vm0, %v4363_v1  ;;  %49 = vst.msk [vmem:[#allocation3 + $0x50] sm:$0xff] %vm37_vm0, %v4363_v1  ;;  %s3627_s22 = sld [smem:[#allocation4 + $0x17]] }
  0x1c   :  { %51 = vst.msk [vmem:[#allocation3 + $0x60] sm:$0xff] %vm37_vm0, %v4363_v1  ;;  %52 = vst.msk [vmem:[#allocation3 + $0x68] sm:$0xff] %vm37_vm0, %v4363_v1  ;;  %v99_v6 = vstv %s4393_s0  ;;  %s3637_s23 = sld [smem:[#allocation4 + $0x19]] }
  0x1d   :  { %55 = vst.msk [vmem:[#allocation2 + $0x18] sm:$0xff] %vm37_vm0, %v4363_v1  ;;  %56 = vst.msk [vmem:[#allocation2 + $0x30] sm:$0xff] %vm37_vm0, %v4363_v1  ;;  %v91_v7 = vstv %s3616_s1  ;;  %s3618_s24 = sld [smem:[#allocation4 + $0x29]] }
  0x1e   :  { %57 = vst.msk [vmem:[#allocation2 + $0x48] sm:$0xff] %vm37_vm0, %v4363_v1  ;;  %58 = vst.msk [vmem:[#allocation2 + $0x60] sm:$0xff] %vm37_vm0, %v4363_v1  ;;  %v4431_v8 = vld [vmem:[#allocation2 + $0x7] sm:$0xff]  ;;  %v214_v9 = vstv %s3636_s19  ;;  %s3628_s26 = sld [smem:[#allocation4 + $0x2b]] }
  0x1f   :  { %70 = vst.msk [vmem:[#allocation2 + $0x20] sm:$0xff] %vm37_vm0, %v65_v2  ;;  %71 = vst.msk [vmem:[#allocation2 + $0x38] sm:$0xff] %vm37_vm0, %v66_v3  ;;  %v4433_v10 = vld [vmem:[#allocation2 + $0x8] sm:$0xff]  ;;  %v100_v11 = vmul.f32 %v99_v6, %v4431_v8  ;;  %v92_v12 = vmul.f32 %v91_v7, %v4431_v8  ;;  %v152_v14 = vstv %s3626_s20  ;;  %s3656_s27 = sld [smem:[#allocation4 + $0x9]] }
  0x20   :  { %72 = vst.msk [vmem:[#allocation2 + $0x50] sm:$0xff] %vm37_vm0, %v67_v4  ;;  %73 = vst.msk [vmem:[#allocation2 + $0x68] sm:$0xff] %vm37_vm0, %v68_v5  ;;  %v153_v16 = vmul.f32 %v152_v14, %v4433_v10  ;;  %v275_v18 = vstv %s3646_s21  ;;  %s3666_s28 = sld [smem:[#allocation4 + $0xb]] }
  0x21   :  { %102 = vrot.lane.b32.xlu1 %v100_v11, %s4364_s25  ;;  %94 = vrot.lane.b32.xlu0 %v92_v12, %s4364_s25  ;;  %v160_v19 = vstv %s3627_s22  ;;  %s3647_s29 = sld [smem:[#allocation4 + $0x1b]]  ;;  %59 = vst.msk [vmem:[#allocation2 + $0x10] sm:$0x3] %vm40_vm3, %v4363_v1  ;;  %60 = vst.msk [vmem:[#allocation2 + $0x28] sm:$0x3] %vm40_vm3, %v4363_v1 }
  0x22   :  { %v161_v21 = vmul.f32 %v160_v19, %v4433_v10  ;;  %v222_v22 = vstv %s3637_s23  ;;  %s3638_s30 = sld [smem:[#allocation4 + $0x2d]]  ;;  %61 = vst.msk [vmem:[#allocation2 + $0x40] sm:$0x3] %vm40_vm3, %v4363_v1  ;;  %62 = vst.msk [vmem:[#allocation2 + $0x58] sm:$0x3] %vm40_vm3, %v4363_v1 }
  0x23   :  { %v107_v23 = vstv %s3618_s24  ;;  %s3619_s3 = sld [smem:[#allocation4 + $0x3d]]  ;;  %63 = vst.msk [vmem:[#allocation2 + $0x70] sm:$0x3] %vm40_vm3, %v4363_v1 }
  0x24   :  { %v108_v25 = vmul.f32 %v107_v23, %v4431_v8  ;;  %v168_v26 = vstv %s3628_s26  ;;  %s3676_s4 = sld [smem:[#allocation4 + $0xd]] }
  0x25   :  { %155 = vrot.lane.b32.xlu0 %v153_v16, %s4364_s25  ;;  %v337_v28 = vstv %s3656_s27  ;;  %v169_v29 = vmul.f32 %v168_v26, %v4433_v10  ;;  %s3657_s5 = sld [smem:[#allocation4 + $0x1d]] }
  0x26   :  { %v4437_v13 = vld [vmem:[#allocation2 + $0x1f] sm:$0xff]  ;;  %v4453_v27 = vld [vmem:[#allocation2 + $0x37] sm:$0xff]  ;;  %v398_v32 = vstv %s3666_s28  ;;  %s3648_s6 = sld [smem:[#allocation4 + $0x2f]] }
  0x27   :  { %v215_v15 = vmul.f32 %v214_v9, %v4437_v13  ;;  %v4443_v17 = vld [vmem:[#allocation2 + $0x20] sm:$0xff]  ;;  %v223_v24 = vmul.f32 %v222_v22, %v4437_v13  ;;  %v338_v30 = vmul.f32 %v337_v28, %v4453_v27  ;;  %v4459_v31 = vld [vmem:[#allocation2 + $0x38] sm:$0xff]  ;;  %v283_v33 = vstv %s3647_s29  ;;  %s3629_s7 = sld [smem:[#allocation4 + $0x3f]]  ;;  %v4469_v40 = vld [vmem:[#allocation2 + $0x4f] sm:$0xff] }
  0x28   :  { %v276_v20 = vmul.f32 %v275_v18, %v4443_v17  ;;  %v399_v34 = vmul.f32 %v398_v32, %v4459_v31  ;;  %v284_v35 = vmul.f32 %v283_v33, %v4443_v17  ;;  %v230_v36 = vstv %s3638_s30  ;;  %s3686_s8 = sld [smem:[#allocation4 + $0xf]]  ;;  %v4479_v49 = vld [vmem:[#allocation2 + $0x50] sm:$0xff]  ;;  %v4493_v63 = vld [vmem:[#allocation2 + $0x67] sm:$0xff] }
  0x29   :  { %217 = vrot.lane.b32.xlu1 %v215_v15, %s4364_s25  ;;  %163 = vrot.lane.b32.xlu0 %v161_v21, %s4364_s25  ;;  %v115_v37 = vstv %s3619_s3  ;;  %v231_v38 = vmul.f32 %v230_v36, %v4437_v13  ;;  %s3667_s9 = sld [smem:[#allocation4 + $0x1f]]  ;;  %v4503_v9 = vld [vmem:[#allocation2 + $0x68] sm:$0xff] }
  0x2a   :  { %v116_v39 = vmul.f32 %v115_v37, %v4431_v8  ;;  %v460_v41 = vstv %s3676_s4  ;;  %s3639_s10 = sld [smem:[#allocation4 + $0x41]] }
  0x2b   :  { %v345_v42 = vstv %s3657_s5  ;;  %v461_v43 = vmul.f32 %v460_v41, %v4469_v40  ;;  %s3620_s11 = sld [smem:[#allocation4 + $0x51]] }
  0x2c   :  { %v346_v44 = vmul.f32 %v345_v42, %v4453_v27  ;;  %v291_v45 = vstv %s3648_s6  ;;  %s3677_s12 = sld [smem:[#allocation4 + $0x21]] }
  0x2d   :  { %278 = vrot.lane.b32.xlu1 %v276_v20, %s4364_s25  ;;  %110 = vrot.lane.b32.xlu0 %v108_v25, %s4364_s25  ;;  %v176_v46 = vstv %s3629_s7  ;;  %v292_v47 = vmul.f32 %v291_v45, %v4443_v17  ;;  %s3658_s13 = sld [smem:[#allocation4 + $0x31]] }
  0x2e   :  { %v177_v48 = vmul.f32 %v176_v46, %v4433_v10  ;;  %v521_v50 = vstv %s3686_s8  ;;  %s3630_s14 = sld [smem:[#allocation4 + $0x53]] }
  0x2f   :  { %v406_v51 = vstv %s3667_s9  ;;  %v522_v52 = vmul.f32 %v521_v50, %v4479_v49  ;;  %s3696_s17 = sld [smem:[#allocation4 + $0x11]] }
  0x30   :  { %v407_v53 = vmul.f32 %v406_v51, %v4459_v31  ;;  %v238_v54 = vstv %s3639_s10  ;;  %s3668_s18 = sld [smem:[#allocation4 + $0x33]] }
  0x31   :  { %225 = vrot.lane.b32.xlu1 %v223_v24, %s4364_s25  ;;  %340 = vrot.lane.b32.xlu0 %v338_v30, %s4364_s25  ;;  %v123_v55 = vstv %s3620_s11  ;;  %v239_v56 = vmul.f32 %v238_v54, %v4437_v13  ;;  %s3649_s0 = sld [smem:[#allocation4 + $0x43]] }
  0x32   :  { %v124_v57 = vmul.f32 %v123_v55, %v4431_v8  ;;  %v468_v58 = vstv %s3677_s12  ;;  %s3706_s1 = sld [smem:[#allocation4 + $0x13]] }
  0x33   :  { %v353_v59 = vstv %s3658_s13  ;;  %v469_v60 = vmul.f32 %v468_v58, %v4469_v40  ;;  %s3687_s19 = sld [smem:[#allocation4 + $0x23]] }
  0x34   :  { %v354_v61 = vmul.f32 %v353_v59, %v4453_v27  ;;  %v184_v62 = vstv %s3630_s14  ;;  %s3659_s20 = sld [smem:[#allocation4 + $0x45]] }
  0x35   :  { %171 = vrot.lane.b32.xlu1 %v169_v29, %s4364_s25  ;;  %286 = vrot.lane.b32.xlu0 %v284_v35, %s4364_s25  ;;  %v583_v0 = vstv %s3696_s17  ;;  %v185_v2 = vmul.f32 %v184_v62, %v4433_v10  ;;  %s3640_s21 = sld [smem:[#allocation4 + $0x55]] }
  0x36   :  { %v584_v3 = vmul.f32 %v583_v0, %v4493_v63  ;;  %v414_v4 = vstv %s3668_s18  ;;  %s3697_s22 = sld [smem:[#allocation4 + $0x25]] }
  0x37   :  { %v299_v5 = vstv %s3649_s0  ;;  %v415_v6 = vmul.f32 %v414_v4, %v4459_v31  ;;  %s3678_s23 = sld [smem:[#allocation4 + $0x35]] }
  0x38   :  { %v300_v7 = vmul.f32 %v299_v5, %v4443_v17  ;;  %v644_v11 = vstv %s3706_s1  ;;  %s3669_s24 = sld [smem:[#allocation4 + $0x47]] }
  0x39   :  { %401 = vrot.lane.b32.xlu1 %v399_v34, %s4364_s25  ;;  %118 = vrot.lane.b32.xlu0 %v116_v39, %s4364_s25  ;;  %v529_v12 = vstv %s3687_s19  ;;  %v645_v14 = vmul.f32 %v644_v11, %v4503_v9  ;;  %s3650_s26 = sld [smem:[#allocation4 + $0x57]] }
  0x3a   :  { %v530_v15 = vmul.f32 %v529_v12, %v4479_v49  ;;  %v361_v16 = vstv %s3659_s20  ;;  %s3707_s27 = sld [smem:[#allocation4 + $0x27]] }
  0x3b   :  { %v246_v18 = vstv %s3640_s21  ;;  %v362_v19 = vmul.f32 %v361_v16, %v4453_v27  ;;  %s3688_s28 = sld [smem:[#allocation4 + $0x37]] }
  0x3c   :  { %v247_v20 = vmul.f32 %v246_v18, %v4437_v13  ;;  %v591_v21 = vstv %s3697_s22  ;;  %s3679_s29 = sld [smem:[#allocation4 + $0x49]] }
  0x3d   :  { %233 = vrot.lane.b32.xlu1 %v231_v38, %s4364_s25  ;;  %348 = vrot.lane.b32.xlu0 %v346_v44, %s4364_s25  ;;  %v476_v22 = vstv %s3678_s23  ;;  %v592_v23 = vmul.f32 %v591_v21, %v4493_v63  ;;  %s3660_s30 = sld [smem:[#allocation4 + $0x59]] }
  0x3e   :  { %v477_v24 = vmul.f32 %v476_v22, %v4469_v40  ;;  %v422_v25 = vstv %s3669_s24  ;;  %s3670_s3 = sld [smem:[#allocation4 + $0x5b]] }
  0x3f   :  { %v307_v26 = vstv %s3650_s26  ;;  %v423_v28 = vmul.f32 %v422_v25, %v4459_v31  ;;  %s3698_s4 = sld [smem:[#allocation4 + $0x39]] }
  0x40   :  { %v308_v29 = vmul.f32 %v307_v26, %v4443_v17  ;;  %v652_v30 = vstv %s3707_s27  ;;  %s3708_s5 = sld [smem:[#allocation4 + $0x3b]] }
  0x41   :  { %463 = vrot.lane.b32.xlu1 %v461_v43, %s4364_s25  ;;  %179 = vrot.lane.b32.xlu0 %v177_v48, %s4364_s25  ;;  %v537_v32 = vstv %s3688_s28  ;;  %v653_v33 = vmul.f32 %v652_v30, %v4503_v9  ;;  %s3689_s6 = sld [smem:[#allocation4 + $0x4b]] }
  0x42   :  { %v538_v34 = vmul.f32 %v537_v32, %v4479_v49  ;;  %v484_v35 = vstv %s3679_s29  ;;  %s3699_s7 = sld [smem:[#allocation4 + $0x4d]] }
  0x43   :  { %v369_v36 = vstv %s3660_s30  ;;  %v485_v37 = vmul.f32 %v484_v35, %v4469_v40  ;;  %s3680_s8 = sld [smem:[#allocation4 + $0x5d]] }
  0x44   :  { %v370_v38 = vmul.f32 %v369_v36, %v4453_v27  ;;  %v430_v39 = vstv %s3670_s3  ;;  %s3709_s9 = sld [smem:[#allocation4 + $0x4f]] }
  0x45   :  { %294 = vrot.lane.b32.xlu1 %v292_v47, %s4364_s25  ;;  %409 = vrot.lane.b32.xlu0 %v407_v53, %s4364_s25  ;;  %v599_v41 = vstv %s3698_s4  ;;  %v431_v42 = vmul.f32 %v430_v39, %v4459_v31  ;;  %s3690_s10 = sld [smem:[#allocation4 + $0x5f]] }
  0x46   :  { %v600_v43 = vmul.f32 %v599_v41, %v4493_v63  ;;  %v660_v44 = vstv %s3708_s5  ;;  %s3700_s11 = sld [smem:[#allocation4 + $0x61]] }
  0x47   :  { %v545_v45 = vstv %s3689_s6  ;;  %v661_v46 = vmul.f32 %v660_v44, %v4503_v9  ;;  %s3710_s12 = sld [smem:[#allocation4 + $0x63]] }
  0x48   :  { %v546_v47 = vmul.f32 %v545_v45, %v4479_v49  ;;  %v607_v48 = vstv %s3699_s7  ;;  %s75_s13 = sld [smem:[#allocation4]] }
  0x49   :  { %524 = vrot.lane.b32.xlu1 %v522_v52, %s4364_s25  ;;  %126 = vrot.lane.b32.xlu0 %v124_v57, %s4364_s25  ;;  %v492_v50 = vstv %s3680_s8  ;;  %v608_v51 = vmul.f32 %v607_v48, %v4493_v63  ;;  %s3621_s14 = sld [smem:[#allocation4 + $0x2]] }
  0x4a   :  { %v493_v52 = vmul.f32 %v492_v50, %v4469_v40  ;;  %v668_v53 = vstv %s3709_s9  ;;  %s3631_s17 = sld [smem:[#allocation4 + $0x4]] }
  0x4b   :  { %v553_v54 = vstv %s3690_s10  ;;  %v669_v55 = vmul.f32 %v668_v53, %v4503_v9  ;;  %s3641_s18 = sld [smem:[#allocation4 + $0x6]] }
  0x4c   :  { %v615_v57 = vstv %s3700_s11  ;;  %s3612_s0 = sld [smem:[#allocation4 + $0x14]] }
  0x4d   :  { %241 = vrot.lane.b32.xlu1 %v239_v56, %s4364_s25  ;;  %356 = vrot.lane.b32.xlu0 %v354_v61, %s4364_s25  ;;  %v554_v56 = vmul.f32 %v553_v54, %v4479_v49  ;;  %v676_v58 = vstv %s3710_s12  ;;  %v616_v59 = vmul.f32 %v615_v57, %v4493_v63  ;;  %s3622_s1 = sld [smem:[#allocation4 + $0x16]] }
  0x4e   :  { %v76_v61 = vstv %s75_s13  ;;  %s3651_s19 = sld [smem:[#allocation4 + $0x8]] }
  0x4f   :  { %v132_v62 = vstv %s3621_s14  ;;  %v77_v0 = vmul.f32 %v76_v61, %v4431_v8  ;;  %s3632_s20 = sld [smem:[#allocation4 + $0x18]] }
  0x50   :  { %v194_v5 = vstv %s3631_s17  ;;  %s3661_s21 = sld [smem:[#allocation4 + $0xa]] }
  0x51   :  { %471 = vrot.lane.b32.xlu1 %v469_v60, %s4364_s25  ;;  %586 = vrot.lane.b32.xlu0 %v584_v3, %s4364_s25  ;;  %v677_v60 = vmul.f32 %v676_v58, %v4503_v9  ;;  %v255_v16 = vstv %s3641_s18  ;;  %s3613_s22 = sld [smem:[#allocation4 + $0x28]] }
  0x52   :  { %v256_v21 = vmul.f32 %v255_v16, %v4443_v17  ;;  %s3623_s23 = sld [smem:[#allocation4 + $0x2a]] }
  0x53   :  { %s3642_s24 = sld [smem:[#allocation4 + $0x1a]] }
  0x54   :  { %v317_v30 = vstv %s3651_s19  ;;  %s3671_s26 = sld [smem:[#allocation4 + $0xc]] }
  0x55   :  { %187 = vrot.lane.b32.xlu1 %v185_v2, %s4364_s25  ;;  %302 = vrot.lane.b32.xlu0 %v300_v7, %s4364_s25  ;;  %v133_v2 = vmul.f32 %v132_v62, %v4433_v10  ;;  %v195_v7 = vmul.f32 %v194_v5, %v4437_v13  ;;  %s4562_s27 = sld [smem:[#allocation4 + $0x3c]] }
  0x56   :  { %v378_v44 = vstv %s3661_s21  ;;  %s4565_s28 = sld [smem:[#allocation4 + $0x1c]] }
  0x57   :  { %s4567_s29 = sld [smem:[#allocation4 + $0x2c]] }
  0x58   :  { %s4569_s30 = sld [smem:[#allocation4 + $0xe]] }
  0x59   :  { %417 = vrot.lane.b32.xlu1 %v415_v6, %s4364_s25  ;;  %532 = vrot.lane.b32.xlu0 %v530_v15, %s4364_s25  ;;  %s4572_s3 = sld [smem:[#allocation4 + $0x3e]] }
  0x5a   :  { %v440_v62 = vstv %s3671_s26  ;;  %s4579_s4 = sld [smem:[#allocation4 + $0x1e]] }
  0x5b   :  { %s4582_s5 = sld [smem:[#allocation4 + $0x2e]] }
  0x5c   :  { %s4586_s6 = sld [smem:[#allocation4 + $0x10]] }
  0x5d   :  { %647 = vrot.lane.b32.xlu1 %v645_v14, %s4364_s25  ;;  %249 = vrot.lane.b32.xlu0 %v247_v20, %s4364_s25  ;;  %s4589_s7 = sld [smem:[#allocation4 + $0x40]] }
  0x5e   :  { %v501_v16 = vstv %s4569_s30  ;;  %s4592_s8 = sld [smem:[#allocation4 + $0x50]] }
  0x5f   :  { %s4596_s9 = sld [smem:[#allocation4 + $0x20]] }
  0x60   :  { %s4600_s10 = sld [smem:[#allocation4 + $0x30]] }
  0x61   :  { %364 = vrot.lane.b32.xlu1 %v362_v19, %s4364_s25  ;;  %479 = vrot.lane.b32.xlu0 %v477_v24, %s4364_s25  ;;  %s4603_s11 = sld [smem:[#allocation4 + $0x52]] }
  0x62   :  { %s4606_s12 = sld [smem:[#allocation4 + $0x12]] }
  0x63   :  { %s4611_s13 = sld [smem:[#allocation4 + $0x42]] }
  0x64   :  { %s4614_s14 = sld [smem:[#allocation4 + $0x22]] }
  0x65   :  { %594 = vrot.lane.b32.xlu1 %v592_v23, %s4364_s25  ;;  %310 = vrot.lane.b32.xlu0 %v308_v29, %s4364_s25  ;;  %v79_v23 = vstv %s3612_s0  ;;  %v136_v29 = vstv %s3622_s1  ;;  %s4621_s17 = sld [smem:[#allocation4 + $0x32]] }
  0x66   :  { %v80_v26 = vmul.f32 %v79_v23, %v4431_v8  ;;  %v137_v36 = vmul.f32 %v136_v29, %v4433_v10  ;;  %v502_v29 = vmul.f32 %v501_v16, %v4479_v49  ;;  %s4624_s18 = sld [smem:[#allocation4 + $0x54]] }
  0x67   :  { %s4629_s0 = sld [smem:[#allocation4 + $0x64]] }
  0x68   :  { %s4633_s1 = sld [smem:[#allocation4 + $0x44]] }
  0x69   :  { %425 = vrot.lane.b32.xlu1 %v423_v28, %s4364_s25  ;;  %540 = vrot.lane.b32.xlu0 %v538_v34, %s4364_s25  ;;  %s4637_s19 = sld [smem:[#allocation4 + $0x24]] }
  0x6a   :  { %s4648_s21 = sld [smem:[#allocation4 + $0x46]] }
  0x6b   :  { %s4665_s26 = sld [smem:[#allocation4 + $0x58]] }
  0x6c   :  { %s4679_s30 = sld [smem:[#allocation4 + $0x65]] }
  0x6d   :  { %655 = vrot.lane.b32.xlu1 %v653_v33, %s4364_s25  ;;  %372 = vrot.lane.b32.xlu0 %v370_v38, %s4364_s25  ;;  %v198_v38 = vstv %s3632_s20  ;;  %s4643_s20 = sld [smem:[#allocation4 + $0x34]] }
  0x6e   :  { %s4924_s15 = sld [smem:[#allocation4 + $0x75]] }
  0x6f   :  { %s4928_s16 = sld [smem:[#allocation4 + $0x85]] }
  0x70   :  { %s4942_s2 = sld [smem:[#allocation4 + $0x87]] }
  0x71   :  { %487 = vrot.lane.b32.xlu1 %v485_v37, %s4364_s25  ;;  %602 = vrot.lane.b32.xlu0 %v600_v43, %s4364_s25  ;;  %v318_v37 = vmul.f32 %v317_v30, %v4453_v27  ;;  %v382_v30 = vstv %s4579_s4  ;;  %s4688_s4 = sld [smem:[#allocation4 + $0x4a]] }
  0x74   :  { %7135 = sst [smem:[#allocation22_spill]] %s4924_s15 }
  0x75   :  { %433 = vrot.lane.b32.xlu1 %v431_v42, %s4364_s25  ;;  %548 = vrot.lane.b32.xlu0 %v546_v47, %s4364_s25  ;;  %v82_v47 = vstv %s3613_s22  ;;  %s4653_s22 = sld [smem:[#allocation4 + $0x56]] }
  0x76   :  { %v83_v53 = vmul.f32 %v82_v47, %v4431_v8  ;;  %7136 = sst [smem:[#allocation23_spill]] %s4928_s16 }
  0x77   :  { %7140 = sst [smem:[#allocation27_spill]] %s4942_s2 }
  0x78   :  { %s5075_s15 = sld [smem:[#allocation4 + $0xb5]] }
  0x79   :  { %663 = vrot.lane.b32.xlu1 %v661_v46, %s4364_s25  ;;  %495 = vrot.lane.b32.xlu0 %v493_v52, %s4364_s25  ;;  %v199_v46 = vmul.f32 %v198_v38, %v4437_v13  ;;  %v379_v52 = vmul.f32 %v378_v44, %v4459_v31 }
  0x7d   :  { %610 = vrot.lane.b32.xlu1 %v608_v51, %s4364_s25  ;;  %556 = vrot.lane.b32.xlu0 %v554_v56, %s4364_s25  ;;  %v259_v56 = vstv %s3642_s24  ;;  %s4663_s24 = sld [smem:[#allocation4 + $0x36]] }
  0x81   :  { %671 = vrot.lane.b32.xlu1 %v669_v55, %s4364_s25  ;;  %618 = vrot.lane.b32.xlu0 %v616_v59, %s4364_s25  ;;  %v140_v55 = vstv %s3623_s23  ;;  %s4655_s23 = sld [smem:[#allocation4 + $0x26]] }
  0x82   :  { %v141_v61 = vmul.f32 %v140_v55, %v4433_v10  ;;  %v444_v55 = vstv %s4596_s9  ;;  %s4708_s9 = sld [smem:[#allocation4 + $0x4e]] }
  0x85   :  { %679 = vrot.lane.b32.xlu1 %v677_v60, %s4364_s25 }
  0x93   :  { %v103_v3 = vpop.permute.xlu1 %102  ;;  %v95_v4 = vpop.permute.xlu0 %94 }
  0x94   :  { %v97_v6 = vadd.f32 %v95_v4, %v77_v0  ;;  %v105_v34 = vadd.f32 %v103_v3, %v80_v26  ;;  %v144_v26 = vstv %s4572_s3  ;;  %s4685_s3 = sld [smem:[#allocation4 + $0x3a]] }
  0x96   :  { %v134_v11 = vadd.f32 %v133_v2, %v97_v6  ;;  %v138_v42 = vadd.f32 %v137_v36, %v105_v34  ;;  %v260_v2 = vmul.f32 %v259_v56, %v4443_v17  ;;  %v441_v6 = vmul.f32 %v440_v62, %v4469_v40 }
  0x97   :  { %v156_v14 = vpop.permute.xlu0 %155 }
  0x98   :  { %v158_v15 = vadd.f32 %v156_v14, %v134_v11  ;;  %v85_v11 = vstv %s4562_s27  ;;  %s4669_s27 = sld [smem:[#allocation4 + $0x48]] }
  0x9a   :  { %v196_v18 = vadd.f32 %v195_v7, %v158_v15  ;;  %v202_v15 = vstv %s4567_s29  ;;  %s4677_s29 = sld [smem:[#allocation4 + $0x38]] }
  0x9b   :  { %v218_v12 = vpop.permute.xlu1 %217  ;;  %v164_v20 = vpop.permute.xlu0 %163 }
  0x9c   :  { %v220_v22 = vadd.f32 %v218_v12, %v196_v18  ;;  %v166_v45 = vadd.f32 %v164_v20, %v138_v42  ;;  %v321_v12 = vstv %s4565_s28  ;;  %s4673_s28 = sld [smem:[#allocation4 + $0x5a]] }
  0x9d   :  { %v322_v23 = vmul.f32 %v321_v12, %v4453_v27 }
  0x9e   :  { %v257_v28 = vadd.f32 %v256_v21, %v220_v22  ;;  %v200_v54 = vadd.f32 %v199_v46, %v166_v45  ;;  %v86_v21 = vmul.f32 %v85_v11, %v4431_v8  ;;  %v88_v46 = vstv %s4592_s8  ;;  %s7085_s8 = smov 1  }
  0x9f   :  { %v279_v19 = vpop.permute.xlu1 %278  ;;  %v111_v25 = vpop.permute.xlu0 %110 }
  0xa0   :  { %v281_v35 = vadd.f32 %v279_v19, %v257_v28  ;;  %v113_v60 = vadd.f32 %v111_v25, %v83_v53  ;;  %v203_v25 = vmul.f32 %v202_v15, %v4437_v13  ;;  %v206_v53 = vstv %s4589_s7  ;;  %s4704_s7 = sld [smem:[#allocation4 + $0x66]] }
  0xa2   :  { %v319_v43 = vadd.f32 %v318_v37, %v281_v35  ;;  %v142_v7 = vadd.f32 %v141_v61, %v113_v60  ;;  %v145_v37 = vmul.f32 %v144_v26, %v4433_v10  ;;  %v207_v60 = vmul.f32 %v206_v53, %v4437_v13 }
  0xa3   :  { %v226_v24 = vpop.permute.xlu1 %225  ;;  %v341_v33 = vpop.permute.xlu0 %340 }
  0xa4   :  { %v343_v51 = vadd.f32 %v341_v33, %v319_v43  ;;  %v228_v0 = vadd.f32 %v226_v24, %v200_v54  ;;  %v383_v43 = vmul.f32 %v382_v30, %v4459_v31 }
  0xa6   :  { %v380_v59 = vadd.f32 %v379_v52, %v343_v51  ;;  %v261_v14 = vadd.f32 %v260_v2, %v228_v0  ;;  %v624_v0 = vstv %s4606_s12  ;;  %s4721_s12 = sld [smem:[#allocation4 + $0x67]] }
  0xa7   :  { %v172_v32 = vpop.permute.xlu1 %171  ;;  %v287_v41 = vpop.permute.xlu0 %286 }
  0xa8   :  { %v289_v20 = vadd.f32 %v287_v41, %v261_v14  ;;  %v174_v24 = vadd.f32 %v172_v32, %v142_v7  ;;  %v263_v32 = vstv %s4582_s5  ;;  %v267_v14 = vstv %s4611_s13  ;;  %s4694_s5 = sld [smem:[#allocation4 + $0x4c]] }
  0xa9   :  { %v264_v45 = vmul.f32 %v263_v32, %v4443_v17  ;;  %s3705_s13 = sld [smem:[#allocation4 + $0x62]] }
  0xaa   :  { %v323_v36 = vadd.f32 %v322_v23, %v289_v20  ;;  %v204_v38 = vadd.f32 %v203_v25, %v174_v24  ;;  %v386_v23 = vstv %s4621_s17  ;;  %v210_v25 = vstv %s4624_s18  ;;  %s3731_s17 = sld [smem:[#allocation4 + $0x6c]] }
  0xab   :  { %v402_v39 = vpop.permute.xlu1 %401  ;;  %v119_v50 = vpop.permute.xlu0 %118  ;;  %s3721_s18 = sld [smem:[#allocation4 + $0x6a]] }
  0xac   :  { %v404_v5 = vadd.f32 %v402_v39, %v380_v59  ;;  %v121_v35 = vadd.f32 %v119_v50, %v86_v21  ;;  %v563_v39 = vstv %s4586_s6  ;;  %s4697_s6 = sld [smem:[#allocation4 + $0x5c]] }
  0xad   :  { %v564_v54 = vmul.f32 %v563_v39, %v4493_v63  ;;  %v329_v39 = vstv %s4633_s1  ;;  %s3732_s1 = sld [smem:[#allocation4 + $0x80]] }
  0xae   :  { %v442_v22 = vadd.f32 %v441_v6, %v404_v5  ;;  %v146_v51 = vadd.f32 %v145_v37, %v121_v35  ;;  %v445_v6 = vmul.f32 %v444_v55, %v4469_v40  ;;  %v684_v35 = vstv %s4629_s0  ;;  %s3722_s0 = sld [smem:[#allocation4 + $0x7e]] }
  0xaf   :  { %v4559_v48 = vpop.permute.xlu1 %233  ;;  %v349_v58 = vpop.permute.xlu0 %348 }
  0xb0   :  { %v351_v41 = vadd.f32 %v349_v58, %v323_v36  ;;  %v236_v44 = vadd.f32 %v4559_v48, %v204_v38  ;;  %v325_v48 = vstv %s4600_s10  ;;  %v148_v58 = vstv %s4603_s11  ;;  %s4710_s10 = sld [smem:[#allocation4 + $0x5e]] }
  0xb1   :  { %v326_v11 = vmul.f32 %v325_v48, %v4453_v27  ;;  %v149_v12 = vmul.f32 %v148_v58, %v4433_v10  ;;  %v268_v10 = vmul.f32 %v267_v14, %v4443_v17  ;;  %v390_v58 = vstv %s4648_s21  ;;  %s4716_s11 = sld [smem:[#allocation4 + $0x60]] }
  0xb2   :  { %v384_v56 = vadd.f32 %v383_v43, %v351_v41  ;;  %v265_v59 = vadd.f32 %v264_v45, %v236_v44  ;;  %v567_v41 = vstv %s4637_s19  ;;  %v448_v43 = vstv %s4643_s20  ;;  %s3723_s19 = sld [smem:[#allocation4 + $0x92]] }
  0xb3   :  { %v464_v57 = vpop.permute.xlu1 %463  ;;  %v4577_v4 = vpop.permute.xlu0 %179  ;;  %v449_v55 = vmul.f32 %v448_v43, %v4469_v40  ;;  %s3741_s20 = sld [smem:[#allocation4 + $0x6e]] }
  0xb4   :  { %v466_v28 = vadd.f32 %v464_v57, %v442_v22  ;;  %v89_v57 = vmul.f32 %v88_v46, %v4431_v8  ;;  %v182_v2 = vadd.f32 %v4577_v4, %v146_v51  ;;  %v625_v4 = vmul.f32 %v624_v0, %v4503_v9  ;;  %s3751_s21 = sld [smem:[#allocation4 + $0x70]] }
  0xb6   :  { %v503_v42 = vadd.f32 %v502_v29, %v466_v28  ;;  %v208_v21 = vadd.f32 %v207_v60, %v182_v2 }
  0xb7   :  { %v4575_v3 = vpop.permute.xlu1 %294  ;;  %v410_v19 = vpop.permute.xlu0 %409 }
  0xb8   :  { %v412_v5 = vadd.f32 %v410_v19, %v384_v56  ;;  %v297_v7 = vadd.f32 %v4575_v3, %v265_v59  ;;  %v271_v56 = vstv %s4653_s22  ;;  %v628_v59 = vstv %s4655_s23  ;;  %s3742_s22 = sld [smem:[#allocation4 + $0x82]] }
  0xb9   :  { %s3733_s23 = sld [smem:[#allocation4 + $0x94]] }
  0xba   :  { %v446_v22 = vadd.f32 %v445_v6, %v412_v5  ;;  %v327_v3 = vadd.f32 %v326_v11, %v297_v7  ;;  %v272_v5 = vmul.f32 %v271_v56, %v4443_v17  ;;  %v391_v6 = vmul.f32 %v390_v58, %v4459_v31 }
  0xbb   :  { %v525_v18 = vpop.permute.xlu1 %524  ;;  %v127_v34 = vpop.permute.xlu0 %126  ;;  %v509_v7 = vstv %s4663_s24  ;;  %s3761_s24 = sld [smem:[#allocation4 + $0x72]] }
  0xbc   :  { %v527_v52 = vadd.f32 %v525_v18, %v503_v42  ;;  %v129_v15 = vadd.f32 %v127_v34, %v89_v57  ;;  %v505_v18 = vstv %s4614_s14  ;;  %v387_v34 = vmul.f32 %v386_v23, %v4459_v31  ;;  %s3715_s14 = sld [smem:[#allocation4 + $0x68]] }
  0xbd   :  { %v506_v24 = vmul.f32 %v505_v18, %v4479_v49  ;;  %v211_v42 = vmul.f32 %v210_v25, %v4437_v13  ;;  %v688_v25 = vstv %s4679_s30  ;;  %s3762_s30 = sld [smem:[#allocation4 + $0x86]] }
  0xbe   :  { %v565_v8 = vadd.f32 %v564_v54, %v527_v52  ;;  %v150_v29 = vadd.f32 %v149_v12, %v129_v15  ;;  %v568_v52 = vmul.f32 %v567_v41, %v4493_v63  ;;  %v333_v15 = vstv %s4665_s26  ;;  %s3752_s26 = sld [smem:[#allocation4 + $0x84]] }
  0xbf   :  { %v242_v33 = vpop.permute.xlu1 %241  ;;  %v357_v50 = vpop.permute.xlu0 %356 }
  0xc0   :  { %v244_v26 = vadd.f32 %v242_v33, %v208_v21  ;;  %v359_v37 = vadd.f32 %v357_v50, %v327_v3  ;;  %v334_v21 = vmul.f32 %v333_v15, %v4453_v27 }
  0xc2   :  { %v269_v44 = vadd.f32 %v268_v10, %v244_v26  ;;  %v388_v53 = vadd.f32 %v387_v34, %v359_v37  ;;  %v632_v37 = vstv %s4685_s3  ;;  %s3781_s3 = sld [smem:[#allocation4 + $0x76]] }
  0xc3   :  { %v472_v47 = vpop.permute.xlu1 %471  ;;  %v587_v62 = vpop.permute.xlu0 %586 }
  0xc4   :  { %v589_v16 = vadd.f32 %v587_v62, %v565_v8  ;;  %v474_v28 = vadd.f32 %v472_v47, %v446_v22  ;;  %v330_v47 = vmul.f32 %v329_v39, %v4453_v27  ;;  %v629_v8 = vmul.f32 %v628_v59, %v4503_v9 }
  0xc5   :  { %v394_v22 = vstv %s4673_s28  ;;  %s3724_s28 = sld [smem:[#allocation4 + $0xa6]] }
  0xc6   :  { %v626_v30 = vadd.f32 %v625_v4, %v589_v16  ;;  %v507_v46 = vadd.f32 %v506_v24, %v474_v28  ;;  %v571_v24 = vstv %s4677_s29  ;;  %s3743_s29 = sld [smem:[#allocation4 + $0x96]] }
  0xc7   :  { %v188_v61 = vpop.permute.xlu1 %187  ;;  %v303_v20 = vpop.permute.xlu0 %302 }
  0xc8   :  { %v190_v33 = vadd.f32 %v188_v61, %v150_v29  ;;  %v305_v13 = vadd.f32 %v303_v20, %v269_v44  ;;  %v452_v20 = vstv %s4669_s27  ;;  %s3771_s27 = sld [smem:[#allocation4 + $0x74]] }
  0xca   :  { %v212_v48 = vadd.f32 %v211_v42, %v190_v33  ;;  %v331_v62 = vadd.f32 %v330_v47, %v305_v13  ;;  %v513_v42 = vstv %s4688_s4  ;;  %v575_v47 = vstv %s4694_s5  ;;  %s4777_s4 = sld [smem:[#allocation4 + $0xa8]] }
  0xcb   :  { %v418_v19 = vpop.permute.xlu1 %417  ;;  %v533_v32 = vpop.permute.xlu0 %532  ;;  %v576_v56 = vmul.f32 %v575_v47, %v4493_v63  ;;  %s3753_s5 = sld [smem:[#allocation4 + $0x98]] }
  0xcc   :  { %v535_v54 = vadd.f32 %v533_v32, %v507_v46  ;;  %v420_v57 = vadd.f32 %v418_v19, %v388_v53  ;;  %v510_v19 = vmul.f32 %v509_v7, %v4479_v49  ;;  %v572_v32 = vmul.f32 %v571_v24, %v4493_v63 }
  0xcd   :  { %v514_v46 = vmul.f32 %v513_v42, %v4479_v49  ;;  %v456_v53 = vstv %s4697_s6  ;;  %s4785_s6 = sld [smem:[#allocation4 + $0x88]] }
  0xce   :  { %v569_v2 = vadd.f32 %v568_v52, %v535_v54  ;;  %v450_v14 = vadd.f32 %v449_v55, %v420_v57  ;;  %v457_v57 = vmul.f32 %v456_v53, %v4469_v40  ;;  %v878_v53 = vstv %s3741_s20  ;;  %s4827_s20 = sld [smem:[#allocation4 + $0x7f]] }
  0xcf   :  { %v648_v36 = vpop.permute.xlu1 %647  ;;  %v250_v51 = vpop.permute.xlu0 %249 }
  0xd0   :  { %v650_v38 = vadd.f32 %v648_v36, %v626_v30  ;;  %v252_v0 = vadd.f32 %v250_v51, %v212_v48  ;;  %v395_v36 = vmul.f32 %v394_v22, %v4459_v31  ;;  %v696_v22 = vstv %s4721_s12  ;;  %s3782_s12 = sld [smem:[#allocation4 + $0x8a]] }
  0xd2   :  { %v685_v45 = vadd.f32 %v684_v35, %v650_v38  ;;  %v273_v17 = vadd.f32 %v272_v5, %v252_v0  ;;  %v453_v35 = vmul.f32 %v452_v20, %v4469_v40 }
  0xd3   :  { %v365_v50 = vpop.permute.xlu1 %364  ;;  %v480_v61 = vpop.permute.xlu0 %479 }
  0xd4   :  { %4251 = vtanh.f32 %v685_v45  ;;  %v367_v11 = vadd.f32 %v365_v50, %v331_v62  ;;  %v482_v18 = vadd.f32 %v480_v61, %v450_v14  ;;  %v633_v45 = vmul.f32 %v632_v37, %v4503_v9  ;;  %7126 = sst [smem:[#allocation13_spill]] %s4827_s20 }
  0xd5   :  { %v692_v61 = vstv %s4704_s7  ;;  %s3791_s7 = sld [smem:[#allocation4 + $0x78]] }
  0xd6   :  { %v392_v23 = vadd.f32 %v391_v6, %v367_v11  ;;  %v511_v34 = vadd.f32 %v510_v19, %v482_v18 }
  0xd7   :  { %v595_v60 = vpop.permute.xlu1 %594  ;;  %v311_v4 = vpop.permute.xlu0 %310 }
  0xd8   :  { %v597_v12 = vadd.f32 %v595_v60, %v569_v2  ;;  %v313_v3 = vadd.f32 %v311_v4, %v273_v17  ;;  %v636_v60 = vstv %s4708_s9  ;;  %v517_v2 = vstv %s4710_s10  ;;  %s4793_s9 = sld [smem:[#allocation4 + $0xba]] }
  0xd9   :  { %s3744_s10 = sld [smem:[#allocation4 + $0xaa]] }
  0xda   :  { %v630_v10 = vadd.f32 %v629_v8, %v597_v12  ;;  %v335_v41 = vadd.f32 %v334_v21, %v313_v3  ;;  %v637_v8 = vmul.f32 %v636_v60, %v4503_v9  ;;  %v518_v12 = vmul.f32 %v517_v2, %v4479_v49 }
  0xdb   :  { %v426_v16 = vpop.permute.xlu1 %425  ;;  %v541_v28 = vpop.permute.xlu0 %540  ;;  %v833_v60 = vstv %s3733_s23  ;;  %s3811_s23 = sld [smem:[#allocation4 + $0x7c]] }
  0xdc   :  { %v428_v29 = vadd.f32 %v426_v16, %v392_v23  ;;  %v543_v39 = vadd.f32 %v541_v28, %v511_v34  ;;  %v579_v16 = vstv %s4716_s11  ;;  %s3763_s11 = sld [smem:[#allocation4 + $0x9a]] }
  0xdd   :  { %v580_v21 = vmul.f32 %v579_v16, %v4493_v63 }
  0xde   :  { %v454_v31 = vadd.f32 %v453_v35, %v428_v29  ;;  %v573_v52 = vadd.f32 %v572_v32, %v543_v39  ;;  %v817_v39 = vstv %s3731_s17  ;;  %s3801_s17 = sld [smem:[#allocation4 + $0x7a]] }
  0xdf   :  { %v656_v26 = vpop.permute.xlu1 %655  ;;  %v373_v33 = vpop.permute.xlu0 %372 }
  0xe0   :  { %v658_v30 = vadd.f32 %v656_v26, %v630_v10  ;;  %v375_v44 = vadd.f32 %v373_v33, %v335_v41  ;;  %v640_v10 = vstv %s3705_s13  ;;  %v756_v41 = vstv %s3721_s18  ;;  %s4810_s13 = sld [smem:[#allocation4 + $0xbc]] }
  0xe1   :  { %v4252_v27 = vpop.eup %4251  ;;  %v641_v28 = vmul.f32 %v640_v10, %v4503_v9  ;;  %s4819_s18 = sld [smem:[#allocation4 + $0x6b]] }
  0xe2   :  { %v689_v38 = vadd.f32 %v688_v25, %v658_v30  ;;  %704 = vrot.lane.b32.xlu0 %v4252_v27, %s7085_s8  ;;  %v396_v51 = vadd.f32 %v395_v36, %v375_v44  ;;  %v700_v27 = vstv %s3715_s14  ;;  %v764_v44 = vstv %s3722_s0  ;;  %s4814_s14 = sld [smem:[#allocation4 + $0x69]] }
  0xe3   :  { %v488_v43 = vpop.permute.xlu1 %487  ;;  %v603_v54 = vpop.permute.xlu0 %602  ;;  %s4821_s0 = sld [smem:[#allocation4 + $0x7d]] }
  0xe4   :  { %4253 = vtanh.f32 %v689_v38  ;;  %v490_v50 = vadd.f32 %v488_v43, %v454_v31  ;;  %v605_v55 = vadd.f32 %v603_v54, %v573_v52 }
  0xe6   :  { %v634_v58 = vadd.f32 %v633_v45, %v605_v55  ;;  %v515_v59 = vadd.f32 %v514_v46, %v490_v50  ;;  %v825_v46 = vstv %s3732_s1  ;;  %s3754_s1 = sld [smem:[#allocation4 + $0xac]] }
  0xe7   :  { %v434_v13 = vpop.permute.xlu1 %433  ;;  %v549_v0 = vpop.permute.xlu0 %548 }
  0xe8   :  { %v436_v48 = vadd.f32 %v434_v13, %v396_v51  ;;  %v551_v6 = vadd.f32 %v549_v0, %v515_v59  ;;  %v772_v51 = vstv %s3723_s19  ;;  %s3773_s19 = sld [smem:[#allocation4 + $0x9c]] }
  0xea   :  { %v577_v11 = vadd.f32 %v576_v56, %v551_v6  ;;  %v458_v40 = vadd.f32 %v457_v57, %v436_v48  ;;  %v939_v56 = vstv %s3751_s21  ;;  %s4829_s21 = sld [smem:[#allocation4 + $0x91]] }
  0xeb   :  { %v664_v62 = vpop.permute.xlu1 %663  ;;  %v496_v15 = vpop.permute.xlu0 %495 }
  0xec   :  { %v666_v5 = vadd.f32 %v664_v62, %v634_v58  ;;  %v498_v18 = vadd.f32 %v496_v15, %v458_v40  ;;  %v886_v58 = vstv %s3742_s22  ;;  %s4833_s22 = sld [smem:[#allocation4 + $0x8c]] }
  0xee   :  { %v693_v7 = vadd.f32 %v692_v61, %v666_v5  ;;  %v519_v20 = vadd.f32 %v518_v12, %v498_v18  ;;  %v1000_v61 = vstv %s3761_s24  ;;  %v894_v12 = vstv %s3743_s29  ;;  %s4840_s24 = sld [smem:[#allocation4 + $0x93]] }
  0xef   :  { %v611_v14 = vpop.permute.xlu1 %610  ;;  %v557_v3 = vpop.permute.xlu0 %556  ;;  %s4848_s29 = sld [smem:[#allocation4 + $0xc0]] }
  0xf0   :  { %4255 = vtanh.f32 %v693_v7  ;;  %v613_v4 = vadd.f32 %v611_v14, %v577_v11  ;;  %v559_v49 = vadd.f32 %v557_v3, %v519_v20  ;;  %v947_v7 = vstv %s3752_s26  ;;  %7127 = sst [smem:[#allocation14_spill]] %s4829_s21 }
  0xf1   :  { %v4254_v17 = vpop.eup %4253  ;;  %v780_v14 = vstv %s3724_s28  ;;  %s4842_s26 = sld [smem:[#allocation4 + $0xa5]] }
  0xf2   :  { %712 = vrot.lane.b32.xlu1 %v4254_v17, %s7085_s8  ;;  %v638_v19 = vadd.f32 %v637_v8, %v613_v4  ;;  %v581_v26 = vadd.f32 %v580_v21, %v559_v49  ;;  %v1061_v8 = vstv %s3771_s27  ;;  %v1122_v17 = vstv %s3781_s3  ;;  %s3745_s27 = sld [smem:[#allocation4 + $0xbe]] }
  0xf3   :  { %v672_v23 = vpop.permute.xlu1 %671  ;;  %v619_v29 = vpop.permute.xlu0 %618  ;;  %v1183_v49 = vstv %s3791_s7  ;;  %s3764_s28 = sld [smem:[#allocation4 + $0xae]] }
  0xf4   :  { %v674_v24 = vadd.f32 %v672_v23, %v638_v19  ;;  %v621_v30 = vadd.f32 %v619_v29, %v581_v26  ;;  %v1008_v19 = vstv %s3762_s30  ;;  %v841_v23 = vstv %s4777_s4  ;;  %7128 = sst [smem:[#allocation15_spill]] %s4840_s24 }
  0xf5   :  { %v788_v29 = vstv %s4793_s9  ;;  %s4850_s30 = sld [smem:[#allocation4 + $0x6d]] }
  0xf6   :  { %v697_v25 = vadd.f32 %v696_v22, %v674_v24  ;;  %v642_v35 = vadd.f32 %v641_v28, %v621_v30  ;;  %v955_v22 = vstv %s3753_s5  ;;  %v902_v28 = vstv %s3744_s10  ;;  %s3783_s3 = sld [smem:[#allocation4 + $0x9e]] }
  0xf7   :  { %v680_v34 = vpop.permute.xlu1 %679  ;;  %7129 = sst [smem:[#allocation16_spill]] %s4842_s26 }
  0xf8   :  { %4257 = vtanh.f32 %v697_v25  ;;  %v682_v36 = vadd.f32 %v680_v34, %v642_v35  ;;  %v1069_v25 = vstv %s4785_s6  ;;  %v1130_v35 = vstv %s3782_s12  ;;  %s3802_s4 = sld [smem:[#allocation4 + $0x8e]] }
  0xf9   :  { %s4859_s5 = sld [smem:[#allocation4 + $0x6f]] }
  0xfa   :  { %v701_v63 = vadd.f32 %v700_v27, %v682_v36  ;;  %v1016_v27 = vstv %s3763_s11  ;;  %s4861_s6 = sld [smem:[#allocation4 + $0xb0]] }
  0xfb   :  { %s4865_s7 = sld [smem:[#allocation4 + $0xa0]] }
  0xfc   :  { %4259 = vtanh.f32 %v701_v63  ;;  %s4867_s9 = sld [smem:[#allocation4 + $0xb2]] }
  0xfd   :  { %v4256_v32 = vpop.eup %4255  ;;  %s4871_s10 = sld [smem:[#allocation4 + $0xc2]] }
  0xfe   :  { %719 = vrot.lane.b32.xlu0 %v4256_v32, %s7085_s8  ;;  %s4873_s11 = sld [smem:[#allocation4 + $0xc4]] }
  0xff   :  { %s3812_s12 = sld [smem:[#allocation4 + $0x90]] }
 0x105   :  { %v4258_v37 = vpop.eup %4257 }
 0x106   :  { %726 = vrot.lane.b32.xlu1 %v4258_v37, %s7085_s8  ;;  %v849_v37 = vstv %s4810_s13  ;;  %s4877_s13 = sld [smem:[#allocation4 + $0xa2]] }
 0x109   :  { %v4260_v38 = vpop.eup %4259 }
 0x10a   :  { %733 = vrot.lane.b32.xlu0 %v4260_v38, %s7085_s8  ;;  %v1244_v38 = vstv %s3801_s17  ;;  %s4881_s17 = sld [smem:[#allocation4 + $0xa4]] }
 0x10b   :  { %s4938_s8 = sld [smem:[#allocation4 + $0x77]] }
 0x111   :  { %7139 = sst [smem:[#allocation26_spill]] %s4938_s8 }
 0x112   :  { %s4956_s8 = sld [smem:[#allocation4 + $0x99]] }
 0x154   :  { %v705_v9 = vpop.permute.xlu0 %704 }
 0x155   :  { %708 = vst.msk [vmem:[#allocation3 + $0x8] sm:$0xff] %vm707_vm1, %v705_v9 }
 0x156   :  { %710 = vst.msk [vmem:[#allocation3 + $0x8] sm:$0xff] %vm709_vm2, %v705_v9 }
 0x15d   :  { %v4737_v42 = vld [vmem:[#allocation3 + $0x7] sm:$0xff] }
 0x15e   :  { %v4739_v43 = vld [vmem:[#allocation3 + $0x8] sm:$0xff]  ;;  %v757_v31 = vmul.f32 %v756_v41, %v4737_v42  ;;  %v765_v45 = vmul.f32 %v764_v44, %v4737_v42  ;;  %v773_v52 = vmul.f32 %v772_v51, %v4737_v42  ;;  %v781_v4 = vmul.f32 %v780_v14, %v4737_v42 }
 0x15f   :  { %v818_v33 = vmul.f32 %v817_v39, %v4739_v43  ;;  %v826_v50 = vmul.f32 %v825_v46, %v4739_v43  ;;  %v834_v2 = vmul.f32 %v833_v60, %v4739_v43  ;;  %v842_v10 = vmul.f32 %v841_v23, %v4739_v43 }
 0x160   :  { %759 = vrot.lane.b32.xlu1 %v757_v31, %s4364_s25  ;;  %v789_v34 = vmul.f32 %v788_v29, %v4737_v42  ;;  %v850_v9 = vmul.f32 %v849_v37, %v4739_v43  ;;  %v1077_v41 = vstv %s3773_s19  ;;  %v1305_v46 = vstv %s3811_s23  ;;  %s4887_s19 = sld [smem:[#allocation4 + $0xb6]]  ;;  %v4999_v37 = vld [vmem:[#allocation2 + $0x8] sm:$0xff] }
 0x161   :  { %820 = vrot.lane.b32.xlu0 %v818_v33, %s4364_s25  ;;  %v963_v33 = vstv %s3754_s1  ;;  %s4883_s1 = sld [smem:[#allocation4 + $0xb4]]  ;;  %v1085_v60 = vstv %s4861_s6 }
 0x162   :  { %s4895_s23 = sld [smem:[#allocation4 + $0xb8]] }
 0x163   :  { %s4914_s6 = sld [smem:[#allocation4 + $0x73]] }
 0x164   :  { %v713_v47 = vpop.permute.xlu1 %712  ;;  %767 = vrot.lane.b32.xlu1 %v765_v45, %s4364_s25 }
 0x165   :  { %716 = vst.msk [vmem:[#allocation3 + $0x20] sm:$0xff] %vm707_vm1, %v713_v47 }
 0x166   :  { %717 = vst.msk [vmem:[#allocation3 + $0x20] sm:$0xff] %vm709_vm2, %v713_v47  ;;  %v1191_v47 = vstv %s4833_s22  ;;  %s4891_s22 = sld [smem:[#allocation4 + $0xc6]] }
 0x168   :  { %828 = vrot.lane.b32.xlu1 %v826_v50, %s4364_s25 }
 0x169   :  { %7132 = sst [smem:[#allocation19_spill]] %s4914_s6 }
 0x16c   :  { %775 = vrot.lane.b32.xlu1 %v773_v52, %s4364_s25  ;;  %v1024_v52 = vstv %s3764_s28  ;;  %s4901_s28 = sld [smem:[#allocation4 + $0xcc]] }
 0x16d   :  { %v4753_v13 = vld [vmem:[#allocation3 + $0x1f] sm:$0xff] }
 0x16e   :  { %v879_v54 = vmul.f32 %v878_v53, %v4753_v13  ;;  %v4756_v55 = vld [vmem:[#allocation3 + $0x20] sm:$0xff]  ;;  %v887_v59 = vmul.f32 %v886_v58, %v4753_v13  ;;  %v895_v16 = vmul.f32 %v894_v12, %v4753_v13  ;;  %v903_v30 = vmul.f32 %v902_v28, %v4753_v13 }
 0x16f   :  { %v940_v48 = vmul.f32 %v939_v56, %v4756_v55  ;;  %v948_v40 = vmul.f32 %v947_v7, %v4756_v55  ;;  %v956_v3 = vmul.f32 %v955_v22, %v4756_v55  ;;  %v964_v44 = vmul.f32 %v963_v33, %v4756_v55 }
 0x170   :  { %v720_v57 = vpop.permute.xlu0 %719  ;;  %881 = vrot.lane.b32.xlu0 %v879_v54, %s4364_s25  ;;  %v910_v53 = vstv %s3745_s27  ;;  %s4897_s27 = sld [smem:[#allocation4 + $0xc8]]  ;;  %v1032_v12 = vstv %s4871_s10 }
 0x171   :  { %723 = vst.msk [vmem:[#allocation3 + $0x38] sm:$0xff] %vm707_vm1, %v720_v57  ;;  %v911_v56 = vmul.f32 %v910_v53, %v4753_v13  ;;  %s4936_s10 = sld [smem:[#allocation4 + $0xa7]]  ;;  %v5032_v53 = vld [vmem:[#allocation2 + $0x20] sm:$0xff] }
 0x172   :  { %724 = vst.msk [vmem:[#allocation3 + $0x38] sm:$0xff] %vm709_vm2, %v720_v57  ;;  %v1252_v57 = vstv %s3802_s4  ;;  %s4910_s4 = sld [smem:[#allocation4 + $0x71]] }
 0x174   :  { %942 = vrot.lane.b32.xlu0 %v940_v48, %s4364_s25  ;;  %v1138_v48 = vstv %s3783_s3  ;;  %s4908_s3 = sld [smem:[#allocation4 + $0x81]] }
 0x177   :  { %7138 = sst [smem:[#allocation25_spill]] %s4936_s10 }
 0x178   :  { %v727_v62 = vpop.permute.xlu1 %726  ;;  %889 = vrot.lane.b32.xlu0 %v887_v59, %s4364_s25  ;;  %7131 = sst [smem:[#allocation18_spill]] %s4910_s4 }
 0x179   :  { %v4765_v0 = vld [vmem:[#allocation3 + $0x37] sm:$0xff]  ;;  %730 = vst.msk [vmem:[#allocation3 + $0x50] sm:$0xff] %vm707_vm1, %v727_v62  ;;  %s4952_s10 = sld [smem:[#allocation4 + $0x89]] }
 0x17a   :  { %731 = vst.msk [vmem:[#allocation3 + $0x50] sm:$0xff] %vm709_vm2, %v727_v62  ;;  %v1001_v5 = vmul.f32 %v1000_v61, %v4765_v0  ;;  %v4771_v6 = vld [vmem:[#allocation3 + $0x38] sm:$0xff]  ;;  %v1009_v21 = vmul.f32 %v1008_v19, %v4765_v0  ;;  %v1017_v32 = vmul.f32 %v1016_v27, %v4765_v0  ;;  %v1025_v54 = vmul.f32 %v1024_v52, %v4765_v0  ;;  %7130 = sst [smem:[#allocation17_spill]] %s4908_s3 }
 0x17b   :  { %v1062_v11 = vmul.f32 %v1061_v8, %v4771_v6  ;;  %v1070_v1 = vmul.f32 %v1069_v25, %v4771_v6  ;;  %v1078_v31 = vmul.f32 %v1077_v41, %v4771_v6  ;;  %v971_v61 = vstv %s4848_s29  ;;  %s4904_s29 = sld [smem:[#allocation4 + $0xca]]  ;;  %v5011_v41 = vld [vmem:[#allocation2 + $0x9] sm:$0xff] }
 0x17c   :  { %836 = vrot.lane.b32.xlu0 %v834_v2, %s4364_s25  ;;  %1003 = vrot.lane.b32.xlu1 %v1001_v5, %s4364_s25  ;;  %v734_v15 = vpop.permute.xlu0 %733  ;;  %v1086_v62 = vmul.f32 %v1085_v60, %v4771_v6  ;;  %v972_v2 = vmul.f32 %v971_v61, %v4756_v55  ;;  %v1313_v5 = vstv %s3812_s12  ;;  %v1199_v8 = vstv %s4865_s7  ;;  %s4918_s7 = sld [smem:[#allocation4 + $0x83]] }
 0x17d   :  { %737 = vst.msk [vmem:[#allocation3 + $0x68] sm:$0xff] %vm707_vm1, %v734_v15  ;;  %s4922_s12 = sld [smem:[#allocation4 + $0x95]]  ;;  %v747_v60 = vstv %s4829_s21  ;;  %v805_v61 = vstv %s4840_s24 }
 0x17e   :  { %738 = vst.msk [vmem:[#allocation3 + $0x68] sm:$0xff] %vm709_vm2, %v734_v15  ;;  %v1033_v15 = vmul.f32 %v1032_v12, %v4765_v0  ;;  %v5053_v12 = vld [vmem:[#allocation2 + $0x21] sm:$0xff]  ;;  %s5056_s21 = sld [smem:[#allocation4 + $0xd9]] }
 0x17f   :  { %7143 = sst [smem:[#allocation30_spill]] %s4952_s10 }
 0x180   :  { %1064 = vrot.lane.b32.xlu0 %v1062_v11, %s4364_s25  ;;  %950 = vrot.lane.b32.xlu1 %v948_v40, %s4364_s25  ;;  %v1146_v40 = vstv %s4867_s9  ;;  %s4932_s9 = sld [smem:[#allocation4 + $0x97]] }
 0x181   :  { %v4787_v18 = vld [vmem:[#allocation3 + $0x4f] sm:$0xff]  ;;  %s4970_s10 = sld [smem:[#allocation4 + $0xd2]] }
 0x182   :  { %v1123_v20 = vmul.f32 %v1122_v17, %v4787_v18  ;;  %v4805_v24 = vld [vmem:[#allocation3 + $0x50] sm:$0xff]  ;;  %v1131_v36 = vmul.f32 %v1130_v35, %v4787_v18  ;;  %v1139_v59 = vmul.f32 %v1138_v48, %v4787_v18  ;;  %7133 = sst [smem:[#allocation20_spill]] %s4918_s7  ;;  %v1147_v14 = vmul.f32 %v1146_v40, %v4787_v18 }
 0x183   :  { %v1184_v26 = vmul.f32 %v1183_v49, %v4805_v24  ;;  %v1192_v51 = vmul.f32 %v1191_v47, %v4805_v24  ;;  %v1200_v11 = vmul.f32 %v1199_v8, %v4805_v24  ;;  %7134 = sst [smem:[#allocation21_spill]] %s4922_s12  ;;  %v744_v48 = vstv %s4821_s0 }
 0x184   :  { %897 = vrot.lane.b32.xlu0 %v895_v16, %s4364_s25  ;;  %783 = vrot.lane.b32.xlu1 %v781_v4, %s4364_s25  ;;  %v1093_v16 = vstv %s4873_s11  ;;  %v1260_v4 = vstv %s4877_s13  ;;  %s4946_s11 = sld [smem:[#allocation4 + $0xa9]] }
 0x185   :  { %v4835_v63 = vld [vmem:[#allocation3 + $0x67] sm:$0xff]  ;;  %v1094_v17 = vmul.f32 %v1093_v16, %v4771_v6  ;;  %s4950_s13 = sld [smem:[#allocation4 + $0xb9]]  ;;  %v862_v40 = vstv %s4908_s3  ;;  %v1041_v16 = vstv %s4914_s6 }
 0x186   :  { %v1245_v39 = vmul.f32 %v1244_v38, %v4835_v63  ;;  %v4854_v45 = vld [vmem:[#allocation3 + $0x68] sm:$0xff]  ;;  %v1253_v58 = vmul.f32 %v1252_v57, %v4835_v63  ;;  %7137 = sst [smem:[#allocation24_spill]] %s4932_s9  ;;  %v1261_v19 = vmul.f32 %v1260_v4, %v4835_v63  ;;  %v923_v4 = vstv %s4918_s7 }
 0x187   :  { %v1306_v50 = vmul.f32 %v1305_v46, %v4854_v45  ;;  %v1314_v7 = vmul.f32 %v1313_v5, %v4854_v45  ;;  %v5020_v46 = vld [vmem:[#allocation2 + $0x1f] sm:$0xff]  ;;  %s5094_s7 = sld [smem:[#allocation4 + $0xe4]] }
 0x188   :  { %1125 = vrot.lane.b32.xlu0 %v1123_v20, %s4364_s25  ;;  %1011 = vrot.lane.b32.xlu1 %v1009_v21, %s4364_s25  ;;  %v1321_v20 = vstv %s4881_s17  ;;  %v1207_v21 = vstv %s4883_s1  ;;  %s4960_s17 = sld [smem:[#allocation4 + $0xbb]] }
 0x189   :  { %v1322_v22 = vmul.f32 %v1321_v20, %v4854_v45  ;;  %v1208_v23 = vmul.f32 %v1207_v21, %v4805_v24  ;;  %s4964_s1 = sld [smem:[#allocation4 + $0x79]]  ;;  %v984_v21 = vstv %s4928_s16 }
 0x18a   :  { %7141 = sst [smem:[#allocation28_spill]] %s4946_s11 }
 0x18b   :  { %7142 = sst [smem:[#allocation29_spill]] %s4950_s13 }
 0x18c   :  { %958 = vrot.lane.b32.xlu0 %v956_v3, %s4364_s25  ;;  %844 = vrot.lane.b32.xlu1 %v842_v10, %s4364_s25  ;;  %v1268_v3 = vstv %s4887_s19  ;;  %v1154_v10 = vstv %s4891_s22  ;;  %s4966_s13 = sld [smem:[#allocation4 + $0x9b]] }
 0x18d   :  { %v1269_v49 = vmul.f32 %v1268_v3, %v4835_v63  ;;  %v1155_v25 = vmul.f32 %v1154_v10, %v4787_v18  ;;  %s3826_s19 = sld [smem:[#allocation4 + $0xd3]] }
 0x18e   :  { %7144 = sst [smem:[#allocation31_spill]] %s4960_s17 }
 0x18f   :  { %7145 = sst [smem:[#allocation32_spill]] %s4964_s1 }
 0x190   :  { %1186 = vrot.lane.b32.xlu0 %v1184_v26, %s4364_s25  ;;  %1072 = vrot.lane.b32.xlu1 %v1070_v1, %s4364_s25  ;;  %v1329_v26 = vstv %s4895_s23  ;;  %v1215_v1 = vstv %s4897_s27  ;;  %s4976_s22 = sld [smem:[#allocation4 + $0xab]] }
 0x191   :  { %s4978_s1 = sld [smem:[#allocation4 + $0x7b]]  ;;  %v1330_v28 = vmul.f32 %v1329_v26, %v4854_v45  ;;  %v1216_v29 = vmul.f32 %v1215_v1, %v4805_v24 }
 0x192   :  { %7146 = sst [smem:[#allocation33_spill]] %s4966_s13 }
 0x193   :  { %s4982_s13 = sld [smem:[#allocation4 + $0x8b]]  ;;  %v1382_v38 = vstv %s3826_s19 }
 0x194   :  { %905 = vrot.lane.b32.xlu0 %v903_v30, %s4364_s25  ;;  %791 = vrot.lane.b32.xlu1 %v789_v34, %s4364_s25  ;;  %v1337_v30 = vstv %s4901_s28  ;;  %v1276_v34 = vstv %s4904_s29  ;;  %s3831_s23 = sld [smem:[#allocation4 + $0xd4]] }
 0x195   :  { %s4988_s27 = sld [smem:[#allocation4 + $0xad]]  ;;  %v1338_v35 = vmul.f32 %v1337_v30, %v4854_v45  ;;  %v1277_v27 = vmul.f32 %v1276_v34, %v4835_v63  ;;  %v5079_v30 = vld [vmem:[#allocation2 + $0x37] sm:$0xff] }
 0x196   :  { %s4990_s17 = sld [smem:[#allocation4 + $0xbd]] }
 0x197   :  { %7147 = sst [smem:[#allocation34_spill]] %s4978_s1 }
 0x198   :  { %1133 = vrot.lane.b32.xlu0 %v1131_v36, %s4364_s25  ;;  %1019 = vrot.lane.b32.xlu1 %v1017_v32, %s4364_s25  ;;  %s4994_s1 = sld [smem:[#allocation4 + $0x8d]]  ;;  %v4996_v36 = vld [vmem:[#allocation2 + $0x7] sm:$0xff]  ;;  %v1366_v32 = vstv %s4970_s10 }
 0x199   :  { %7148 = sst [smem:[#allocation35_spill]] %s4982_s13 }
 0x19a   :  { %s3836_s28 = sld [smem:[#allocation4 + $0xd5]]  ;;  %v1403_v33 = vstv %s3831_s23 }
 0x19b   :  { %7149 = sst [smem:[#allocation36_spill]] %s4988_s27 }
 0x19c   :  { %852 = vrot.lane.b32.xlu0 %v850_v9, %s4364_s25  ;;  %1247 = vrot.lane.b32.xlu1 %v1245_v39, %s4364_s25  ;;  %7150 = sst [smem:[#allocation37_spill]] %s4990_s17  ;;  %v1367_v9 = vmul.f32 %v1366_v32, %v4996_v36  ;;  %v1383_v39 = vmul.f32 %v1382_v38, %v4999_v37  ;;  %v988_v32 = vstv %s4956_s8 }
 0x19d   :  { %s5003_s29 = sld [smem:[#allocation4 + $0x9d]] }
 0x19e   :  { %7151 = sst [smem:[#allocation38_spill]] %s4994_s1 }
 0x19f   :  { %s5005_s17 = sld [smem:[#allocation4 + $0xaf]] }
 0x1a0   :  { %1080 = vrot.lane.b32.xlu0 %v1078_v31, %s4364_s25  ;;  %966 = vrot.lane.b32.xlu1 %v964_v44, %s4364_s25  ;;  %s5007_s27 = sld [smem:[#allocation4 + $0xbf]]  ;;  %v1384_v31 = vadd.f32 %v1383_v39, %v1367_v9  ;;  %v1404_v44 = vmul.f32 %v1403_v33, %v5011_v41  ;;  %v1424_v47 = vstv %s3836_s28 }
 0x1a1   :  { %s3841_s10 = sld [smem:[#allocation4 + $0xd6]]  ;;  %v1425_v52 = vmul.f32 %v1424_v47, %v5020_v46  ;;  %v931_v47 = vstv %s4976_s22 }
 0x1a2   :  { %s5013_s19 = sld [smem:[#allocation4 + $0x8f]] }
 0x1a3   :  { %s5015_s1 = sld [smem:[#allocation4 + $0x9f]] }
 0x1a4   :  { %1308 = vrot.lane.b32.xlu0 %v1306_v50, %s4364_s25  ;;  %1194 = vrot.lane.b32.xlu1 %v1192_v51, %s4364_s25  ;;  %s5024_s23 = sld [smem:[#allocation4 + $0xc1]]  ;;  %v741_v50 = vstv %s4814_s14  ;;  %v1405_v51 = vadd.f32 %v1404_v44, %v1384_v31 }
 0x1a5   :  { %s5034_s28 = sld [smem:[#allocation4 + $0xd8]] }
 0x1a6   :  { %7152 = sst [smem:[#allocation39_spill]] %s5007_s27  ;;  %v1426_v5 = vadd.f32 %v1425_v52, %v1405_v51 }
 0x1a7   :  { %s5022_s27 = sld [smem:[#allocation4 + $0xd7]] }
 0x1a8   :  { %1027 = vrot.lane.b32.xlu0 %v1025_v54, %s4364_s25  ;;  %913 = vrot.lane.b32.xlu1 %v911_v56, %s4364_s25  ;;  %7153 = sst [smem:[#allocation40_spill]] %s5013_s19  ;;  %v1445_v54 = vstv %s3841_s10  ;;  %v797_v56 = vstv %s4819_s18 }
 0x1a9   :  { %s5026_s19 = sld [smem:[#allocation4 + $0xc3]]  ;;  %v1446_v8 = vmul.f32 %v1445_v54, %v5032_v53 }
 0x1aa   :  { %s5044_s14 = sld [smem:[#allocation4 + $0xe2]]  ;;  %v996_v20 = vstv %s5024_s23 }
 0x1ab   :  { %s5049_s18 = sld [smem:[#allocation4 + $0xa3]]  ;;  %v1487_v34 = vstv %s5034_s28 }
 0x1ac   :  { %1255 = vrot.lane.b32.xlu0 %v1253_v58, %s4364_s25  ;;  %1141 = vrot.lane.b32.xlu1 %v1139_v59, %s4364_s25  ;;  %v742_v58 = vmul.f32 %v741_v50, %v4737_v42  ;;  %v801_v59 = vstv %s4827_s20  ;;  %s7158_s10 = sld [smem:[#allocation25_spill]]  ;;  %v1488_v52 = vmul.f32 %v1487_v34, %v5079_v30 }
 0x1ad   :  { %s7160_s3 = sld [smem:[#allocation29_spill]] }
 0x1ae   :  { %s5068_s20 = sld [smem:[#allocation4 + $0xe3]] }
 0x1af   :  { %7155 = sst [smem:[#allocation42_spill]] %s5026_s19 }
 0x1b0   :  { %1088 = vrot.lane.b32.xlu0 %v1086_v62, %s4364_s25  ;;  %974 = vrot.lane.b32.xlu1 %v972_v2, %s4364_s25  ;;  %s5038_s19 = sld [smem:[#allocation4 + $0xe1]]  ;;  %v858_v62 = vstv %s4850_s30  ;;  %v750_v2 = vstv %s4842_s26 }
 0x1b1   :  { %7157 = sst [smem:[#allocation44_spill]] %s5049_s18  ;;  %v1386_v31 = vstv %s5044_s14 }
 0x1b2   :  { %s5062_s30 = sld [smem:[#allocation4 + $0xb3]]  ;;  %v809_v10 = vstv %s7158_s10 }
 0x1b3   :  { %s7166_s24 = sld [smem:[#allocation36_spill]] }
 0x1b4   :  { %1316 = vrot.lane.b32.xlu0 %v1314_v7, %s4364_s25  ;;  %1202 = vrot.lane.b32.xlu1 %v1200_v11, %s4364_s25  ;;  %v919_v11 = vstv %s4859_s5  ;;  %s5099_s28 = sld [smem:[#allocation4 + $0xb7]]  ;;  %v1407_v34 = vstv %s5068_s20 }
 0x1b5   :  { %s5106_s6 = sld [smem:[#allocation4 + $0xdb]]  ;;  %v1408_v9 = vmul.f32 %v1407_v34, %v5011_v41  ;;  %v5150_v34 = vld [vmem:[#allocation2 + $0x4f] sm:$0xff] }
 0x1b6   :  { %v1369_v33 = vstv %s5038_s19  ;;  %s7169_s19 = sld [smem:[#allocation39_spill]] }
 0x1b7   :  { %s5112_s26 = sld [smem:[#allocation4 + $0xc7]] }
 0x1b8   :  { %1149 = vrot.lane.b32.xlu0 %v1147_v14, %s4364_s25  ;;  %1035 = vrot.lane.b32.xlu1 %v1033_v15, %s4364_s25  ;;  %v1466_v14 = vstv %s5022_s27  ;;  %v980_v15 = vstv %s4910_s4  ;;  %s7162_s27 = sld [smem:[#allocation31_spill]] }
 0x1b9   :  { %s7164_s4 = sld [smem:[#allocation33_spill]]  ;;  %v1467_v26 = vmul.f32 %v1466_v14, %v5053_v12 }
 0x1ba   :  { %s5120_s13 = sld [smem:[#allocation4 + $0xe5]] }
 0x1bb   :  { %s5130_s20 = sld [smem:[#allocation4 + $0xdc]] }
 0x1bc   :  { %1096 = vrot.lane.b32.xlu0 %v1094_v17, %s4364_s25  ;;  %1263 = vrot.lane.b32.xlu1 %v1261_v19, %s4364_s25  ;;  %v866_v17 = vstv %s4922_s12  ;;  %v798_v19 = vmul.f32 %v797_v56, %v4739_v43  ;;  %s5088_s12 = sld [smem:[#allocation4 + $0xc5]]  ;;  %v935_v14 = vstv %s7169_s19 }
 0x1bd   :  { %s5138_s14 = sld [smem:[#allocation4 + $0xe6]] }
 0x1be   :  { %v813_v38 = vstv %s7162_s27  ;;  %s5171_s0 = sld [smem:[#allocation4 + $0xe7]] }
 0x1bf   :  { %v1049_v39 = vstv %s7164_s4  ;;  %s5200_s18 = sld [smem:[#allocation4 + $0xde]] }
 0x1c0   :  { %1324 = vrot.lane.b32.xlu0 %v1322_v22, %s4364_s25  ;;  %1210 = vrot.lane.b32.xlu1 %v1208_v23, %s4364_s25  ;;  %v927_v22 = vstv %s4932_s9  ;;  %s5082_s9 = sld [smem:[#allocation4 + $0xda]] }
 0x1c1   :  { %s5252_s5 = sld [smem:[#allocation4 + $0xdf]] }
 0x1c2   :  { %s7189_s22 = sld [smem:[#allocation22_spill]] }
 0x1c3   :  { %s7191_s19 = sld [smem:[#allocation26_spill]] }
 0x1c4   :  { %1271 = vrot.lane.b32.xlu0 %v1269_v49, %s4364_s25  ;;  %1157 = vrot.lane.b32.xlu1 %v1155_v25, %s4364_s25  ;;  %v1447_v25 = vadd.f32 %v1446_v8, %v1426_v5  ;;  %v1508_v5 = vstv %s5056_s21  ;;  %s7172_s21 = sld [smem:[#allocation42_spill]] }
 0x1c5   :  { %s7192_s8 = sld [smem:[#allocation30_spill]] }
 0x1c6   :  { %v1468_v51 = vadd.f32 %v1467_v26, %v1447_v25  ;;  %v859_v25 = vmul.f32 %v858_v62, %v4753_v13  ;;  %v5127_v62 = vld [vmem:[#allocation2 + $0x39] sm:$0xff]  ;;  %v1529_v26 = vstv %s5082_s9  ;;  %s5316_s9 = sld [smem:[#allocation4 + $0x11d]] }
 0x1c7   :  { %7173 = vst [vmem:[#allocation45_spill] sm:$0xff] %v5127_v62  ;;  %s7197_s4 = sld [smem:[#allocation35_spill]] }
 0x1c8   :  { %1332 = vrot.lane.b32.xlu0 %v1330_v28, %s4364_s25  ;;  %1218 = vrot.lane.b32.xlu1 %v1216_v29, %s4364_s25  ;;  %v1045_v28 = vstv %s4942_s2  ;;  %v870_v29 = vstv %s4946_s11  ;;  %s7167_s2 = sld [smem:[#allocation37_spill]]  ;;  %v1489_v56 = vadd.f32 %v1488_v52, %v1468_v51 }
 0x1c9   :  { %s5360_s23 = sld [smem:[#allocation4 + $0xf2]] }
 0x1ca   :  { %s5387_s11 = sld [smem:[#allocation4 + $0xed]] }
 0x1cb   :  { %s5441_s27 = sld [smem:[#allocation4 + $0xee]] }
 0x1cc   :  { %1340 = vrot.lane.b32.xlu0 %v1338_v35, %s4364_s25  ;;  %1279 = vrot.lane.b32.xlu1 %v1277_v27, %s4364_s25  ;;  %s5017_s25 = sld [smem:[#allocation4 + $0xb1]]  ;;  %v753_v35 = vstv %s7160_s3 }
 0x1cd   :  { %s5222_s3 = sld [smem:[#allocation4 + $0xe8]] }
 0x1d2   :  { %7154 = sst [smem:[#allocation41_spill]] %s5017_s25  ;;  %v760_v57 = vpop.permute.xlu1 %759 }
 0x1d3   :  { %s5030_s25 = sld [smem:[#allocation4 + $0xa1]]  ;;  %v762_v7 = vadd.f32 %v760_v57, %v742_v58  ;;  %v821_v23 = vpop.permute.xlu0 %820  ;;  %v5103_v58 = vld [vmem:[#allocation2 + $0x38] sm:$0xff] }
 0x1d4   :  { %s7171_s16 = sld [smem:[#allocation41_spill]] }
 0x1d5   :  { %v799_v1 = vadd.f32 %v798_v19, %v762_v7  ;;  %v874_v7 = vstv %s7167_s2  ;;  %v1370_v19 = vmul.f32 %v1369_v33, %v4996_v36  ;;  %v1509_v33 = vmul.f32 %v1508_v5, %v5103_v58  ;;  %s5276_s2 = sld [smem:[#allocation4 + $0xe9]] }
 0x1d6   :  { %v5070_v3 = vpop.permute.xlu1 %767  ;;  %v1428_v5 = vstv %s5094_s7  ;;  %s7227_s7 = sld [smem:[#allocation44_spill]] }
 0x1d7   :  { %v823_v54 = vadd.f32 %v821_v23, %v799_v1  ;;  %v1387_v23 = vmul.f32 %v1386_v31, %v4999_v37  ;;  %v1510_v31 = vadd.f32 %v1509_v33, %v1489_v56  ;;  %v745_v56 = vmul.f32 %v744_v48, %v4737_v42 }
 0x1d8   :  { %v1449_v1 = vstv %s5120_s13  ;;  %s7217_s13 = sld [smem:[#allocation40_spill]] }
 0x1d9   :  { %7156 = sst [smem:[#allocation43_spill]] %s5030_s25  ;;  %v860_v27 = vadd.f32 %v859_v25, %v823_v54  ;;  %v1388_v57 = vadd.f32 %v1387_v23, %v1370_v19  ;;  %v1530_v19 = vmul.f32 %v1529_v26, %v5127_v62  ;;  %v1550_v54 = vstv %s5106_s6  ;;  %v5197_v26 = vld [vmem:[#allocation2 + $0x50] sm:$0xff] }
 0x1da   :  { %v5108_v8 = vpop.permute.xlu1 %828  ;;  %s5153_s25 = sld [smem:[#allocation4 + $0xdd]]  ;;  %v5168_v23 = vmul.f32 %v747_v60, %v4737_v42 }
 0x1db   :  { %v1409_v33 = vadd.f32 %v1408_v9, %v1388_v57  ;;  %v5178_v9 = vmul.f32 %v805_v61, %v4739_v43  ;;  %v1531_v60 = vadd.f32 %v1530_v19, %v1510_v31  ;;  %v5195_v61 = vmul.f32 %v753_v35, %v4737_v42  ;;  %s5264_s6 = sld [smem:[#allocation4 + $0xe0]] }
 0x1dc   :  { %v863_v31 = vmul.f32 %v862_v40, %v4753_v13  ;;  %v5214_v35 = vmul.f32 %v923_v4, %v4756_v55  ;;  %v5219_v19 = vmul.f32 %v866_v17, %v4753_v13  ;;  %v1470_v40 = vstv %s5138_s14  ;;  %s7225_s10 = sld [smem:[#allocation43_spill]] }
 0x1dd   :  { %v5236_v4 = vmul.f32 %v870_v29, %v4753_v13  ;;  %s5448_s14 = sld [smem:[#allocation4 + $0xf4]] }
 0x1de   :  { %v5140_v25 = vpop.permute.xlu1 %775 }
 0x1e0   :  { %v1592_v29 = vstv %s5153_s25  ;;  %s5293_s25 = sld [smem:[#allocation4 + $0xf0]] }
 0x1e2   :  { %v882_v44 = vpop.permute.xlu0 %881 }
 0x1e3   :  { %v884_v51 = vadd.f32 %v882_v44, %v860_v27  ;;  %v920_v44 = vmul.f32 %v919_v11, %v4756_v55  ;;  %v1429_v27 = vmul.f32 %v1428_v5, %v5020_v46  ;;  %v802_v11 = vmul.f32 %v801_v59, %v4739_v43 }
 0x1e4   :  { %v5183_v59 = vmul.f32 %v750_v2, %v4737_v42  ;;  %v770_v5 = vadd.f32 %v5070_v3, %v745_v56  ;;  %v1571_v2 = vstv %s5130_s20  ;;  %v5208_v3 = vmul.f32 %v813_v38, %v4739_v43  ;;  %s5238_s20 = sld [smem:[#allocation4 + $0xcd]]  ;;  %v5249_v56 = vld [vmem:[#allocation2 + $0x51] sm:$0xff] }
 0x1e5   :  { %v921_v52 = vadd.f32 %v920_v44, %v884_v51  ;;  %v1551_v51 = vmul.f32 %v1550_v54, %v5150_v34  ;;  %v5190_v44 = vmul.f32 %v809_v10, %v4739_v43  ;;  %v1430_v10 = vadd.f32 %v1429_v27, %v1409_v33 }
 0x1e6   :  { %v943_v50 = vpop.permute.xlu0 %942  ;;  %v1450_v54 = vmul.f32 %v1449_v1, %v5032_v53  ;;  %v1572_v1 = vmul.f32 %v1571_v2, %v5197_v26  ;;  %v981_v27 = vmul.f32 %v980_v15, %v4765_v0  ;;  %v5257_v33 = vmul.f32 %v874_v7, %v4753_v13 }
 0x1e7   :  { %v945_v42 = vadd.f32 %v943_v50, %v921_v52  ;;  %v5231_v50 = vmul.f32 %v927_v22, %v4756_v55  ;;  %v1552_v17 = vadd.f32 %v1551_v51, %v1531_v60  ;;  %v803_v52 = vadd.f32 %v802_v11, %v770_v5 }
 0x1e8   :  { %v5247_v22 = vmul.f32 %v931_v47, %v4756_v55  ;;  %7187 = vst [vmem:[#allocation46_spill] sm:$0xff] %v5257_v33  ;;  %v5262_v11 = vmul.f32 %v935_v14, %v4756_v55  ;;  %v1451_v15 = vadd.f32 %v1450_v54, %v1430_v10  ;;  %v1471_v47 = vmul.f32 %v1470_v40, %v5053_v12 }
 0x1e9   :  { %v982_v60 = vadd.f32 %v981_v27, %v945_v42  ;;  %v1042_v51 = vmul.f32 %v1041_v16, %v4771_v6  ;;  %v5273_v5 = vmul.f32 %v984_v21, %v4765_v0  ;;  %v1491_v13 = vstv %s5171_s0  ;;  %v5301_v42 = vld [vmem:[#allocation2 + $0x67] sm:$0xff]  ;;  %s5304_s0 = sld [smem:[#allocation4 + $0xf1]] }
 0x1ea   :  { %v5142_v49 = vpop.permute.xlu0 %889  ;;  %7188 = vst [vmem:[#allocation47_spill] sm:$0xff] %v5262_v11  ;;  %v5285_v14 = vmul.f32 %v1045_v28, %v4771_v6  ;;  %v5290_v16 = vmul.f32 %v988_v32, %v4765_v0  ;;  %v1573_v21 = vadd.f32 %v1572_v1, %v1552_v17  ;;  %v1593_v2 = vmul.f32 %v1592_v29, %v5249_v56 }
 0x1eb   :  { %v831_v10 = vadd.f32 %v5108_v8, %v803_v52  ;;  %v5299_v28 = vmul.f32 %v1049_v39, %v4771_v6  ;;  %v1613_v32 = vstv %s5200_s18  ;;  %v7193_v40 = vstv %s7166_s24  ;;  %s5333_s24 = sld [smem:[#allocation4 + $0xea]] }
 0x1ec   :  { %v5309_v17 = vmul.f32 %v7193_v40, %v4765_v0  ;;  %v7195_v1 = vstv %s5005_s17  ;;  %v1472_v8 = vadd.f32 %v1471_v47, %v1451_v15  ;;  %v1492_v39 = vmul.f32 %v1491_v13, %v5079_v30  ;;  %s5350_s17 = sld [smem:[#allocation4 + $0xeb]] }
 0x1ed   :  { %7190 = vst [vmem:[#allocation48_spill] sm:$0xff] %v5299_v28  ;;  %v5314_v27 = vmul.f32 %v7195_v1, %v4771_v6  ;;  %v5325_v29 = vmul.f32 %v996_v20, %v4765_v0  ;;  %v1512_v1 = vstv %s5222_s3  ;;  %v7202_v13 = vstv %s7191_s19  ;;  %s5409_s18 = sld [smem:[#allocation4 + $0xff]] }
 0x1ee   :  { %v5173_v48 = vpop.permute.xlu0 %836  ;;  %v1004_v57 = vpop.permute.xlu1 %1003  ;;  %7194 = vst [vmem:[#allocation49_spill] sm:$0xff] %v5309_v17  ;;  %v7203_v0 = vstv %s7192_s8  ;;  %v1634_v17 = vstv %s5252_s5  ;;  %s5435_s3 = sld [smem:[#allocation4 + $0xce]] }
 0x1ef   :  { %v1006_v54 = vadd.f32 %v1004_v57, %v982_v60  ;;  %7196 = vst [vmem:[#allocation50_spill] sm:$0xff] %v5314_v27  ;;  %v7198_v57 = vstv %s7189_s22  ;;  %7199 = vst [vmem:[#allocation51_spill] sm:$0xff] %v5325_v29  ;;  %v7200_v60 = vstv %s7172_s21  ;;  %v5347_v20 = vmul.f32 %v7203_v0, %v4787_v18  ;;  %s5373_s21 = sld [smem:[#allocation4 + $0xec]] }
 0x1f0   :  { %v1103_v52 = vmul.f32 %v7198_v57, %v4787_v18  ;;  %v5330_v40 = vmul.f32 %v7200_v60, %v4771_v6  ;;  %v5342_v57 = vmul.f32 %v7202_v13, %v4805_v24  ;;  %v1594_v6 = vadd.f32 %v1593_v2, %v1573_v21  ;;  %v5357_v13 = vld [vmem:[#allocation2 + $0x68] sm:$0xff]  ;;  %s5457_s5 = sld [smem:[#allocation4 + $0xf5]] }
 0x1f1   :  { %v1614_v60 = vmul.f32 %v1613_v32, %v5301_v42  ;;  %v1043_v29 = vadd.f32 %v1042_v51, %v1006_v54  ;;  %v7204_v27 = vstv %s7197_s4  ;;  %v7205_v21 = vstv %s5003_s29  ;;  %s7214_s29 = sld [smem:[#allocation34_spill]] }
 0x1f2   :  { %v5224_v43 = vpop.permute.xlu0 %1064  ;;  %v5226_v38 = vpop.permute.xlu1 %950  ;;  %7201 = vst [vmem:[#allocation52_spill] sm:$0xff] %v5330_v40  ;;  %v864_v40 = vadd.f32 %v863_v31, %v831_v10  ;;  %v5355_v11 = vmul.f32 %v7204_v27, %v4805_v24  ;;  %v5365_v2 = vmul.f32 %v7205_v21, %v4787_v18  ;;  %v7207_v32 = vstv %s5015_s1  ;;  %s7213_s1 = sld [smem:[#allocation32_spill]] }
 0x1f3   :  { %v5370_v0 = vmul.f32 %v7207_v32, %v4805_v24  ;;  %v1493_v31 = vadd.f32 %v1492_v39, %v1472_v8  ;;  %v1513_v51 = vmul.f32 %v1512_v1, %v5103_v58  ;;  %v7209_v54 = vstv %s7171_s16  ;;  %s7215_s16 = sld [smem:[#allocation38_spill]] }
 0x1f4   :  { %7206 = vst [vmem:[#allocation53_spill] sm:$0xff] %v5365_v2  ;;  %v892_v10 = vadd.f32 %v5142_v49, %v864_v40  ;;  %v5379_v27 = vmul.f32 %v7209_v54, %v4787_v18  ;;  %v7211_v21 = vstv %s5062_s30  ;;  %v1533_v32 = vstv %s5276_s2  ;;  %s5400_s30 = sld [smem:[#allocation4 + $0xf3]] }
 0x1f5   :  { %7208 = vst [vmem:[#allocation54_spill] sm:$0xff] %v5370_v0  ;;  %v5384_v2 = vmul.f32 %v7211_v21, %v4805_v24  ;;  %v1615_v1 = vadd.f32 %v1614_v60, %v1594_v6  ;;  %v1635_v49 = vmul.f32 %v1634_v17, %v5357_v13  ;;  %v1655_v40 = vstv %s5264_s6  ;;  %s5467_s6 = sld [smem:[#allocation4 + $0x101]] }
 0x1f6   :  { %v5278_v55 = vpop.permute.xlu0 %897  ;;  %v5280_v7 = vpop.permute.xlu1 %783  ;;  %7210 = vst [vmem:[#allocation55_spill] sm:$0xff] %v5379_v27  ;;  %v7216_v54 = vstv %s5088_s12  ;;  %v778_v24 = vadd.f32 %v5140_v25, %v5168_v23  ;;  %v1067_v21 = vadd.f32 %v5224_v43, %v1043_v29  ;;  %v1372_v6 = vstv %s5293_s25  ;;  %s5422_s12 = sld [smem:[#allocation4 + $0x100]] }
 0x1f7   :  { %7212 = vst [vmem:[#allocation56_spill] sm:$0xff] %v5384_v2  ;;  %v5398_v27 = vmul.f32 %v7216_v54, %v4787_v18  ;;  %v5405_v2 = vld [vmem:[#allocation2 + $0x69] sm:$0xff]  ;;  %v1390_v60 = vstv %s5304_s0  ;;  %v7221_v18 = vstv %s7214_s29  ;;  %v1534_v33 = vmul.f32 %v1533_v32, %v5127_v62  ;;  %s5475_s2 = sld [smem:[#allocation4 + $0x102]] }
 0x1f8   :  { %7219 = vst [vmem:[#allocation58_spill] sm:$0xff] %v5405_v2  ;;  %v7220_v17 = vstv %s7213_s1  ;;  %v5419_v54 = vmul.f32 %v7221_v18, %v4854_v45  ;;  %v925_v25 = vadd.f32 %v5214_v35, %v892_v10  ;;  %v7224_v29 = vstv %s7217_s13  ;;  %s5484_s22 = sld [smem:[#allocation4 + $0x10e]] }
 0x1f9   :  { %7218 = vst [vmem:[#allocation57_spill] sm:$0xff] %v5398_v27  ;;  %v5414_v0 = vmul.f32 %v7220_v17, %v4835_v63  ;;  %v1514_v27 = vadd.f32 %v1513_v51, %v1493_v31  ;;  %v7222_v23 = vstv %s7215_s16  ;;  %v5433_v17 = vmul.f32 %v7224_v29, %v4854_v45  ;;  %s5491_s25 = sld [smem:[#allocation4 + $0x10f]] }
 0x1fa   :  { %v5335_v15 = vpop.permute.xlu0 %1125  ;;  %v5337_v47 = vpop.permute.xlu1 %1011  ;;  %v5428_v43 = vmul.f32 %v7222_v23, %v4835_v63  ;;  %v1554_v18 = vstv %s5333_s24  ;;  %v1636_v32 = vadd.f32 %v1635_v49, %v1615_v1  ;;  %v1656_v62 = vmul.f32 %v1655_v40, %v5405_v2  ;;  %s5499_s19 = sld [smem:[#allocation4 + $0xf6]] }
 0x1fb   :  { %7226 = vst [vmem:[#allocation60_spill] sm:$0xff] %v5433_v17  ;;  %v1373_v35 = vmul.f32 %v1372_v6, %v4996_v36  ;;  %v1391_v10 = vmul.f32 %v1390_v60, %v4999_v37  ;;  %v807_v23 = vadd.f32 %v5178_v9, %v778_v24  ;;  %v953_v29 = vadd.f32 %v5226_v38, %v925_v25  ;;  %s5504_s8 = sld [smem:[#allocation4 + $0x103]] }
 0x1fc   :  { %7223 = vst [vmem:[#allocation59_spill] sm:$0xff] %v5428_v43  ;;  %v1104_v17 = vadd.f32 %v1103_v52, %v1067_v21  ;;  %v1411_v43 = vstv %s5360_s23  ;;  %v7228_v1 = vstv %s7225_s10  ;;  %v1535_v40 = vadd.f32 %v1534_v33, %v1514_v27  ;;  %s5511_s0 = sld [smem:[#allocation4 + $0x110]] }
 0x1fd   :  { %v5453_v49 = vmul.f32 %v7228_v1, %v4835_v63  ;;  %v1555_v2 = vmul.f32 %v1554_v18, %v5150_v34  ;;  %v1575_v28 = vstv %s5350_s17  ;;  %v839_v9 = vadd.f32 %v5173_v48, %v807_v23  ;;  %s5526_s4 = sld [smem:[#allocation4 + $0x104]] }
 0x1fe   :  { %v5389_v8 = vpop.permute.xlu0 %958  ;;  %v5391_v39 = vpop.permute.xlu1 %844  ;;  %v1128_v38 = vadd.f32 %v5335_v15, %v1104_v17  ;;  %v1345_v52 = vstv %s5238_s20  ;;  %v7229_v24 = vstv %s7227_s7  ;;  %v1657_v27 = vadd.f32 %v1656_v62, %v1636_v32  ;;  %s5534_s24 = sld [smem:[#allocation4 + $0x111]] }
 0x1ff   :  { %v5465_v21 = vmul.f32 %v7229_v24, %v4854_v45  ;;  %v1675_v6 = vstv %s5316_s9  ;;  %v1392_v60 = vadd.f32 %v1391_v10, %v1373_v35  ;;  %v1412_v48 = vmul.f32 %v1411_v43, %v5011_v41  ;;  %s5519_s9 = sld [smem:[#allocation4 + $0xf7]] }
 0x200   :  { %v986_v15 = vadd.f32 %v5273_v5, %v953_v29  ;;  %v1576_v45 = vmul.f32 %v1575_v28, %v5197_v26  ;;  %v1596_v25 = vstv %s5373_s21  ;;  %v1432_v17 = vstv %s5400_s30  ;;  %s5541_s17 = sld [smem:[#allocation4 + $0xf8]] }
 0x201   :  { %v1556_v18 = vadd.f32 %v1555_v2, %v1535_v40  ;;  %v1617_v23 = vstv %s5387_s11  ;;  %v1375_v1 = vstv %s5409_s18  ;;  %v1394_v24 = vstv %s5422_s12  ;;  %s5548_s23 = sld [smem:[#allocation4 + $0xef]] }
 0x202   :  { %v1187_v31 = vpop.permute.xlu0 %1186  ;;  %v5438_v51 = vpop.permute.xlu1 %1072  ;;  %v868_v62 = vadd.f32 %v5219_v19, %v839_v9  ;;  %v786_v43 = vadd.f32 %v5280_v7, %v5183_v59  ;;  %v1014_v32 = vadd.f32 %v5337_v47, %v986_v15  ;;  %v1165_v5 = vadd.f32 %v5342_v57, %v1128_v38  ;;  %s5551_s21 = sld [smem:[#allocation4 + $0x105]] }
 0x203   :  { %v1349_v2 = vstv %s5435_s3  ;;  %v5496_v10 = vadd.f32 %v1675_v6, %v1657_v27  ;;  %v1413_v29 = vadd.f32 %v1412_v48, %v1392_v60  ;;  %v1433_v19 = vmul.f32 %v1432_v17, %v5020_v46  ;;  %s5559_s1 = sld [smem:[#allocation4 + $0x112]] }
 0x204   :  { %v900_v59 = vadd.f32 %v5278_v55, %v868_v62  ;;  %v1189_v7 = vadd.f32 %v1187_v31, %v1165_v5  ;;  %v1597_v47 = vmul.f32 %v1596_v25, %v5249_v56  ;;  %v1453_v57 = vstv %s5448_s14  ;;  %s5563_s29 = sld [smem:[#allocation4 + $0xf9]] }
 0x205   :  { %v1577_v40 = vadd.f32 %v1576_v45, %v1556_v18  ;;  %v5507_v9 = vmul.f32 %v1617_v23, %v5301_v42  ;;  %v1376_v38 = vmul.f32 %v1375_v1, %v4996_v36  ;;  %v1395_v27 = vmul.f32 %v1394_v24, %v4999_v37  ;;  %s5569_s11 = sld [smem:[#allocation4 + $0x106]] }
 0x206   :  { %v5469_v63 = vpop.permute.xlu0 %905  ;;  %v5471_v33 = vpop.permute.xlu1 %791  ;;  %v811_v55 = vadd.f32 %v5190_v44, %v786_v43  ;;  %v1047_v31 = vadd.f32 %v5285_v14, %v1014_v32  ;;  %v1638_v6 = vstv %s5441_s27  ;;  %v1415_v60 = vstv %s5467_s6  ;;  %s5577_s16 = sld [smem:[#allocation4 + $0x113]] }
 0x207   :  { %v1434_v25 = vadd.f32 %v1433_v19, %v1413_v29  ;;  %v1454_v45 = vmul.f32 %v1453_v57, %v5032_v53  ;;  %v1474_v17 = vstv %s5457_s5  ;;  %v1436_v18 = vstv %s5475_s2  ;;  %s5581_s13 = sld [smem:[#allocation4 + $0xfa]] }
 0x208   :  { %v929_v23 = vadd.f32 %v5231_v50, %v900_v59  ;;  %v847_v1 = vadd.f32 %v5391_v39, %v811_v55  ;;  %v1075_v44 = vadd.f32 %v5438_v51, %v1047_v31  ;;  %v1226_v14 = vadd.f32 %v5414_v0, %v1189_v7  ;;  %s5585_s20 = sld [smem:[#allocation4 + $0x107]] }
 0x209   :  { %v5528_v24 = vadd.f32 %v1597_v47, %v1577_v40  ;;  %v5531_v62 = vmul.f32 %v1638_v6, %v5357_v13  ;;  %v1396_v43 = vadd.f32 %v1395_v27, %v1376_v38  ;;  %v1416_v32 = vmul.f32 %v1415_v60, %v5011_v41  ;;  %s5592_s30 = sld [smem:[#allocation4 + $0x114]] }
 0x20a   :  { %v1134_v28 = vpop.permute.xlu0 %1133  ;;  %v5493_v35 = vpop.permute.xlu1 %1019  ;;  %v961_v50 = vadd.f32 %v5389_v8, %v929_v23  ;;  %v1378_v51 = vstv %s5484_s22  ;;  %v1398_v5 = vstv %s5491_s25  ;;  %v1455_v19 = vadd.f32 %v1454_v45, %v1434_v25  ;;  %s5598_s18 = sld [smem:[#allocation4 + $0xfb]] }
 0x20b   :  { %v1475_v59 = vmul.f32 %v1474_v17, %v5053_v12  ;;  %v1495_v7 = vstv %s5499_s19  ;;  %v1437_v47 = vmul.f32 %v1436_v18, %v5020_v46  ;;  %v872_v57 = vadd.f32 %v5236_v4, %v847_v1  ;;  %s5603_s12 = sld [smem:[#allocation4 + $0x108]] }
 0x20c   :  { %v794_v40 = vadd.f32 %v5471_v33, %v5195_v61  ;;  %v1108_v8 = vadd.f32 %v5347_v20, %v1075_v44  ;;  %v1457_v38 = vstv %s5504_s8  ;;  %v1417_v27 = vadd.f32 %v1416_v32, %v1396_v43  ;;  %s5607_s10 = sld [smem:[#allocation4 + $0x115]] }
 0x20d   :  { %v1379_v55 = vmul.f32 %v1378_v51, %v4996_v36  ;;  %v1399_v31 = vmul.f32 %v1398_v5, %v4999_v37  ;;  %v1419_v6 = vstv %s5511_s0  ;;  %v908_v4 = vadd.f32 %v5469_v63, %v872_v57  ;;  %v7231_v57 = vld [vmem:[#allocation46_spill] sm:$0xff]  ;;  %s5618_s27 = sld [smem:[#allocation4 + $0xfc]]  ;;  %s7243_s0 = smov 1  }
 0x20e   :  { %v853_v48 = vpop.permute.xlu0 %852  ;;  %v1248_v15 = vpop.permute.xlu1 %1247  ;;  %v1136_v60 = vadd.f32 %v1134_v28, %v1108_v8  ;;  %v990_v61 = vadd.f32 %v5290_v16, %v961_v50  ;;  %v1476_v25 = vadd.f32 %v1475_v59, %v1455_v19  ;;  %v1496_v36 = vmul.f32 %v1495_v7, %v5079_v30  ;;  %s5623_s7 = sld [smem:[#allocation4 + $0x109]] }
 0x20f   :  { %v1250_v39 = vadd.f32 %v1248_v15, %v1226_v14  ;;  %v1516_v45 = vstv %s5519_s9  ;;  %v1458_v37 = vmul.f32 %v1457_v38, %v5032_v53  ;;  %v815_v16 = vadd.f32 %v5208_v3, %v794_v40  ;;  %s5627_s14 = sld [smem:[#allocation4 + $0x116]] }
 0x210   :  { %v1022_v63 = vadd.f32 %v5493_v35, %v990_v61  ;;  %v1438_v17 = vadd.f32 %v1437_v47, %v1417_v27  ;;  %v1400_v18 = vadd.f32 %v1399_v31, %v1379_v55  ;;  %v1420_v23 = vmul.f32 %v1419_v6, %v5011_v41  ;;  %v7232_v6 = vld [vmem:[#allocation45_spill] sm:$0xff]  ;;  %s5631_s5 = sld [smem:[#allocation4 + $0x11e]] }
 0x211   :  { %v1287_v20 = vadd.f32 %v5419_v54, %v1250_v39  ;;  %v1478_v54 = vstv %s5526_s4  ;;  %v1440_v1 = vstv %s5534_s24  ;;  %v855_v44 = vadd.f32 %v853_v48, %v815_v16  ;;  %s5636_s6 = sld [smem:[#allocation4 + $0xfd]] }
 0x212   :  { %v1081_v29 = vpop.permute.xlu0 %1080  ;;  %v967_v0 = vpop.permute.xlu1 %966  ;;  %v933_v14 = vadd.f32 %v5247_v22, %v908_v4  ;;  %v1169_v35 = vadd.f32 %v5355_v11, %v1136_v60  ;;  %v1497_v50 = vadd.f32 %v1496_v36, %v1476_v25  ;;  %v1517_v39 = vmul.f32 %v1516_v45, %v5103_v58  ;;  %v7230_v22 = vld [vmem:[#allocation48_spill] sm:$0xff]  ;;  %s5641_s2 = sld [smem:[#allocation4 + $0x10a]] }
 0x213   :  { %v1537_v51 = vstv %s5541_s17  ;;  %v1479_v41 = vmul.f32 %v1478_v54, %v5053_v12  ;;  %v1051_v48 = vadd.f32 %v7230_v22, %v1022_v63  ;;  %v1459_v11 = vadd.f32 %v1458_v37, %v1438_v17  ;;  %v7235_v63 = vld [vmem:[#allocation53_spill] sm:$0xff]  ;;  %s5645_s22 = sld [smem:[#allocation4 + $0x117]] }
 0x214   :  { %v1499_v19 = vstv %s5551_s21  ;;  %v1421_v59 = vadd.f32 %v1420_v23, %v1400_v18  ;;  %v1441_v7 = vmul.f32 %v1440_v1, %v5020_v46  ;;  %v876_v40 = vadd.f32 %v7231_v57, %v855_v44  ;;  %v7233_v46 = vld [vmem:[#allocation49_spill] sm:$0xff]  ;;  %v7236_v23 = vld [vmem:[#allocation58_spill] sm:$0xff]  ;;  %s5651_s25 = sld [smem:[#allocation4 + $0xcf]] }
 0x215   :  { %v1083_v47 = vadd.f32 %v1081_v29, %v1051_v48  ;;  %v1659_v8 = vstv %s5548_s23  ;;  %v1461_v38 = vstv %s5559_s1  ;;  %v1619_v55 = vadd.f32 %v5507_v9, %v5528_v24  ;;  %s5655_s19 = sld [smem:[#allocation4 + $0xfe]] }
 0x216   :  { %v1309_v33 = vpop.permute.xlu0 %1308  ;;  %v1195_v15 = vpop.permute.xlu1 %1194  ;;  %v1518_v31 = vadd.f32 %v1517_v39, %v1497_v50  ;;  %v1538_v4 = vmul.f32 %v1537_v51, %v7232_v6  ;;  %v1558_v60 = vstv %s5563_s29  ;;  %v1480_v25 = vadd.f32 %v1479_v41, %v1459_v11  ;;  %v7238_v41 = vld [vmem:[#allocation50_spill] sm:$0xff]  ;;  %s5659_s3 = sld [smem:[#allocation4 + $0x10b]] }
 0x217   :  { %v1311_v28 = vadd.f32 %v1309_v33, %v1287_v20  ;;  %v1197_v5 = vadd.f32 %v1195_v15, %v1169_v35  ;;  %v7234_v20 = vld [vmem:[#allocation59_spill] sm:$0xff]  ;;  %v1500_v15 = vmul.f32 %v1499_v19, %v5079_v30  ;;  %v1520_v36 = vstv %s5569_s11  ;;  %s5664_s8 = sld [smem:[#allocation4 + $0x118]] }
 0x218   :  { %v1442_v45 = vadd.f32 %v1441_v7, %v1421_v59  ;;  %v1462_v9 = vmul.f32 %v1461_v38, %v5032_v53  ;;  %v1112_v16 = vadd.f32 %v7235_v63, %v1083_v47  ;;  %v5612_v18 = vadd.f32 %v5531_v62, %v1619_v55  ;;  %v7240_v38 = vld [vmem:[#allocation54_spill] sm:$0xff]  ;;  %s5677_s9 = sld [smem:[#allocation4 + $0xc9]] }
 0x219   :  { %v1346_v43 = vadd.f32 %v1345_v52, %v1311_v28  ;;  %v969_v52 = vadd.f32 %v967_v0, %v933_v14  ;;  %v1230_v33 = vadd.f32 %v7234_v20, %v1197_v5  ;;  %v1482_v28 = vstv %s5577_s16  ;;  %v7241_v20 = vld [vmem:[#allocation51_spill] sm:$0xff]  ;;  %s5680_s4 = sld [smem:[#allocation4 + $0xcb]] }
 0x21a   :  { %v1028_v3 = vpop.permute.xlu0 %1027  ;;  %v914_v32 = vpop.permute.xlu1 %913  ;;  %v5615_v1 = vmul.f32 %v1659_v8, %v7236_v23  ;;  %v1539_v44 = vadd.f32 %v1538_v4, %v1518_v31  ;;  %v1559_v14 = vmul.f32 %v1558_v60, %v5150_v34  ;;  %v1501_v50 = vadd.f32 %v1500_v15, %v1480_v25  ;;  %s5691_s24 = sld [smem:[#allocation4 + $0xd0]] }
 0x21b   :  { %4261 = vtanh.f32 %v1346_v43  ;;  %v994_v29 = vadd.f32 %v7233_v46, %v969_v52  ;;  %v916_v61 = vadd.f32 %v914_v32, %v876_v40  ;;  %v7237_v43 = vld [vmem:[#allocation47_spill] sm:$0xff]  ;;  %v1541_v32 = vstv %s5585_s20  ;;  %v7239_v52 = vld [vmem:[#allocation60_spill] sm:$0xff]  ;;  %s5696_s17 = sld [smem:[#allocation4 + $0x119]] }
 0x21c   :  { %v1521_v62 = vmul.f32 %v1520_v36, %v5103_v58  ;;  %v1463_v39 = vadd.f32 %v1462_v9, %v1442_v45  ;;  %v1483_v51 = vmul.f32 %v1482_v28, %v5053_v12  ;;  %v1503_v11 = vstv %s5592_s30  ;;  %s5700_s23 = sld [smem:[#allocation4 + $0x10d]] }
 0x21d   :  { %v1030_v24 = vadd.f32 %v1028_v3, %v994_v29  ;;  %v937_v35 = vadd.f32 %v7237_v43, %v916_v61  ;;  %v1579_v3 = vstv %s5581_s13  ;;  %v1560_v7 = vadd.f32 %v1559_v14, %v1539_v44  ;;  %v7244_v14 = vld [vmem:[#allocation52_spill] sm:$0xff]  ;;  %s5705_s21 = sld [smem:[#allocation4 + $0x11f]] }
 0x21e   :  { %v1256_v27 = vpop.permute.xlu0 %1255  ;;  %v1142_v0 = vpop.permute.xlu1 %1141  ;;  %v1580_v47 = vmul.f32 %v1579_v3, %v5197_v26  ;;  %v1600_v57 = vstv %s5598_s18  ;;  %v1542_v12 = vmul.f32 %v1541_v32, %v7232_v6  ;;  %v1522_v31 = vadd.f32 %v1521_v62, %v1501_v50  ;;  %v5669_v50 = vld [vmem:[#allocation3 + $0x67] sm:$0xff]  ;;  %s5713_s1 = sld [smem:[#allocation4 + $0x11a]] }
 0x21f   :  { %v1258_v37 = vadd.f32 %v1256_v27, %v1230_v33  ;;  %v1144_v53 = vadd.f32 %v1142_v0, %v1112_v16  ;;  %v1055_v22 = vadd.f32 %v7238_v41, %v1030_v24  ;;  %v1562_v0 = vstv %s5603_s12  ;;  %s5729_s29 = sld [smem:[#allocation4 + $0x120]] }
 0x220   :  { %v1484_v4 = vadd.f32 %v1483_v51, %v1463_v39  ;;  %v1504_v60 = vmul.f32 %v1503_v11, %v5079_v30  ;;  %v1524_v46 = vstv %s5607_s10  ;;  %v1581_v45 = vadd.f32 %v1580_v47, %v1560_v7  ;;  %v7246_v7 = vld [vmem:[#allocation56_spill] sm:$0xff]  ;;  %s3895_s11 = sld [smem:[#allocation4 + $0x11c]] }
 0x221   :  { %v1291_v5 = vadd.f32 %v7239_v52, %v1258_v37  ;;  %v1173_v27 = vadd.f32 %v7240_v38, %v1144_v53  ;;  %v1601_v9 = vmul.f32 %v1600_v57, %v5249_v56  ;;  %v1621_v30 = vstv %s5618_s27  ;;  %s3900_s16 = sld [smem:[#allocation4 + $0x121]] }
 0x222   :  { %v1089_v54 = vpop.permute.xlu0 %1088  ;;  %v975_v17 = vpop.permute.xlu1 %974  ;;  %v1563_v24 = vmul.f32 %v1562_v0, %v5150_v34  ;;  %v1583_v28 = vstv %s5623_s7  ;;  %v7245_v62 = vstv %s5075_s15  ;;  %v1661_v39 = vadd.f32 %v5615_v1, %v5612_v18  ;;  %s5685_s15 = sld [smem:[#allocation4 + $0x10c]] }
 0x223   :  { %v977_v48 = vadd.f32 %v975_v17, %v937_v35  ;;  %v1091_v40 = vadd.f32 %v1089_v54, %v1055_v22  ;;  %v1525_v54 = vmul.f32 %v1524_v46, %v5103_v58  ;;  %v1545_v17 = vstv %s5627_s14  ;;  %s5744_s13 = sld [smem:[#allocation4 + $0x1f4]] }
 0x224   :  { %v1505_v35 = vadd.f32 %v1504_v60, %v1484_v4  ;;  %v1237_v58 = vmul.f32 %v5669_v50, %v7245_v62  ;;  %v1680_v51 = vstv %s5631_s5  ;;  %v1622_v41 = vmul.f32 %v1621_v30, %v5301_v42  ;;  %s5746_s20 = sld [smem:[#allocation4 + $0x20d]] }
 0x225   :  { %v998_v33 = vadd.f32 %v7241_v20, %v977_v48  ;;  %v1602_v22 = vadd.f32 %v1601_v9, %v1581_v45  ;;  %v1642_v48 = vstv %s5636_s6  ;;  %v1584_v52 = vmul.f32 %v1583_v28, %v5197_v26  ;;  %v4292_v9 = vld [vmem:[#allocation3 + $0x68] sm:$0xff]  ;;  %s5748_s30 = sld [smem:[#allocation4 + $0x226]] }
 0x226   :  { %v1317_v19 = vpop.permute.xlu0 %1316  ;;  %v1203_v59 = vpop.permute.xlu1 %1202  ;;  %v1604_v11 = vstv %s5641_s2  ;;  %v1546_v18 = vmul.f32 %v1545_v17, %v7232_v6  ;;  %v1566_v1 = vstv %s5645_s22  ;;  %v1526_v57 = vadd.f32 %v1525_v54, %v1505_v35  ;;  %s5750_s18 = sld [smem:[#allocation4 + $0x23f]] }
 0x227   :  { %v1319_v8 = vadd.f32 %v1317_v19, %v1291_v5  ;;  %v1205_v61 = vadd.f32 %v1203_v59, %v1173_v27  ;;  %v1681_v38 = vadd.f32 %v1680_v51, %v1661_v39  ;;  %v1643_v27 = vmul.f32 %v1642_v48, %v5357_v13  ;;  %s5752_s12 = sld [smem:[#allocation4 + $0x258]] }
 0x228   :  { %v4262_v55 = vpop.eup %4261  ;;  %v1663_v0 = vstv %s5655_s19  ;;  %v1625_v60 = vstv %s5659_s3  ;;  %v1567_v46 = vmul.f32 %v1566_v1, %v5150_v34  ;;  %v7248_v30 = vstv %s5099_s28  ;;  %s5723_s28 = sld [smem:[#allocation4 + $0x11b]] }
 0x229   :  { %v1350_v29 = vadd.f32 %v1349_v2, %v1319_v8  ;;  %v1677_v15 = vadd.f32 %v4262_v55, %v5496_v10  ;;  %v7242_v2 = vld [vmem:[#allocation55_spill] sm:$0xff]  ;;  %v1543_v10 = vadd.f32 %v1542_v12, %v1522_v31  ;;  %v1234_v43 = vadd.f32 %v5453_v49, %v1205_v61  ;;  %s5754_s10 = sld [smem:[#allocation4 + $0x1f5]] }
 0x22a   :  { %v1150_v25 = vpop.permute.xlu0 %1149  ;;  %v1036_v36 = vpop.permute.xlu1 %1035  ;;  %v1116_v37 = vadd.f32 %v7242_v2, %v1091_v40  ;;  %v1353_v12 = vstv %s5651_s25  ;;  %v1605_v31 = vmul.f32 %v1604_v11, %v5249_v56  ;;  %v4293_v2 = vld [vmem:[#allocation3 + $0x50] sm:$0xff]  ;;  %v1664_v34 = vmul.f32 %v1663_v0, %v7236_v23  ;;  %s5756_s27 = sld [smem:[#allocation4 + $0x20e]] }
 0x22b   :  { %4263 = vtanh.f32 %v1350_v29  ;;  %v1038_v63 = vadd.f32 %v1036_v36, %v998_v33  ;;  %v1678_v16 = vmax.f32 %v1677_v15, 0.0  ;;  %v1564_v5 = vadd.f32 %v1563_v24, %v1543_v10  ;;  %v7247_v33 = vld [vmem:[#allocation57_spill] sm:$0xff]  ;;  %s5758_s7 = sld [smem:[#allocation4 + $0x227]] }
 0x22c   :  { %v1152_v44 = vadd.f32 %v1150_v25, %v1116_v37  ;;  %v1587_v29 = vstv %s5664_s8  ;;  %v1547_v25 = vadd.f32 %v1546_v18, %v1526_v57  ;;  %v1298_v24 = vmul.f32 %v4292_v9, %v7248_v30  ;;  %s5760_s14 = sld [smem:[#allocation4 + $0x240]] }
 0x22d   :  { %1700 = vrot.lane.b32.xlu1 %v1678_v16, %s7243_s0  ;;  %v1059_v53 = vadd.f32 %v7244_v14, %v1038_v63  ;;  %v1585_v4 = vadd.f32 %v1584_v52, %v1564_v5  ;;  %v7249_v37 = vstv %s5112_s26  ;;  %v1240_v16 = vstv %s5677_s9  ;;  %s5718_s26 = sld [smem:[#allocation4 + $0xd1]] }
 0x22e   :  { %v1097_v3 = vpop.permute.xlu0 %1096  ;;  %v1264_v32 = vpop.permute.xlu1 %1263  ;;  %v1177_v47 = vadd.f32 %v7246_v7, %v1152_v44  ;;  %v1180_v63 = vmul.f32 %v4293_v2, %v7249_v37  ;;  %v1626_v14 = vmul.f32 %v1625_v60, %v5301_v42  ;;  %v1568_v62 = vadd.f32 %v1567_v46, %v1547_v25  ;;  %s5762_s5 = sld [smem:[#allocation4 + $0x259]] }
 0x22f   :  { %v1266_v49 = vadd.f32 %v1264_v32, %v1234_v43  ;;  %v1099_v19 = vadd.f32 %v1097_v3, %v1059_v53  ;;  %v1606_v44 = vadd.f32 %v1605_v31, %v1585_v4  ;;  %v1646_v53 = vstv %s5685_s15  ;;  %s5764_s6 = sld [smem:[#allocation4 + $0x1f6]] }
 0x230   :  { %v1588_v43 = vmul.f32 %v1587_v29, %v5197_v26  ;;  %v1241_v26 = vmul.f32 %v5669_v50, %v1240_v16  ;;  %v1647_v18 = vmul.f32 %v1646_v53, %v5357_v13  ;;  %v1667_v1 = vstv %s5700_s23  ;;  %s5766_s2 = sld [smem:[#allocation4 + $0x20f]] }
 0x231   :  { %v1295_v59 = vadd.f32 %v5465_v21, %v1266_v49  ;;  %v1623_v21 = vadd.f32 %v1622_v41, %v1602_v22  ;;  %v1120_v15 = vadd.f32 %v7247_v33, %v1099_v19  ;;  %v1301_v41 = vstv %s5680_s4  ;;  %s5768_s22 = sld [smem:[#allocation4 + $0x228]] }
 0x232   :  { %v1325_v40 = vpop.permute.xlu0 %1324  ;;  %v1211_v8 = vpop.permute.xlu1 %1210  ;;  %v1608_v49 = vstv %s5696_s17  ;;  %v1627_v11 = vadd.f32 %v1626_v14, %v1606_v44  ;;  %v1589_v7 = vadd.f32 %v1588_v43, %v1568_v62  ;;  %v1302_v50 = vmul.f32 %v4292_v9, %v1301_v41  ;;  %s5770_s25 = sld [smem:[#allocation4 + $0x241]] }
 0x233   :  { %v1327_v6 = vadd.f32 %v1325_v40, %v1295_v59  ;;  %v1213_v55 = vadd.f32 %v1211_v8, %v1177_v47  ;;  %v1644_v54 = vadd.f32 %v1643_v27, %v1623_v21  ;;  %v1609_v47 = vmul.f32 %v1608_v49, %v5249_v56  ;;  %s5772_s19 = sld [smem:[#allocation4 + $0x25a]] }
 0x234   :  { %v1629_v40 = vstv %s5713_s1  ;;  %v1668_v27 = vmul.f32 %v1667_v1, %v7236_v23  ;;  %v1361_v4 = vstv %s5718_s26  ;;  %v1650_v56 = vstv %s5723_s28  ;;  %s5774_s3 = sld [smem:[#allocation4 + $0x1f7]] }
 0x235   :  { %v1354_v61 = vadd.f32 %v1353_v12, %v1327_v6  ;;  %v1238_v20 = vadd.f32 %v1237_v58, %v1213_v55  ;;  %v1357_v58 = vstv %s5691_s24  ;;  %v1665_v5 = vadd.f32 %v1664_v34, %v1644_v54  ;;  %s5776_s8 = sld [smem:[#allocation4 + $0x210]] }
 0x236   :  { %v1272_v36 = vpop.permute.xlu0 %1271  ;;  %v1158_v45 = vpop.permute.xlu1 %1157  ;;  %v1685_v12 = vstv %s5705_s21  ;;  %v1610_v55 = vadd.f32 %v1609_v47, %v1589_v7  ;;  %v1630_v21 = vmul.f32 %v1629_v40, %v5301_v42  ;;  %v1690_v25 = vstv %s5729_s29  ;;  %s5780_s9 = sld [smem:[#allocation4 + $0x242]] }
 0x237   :  { %4265 = vtanh.f32 %v1354_v61  ;;  %v1274_v10 = vadd.f32 %v1272_v36, %v1238_v20  ;;  %v1160_v28 = vadd.f32 %v1158_v45, %v1120_v15  ;;  %v1686_v6 = vadd.f32 %v1685_v12, %v1665_v5  ;;  %s5783_s4 = sld [smem:[#allocation4 + $0x25b]] }
 0x238   :  { %v4264_v17 = vpop.eup %4263  ;;  %v1631_v33 = vadd.f32 %v1630_v21, %v1610_v55  ;;  %v1651_v15 = vmul.f32 %v1650_v56, %v5357_v13  ;;  %v1671_v36 = vstv %s3895_s11  ;;  %s5786_s15 = sld [smem:[#allocation4 + $0x1f8]]  ;;  %v3015_v54 = vstv %s5744_s13 }
 0x239   :  { %v1299_v35 = vadd.f32 %v1298_v24, %v1274_v10  ;;  %v1181_v3 = vadd.f32 %v1180_v63, %v1160_v28  ;;  %v1682_v32 = vadd.f32 %v4264_v17, %v1681_v38  ;;  %v1648_v38 = vadd.f32 %v1647_v18, %v1627_v11  ;;  %s5788_s24 = sld [smem:[#allocation4 + $0x211]] }
 0x23a   :  { %v1333_v39 = vpop.permute.xlu0 %1332  ;;  %v1219_v51 = vpop.permute.xlu1 %1218  ;;  %v1652_v42 = vadd.f32 %v1651_v15, %v1631_v33  ;;  %v1672_v30 = vmul.f32 %v1671_v36, %v7236_v23  ;;  %v1695_v63 = vstv %s3900_s16  ;;  %s5791_s17 = sld [smem:[#allocation4 + $0x22a]]  ;;  %v3018_v17 = vstv %s5746_s20 }
 0x23b   :  { %v1335_v22 = vadd.f32 %v1333_v39, %v1299_v35  ;;  %v1221_v48 = vadd.f32 %v1219_v51, %v1181_v3  ;;  %v1683_v52 = vmax.f32 %v1682_v32, 0.0  ;;  %v1669_v29 = vadd.f32 %v1668_v27, %v1648_v38  ;;  %s5797_s23 = sld [smem:[#allocation4 + $0x243]] }
 0x23c   :  { %v1673_v37 = vadd.f32 %v1672_v30, %v1652_v42  ;;  %v3021_v44 = vstv %s5748_s30  ;;  %v3024_v14 = vstv %s5750_s18  ;;  %v3027_v53 = vstv %s5752_s12  ;;  %s5803_s21 = sld [smem:[#allocation4 + $0x25c]]  ;;  %s7123_s12 = smov 126  }
 0x23d   :  { %v1358_v19 = vadd.f32 %v1357_v58, %v1335_v22  ;;  %1708 = vrot.lane.b32.xlu0 %v1683_v52, %s7243_s0  ;;  %v1242_v59 = vadd.f32 %v1241_v26, %v1221_v48  ;;  %v1691_v9 = vadd.f32 %v1690_v25, %v1669_v29  ;;  %v3031_v43 = vstv %s5754_s10  ;;  %s5809_s1 = sld [smem:[#allocation4 + $0x125]] }
 0x23e   :  { %v1280_v57 = vpop.permute.xlu1 %1279  ;;  %v1341_v31 = vpop.permute.xlu0 %1340  ;;  %v1696_v34 = vadd.f32 %v1695_v63, %v1673_v37  ;;  %v3035_v35 = vstv %s5756_s27  ;;  %v3039_v3 = vstv %s5758_s7  ;;  %v3043_v32 = vstv %s5760_s14  ;;  %s5819_s26 = sld [smem:[#allocation4 + $0x123]] }
 0x23f   :  { %4267 = vtanh.f32 %v1358_v19  ;;  %v1282_v8 = vadd.f32 %v1280_v57, %v1242_v59  ;;  %v3047_v62 = vstv %s5762_s5  ;;  %v3052_v58 = vstv %s5764_s6  ;;  %s5825_s28 = sld [smem:[#allocation4 + $0x137]] }
 0x240   :  { %v3056_v39 = vstv %s5766_s2  ;;  %v3060_v51 = vstv %s5768_s22  ;;  %v3064_v41 = vstv %s5770_s25  ;;  %v3068_v49 = vstv %s5772_s19  ;;  %s5828_s29 = sld [smem:[#allocation4 + $0x139]] }
 0x241   :  { %v1303_v0 = vadd.f32 %v1302_v50, %v1282_v8  ;;  %v3073_v22 = vstv %s5774_s3  ;;  %v3077_v48 = vstv %s5776_s8  ;;  %s5832_s11 = sld [smem:[#allocation4 + $0x1f9]]  ;;  %v3089_v33 = vstv %s5783_s4 }
 0x242   :  { %s5835_s16 = sld [smem:[#allocation4 + $0x212]]  ;;  %v3102_v42 = vstv %s5791_s17 }
 0x243   :  { %v1343_v60 = vadd.f32 %v1341_v31, %v1303_v0  ;;  %s5839_s13 = sld [smem:[#allocation4 + $0x22b]]  ;;  %v1809_v30 = vstv %s5809_s1 }
 0x244   :  { %v4266_v46 = vpop.eup %4265  ;;  %s5842_s20 = sld [smem:[#allocation4 + $0x244]]  ;;  %v1748_v63 = vstv %s5819_s26 }
 0x245   :  { %v1362_v61 = vadd.f32 %v1361_v4, %v1343_v60  ;;  %v1687_v20 = vadd.f32 %v4266_v46, %v1686_v6  ;;  %s5846_s30 = sld [smem:[#allocation4 + $0x25d]] }
 0x246   :  { %s5858_s18 = sld [smem:[#allocation4 + $0x127]] }
 0x247   :  { %4269 = vtanh.f32 %v1362_v61  ;;  %v1688_v45 = vmax.f32 %v1687_v20, 0.0  ;;  %v3085_v20 = vstv %s5780_s9  ;;  %s5866_s10 = sld [smem:[#allocation4 + $0x14b]] }
 0x248   :  { %s5872_s27 = sld [smem:[#allocation4 + $0x129]] }
 0x249   :  { %1714 = vrot.lane.b32.xlu1 %v1688_v45, %s7243_s0  ;;  %v3094_v45 = vstv %s5786_s15  ;;  %s5877_s7 = sld [smem:[#allocation4 + $0x1fa]] }
 0x24a   :  { %s5886_s14 = sld [smem:[#allocation4 + $0x12b]] }
 0x24b   :  { %s5894_s5 = sld [smem:[#allocation4 + $0x13b]] }
 0x24c   :  { %v4268_v24 = vpop.eup %4267  ;;  %s5900_s6 = sld [smem:[#allocation4 + $0x1fb]] }
 0x24d   :  { %v1692_v2 = vadd.f32 %v4268_v24, %v1691_v9  ;;  %v3098_v9 = vstv %s5788_s24  ;;  %v3106_v24 = vstv %s5797_s23  ;;  %s5906_s2 = sld [smem:[#allocation4 + $0x13d]] }
 0x24e   :  { %s5911_s22 = sld [smem:[#allocation4 + $0x14d]] }
 0x24f   :  { %v1693_v16 = vmax.f32 %v1692_v2, 0.0  ;;  %s5921_s25 = sld [smem:[#allocation4 + $0x15f]] }
 0x250   :  { %s5924_s19 = sld [smem:[#allocation4 + $0x12d]] }
 0x251   :  { %1720 = vrot.lane.b32.xlu0 %v1693_v16, %s7243_s0  ;;  %v3110_v16 = vstv %s5803_s21  ;;  %s5936_s3 = sld [smem:[#allocation4 + $0x13f]] }
 0x252   :  { %s3928_s8 = sld [smem:[#allocation4 + $0x14f]] }
 0x253   :  { %s5945_s9 = sld [smem:[#allocation4 + $0x22c]] }
 0x254   :  { %v4270_v13 = vpop.eup %4269  ;;  %s3966_s4 = sld [smem:[#allocation4 + $0x12f]] }
 0x255   :  { %v1697_v10 = vadd.f32 %v4270_v13, %v1696_v34  ;;  %s5957_s15 = sld [smem:[#allocation4 + $0x22d]] }
 0x256   :  { %s3957_s24 = sld [smem:[#allocation4 + $0x141]] }
 0x257   :  { %v1698_v28 = vmax.f32 %v1697_v10, 0.0  ;;  %s3938_s17 = sld [smem:[#allocation4 + $0x151]] }
 0x258   :  { %s5969_s23 = sld [smem:[#allocation4 + $0x173]] }
 0x259   :  { %1726 = vrot.lane.b32.xlu1 %v1698_v28, %s7243_s0  ;;  %s5778_s0 = sld [smem:[#allocation4 + $0x229]]  ;;  %v1756_v28 = vstv %s5825_s28 }
 0x25a   :  { %s3976_s21 = sld [smem:[#allocation4 + $0x131]] }
 0x25b   :  { %s3948_s1 = sld [smem:[#allocation4 + $0x153]] }
 0x25c   :  { %s3929_s26 = sld [smem:[#allocation4 + $0x163]] }
 0x25d   :  { %s5982_s28 = sld [smem:[#allocation4 + $0x213]] }
 0x25f   :  { %v3081_v56 = vstv %s5778_s0  ;;  %s5943_s0 = sld [smem:[#allocation4 + $0x161]] }
 0x29f   :  { %v1701_v23 = vpop.permute.xlu1 %1700 }
 0x2a0   :  { %1704 = vst.msk [vmem:[#allocation2 + $0x8] sm:$0xff] %vm1703_vm4, %v1701_v23 }
 0x2a1   :  { %1706 = vst.msk [vmem:[#allocation2 + $0x8] sm:$0xff] %vm1705_vm5, %v1701_v23 }
 0x2a8   :  { %v5815_v52 = vld [vmem:[#allocation2 + $0x6] sm:$0xff] }
 0x2a9   :  { %v3029_v26 = vld [vmem:[#allocation2 + $0x7] sm:$0xff]  ;;  %v3016_v11 = vmul.f32 %v3015_v54, %v5815_v52  ;;  %v3019_v18 = vmul.f32 %v3018_v17, %v5815_v52  ;;  %v3022_v1 = vmul.f32 %v3021_v44, %v5815_v52  ;;  %v3025_v19 = vmul.f32 %v3024_v14, %v5815_v52 }
 0x2aa   :  { %v5817_v5 = vld [vmem:[#allocation2 + $0x8] sm:$0xff]  ;;  %v3028_v59 = vmul.f32 %v3027_v53, %v5815_v52  ;;  %v3032_v7 = vmul.f32 %v3031_v43, %v3029_v26  ;;  %v3036_v47 = vmul.f32 %v3035_v35, %v3029_v26  ;;  %v3040_v57 = vmul.f32 %v3039_v3, %v3029_v26 }
 0x2ab   :  { %v3044_v12 = vmul.f32 %v3043_v32, %v3029_v26  ;;  %v3048_v40 = vmul.f32 %v3047_v62, %v3029_v26  ;;  %v3053_v50 = vmul.f32 %v3052_v58, %v5817_v5  ;;  %v3057_v8 = vmul.f32 %v3056_v39, %v5817_v5  ;;  %v3071_v61 = vld [vmem:[#allocation2 + $0x9] sm:$0xff] }
 0x2ac   :  { %v3033_v38 = vadd.f32 %v3032_v7, %v3016_v11  ;;  %v3037_v27 = vadd.f32 %v3036_v47, %v3019_v18  ;;  %v3041_v0 = vadd.f32 %v3040_v57, %v3022_v1  ;;  %v3061_v6 = vmul.f32 %v3060_v51, %v5817_v5  ;;  %v3092_v10 = vld [vmem:[#allocation2 + $0xa] sm:$0xff] }
 0x2ad   :  { %v3045_v55 = vadd.f32 %v3044_v12, %v3025_v19  ;;  %v3049_v21 = vadd.f32 %v3048_v40, %v3028_v59  ;;  %v3065_v31 = vmul.f32 %v3064_v41, %v5817_v5  ;;  %v3069_v4 = vmul.f32 %v3068_v49, %v5817_v5 }
 0x2ae   :  { %v3054_v60 = vadd.f32 %v3053_v50, %v3033_v38  ;;  %v3058_v46 = vadd.f32 %v3057_v8, %v3037_v27  ;;  %v3062_v29 = vadd.f32 %v3061_v6, %v3041_v0  ;;  %v3074_v2 = vmul.f32 %v3073_v22, %v3071_v61 }
 0x2af   :  { %v3066_v15 = vadd.f32 %v3065_v31, %v3045_v55  ;;  %v3070_v25 = vadd.f32 %v3069_v4, %v3049_v21  ;;  %v1709_v36 = vpop.permute.xlu0 %1708  ;;  %v3078_v37 = vmul.f32 %v3077_v48, %v3071_v61  ;;  %v3082_v34 = vmul.f32 %v3081_v56, %v3071_v61 }
 0x2b0   :  { %1711 = vst.msk [vmem:[#allocation2 + $0x20] sm:$0xff] %vm1703_vm4, %v1709_v36  ;;  %v3086_v13 = vmul.f32 %v3085_v20, %v3071_v61  ;;  %v3075_v23 = vadd.f32 %v3074_v2, %v3054_v60  ;;  %v1810_v17 = vmul.f32 %v5817_v5, %v1809_v30  ;;  %v3115_v44 = vstv %s5832_s11  ;;  %s3967_s11 = sld [smem:[#allocation4 + $0x143]] }
 0x2b1   :  { %1712 = vst.msk [vmem:[#allocation2 + $0x20] sm:$0xff] %vm1705_vm5, %v1709_v36  ;;  %v3079_v54 = vadd.f32 %v3078_v37, %v3058_v46  ;;  %v3083_v14 = vadd.f32 %v3082_v34, %v3062_v29  ;;  %v3090_v43 = vmul.f32 %v3089_v33, %v3071_v61  ;;  %v1749_v35 = vmul.f32 %v5815_v52, %v1748_v63 }
 0x2b2   :  { %v3087_v53 = vadd.f32 %v3086_v13, %v3066_v15  ;;  %v3095_v3 = vmul.f32 %v3094_v45, %v3092_v10  ;;  %v3099_v32 = vmul.f32 %v3098_v9, %v3092_v10  ;;  %1812 = vrot.lane.b32.xlu1 %v1810_v17, %s7123_s12  ;;  %v3119_v62 = vstv %s5835_s16  ;;  %s4147_s16 = sld [smem:[#allocation4 + $0x214]] }
 0x2b3   :  { %v3123_v58 = vstv %s5839_s13  ;;  %v3091_v39 = vadd.f32 %v3090_v43, %v3070_v25  ;;  %v3103_v51 = vmul.f32 %v3102_v42, %v3092_v10  ;;  %v3107_v41 = vmul.f32 %v3106_v24, %v3092_v10  ;;  %1751 = vrot.lane.b32.xlu0 %v1749_v35, %s7123_s12  ;;  %s3939_s13 = sld [smem:[#allocation4 + $0x165]] }
 0x2b4   :  { %v3127_v49 = vstv %s5842_s20  ;;  %v3096_v22 = vadd.f32 %v3095_v3, %v3075_v23  ;;  %v3100_v48 = vadd.f32 %v3099_v32, %v3079_v54  ;;  %v3131_v26 = vstv %s5846_s30  ;;  %s3920_s20 = sld [smem:[#allocation4 + $0x175]] }
 0x2b5   :  { %v1817_v11 = vstv %s5828_s29  ;;  %v3104_v18 = vadd.f32 %v3103_v51, %v3083_v14  ;;  %v3108_v1 = vadd.f32 %v3107_v41, %v3087_v53  ;;  %v3111_v19 = vmul.f32 %v3110_v16, %v3092_v10  ;;  %s3986_s29 = sld [smem:[#allocation4 + $0x133]] }
 0x2b6   :  { %v1757_v7 = vmul.f32 %v5815_v52, %v1756_v28  ;;  %v1870_v38 = vstv %s5858_s18  ;;  %v1818_v4 = vmul.f32 %v5817_v5, %v1817_v11  ;;  %v1764_v56 = vstv %s5866_s10  ;;  %s3977_s30 = sld [smem:[#allocation4 + $0x145]] }
 0x2b7   :  { %v3112_v50 = vadd.f32 %v3111_v19, %v3091_v39  ;;  %v1931_v29 = vstv %s5872_s27  ;;  %v1765_v61 = vmul.f32 %v5815_v52, %v1764_v56  ;;  %v3136_v20 = vstv %s5877_s7  ;;  %s3958_s18 = sld [smem:[#allocation4 + $0x155]] }
 0x2b8   :  { %v5874_v59 = vld [vmem:[#allocation2 + $0x1e] sm:$0xff]  ;;  %1759 = vrot.lane.b32.xlu0 %v1757_v7, %s7123_s12  ;;  %v1992_v25 = vstv %s5886_s14  ;;  %v1878_v45 = vstv %s5894_s5  ;;  %v3157_v30 = vstv %s5900_s6  ;;  %s3930_s10 = sld [smem:[#allocation4 + $0x177]] }
 0x2b9   :  { %v3116_v47 = vmul.f32 %v3115_v44, %v5874_v59  ;;  %v3120_v57 = vmul.f32 %v3119_v62, %v5874_v59  ;;  %v3124_v12 = vmul.f32 %v3123_v58, %v5874_v59  ;;  %v3128_v40 = vmul.f32 %v3127_v49, %v5874_v59  ;;  %v5908_v46 = vld [vmem:[#allocation2 + $0x20] sm:$0xff]  ;;  %s3996_s27 = sld [smem:[#allocation4 + $0x135]] }
 0x2ba   :  { %v3132_v8 = vmul.f32 %v3131_v26, %v5874_v59  ;;  %v1871_v60 = vmul.f32 %v5874_v59, %v1870_v38  ;;  %v5916_v33 = vld [vmem:[#allocation2 + $0x1f] sm:$0xff]  ;;  %v1932_v15 = vmul.f32 %v5908_v46, %v1931_v29  ;;  %v1879_v2 = vmul.f32 %v5874_v59, %v1878_v45  ;;  %s4145_s7 = sld [smem:[#allocation4 + $0x25e]] }
 0x2bb   :  { %v3117_v27 = vadd.f32 %v3116_v47, %v3096_v22  ;;  %v5888_v0 = vadd.f32 %v3120_v57, %v3100_v48  ;;  %v5890_v6 = vadd.f32 %v3124_v12, %v3104_v18  ;;  %v5892_v55 = vadd.f32 %v3128_v40, %v3108_v1  ;;  %v1715_v21 = vpop.permute.xlu1 %1714  ;;  %s6012_s14 = sld [smem:[#allocation4 + $0x25f]] }
 0x2bc   :  { %v5896_v31 = vadd.f32 %v3132_v8, %v3112_v50  ;;  %1717 = vst.msk [vmem:[#allocation2 + $0x38] sm:$0xff] %vm1703_vm4, %v1715_v21  ;;  %1820 = vrot.lane.b32.xlu0 %v1818_v4, %s7123_s12  ;;  %1873 = vrot.lane.b32.xlu1 %v1871_v60, %s7123_s12  ;;  %v3137_v9 = vmul.f32 %v3136_v20, %v5916_v33  ;;  %v1939_v37 = vstv %s5906_s2  ;;  %v1825_v16 = vstv %s5911_s22  ;;  %s3968_s5 = sld [smem:[#allocation4 + $0x157]] }
 0x2bd   :  { %1718 = vst.msk [vmem:[#allocation2 + $0x38] sm:$0xff] %vm1705_vm5, %v1715_v21  ;;  %v3158_v34 = vmul.f32 %v3157_v30, %v5908_v46  ;;  %v1940_v13 = vmul.f32 %v5908_v46, %v1939_v37  ;;  %v1826_v10 = vmul.f32 %v5817_v5, %v1825_v16  ;;  %v1772_v28 = vstv %s5921_s25  ;;  %s3949_s6 = sld [smem:[#allocation4 + $0x167]] }
 0x2be   :  { %v3138_v63 = vadd.f32 %v3137_v9, %v3117_v27  ;;  %v2053_v17 = vstv %s5924_s19  ;;  %v1773_v14 = vmul.f32 %v5815_v52, %v1772_v28  ;;  %v2000_v43 = vstv %s5936_s3  ;;  %s3940_s2 = sld [smem:[#allocation4 + $0x179]] }
 0x2bf   :  { %v1886_v35 = vstv %s3928_s8  ;;  %v3144_v32 = vstv %s5945_s9  ;;  %v1833_v58 = vstv %s5943_s0  ;;  %v2114_v51 = vstv %s3966_s4  ;;  %s3987_s22 = sld [smem:[#allocation4 + $0x147]] }
 0x2c0   :  { %1767 = vrot.lane.b32.xlu0 %v1765_v61, %s7123_s12  ;;  %1934 = vrot.lane.b32.xlu1 %v1932_v15, %s7123_s12  ;;  %v5949_v23 = vadd.f32 %v3158_v34, %v3138_v63  ;;  %v1887_v62 = vmul.f32 %v5874_v59, %v1886_v35  ;;  %v3145_v41 = vmul.f32 %v3144_v32, %v5916_v33  ;;  %v3165_v22 = vstv %s5957_s15  ;;  %s3978_s25 = sld [smem:[#allocation4 + $0x159]] }
 0x2c1   :  { %v1834_v49 = vmul.f32 %v5817_v5, %v1833_v58  ;;  %v2061_v26 = vstv %s3957_s24  ;;  %v1947_v11 = vstv %s3938_s17  ;;  %v3166_v1 = vmul.f32 %v3165_v22, %v5908_v46  ;;  %s3959_s19 = sld [smem:[#allocation4 + $0x169]] }
 0x2c2   :  { %v3146_v18 = vadd.f32 %v3145_v41, %v5890_v6  ;;  %v1948_v7 = vmul.f32 %v5908_v46, %v1947_v11  ;;  %v1780_v47 = vstv %s5969_s23  ;;  %v2175_v12 = vstv %s3976_s21  ;;  %s6032_s3 = sld [smem:[#allocation4 + $0x245]] }
 0x2c3   :  { %v1721_v36 = vpop.permute.xlu0 %1720  ;;  %v1781_v50 = vmul.f32 %v5815_v52, %v1780_v47  ;;  %v2008_v38 = vstv %s3948_s1  ;;  %v1894_v27 = vstv %s3929_s26  ;;  %v3140_v21 = vstv %s5982_s28  ;;  %s3950_s8 = sld [smem:[#allocation4 + $0x17b]] }
 0x2c4   :  { %v5927_v42 = vld [vmem:[#allocation2 + $0x36] sm:$0xff]  ;;  %1723 = vst.msk [vmem:[#allocation2 + $0x50] sm:$0xff] %vm1703_vm4, %v1721_v36  ;;  %1881 = vrot.lane.b32.xlu1 %v1879_v2, %s7123_s12  ;;  %v5991_v40 = vadd.f32 %v3166_v1, %v3146_v18  ;;  %v1895_v4 = vmul.f32 %v5874_v59, %v1894_v27  ;;  %v2236_v60 = vstv %s3986_s29  ;;  %v2122_v29 = vstv %s3967_s11  ;;  %s3997_s0 = sld [smem:[#allocation4 + $0x149]] }
 0x2c5   :  { %1724 = vst.msk [vmem:[#allocation2 + $0x50] sm:$0xff] %vm1705_vm5, %v1721_v36  ;;  %v1993_v24 = vmul.f32 %v5927_v42, %v1992_v25  ;;  %v5951_v54 = vld [vmem:[#allocation2 + $0x38] sm:$0xff]  ;;  %v2001_v3 = vmul.f32 %v5927_v42, %v2000_v43  ;;  %v2009_v6 = vmul.f32 %v5927_v42, %v2008_v38  ;;  %v3161_v61 = vstv %s4147_s16  ;;  %s4149_s9 = sld [smem:[#allocation4 + $0x246]] }
 0x2c6   :  { %v2054_v53 = vmul.f32 %v5951_v54, %v2053_v17  ;;  %v2062_v19 = vmul.f32 %v5951_v54, %v2061_v26  ;;  %v3141_v20 = vmul.f32 %v3140_v21, %v5916_v33  ;;  %v1955_v36 = vstv %s3939_s13  ;;  %s3988_s4 = sld [smem:[#allocation4 + $0x15b]] }
 0x2c7   :  { %1995 = vrot.lane.b32.xlu0 %v1993_v24, %s7123_s12  ;;  %v3162_v45 = vmul.f32 %v3161_v61, %v5908_v46  ;;  %v1841_v9 = vstv %s3920_s20  ;;  %v1956_v24 = vmul.f32 %v5908_v46, %v1955_v36  ;;  %v2183_v63 = vstv %s3977_s30  ;;  %s3969_s15 = sld [smem:[#allocation4 + $0x16b]] }
 0x2c8   :  { %1828 = vrot.lane.b32.xlu1 %v1826_v10, %s7123_s12  ;;  %v3142_v30 = vadd.f32 %v3141_v20, %v5888_v0  ;;  %v1842_v37 = vmul.f32 %v5817_v5, %v1841_v9  ;;  %v2069_v16 = vstv %s3958_s18  ;;  %v2297_v28 = vstv %s3996_s27  ;;  %s3979_s24 = sld [smem:[#allocation4 + $0x16d]] }
 0x2c9   :  { %v2070_v34 = vmul.f32 %v5951_v54, %v2069_v16  ;;  %v3152_v17 = vstv %s4145_s7  ;;  %v3173_v43 = vstv %s6012_s14  ;;  %v2016_v35 = vstv %s3949_s6  ;;  %s3960_s17 = sld [smem:[#allocation4 + $0x17d]] }
 0x2ca   :  { %v6015_v2 = vadd.f32 %v3162_v45, %v3142_v30  ;;  %v2017_v58 = vmul.f32 %v5927_v42, %v2016_v35  ;;  %v2191_v11 = vstv %s3978_s25  ;;  %v2077_v18 = vstv %s3959_s19  ;;  %s3970_s23 = sld [smem:[#allocation4 + $0x17f]] }
 0x2cb   :  { %1942 = vrot.lane.b32.xlu0 %v1940_v13, %s7123_s12  ;;  %v1727_v44 = vpop.permute.xlu1 %1726  ;;  %v1902_v13 = vstv %s3930_s10  ;;  %v2078_v1 = vmul.f32 %v5951_v54, %v2077_v18  ;;  %v2305_v47 = vstv %s3997_s0  ;;  %s3998_s21 = sld [smem:[#allocation4 + $0x15d]] }
 0x2cc   :  { %1729 = vst.msk [vmem:[#allocation2 + $0x68] sm:$0xff] %vm1703_vm4, %v1727_v44  ;;  %2056 = vrot.lane.b32.xlu1 %v2054_v53, %s7123_s12  ;;  %v5971_v39 = vld [vmem:[#allocation2 + $0x4e] sm:$0xff]  ;;  %v2130_v53 = vstv %s3968_s5  ;;  %v2252_v27 = vstv %s3988_s4  ;;  %s3980_s1 = sld [smem:[#allocation4 + $0x181]] }
 0x2cd   :  { %1730 = vst.msk [vmem:[#allocation2 + $0x68] sm:$0xff] %vm1705_vm5, %v1727_v44  ;;  %v2115_v48 = vmul.f32 %v2114_v51, %v5971_v39  ;;  %v5988_v57 = vld [vmem:[#allocation2 + $0x50] sm:$0xff]  ;;  %v2123_v25 = vmul.f32 %v2122_v29, %v5971_v39  ;;  %v1903_v44 = vmul.f32 %v5874_v59, %v1902_v13  ;;  %v2131_v32 = vmul.f32 %v2130_v53, %v5971_v39  ;;  %s3989_s26 = sld [smem:[#allocation4 + $0x16f]] }
 0x2ce   :  { %v2176_v8 = vmul.f32 %v2175_v12, %v5988_v57  ;;  %v2184_v0 = vmul.f32 %v2183_v63, %v5988_v57  ;;  %v1963_v51 = vstv %s3940_s2  ;;  %v3169_v12 = vstv %s4149_s9  ;;  %s3990_s28 = sld [smem:[#allocation4 + $0x183]] }
 0x2cf   :  { %1775 = vrot.lane.b32.xlu0 %v1773_v14, %s7123_s12  ;;  %v3170_v21 = vmul.f32 %v3169_v12, %v5908_v46  ;;  %v2199_v61 = vstv %s3979_s24  ;;  %v2085_v20 = vstv %s3960_s17  ;;  %s3999_s29 = sld [smem:[#allocation4 + $0x171]] }
 0x2d0   :  { %1889 = vrot.lane.b32.xlu1 %v1887_v62, %s7123_s12  ;;  %v3174_v62 = vmul.f32 %v3173_v43, %v5908_v46  ;;  %v2146_v36 = vstv %s3970_s23  ;;  %s4000_s11 = sld [smem:[#allocation4 + $0x185]] }
 0x2d1   :  { %v2147_v45 = vmul.f32 %v2146_v36, %v5971_v39  ;;  %s3901_s16 = sld [smem:[#allocation4 + $0x122]] }
 0x2d2   :  { %v2207_v30 = vstv %s3980_s1  ;;  %s3911_s13 = sld [smem:[#allocation4 + $0x124]] }
 0x2d3   :  { %2003 = vrot.lane.b32.xlu0 %v2001_v3, %s7123_s12  ;;  %v3153_v3 = vmul.f32 %v3152_v17, %v5916_v33  ;;  %s3902_s20 = sld [smem:[#allocation4 + $0x136]] }
 0x2d4   :  { %2117 = vrot.lane.b32.xlu1 %v2115_v48, %s7123_s12  ;;  %v6001_v56 = vld [vmem:[#allocation2 + $0x66] sm:$0xff]  ;;  %v1964_v48 = vmul.f32 %v5908_v46, %v1963_v51  ;;  %v2268_v16 = vstv %s3990_s28  ;;  %s3912_s30 = sld [smem:[#allocation4 + $0x138]] }
 0x2d5   :  { %v2237_v15 = vmul.f32 %v2236_v60, %v6001_v56  ;;  %v6022_v10 = vld [vmem:[#allocation2 + $0x68] sm:$0xff]  ;;  %v3154_v41 = vadd.f32 %v3153_v3, %v5896_v31  ;;  %v2192_v31 = vmul.f32 %v2191_v11, %v5988_v57  ;;  %v2253_v60 = vmul.f32 %v2252_v27, %v6001_v56  ;;  %s3921_s18 = sld [smem:[#allocation4 + $0x126]] }
 0x2d6   :  { %v2298_v14 = vmul.f32 %v2297_v28, %v6022_v10  ;;  %v2306_v38 = vmul.f32 %v2305_v47, %v6022_v10  ;;  %v2329_v28 = vstv %s4000_s11  ;;  %s3922_s10 = sld [smem:[#allocation4 + $0x13a]] }
 0x2d7   :  { %1836 = vrot.lane.b32.xlu0 %v1834_v49, %s7123_s12  ;;  %v2244_v49 = vstv %s3987_s22  ;;  %v6040_v22 = vadd.f32 %v3174_v62, %v3154_v41  ;;  %v2330_v17 = vmul.f32 %v2329_v28, %v6022_v10  ;;  %s3903_s27 = sld [smem:[#allocation4 + $0x14a]] }
 0x2d8   :  { %1950 = vrot.lane.b32.xlu1 %v1948_v7, %s7123_s12  ;;  %v2245_v26 = vmul.f32 %v2244_v49, %v6001_v56  ;;  %v3148_v7 = vstv %s6032_s3  ;;  %s3931_s7 = sld [smem:[#allocation4 + $0x128]] }
 0x2d9   :  { %v1736_v35 = vstv %s3902_s20  ;;  %s6084_s14 = sld [smem:[#allocation4 + $0x14c]] }
 0x2da   :  { %v1793_v62 = vstv %s3912_s30  ;;  %v1737_v41 = vmul.f32 %v5815_v52, %v1736_v35  ;;  %s3941_s5 = sld [smem:[#allocation4 + $0x12a]] }
 0x2db   :  { %2064 = vrot.lane.b32.xlu0 %v2062_v19, %s7123_s12  ;;  %v2024_v19 = vstv %s3950_s8  ;;  %v1794_v18 = vmul.f32 %v5817_v5, %v1793_v62  ;;  %s6089_s6 = sld [smem:[#allocation4 + $0x13c]] }
 0x2dc   :  { %2178 = vrot.lane.b32.xlu1 %v2176_v8, %s7123_s12  ;;  %v3149_v8 = vmul.f32 %v3148_v7, %v5916_v33  ;;  %s6093_s2 = sld [smem:[#allocation4 + $0x12c]] }
 0x2dd   :  { %v1739_v12 = vstv %s3903_s27  ;;  %s3923_s22 = sld [smem:[#allocation4 + $0x14e]] }
 0x2de   :  { %s3904_s25 = sld [smem:[#allocation4 + $0x15e]] }
 0x2df   :  { %1783 = vrot.lane.b32.xlu0 %v1781_v50, %s7123_s12  ;;  %v2025_v50 = vmul.f32 %v5927_v42, %v2024_v19  ;;  %s6099_s19 = sld [smem:[#allocation4 + $0x160]] }
 0x2e0   :  { %1897 = vrot.lane.b32.xlu1 %v1895_v4, %s7123_s12  ;;  %v3150_v4 = vadd.f32 %v3149_v8, %v5892_v55  ;;  %v2313_v55 = vstv %s3998_s21  ;;  %s6102_s3 = sld [smem:[#allocation4 + $0x12e]] }
 0x2e1   :  { %v2314_v9 = vmul.f32 %v2313_v55, %v6022_v10  ;;  %s6104_s8 = sld [smem:[#allocation4 + $0x13e]] }
 0x2e2   :  { %v6060_v33 = vadd.f32 %v3170_v21, %v3150_v4  ;;  %v1740_v21 = vmul.f32 %v5815_v52, %v1739_v12  ;;  %s6108_s0 = sld [smem:[#allocation4 + $0x150]] }
 0x2e3   :  { %2011 = vrot.lane.b32.xlu0 %v2009_v6, %s7123_s12  ;;  %v2138_v6 = vstv %s3969_s15  ;;  %s6111_s9 = sld [smem:[#allocation4 + $0x140]] }
 0x2e4   :  { %2125 = vrot.lane.b32.xlu1 %v2123_v25, %s7123_s12  ;;  %v2139_v29 = vmul.f32 %v2138_v6, %v5971_v39  ;;  %v2086_v25 = vmul.f32 %v5951_v54, %v2085_v20  ;;  %v1797_v6 = vstv %s6084_s14  ;;  %v1972_v20 = vstv %s3941_s5  ;;  %s6115_s4 = sld [smem:[#allocation4 + $0x162]] }
 0x2e5   :  { %v1798_v36 = vmul.f32 %v5817_v5, %v1797_v6  ;;  %s6119_s15 = sld [smem:[#allocation4 + $0x130]] }
 0x2e6   :  { %s6124_s24 = sld [smem:[#allocation4 + $0x142]] }
 0x2e7   :  { %2239 = vrot.lane.b32.xlu0 %v2237_v15, %s7123_s12  ;;  %v2200_v15 = vmul.f32 %v2199_v61, %v5988_v57  ;;  %s6128_s17 = sld [smem:[#allocation4 + $0x172]] }
 0x2e8   :  { %1844 = vrot.lane.b32.xlu1 %v1842_v37, %s7123_s12  ;;  %v2208_v37 = vmul.f32 %v2207_v30, %v5988_v57  ;;  %s6133_s23 = sld [smem:[#allocation4 + $0x174]] }
 0x2e9   :  { %s6136_s21 = sld [smem:[#allocation4 + $0x132]] }
 0x2ea   :  { %s3934_s1 = sld [smem:[#allocation4 + $0x164]] }
 0x2eb   :  { %1958 = vrot.lane.b32.xlu0 %v1956_v24, %s7123_s12  ;;  %v2260_v24 = vstv %s3989_s26  ;;  %s3943_s26 = sld [smem:[#allocation4 + $0x152]] }
 0x2ec   :  { %2072 = vrot.lane.b32.xlu1 %v2070_v34, %s7123_s12  ;;  %v2261_v63 = vmul.f32 %v2260_v24, %v6001_v56  ;;  %v2269_v34 = vmul.f32 %v2268_v16, %v6001_v56  ;;  %v1915_v24 = vstv %s6089_s6  ;;  %s6145_s28 = sld [smem:[#allocation4 + $0x134]] }
 0x2ed   :  { %v1916_v28 = vmul.f32 %v5908_v46, %v1915_v24  ;;  %s6151_s11 = sld [smem:[#allocation4 + $0x154]] }
 0x2ee   :  { %s6159_s20 = sld [smem:[#allocation4 + $0x156]] }
 0x2ef   :  { %2186 = vrot.lane.b32.xlu0 %v2184_v0, %s7123_s12  ;;  %v2321_v0 = vstv %s3999_s29  ;;  %s3972_s29 = sld [smem:[#allocation4 + $0x144]] }
 0x2f0   :  { %2300 = vrot.lane.b32.xlu1 %v2298_v14, %s7123_s12  ;;  %v2322_v13 = vmul.f32 %v2321_v0, %v6022_v10  ;;  %v1789_v14 = vstv %s3911_s13  ;;  %v2033_v0 = vstv %s6093_s2  ;;  %s6157_s13 = sld [smem:[#allocation4 + $0x146]] }
 0x2f1   :  { %s6164_s30 = sld [smem:[#allocation4 + $0x178]] }
 0x2f2   :  { %s6175_s27 = sld [smem:[#allocation4 + $0x158]] }
 0x2f3   :  { %1905 = vrot.lane.b32.xlu0 %v1903_v44, %s7123_s12  ;;  %v1733_v44 = vstv %s3901_s16  ;;  %s6153_s16 = sld [smem:[#allocation4 + $0x176]] }
 0x2f4   :  { %2019 = vrot.lane.b32.xlu1 %v2017_v58, %s7123_s12  ;;  %v1734_v53 = vmul.f32 %v5815_v52, %v1733_v44  ;;  %v1850_v58 = vstv %s3921_s18  ;;  %s6168_s18 = sld [smem:[#allocation4 + $0x166]] }
 0x2f5   :  { %s6183_s14 = sld [smem:[#allocation4 + $0x148]] }
 0x2f6   :  { %s6188_s5 = sld [smem:[#allocation4 + $0x17a]] }
 0x2f7   :  { %2133 = vrot.lane.b32.xlu0 %v2131_v32, %s7123_s12  ;;  %v1790_v32 = vmul.f32 %v5817_v5, %v1789_v14  ;;  %s6191_s6 = sld [smem:[#allocation4 + $0x15a]] }
 0x2f8   :  { %2247 = vrot.lane.b32.xlu1 %v2245_v26, %s7123_s12  ;;  %s6193_s2 = sld [smem:[#allocation4 + $0x16a]] }
 0x2fb   :  { %1966 = vrot.lane.b32.xlu0 %v1964_v48, %s7123_s12 }
 0x2fc   :  { %2080 = vrot.lane.b32.xlu1 %v2078_v1, %s7123_s12  ;;  %v1854_v1 = vstv %s3922_s10  ;;  %s6170_s10 = sld [smem:[#allocation4 + $0x186]] }
 0x2ff   :  { %2194 = vrot.lane.b32.xlu0 %v2192_v31, %s7123_s12  ;;  %v1851_v31 = vmul.f32 %v5874_v59, %v1850_v58  ;;  %v1801_v58 = vstv %s6099_s19  ;;  %s6206_s19 = sld [smem:[#allocation4 + $0x15c]] }
 0x300   :  { %2308 = vrot.lane.b32.xlu1 %v2306_v38, %s7123_s12  ;;  %v1855_v38 = vmul.f32 %v5874_v59, %v1854_v1  ;;  %v1802_v1 = vmul.f32 %v5817_v5, %v1801_v58 }
 0x303   :  { %2027 = vrot.lane.b32.xlu0 %v2025_v50, %s7123_s12  ;;  %v1911_v50 = vstv %s3931_s7  ;;  %s6181_s7 = sld [smem:[#allocation4 + $0x168]] }
 0x304   :  { %2141 = vrot.lane.b32.xlu1 %v2139_v29, %s7123_s12 }
 0x307   :  { %2255 = vrot.lane.b32.xlu0 %v2253_v60, %s7123_s12  ;;  %v1912_v60 = vmul.f32 %v5908_v46, %v1911_v50  ;;  %v1919_v50 = vstv %s6108_s0  ;;  %s6217_s0 = sld [smem:[#allocation4 + $0x16e]] }
 0x308   :  { %2088 = vrot.lane.b32.xlu1 %v2086_v25, %s7123_s12 }
 0x30b   :  { %2202 = vrot.lane.b32.xlu0 %v2200_v15, %s7123_s12 }
 0x30c   :  { %2316 = vrot.lane.b32.xlu1 %v2314_v9, %s7123_s12  ;;  %v1973_v9 = vmul.f32 %v5927_v42, %v1972_v20  ;;  %v2155_v20 = vstv %s6119_s15  ;;  %s6228_s15 = sld [smem:[#allocation4 + $0x188]] }
 0x30d   :  { %v2156_v24 = vmul.f32 %v2155_v20, %v5988_v57 }
 0x30f   :  { %2149 = vrot.lane.b32.xlu0 %v2147_v45, %s7123_s12 }
 0x310   :  { %2263 = vrot.lane.b32.xlu1 %v2261_v63, %s7123_s12 }
 0x313   :  { %2210 = vrot.lane.b32.xlu0 %v2208_v37, %s7123_s12 }
 0x314   :  { %2324 = vrot.lane.b32.xlu1 %v2322_v13, %s7123_s12 }
 0x317   :  { %2271 = vrot.lane.b32.xlu0 %v2269_v34, %s7123_s12 }
 0x318   :  { %2332 = vrot.lane.b32.xlu1 %v2330_v17, %s7123_s12  ;;  %v1858_v17 = vstv %s3923_s22  ;;  %s6199_s22 = sld [smem:[#allocation4 + $0x17c]] }
 0x319   :  { %v1859_v62 = vmul.f32 %v5874_v59, %v1858_v17 }
 0x324   :  { %v1813_v49 = vpop.permute.xlu1 %1812 }
 0x325   :  { %v1752_v43 = vpop.permute.xlu0 %1751 }
 0x326   :  { %v1754_v3 = vadd.f32 %v1752_v43, %v1734_v53  ;;  %v2034_v53 = vmul.f32 %v5951_v54, %v2033_v0  ;;  %v1742_v43 = vstv %s3904_s25  ;;  %s6201_s25 = sld [smem:[#allocation4 + $0x187]] }
 0x328   :  { %v1791_v51 = vadd.f32 %v1790_v32, %v1754_v3 }
 0x32a   :  { %v1760_v48 = vpop.permute.xlu0 %1759  ;;  %v1815_v26 = vadd.f32 %v1813_v49, %v1791_v51  ;;  %v1743_v51 = vmul.f32 %v5815_v52, %v1742_v43 }
 0x32b   :  { %v1762_v11 = vadd.f32 %v1760_v48, %v1737_v41  ;;  %v2094_v41 = vstv %s6102_s3  ;;  %s6210_s3 = sld [smem:[#allocation4 + $0x16c]] }
 0x32c   :  { %v1852_v7 = vadd.f32 %v1851_v31, %v1815_v26  ;;  %v1976_v26 = vstv %s6104_s8  ;;  %s6215_s8 = sld [smem:[#allocation4 + $0x17e]] }
 0x32d   :  { %v1795_v19 = vadd.f32 %v1794_v18, %v1762_v11 }
 0x32e   :  { %v1821_v47 = vpop.permute.xlu0 %1820  ;;  %v1874_v27 = vpop.permute.xlu1 %1873 }
 0x32f   :  { %v1823_v8 = vadd.f32 %v1821_v47, %v1795_v19  ;;  %v1876_v4 = vadd.f32 %v1874_v27, %v1852_v7  ;;  %v2095_v7 = vmul.f32 %v2094_v41, %v5971_v39  ;;  %v1977_v47 = vmul.f32 %v5927_v42, %v1976_v26 }
 0x331   :  { %v1856_v29 = vadd.f32 %v1855_v38, %v1823_v8  ;;  %v1913_v25 = vadd.f32 %v1912_v60, %v1876_v4  ;;  %v1920_v4 = vmul.f32 %v5908_v46, %v1919_v50  ;;  %v2037_v60 = vstv %s6111_s9  ;;  %s6223_s9 = sld [smem:[#allocation4 + $0x180]] }
 0x332   :  { %v1768_v61 = vpop.permute.xlu0 %1767  ;;  %v1935_v55 = vpop.permute.xlu1 %1934 }
 0x333   :  { %v1770_v15 = vadd.f32 %v1768_v61, %v1740_v21  ;;  %v1937_v45 = vadd.f32 %v1935_v55, %v1913_v25 }
 0x335   :  { %v1799_v30 = vadd.f32 %v1798_v36, %v1770_v15  ;;  %v1974_v63 = vadd.f32 %v1973_v9, %v1937_v45  ;;  %v2038_v45 = vmul.f32 %v5951_v54, %v2037_v60  ;;  %v2041_v60 = vstv %s6151_s11  ;;  %s4014_s11 = sld [smem:[#allocation4 + $0x1c8]] }
 0x336   :  { %v1882_v16 = vpop.permute.xlu1 %1881 }
 0x337   :  { %v1884_v34 = vadd.f32 %v1882_v16, %v1856_v29  ;;  %v1862_v29 = vstv %s6115_s4  ;;  %s4367_s4 = smov 2  }
 0x338   :  { %v1863_v9 = vmul.f32 %v5874_v59, %v1862_v29 }
 0x339   :  { %v1996_v37 = vpop.permute.xlu0 %1995  ;;  %v1917_v14 = vadd.f32 %v1916_v28, %v1884_v34 }
 0x33a   :  { %v1998_v13 = vadd.f32 %v1996_v37, %v1974_v63  ;;  %v1829_v35 = vpop.permute.xlu1 %1828  ;;  %v2098_v37 = vstv %s6124_s24  ;;  %s3994_s24 = sld [smem:[#allocation4 + $0x170]] }
 0x33b   :  { %v1831_v3 = vadd.f32 %v1829_v35, %v1799_v30  ;;  %v2216_v35 = vstv %s6136_s21  ;;  %s4004_s21 = sld [smem:[#allocation4 + $0x189]] }
 0x33c   :  { %v2035_v32 = vadd.f32 %v2034_v53, %v1998_v13  ;;  %v1745_v13 = vstv %s6128_s17  ;;  %v2217_v41 = vmul.f32 %v2216_v35, %v6001_v56  ;;  %s3985_s17 = sld [smem:[#allocation4 + $0x182]] }
 0x33d   :  { %v1943_v44 = vpop.permute.xlu0 %1942  ;;  %v1860_v48 = vadd.f32 %v1859_v62, %v1831_v3  ;;  %v1746_v53 = vmul.f32 %v5815_v52, %v1745_v13 }
 0x33e   :  { %v1945_v11 = vadd.f32 %v1943_v44, %v1917_v14  ;;  %v2057_v18 = vpop.permute.xlu1 %2056  ;;  %v2099_v44 = vmul.f32 %v2098_v37, %v5971_v39  ;;  %v1805_v14 = vstv %s6133_s23  ;;  %s6236_s23 = sld [smem:[#allocation4 + $0x184]] }
 0x33f   :  { %v2059_v19 = vadd.f32 %v2057_v18, %v2035_v32  ;;  %v1806_v58 = vmul.f32 %v5817_v5, %v1805_v14  ;;  %v1980_v18 = vstv %s3943_s26  ;;  %v2159_v5 = vstv %s3972_s29  ;;  %s4011_s26 = sld [smem:[#allocation4 + $0x18c]] }
 0x340   :  { %v1978_v6 = vadd.f32 %v1977_v47, %v1945_v11  ;;  %v1981_v47 = vmul.f32 %v5927_v42, %v1980_v18  ;;  %s4013_s29 = sld [smem:[#allocation4 + $0x1b4]] }
 0x341   :  { %v1776_v49 = vpop.permute.xlu0 %1775  ;;  %v2096_v38 = vadd.f32 %v2095_v7, %v2059_v19  ;;  %v2277_v7 = vstv %s6145_s28  ;;  %s4012_s28 = sld [smem:[#allocation4 + $0x1a0]] }
 0x342   :  { %v1778_v31 = vadd.f32 %v1776_v49, %v1743_v51  ;;  %v1890_v27 = vpop.permute.xlu1 %1889 }
 0x343   :  { %v1892_v21 = vadd.f32 %v1890_v27, %v1860_v48  ;;  %v1923_v48 = vstv %s3934_s1  ;;  %v2278_v27 = vmul.f32 %v2277_v7, %v6022_v10  ;;  %v2281_v7 = vstv %s6183_s14  ;;  %s4005_s1 = sld [smem:[#allocation4 + $0x18a]] }
 0x344   :  { %v1803_v12 = vadd.f32 %v1802_v1, %v1778_v31  ;;  %v1924_v19 = vmul.f32 %v5908_v46, %v1923_v48  ;;  %s4034_s14 = sld [smem:[#allocation4 + $0x1cc]] }
 0x345   :  { %v2004_v8 = vpop.permute.xlu0 %2003  ;;  %v1921_v25 = vadd.f32 %v1920_v4, %v1892_v21  ;;  %v2160_v4 = vmul.f32 %v2159_v5, %v5988_v57 }
 0x346   :  { %v2006_v61 = vadd.f32 %v2004_v8, %v1978_v6  ;;  %v2118_v36 = vpop.permute.xlu1 %2117 }
 0x347   :  { %v2120_v30 = vadd.f32 %v2118_v36, %v2096_v38 }
 0x348   :  { %v2039_v63 = vadd.f32 %v2038_v45, %v2006_v61  ;;  %v1866_v61 = vstv %s6153_s16  ;;  %v2042_v45 = vmul.f32 %v5951_v54, %v2041_v60  ;;  %s4015_s16 = sld [smem:[#allocation4 + $0x1dc]] }
 0x349   :  { %v1837_v15 = vpop.permute.xlu0 %1836  ;;  %v2157_v34 = vadd.f32 %v2156_v24, %v2120_v30  ;;  %v2220_v30 = vstv %s6157_s13  ;;  %v2102_v24 = vstv %s6159_s20  ;;  %s4021_s13 = sld [smem:[#allocation4 + $0x18e]] }
 0x34a   :  { %v1839_v55 = vadd.f32 %v1837_v15, %v1803_v12  ;;  %v1951_v28 = vpop.permute.xlu1 %1950  ;;  %v2221_v13 = vmul.f32 %v2220_v30, %v6001_v56  ;;  %s4022_s20 = sld [smem:[#allocation4 + $0x1a2]] }
 0x34b   :  { %v1953_v31 = vadd.f32 %v1951_v28, %v1921_v25 }
 0x34c   :  { %v1864_v16 = vadd.f32 %v1863_v9, %v1839_v55  ;;  %v1867_v9 = vmul.f32 %v5874_v59, %v1866_v61 }
 0x34d   :  { %v2065_v0 = vpop.permute.xlu0 %2064  ;;  %v1982_v6 = vadd.f32 %v1981_v47, %v1953_v31 }
 0x34e   :  { %v2067_v17 = vadd.f32 %v2065_v0, %v2039_v63  ;;  %v2179_v32 = vpop.permute.xlu1 %2178 }
 0x34f   :  { %v2181_v51 = vadd.f32 %v2179_v32, %v2157_v34  ;;  %v1984_v32 = vstv %s6168_s18  ;;  %s4024_s18 = sld [smem:[#allocation4 + $0x1ca]] }
 0x350   :  { %v2100_v43 = vadd.f32 %v2099_v44, %v2067_v17  ;;  %v2103_v17 = vmul.f32 %v2102_v24, %v5971_v39  ;;  %v1927_v44 = vstv %s6164_s30  ;;  %s4023_s30 = sld [smem:[#allocation4 + $0x1b6]] }
 0x351   :  { %v1784_v3 = vpop.permute.xlu0 %1783  ;;  %v2218_v52 = vadd.f32 %v2217_v41, %v2181_v51  ;;  %v2163_v41 = vstv %s6175_s27  ;;  %s4032_s27 = sld [smem:[#allocation4 + $0x1a4]] }
 0x352   :  { %v1786_v62 = vadd.f32 %v1784_v3, %v1746_v53  ;;  %v1898_v11 = vpop.permute.xlu1 %1897 }
 0x353   :  { %v1900_v1 = vadd.f32 %v1898_v11, %v1864_v16 }
 0x354   :  { %v1807_v49 = vadd.f32 %v1806_v58, %v1786_v62  ;;  %v1928_v62 = vmul.f32 %v5908_v46, %v1927_v44  ;;  %v2164_v46 = vmul.f32 %v2163_v41, %v5988_v57  ;;  %v2167_v44 = vstv %s6210_s3  ;;  %s4044_s3 = sld [smem:[#allocation4 + $0x1ce]] }
 0x355   :  { %v2012_v26 = vpop.permute.xlu0 %2011  ;;  %v1925_v50 = vadd.f32 %v1924_v19, %v1900_v1  ;;  %v2045_v1 = vstv %s6181_s7  ;;  %v2228_v41 = vstv %s6217_s0  ;;  %s4031_s7 = sld [smem:[#allocation4 + $0x190]] }
 0x356   :  { %v2126_v8 = vpop.permute.xlu1 %2125  ;;  %v2014_v20 = vadd.f32 %v2012_v26, %v1982_v6  ;;  %v1985_v26 = vmul.f32 %v5927_v42, %v1984_v32  ;;  %v1988_v6 = vstv %s6188_s5  ;;  %s4033_s5 = sld [smem:[#allocation4 + $0x1b8]] }
 0x357   :  { %v2128_v21 = vadd.f32 %v2126_v8, %v2100_v43  ;;  %v2337_v43 = vstv %s6170_s10  ;;  %v2046_v8 = vmul.f32 %v5951_v54, %v2045_v1  ;;  %s4025_s10 = sld [smem:[#allocation4 + $0x1de]] }
 0x358   :  { %v2043_v37 = vadd.f32 %v2042_v45, %v2014_v20  ;;  %s4051_s0 = sld [smem:[#allocation4 + $0x194]] }
 0x359   :  { %v2240_v12 = vpop.permute.xlu0 %2239  ;;  %v2161_v25 = vadd.f32 %v2160_v4, %v2128_v21  ;;  %v2106_v21 = vstv %s6193_s2  ;;  %s4035_s2 = sld [smem:[#allocation4 + $0x1e0]] }
 0x35a   :  { %v2242_v38 = vadd.f32 %v2240_v12, %v2218_v52  ;;  %v1845_v36 = vpop.permute.xlu1 %1844  ;;  %v2107_v45 = vmul.f32 %v2106_v21, %v5971_v39 }
 0x35b   :  { %v1847_v55 = vadd.f32 %v1845_v36, %v1807_v49 }
 0x35c   :  { %v2279_v29 = vadd.f32 %v2278_v27, %v2242_v38  ;;  %v2282_v38 = vmul.f32 %v2281_v7, %v6022_v10  ;;  %v2224_v27 = vstv %s6191_s6  ;;  %v2345_v7 = vstv %s6228_s15  ;;  %s4041_s6 = sld [smem:[#allocation4 + $0x192]] }
 0x35d   :  { %v1959_v15 = vpop.permute.xlu0 %1958  ;;  %v1868_v16 = vadd.f32 %v1867_v9, %v1847_v55  ;;  %v1989_v55 = vmul.f32 %v5927_v42, %v1988_v6  ;;  %s4061_s15 = sld [smem:[#allocation4 + $0x196]] }
 0x35e   :  { %v2073_v0 = vpop.permute.xlu1 %2072  ;;  %v1961_v58 = vadd.f32 %v1959_v15, %v1925_v50 }
 0x35f   :  { %v2075_v28 = vadd.f32 %v2073_v0, %v2043_v37  ;;  %v2049_v0 = vstv %s6199_s22  ;;  %s4043_s22 = sld [smem:[#allocation4 + $0x1ba]] }
 0x360   :  { %v1986_v31 = vadd.f32 %v1985_v26, %v1961_v58 }
 0x361   :  { %v2187_v63 = vpop.permute.xlu0 %2186  ;;  %v2104_v53 = vadd.f32 %v2103_v17, %v2075_v28  ;;  %v2285_v28 = vstv %s6206_s19  ;;  %s4045_s19 = sld [smem:[#allocation4 + $0x1e2]] }
 0x362   :  { %v2189_v34 = vadd.f32 %v2187_v63, %v2161_v25  ;;  %v2301_v35 = vpop.permute.xlu1 %2300  ;;  %v2225_v25 = vmul.f32 %v2224_v27, %v6001_v56  ;;  %v2341_v63 = vstv %s6201_s25  ;;  %s4042_s25 = sld [smem:[#allocation4 + $0x1a6]] }
 0x363   :  { %v2303_v51 = vadd.f32 %v2301_v35, %v2279_v29  ;;  %v2286_v35 = vmul.f32 %v2285_v28, %v6022_v10 }
 0x364   :  { %v2222_v59 = vadd.f32 %v2221_v13, %v2189_v34 }
 0x365   :  { %v1906_v14 = vpop.permute.xlu0 %1905  ;;  %v2338_v48 = vadd.f32 %v2337_v43, %v2303_v51  ;;  %v2110_v51 = vstv %s6215_s8  ;;  %s4052_s8 = sld [smem:[#allocation4 + $0x1a8]] }
 0x366   :  { %v1908_v3 = vadd.f32 %v1906_v14, %v1868_v16  ;;  %v2020_v11 = vpop.permute.xlu1 %2019  ;;  %v2050_v14 = vmul.f32 %v5951_v54, %v2049_v0 }
 0x367   :  { %4271 = vtanh.f32 %v2338_v48  ;;  %v2022_v5 = vadd.f32 %v2020_v11, %v1986_v31  ;;  %v2111_v11 = vmul.f32 %v2110_v51, %v5971_v39  ;;  %v2466_v51 = vstv %s4021_s13  ;;  %s4081_s13 = sld [smem:[#allocation4 + $0x19a]] }
 0x368   :  { %v1929_v49 = vadd.f32 %v1928_v62, %v1908_v3  ;;  %v2168_v62 = vmul.f32 %v2167_v44, %v5988_v57  ;;  %v2405_v44 = vstv %s4011_s26  ;;  %s4072_s26 = sld [smem:[#allocation4 + $0x1ac]] }
 0x369   :  { %v2134_v52 = vpop.permute.xlu0 %2133  ;;  %v2047_v60 = vadd.f32 %v2046_v8, %v2022_v5  ;;  %v2289_v8 = vstv %s3994_s24  ;;  %s4055_s24 = sld [smem:[#allocation4 + $0x1e4]] }
 0x36a   :  { %v2136_v18 = vadd.f32 %v2134_v52, %v2104_v53  ;;  %v2248_v12 = vpop.permute.xlu1 %2247 }
 0x36b   :  { %v2250_v50 = vadd.f32 %v2248_v12, %v2222_v59 }
 0x36c   :  { %v2165_v19 = vadd.f32 %v2164_v46, %v2136_v18  ;;  %v2229_v18 = vmul.f32 %v2228_v41, %v6001_v56  ;;  %v2171_v46 = vstv %s6223_s9  ;;  %s4054_s9 = sld [smem:[#allocation4 + $0x1d0]] }
 0x36d   :  { %v1967_v47 = vpop.permute.xlu0 %1966  ;;  %v2283_v61 = vadd.f32 %v2282_v38, %v2250_v50  ;;  %v2172_v50 = vmul.f32 %v2171_v46, %v5988_v57  ;;  %v2232_v38 = vstv %s3985_s17  ;;  %v2498_v46 = vstv %s4025_s10  ;;  %s4063_s17 = sld [smem:[#allocation4 + $0x1be]] }
 0x36e   :  { %v1969_v4 = vadd.f32 %v1967_v47, %v1929_v49  ;;  %v2081_v20 = vpop.permute.xlu1 %2080  ;;  %s4083_s10 = sld [smem:[#allocation4 + $0x1c2]] }
 0x36f   :  { %v2083_v36 = vadd.f32 %v2081_v20, %v2047_v60 }
 0x370   :  { %v1990_v24 = vadd.f32 %v1989_v55, %v1969_v4  ;;  %v2290_v4 = vmul.f32 %v2289_v8, %v6022_v10  ;;  %v2349_v55 = vstv %s4004_s21  ;;  %v2551_v8 = vstv %s4034_s14  ;;  %s4065_s21 = sld [smem:[#allocation4 + $0x1e6]] }
 0x371   :  { %v2195_v29 = vpop.permute.xlu0 %2194  ;;  %v2108_v37 = vadd.f32 %v2107_v45, %v2083_v36  ;;  %s6344_s14 = sld [smem:[#allocation4 + $0x200]] }
 0x372   :  { %v2197_v15 = vadd.f32 %v2195_v29, %v2165_v19  ;;  %v2309_v16 = vpop.permute.xlu1 %2308 }
 0x373   :  { %v2311_v34 = vadd.f32 %v2309_v16, %v2283_v61  ;;  %v2233_v61 = vmul.f32 %v2232_v38, %v6001_v56  ;;  %v2353_v16 = vstv %s4005_s1  ;;  %v2543_v38 = vstv %s4033_s5  ;;  %s4064_s1 = sld [smem:[#allocation4 + $0x1d2]] }
 0x374   :  { %v2226_v9 = vadd.f32 %v2225_v25, %v2197_v15  ;;  %v4272_v17 = vpop.eup %4271  ;;  %v2293_v15 = vstv %s6236_s23  ;;  %s4062_s23 = sld [smem:[#allocation4 + $0x1aa]] }
 0x375   :  { %v2028_v30 = vpop.permute.xlu0 %2027  ;;  %v2342_v42 = vadd.f32 %v2341_v63, %v2311_v34  ;;  %2357 = vrot.lane.b32.xlu0 %v4272_v17, %s4367_s4  ;;  %s4085_s5 = sld [smem:[#allocation4 + $0x1ea]] }
 0x376   :  { %v2030_v13 = vadd.f32 %v2028_v30, %v1990_v24  ;;  %v2142_v53 = vpop.permute.xlu1 %2141  ;;  %v2294_v24 = vmul.f32 %v2293_v15, %v6022_v10  ;;  %v2596_v15 = vstv %s4042_s25  ;;  %s4092_s25 = sld [smem:[#allocation4 + $0x1b0]] }
 0x377   :  { %4273 = vtanh.f32 %v2342_v42  ;;  %v2144_v3 = vadd.f32 %v2142_v53, %v2108_v37  ;;  %v2413_v42 = vstv %s4012_s28  ;;  %s4071_s28 = sld [smem:[#allocation4 + $0x198]] }
 0x378   :  { %v2051_v32 = vadd.f32 %v2050_v14, %v2030_v13 }
 0x379   :  { %v2256_v59 = vpop.permute.xlu0 %2255  ;;  %v2169_v54 = vadd.f32 %v2168_v62, %v2144_v3  ;;  %v2437_v62 = vstv %s4015_s16  ;;  %s6326_s16 = sld [smem:[#allocation4 + $0x1fc]] }
 0x37a   :  { %v2258_v43 = vadd.f32 %v2256_v59, %v2226_v9  ;;  %v2089_v48 = vpop.permute.xlu1 %2088 }
 0x37b   :  { %v2091_v26 = vadd.f32 %v2089_v48, %v2051_v32  ;;  %v2474_v48 = vstv %s4022_s20  ;;  %s4075_s20 = sld [smem:[#allocation4 + $0x1e8]] }
 0x37c   :  { %v2287_v58 = vadd.f32 %v2286_v35, %v2258_v43  ;;  %v2421_v43 = vstv %s4013_s29  ;;  %v2429_v35 = vstv %s4014_s11  ;;  %s4074_s29 = sld [smem:[#allocation4 + $0x1d4]] }
 0x37d   :  { %v2203_v49 = vpop.permute.xlu0 %2202  ;;  %v2112_v1 = vadd.f32 %v2111_v11, %v2091_v26  ;;  %v2482_v26 = vstv %s4023_s30  ;;  %s4073_s11 = sld [smem:[#allocation4 + $0x1c0]] }
 0x37e   :  { %v2205_v52 = vadd.f32 %v2203_v49, %v2169_v54  ;;  %v2317_v5 = vpop.permute.xlu1 %2316  ;;  %s6334_s30 = sld [smem:[#allocation4 + $0x1fd]] }
 0x37f   :  { %v2319_v47 = vadd.f32 %v2317_v5, %v2287_v58  ;;  %v2527_v5 = vstv %s4031_s7  ;;  %s6342_s7 = sld [smem:[#allocation4 + $0x1ff]] }
 0x380   :  { %v2230_v19 = vadd.f32 %v2229_v18, %v2205_v52  ;;  %v2490_v18 = vstv %s4024_s18  ;;  %s6336_s18 = sld [smem:[#allocation4 + $0x1fe]] }
 0x381   :  { %v2150_v31 = vpop.permute.xlu0 %2149  ;;  %v2346_v27 = vadd.f32 %v2345_v7, %v2319_v47  ;;  %v2535_v7 = vstv %s4032_s27  ;;  %s4082_s27 = sld [smem:[#allocation4 + $0x1ae]] }
 0x382   :  { %v2152_v12 = vadd.f32 %v2150_v31, %v2112_v1  ;;  %v2264_v21 = vpop.permute.xlu1 %2263 }
 0x383   :  { %4275 = vtanh.f32 %v2346_v27  ;;  %v2266_v60 = vadd.f32 %v2264_v21, %v2230_v19  ;;  %v2588_v21 = vstv %s4041_s6  ;;  %s4084_s6 = sld [smem:[#allocation4 + $0x1d6]] }
 0x384   :  { %v2173_v6 = vadd.f32 %v2172_v50, %v2152_v12  ;;  %v4274_v20 = vpop.eup %4273 }
 0x385   :  { %v2211_v39 = vpop.permute.xlu0 %2210  ;;  %2365 = vrot.lane.b32.xlu1 %v4274_v20, %s4367_s4  ;;  %v2291_v25 = vadd.f32 %v2290_v4, %v2266_v60  ;;  %v2559_v4 = vstv %s4035_s2  ;;  %v2604_v20 = vstv %s4043_s22  ;;  %s6352_s2 = sld [smem:[#allocation4 + $0x201]] }
 0x386   :  { %v2213_v29 = vadd.f32 %v2211_v39, %v2173_v6  ;;  %v2325_v45 = vpop.permute.xlu1 %2324  ;;  %s6354_s22 = sld [smem:[#allocation4 + $0x202]] }
 0x387   :  { %v2327_v9 = vadd.f32 %v2325_v45, %v2291_v25  ;;  %v2612_v45 = vstv %s4044_s3  ;;  %s6360_s3 = sld [smem:[#allocation4 + $0x203]] }
 0x388   :  { %v2234_v36 = vadd.f32 %v2233_v61, %v2213_v29 }
 0x389   :  { %v2272_v57 = vpop.permute.xlu0 %2271  ;;  %v2350_v37 = vadd.f32 %v2349_v55, %v2327_v9  ;;  %v2620_v55 = vstv %s4045_s19  ;;  %s4091_s19 = sld [smem:[#allocation4 + $0x19c]] }
 0x38a   :  { %v2274_v30 = vadd.f32 %v2272_v57, %v2234_v36  ;;  %v2333_v0 = vpop.permute.xlu1 %2332 }
 0x38b   :  { %4277 = vtanh.f32 %v2350_v37  ;;  %v2657_v37 = vstv %s4052_s8  ;;  %s6362_s8 = sld [smem:[#allocation4 + $0x204]] }
 0x38c   :  { %v2295_v63 = vadd.f32 %v2294_v24, %v2274_v30 }
 0x38e   :  { %v2335_v34 = vadd.f32 %v2333_v0, %v2295_v63  ;;  %v2649_v63 = vstv %s4051_s0  ;;  %s4094_s0 = sld [smem:[#allocation4 + $0x1d8]] }
 0x390   :  { %v2354_v56 = vadd.f32 %v2353_v16, %v2335_v34  ;;  %v4276_v13 = vpop.eup %4275  ;;  %v2673_v34 = vstv %s4054_s9  ;;  %s4093_s9 = sld [smem:[#allocation4 + $0x1c4]] }
 0x391   :  { %2371 = vrot.lane.b32.xlu0 %v4276_v13, %s4367_s4 }
 0x392   :  { %4279 = vtanh.f32 %v2354_v56 }
 0x398   :  { %v4278_v28 = vpop.eup %4277 }
 0x399   :  { %2377 = vrot.lane.b32.xlu1 %v4278_v28, %s4367_s4 }
 0x39f   :  { %v4280_v17 = vpop.eup %4279 }
 0x3a0   :  { %2383 = vrot.lane.b32.xlu0 %v4280_v17, %s4367_s4  ;;  %s4053_s4 = sld [smem:[#allocation4 + $0x1bc]] }
 0x3a6   :  { %v2665_v56 = vstv %s4053_s4  ;;  %s6368_s4 = sld [smem:[#allocation4 + $0x205]] }
 0x3e7   :  { %v2358_v10 = vpop.permute.xlu0 %2357 }
 0x3e8   :  { %2361 = vst.msk [vmem:[#allocation3 + $0x8] sm:$0xff] %vm2360_vm6, %v2358_v10 }
 0x3e9   :  { %2363 = vst.msk [vmem:[#allocation3 + $0x8] sm:$0xff] %vm2362_vm7, %v2358_v10  ;;  %v2710_v10 = vstv %s4061_s15  ;;  %s6370_s15 = sld [smem:[#allocation4 + $0x206]] }
 0x3f0   :  { %v6250_v59 = vld [vmem:[#allocation3 + $0x6] sm:$0xff] }
 0x3f1   :  { %v2406_v14 = vmul.f32 %v2405_v44, %v6250_v59  ;;  %v2414_v53 = vmul.f32 %v2413_v42, %v6250_v59  ;;  %v2422_v3 = vmul.f32 %v2421_v43, %v6250_v59  ;;  %v2430_v32 = vmul.f32 %v2429_v35, %v6250_v59  ;;  %v6258_v58 = vld [vmem:[#allocation3 + $0x8] sm:$0xff] }
 0x3f2   :  { %v2438_v49 = vmul.f32 %v2437_v62, %v6250_v59  ;;  %v2467_v54 = vmul.f32 %v2466_v51, %v6258_v58  ;;  %v2475_v52 = vmul.f32 %v2474_v48, %v6258_v58  ;;  %v2483_v11 = vmul.f32 %v2482_v26, %v6258_v58 }
 0x3f3   :  { %2408 = vrot.lane.b32.xlu1 %v2406_v14, %s7123_s12  ;;  %2416 = vrot.lane.b32.xlu0 %v2414_v53, %s7123_s12  ;;  %v2491_v31 = vmul.f32 %v2490_v18, %v6258_v58  ;;  %v2499_v1 = vmul.f32 %v2498_v46, %v6258_v58  ;;  %v2681_v44 = vstv %s4055_s24  ;;  %v2726_v53 = vstv %s4063_s17  ;;  %s4101_s24 = sld [smem:[#allocation4 + $0x19e]] }
 0x3f4   :  { %v2718_v43 = vstv %s4062_s23  ;;  %v2734_v62 = vstv %s4064_s1  ;;  %v2771_v48 = vstv %s4071_s28  ;;  %v2787_v18 = vstv %s4073_s11  ;;  %s4095_s17 = sld [smem:[#allocation4 + $0x1ec]] }
 0x3f5   :  { %s6376_s23 = sld [smem:[#allocation4 + $0x207]] }
 0x3f6   :  { %s4103_s1 = sld [smem:[#allocation4 + $0x1c6]] }
 0x3f7   :  { %2424 = vrot.lane.b32.xlu1 %v2422_v3, %s7123_s12  ;;  %2432 = vrot.lane.b32.xlu0 %v2430_v32, %s7123_s12  ;;  %v2366_v41 = vpop.permute.xlu1 %2365  ;;  %v2742_v32 = vstv %s4065_s21  ;;  %s6378_s21 = sld [smem:[#allocation4 + $0x208]] }
 0x3f8   :  { %2368 = vst.msk [vmem:[#allocation3 + $0x20] sm:$0xff] %vm2360_vm6, %v2366_v41  ;;  %s6382_s28 = sld [smem:[#allocation4 + $0x209]] }
 0x3f9   :  { %2369 = vst.msk [vmem:[#allocation3 + $0x20] sm:$0xff] %vm2362_vm7, %v2366_v41  ;;  %s4105_s11 = sld [smem:[#allocation4 + $0x1ee]] }
 0x3fb   :  { %2440 = vrot.lane.b32.xlu1 %v2438_v49, %s7123_s12  ;;  %2469 = vrot.lane.b32.xlu0 %v2467_v54, %s7123_s12  ;;  %v2779_v54 = vstv %s4072_s26  ;;  %s4102_s26 = sld [smem:[#allocation4 + $0x1b2]] }
 0x3ff   :  { %2477 = vrot.lane.b32.xlu1 %v2475_v52, %s7123_s12  ;;  %2485 = vrot.lane.b32.xlu0 %v2483_v11, %s7123_s12  ;;  %v2795_v11 = vstv %s4074_s29  ;;  %s6384_s29 = sld [smem:[#allocation4 + $0x20a]] }
 0x400   :  { %v6274_v19 = vld [vmem:[#allocation3 + $0x1e] sm:$0xff] }
 0x401   :  { %v2536_v12 = vmul.f32 %v2535_v7, %v6274_v19  ;;  %v2528_v50 = vmul.f32 %v2527_v5, %v6274_v19  ;;  %v2552_v27 = vmul.f32 %v2551_v8, %v6274_v19  ;;  %v2544_v39 = vmul.f32 %v2543_v38, %v6274_v19  ;;  %v6286_v6 = vld [vmem:[#allocation3 + $0x20] sm:$0xff] }
 0x402   :  { %v2589_v29 = vmul.f32 %v2588_v21, %v6286_v6  ;;  %v2560_v61 = vmul.f32 %v2559_v4, %v6274_v19  ;;  %v2605_v57 = vmul.f32 %v2604_v20, %v6286_v6  ;;  %v2597_v36 = vmul.f32 %v2596_v15, %v6286_v6 }
 0x403   :  { %v2372_v47 = vpop.permute.xlu0 %2371  ;;  %2493 = vrot.lane.b32.xlu1 %v2491_v31, %s7123_s12  ;;  %2501 = vrot.lane.b32.xlu0 %v2499_v1, %s7123_s12  ;;  %v2621_v9 = vmul.f32 %v2620_v55, %v6286_v6  ;;  %v2613_v30 = vmul.f32 %v2612_v45, %v6286_v6  ;;  %v2832_v7 = vstv %s4081_s13  ;;  %v2803_v5 = vstv %s4075_s20  ;;  %s4104_s13 = sld [smem:[#allocation4 + $0x1da]] }
 0x404   :  { %2374 = vst.msk [vmem:[#allocation3 + $0x38] sm:$0xff] %vm2360_vm6, %v2372_v47  ;;  %v2840_v8 = vstv %s4082_s27  ;;  %v2856_v21 = vstv %s4084_s6  ;;  %v2893_v20 = vstv %s4091_s19  ;;  %s6388_s20 = sld [smem:[#allocation4 + $0x20b]] }
 0x405   :  { %2375 = vst.msk [vmem:[#allocation3 + $0x38] sm:$0xff] %vm2362_vm7, %v2372_v47  ;;  %s6392_s27 = sld [smem:[#allocation4 + $0x22e]] }
 0x406   :  { %s6398_s6 = sld [smem:[#allocation4 + $0x230]] }
 0x407   :  { %2538 = vrot.lane.b32.xlu0 %v2536_v12, %s7123_s12  ;;  %2530 = vrot.lane.b32.xlu1 %v2528_v50, %s7123_s12  ;;  %v2848_v50 = vstv %s4083_s10  ;;  %s6390_s10 = sld [smem:[#allocation4 + $0x20c]] }
 0x408   :  { %s6402_s19 = sld [smem:[#allocation4 + $0x232]] }
 0x40b   :  { %2554 = vrot.lane.b32.xlu0 %v2552_v27, %s7123_s12  ;;  %2546 = vrot.lane.b32.xlu1 %v2544_v39, %s7123_s12  ;;  %v2378_v60 = vpop.permute.xlu1 %2377  ;;  %v2864_v39 = vstv %s4085_s5  ;;  %s6394_s5 = sld [smem:[#allocation4 + $0x22f]] }
 0x40c   :  { %2380 = vst.msk [vmem:[#allocation3 + $0x50] sm:$0xff] %vm2360_vm6, %v2378_v60  ;;  %v6304_v24 = vld [vmem:[#allocation3 + $0x36] sm:$0xff] }
 0x40d   :  { %2381 = vst.msk [vmem:[#allocation3 + $0x50] sm:$0xff] %vm2362_vm7, %v2378_v60  ;;  %v2658_v16 = vmul.f32 %v2657_v37, %v6304_v24  ;;  %v2650_v0 = vmul.f32 %v2649_v63, %v6304_v24  ;;  %v2674_v13 = vmul.f32 %v2673_v34, %v6304_v24  ;;  %v2666_v28 = vmul.f32 %v2665_v56, %v6304_v24  ;;  %v6314_v17 = vld [vmem:[#allocation3 + $0x38] sm:$0xff] }
 0x40e   :  { %v2711_v42 = vmul.f32 %v2710_v10, %v6314_v17  ;;  %v2682_v14 = vmul.f32 %v2681_v44, %v6304_v24  ;;  %v2727_v35 = vmul.f32 %v2726_v53, %v6314_v17  ;;  %v2719_v3 = vmul.f32 %v2718_v43, %v6314_v17 }
 0x40f   :  { %2591 = vrot.lane.b32.xlu0 %v2589_v29, %s7123_s12  ;;  %2562 = vrot.lane.b32.xlu1 %v2560_v61, %s7123_s12  ;;  %v2743_v51 = vmul.f32 %v2742_v32, %v6314_v17  ;;  %v2735_v41 = vmul.f32 %v2734_v62, %v6314_v17  ;;  %v2901_v61 = vstv %s4092_s25  ;;  %v2925_v37 = vstv %s4095_s17  ;;  %s6400_s25 = sld [smem:[#allocation4 + $0x231]] }
 0x410   :  { %v2962_v34 = vstv %s4102_s26  ;;  %v2978_v10 = vstv %s4104_s13  ;;  %s6412_s17 = sld [smem:[#allocation4 + $0x236]]  ;;  %v3178_v53 = vstv %s6326_s16  ;;  %v3220_v32 = vstv %s6336_s18 }
 0x411   :  { %s6418_s26 = sld [smem:[#allocation4 + $0x238]] }
 0x412   :  { %v2384_v25 = vpop.permute.xlu0 %2383  ;;  %s6425_s13 = sld [smem:[#allocation4 + $0x23a]] }
 0x413   :  { %2386 = vst.msk [vmem:[#allocation3 + $0x68] sm:$0xff] %vm2360_vm6, %v2384_v25  ;;  %2607 = vrot.lane.b32.xlu0 %v2605_v57, %s7123_s12  ;;  %2599 = vrot.lane.b32.xlu1 %v2597_v36, %s7123_s12  ;;  %v2917_v57 = vstv %s4094_s0  ;;  %v2909_v36 = vstv %s4093_s9  ;;  %s6404_s0 = sld [smem:[#allocation4 + $0x233]] }
 0x414   :  { %2387 = vst.msk [vmem:[#allocation3 + $0x68] sm:$0xff] %vm2362_vm7, %v2384_v25  ;;  %v6330_v49 = vld [vmem:[#allocation3 + $0x4e] sm:$0xff]  ;;  %s6408_s9 = sld [smem:[#allocation4 + $0x234]] }
 0x415   :  { %v2780_v26 = vmul.f32 %v2779_v54, %v6330_v49  ;;  %v2772_v52 = vmul.f32 %v2771_v48, %v6330_v49  ;;  %v2796_v46 = vmul.f32 %v2795_v11, %v6330_v49  ;;  %v2788_v31 = vmul.f32 %v2787_v18, %v6330_v49  ;;  %v6348_v1 = vld [vmem:[#allocation3 + $0x50] sm:$0xff]  ;;  %s6438_s16 = sld [smem:[#allocation4 + $0x18b]]  ;;  %v6448_v54 = vld [vmem:[#allocation2 + $0x36] sm:$0xff] }
 0x416   :  { %v2833_v47 = vmul.f32 %v2832_v7, %v6348_v1  ;;  %v2804_v12 = vmul.f32 %v2803_v5, %v6330_v49  ;;  %v2849_v38 = vmul.f32 %v2848_v50, %v6348_v1  ;;  %v2841_v27 = vmul.f32 %v2840_v8, %v6348_v1  ;;  %7251 = sst [smem:[#allocation29_spill]] %s6412_s17  ;;  %v6463_v7 = vld [vmem:[#allocation2 + $0x4e] sm:$0xff] }
 0x417   :  { %2623 = vrot.lane.b32.xlu0 %v2621_v9, %s7123_s12  ;;  %2615 = vrot.lane.b32.xlu1 %v2613_v30, %s7123_s12  ;;  %v2865_v4 = vmul.f32 %v2864_v39, %v6348_v1  ;;  %v2857_v60 = vmul.f32 %v2856_v21, %v6348_v1  ;;  %v2954_v30 = vstv %s4101_s24  ;;  %s6410_s24 = sld [smem:[#allocation4 + $0x235]]  ;;  %v3221_v48 = vmul.f32 %v6448_v54, %v3220_v32  ;;  %v6472_v8 = vld [vmem:[#allocation2 + $0x50] sm:$0xff]  ;;  %v6477_v39 = vld [vmem:[#allocation2 + $0x38] sm:$0xff] }
 0x418   :  { %7252 = sst [smem:[#allocation31_spill]] %s6425_s13  ;;  %v3283_v11 = vstv %s6352_s2  ;;  %v3325_v5 = vstv %s6360_s3  ;;  %v3514_v32 = vstv %s6390_s10 }
 0x419   :  { %s6430_s17 = sld [smem:[#allocation4 + $0x23c]] }
 0x41a   :  { %s6441_s13 = sld [smem:[#allocation4 + $0x18d]] }
 0x41b   :  { %2660 = vrot.lane.b32.xlu0 %v2658_v16, %s7123_s12  ;;  %2652 = vrot.lane.b32.xlu1 %v2650_v0, %s7123_s12  ;;  %v2871_v29 = vld [vmem:[#allocation3 + $0x66] sm:$0xff]  ;;  %v2970_v0 = vstv %s4103_s1  ;;  %s6414_s1 = sld [smem:[#allocation4 + $0x237]] }
 0x41c   :  { %v2902_v15 = vmul.f32 %v2901_v61, %v2871_v29  ;;  %v2894_v25 = vmul.f32 %v2893_v20, %v2871_v29  ;;  %v2918_v55 = vmul.f32 %v2917_v57, %v2871_v29  ;;  %v2910_v45 = vmul.f32 %v2909_v36, %v2871_v29  ;;  %v2932_v9 = vld [vmem:[#allocation3 + $0x68] sm:$0xff]  ;;  %s6458_s18 = sld [smem:[#allocation4 + $0x1b3]] }
 0x41d   :  { %v2955_v63 = vmul.f32 %v2954_v30, %v2932_v9  ;;  %v2926_v16 = vmul.f32 %v2925_v37, %v2871_v29  ;;  %v2971_v56 = vmul.f32 %v2970_v0, %v2932_v9  ;;  %7250 = sst [smem:[#allocation25_spill]] %s6410_s24  ;;  %v6483_v29 = vld [vmem:[#allocation2 + $0x52] sm:$0xff]  ;;  %v3409_v61 = vstv %s6376_s23 }
 0x41e   :  { %s6427_s24 = sld [smem:[#allocation4 + $0x23b]]  ;;  %v3430_v30 = vstv %s6378_s21  ;;  %v3451_v0 = vstv %s6382_s28 }
 0x41f   :  { %2676 = vrot.lane.b32.xlu0 %v2674_v13, %s7123_s12  ;;  %2668 = vrot.lane.b32.xlu1 %v2666_v28, %s7123_s12  ;;  %v2963_v13 = vmul.f32 %v2962_v34, %v2932_v9  ;;  %v2986_v28 = vstv %s4105_s11  ;;  %s6423_s11 = sld [smem:[#allocation4 + $0x239]]  ;;  %v6521_v34 = vld [vmem:[#allocation2 + $0x68] sm:$0xff] }
 0x420   :  { %v2987_v44 = vmul.f32 %v2986_v28, %v2932_v9  ;;  %s6498_s2 = sld [smem:[#allocation4 + $0x23d]] }
 0x421   :  { %s6510_s3 = sld [smem:[#allocation4 + $0x1dd]] }
 0x422   :  { %s6555_s23 = sld [smem:[#allocation4 + $0x1b7]] }
 0x423   :  { %2713 = vrot.lane.b32.xlu0 %v2711_v42, %s7123_s12  ;;  %2684 = vrot.lane.b32.xlu1 %v2682_v14, %s7123_s12  ;;  %v2979_v42 = vmul.f32 %v2978_v10, %v2932_v9  ;;  %v6420_v14 = vld [vmem:[#allocation2 + $0x21] sm:$0xff]  ;;  %s6562_s21 = sld [smem:[#allocation4 + $0x217]] }
 0x424   :  { %7253 = sst [smem:[#allocation33_spill]] %s6427_s24  ;;  %v3179_v43 = vmul.f32 %v3178_v53, %v6420_v14  ;;  %v6507_v9 = vld [vmem:[#allocation2 + $0x66] sm:$0xff] }
 0x425   :  { %s6445_s24 = sld [smem:[#allocation4 + $0x1a1]] }
 0x426   :  { %v3180_v62 = vadd.f32 %v3179_v43, %v5949_v23  ;;  %v3262_v23 = vstv %s6344_s14  ;;  %s6475_s14 = sld [smem:[#allocation4 + $0x1c9]]  ;;  %v6532_v43 = vmul.f32 %v3430_v30, %v6507_v9 }
 0x427   :  { %2729 = vrot.lane.b32.xlu0 %v2727_v35, %s7123_s12  ;;  %2721 = vrot.lane.b32.xlu1 %v2719_v3, %s7123_s12  ;;  %v6432_v35 = vld [vmem:[#allocation2 + $0x22] sm:$0xff]  ;;  %v3199_v3 = vstv %s6334_s30  ;;  %s6454_s30 = sld [smem:[#allocation4 + $0x1c7]]  ;;  %v3263_v21 = vmul.f32 %v6477_v39, %v3262_v23 }
 0x428   :  { %s6569_s28 = sld [smem:[#allocation4 + $0x218]] }
 0x429   :  { %s6583_s10 = sld [smem:[#allocation4 + $0x219]] }
 0x42b   :  { %2745 = vrot.lane.b32.xlu0 %v2743_v51, %s7123_s12  ;;  %2737 = vrot.lane.b32.xlu1 %v2735_v41, %s7123_s12  ;;  %v6443_v51 = vld [vmem:[#allocation2 + $0x37] sm:$0xff]  ;;  %v3200_v41 = vmul.f32 %v3199_v3, %v6432_v35  ;;  %v2450_v28 = vstv %s6445_s24  ;;  %v6534_v3 = vld [vmem:[#allocation2 + $0x69] sm:$0xff]  ;;  %s6597_s24 = sld [smem:[#allocation4 + $0x1a5]] }
 0x42d   :  { %v3201_v18 = vadd.f32 %v3200_v41, %v3180_v62 }
 0x42f   :  { %2782 = vrot.lane.b32.xlu0 %v2780_v26, %s7123_s12  ;;  %2774 = vrot.lane.b32.xlu1 %v2772_v52, %s7123_s12  ;;  %v3241_v26 = vstv %s6342_s7  ;;  %v6452_v52 = vld [vmem:[#allocation2 + $0x39] sm:$0xff]  ;;  %s6469_s7 = sld [smem:[#allocation4 + $0x1b5]] }
 0x430   :  { %v3242_v50 = vmul.f32 %v3241_v26, %v6443_v51  ;;  %v6487_v20 = vmul.f32 %v3283_v11, %v6452_v52  ;;  %v2396_v26 = vstv %s6458_s18  ;;  %s7256_s18 = sld [smem:[#allocation31_spill]] }
 0x433   :  { %2798 = vrot.lane.b32.xlu0 %v2796_v46, %s7123_s12  ;;  %2790 = vrot.lane.b32.xlu1 %v2788_v31, %s7123_s12  ;;  %v6460_v46 = vld [vmem:[#allocation2 + $0x3a] sm:$0xff]  ;;  %v3304_v31 = vstv %s6354_s22  ;;  %s6502_s22 = sld [smem:[#allocation4 + $0x1db]] }
 0x437   :  { %2835 = vrot.lane.b32.xlu0 %v2833_v47, %s7123_s12  ;;  %2806 = vrot.lane.b32.xlu1 %v2804_v12, %s7123_s12  ;;  %v6466_v47 = vld [vmem:[#allocation2 + $0x4f] sm:$0xff]  ;;  %v3346_v12 = vstv %s6362_s8  ;;  %s6537_s8 = sld [smem:[#allocation4 + $0x215]] }
 0x438   :  { %v6496_v57 = vmul.f32 %v3346_v12, %v6466_v47  ;;  %v2451_v12 = vmul.f32 %v2450_v28, %v6258_v58 }
 0x439   :  { %v2402_v28 = vstv %s6502_s22  ;;  %s6643_s22 = sld [smem:[#allocation4 + $0x193]] }
 0x43b   :  { %2851 = vrot.lane.b32.xlu0 %v2849_v38, %s7123_s12  ;;  %2843 = vrot.lane.b32.xlu1 %v2841_v27, %s7123_s12  ;;  %v3367_v38 = vstv %s6368_s4  ;;  %v3222_v27 = vadd.f32 %v3221_v48, %v3201_v18  ;;  %v2399_v48 = vstv %s6454_s30  ;;  %s6547_s4 = sld [smem:[#allocation4 + $0x216]] }
 0x43c   :  { %s6635_s30 = sld [smem:[#allocation4 + $0x21e]] }
 0x43d   :  { %v3243_v10 = vadd.f32 %v3242_v50, %v3222_v27  ;;  %v3512_v50 = vld [vmem:[#allocation2 + $0x6a] sm:$0xff]  ;;  %v2458_v27 = vstv %s6475_s14  ;;  %s7257_s14 = sld [smem:[#allocation33_spill]] }
 0x43f   :  { %2867 = vrot.lane.b32.xlu0 %v2865_v4, %s7123_s12  ;;  %2859 = vrot.lane.b32.xlu1 %v2857_v60, %s7123_s12  ;;  %v6480_v4 = vld [vmem:[#allocation2 + $0x51] sm:$0xff]  ;;  %v3388_v60 = vstv %s6370_s15  ;;  %s6551_s15 = sld [smem:[#allocation4 + $0x1a3]] }
 0x440   :  { %v6513_v37 = vmul.f32 %v3388_v60, %v6480_v4  ;;  %v3264_v60 = vadd.f32 %v3263_v21, %v3243_v10  ;;  %v3186_v21 = vstv %s6392_s27  ;;  %v3207_v10 = vstv %s6394_s5  ;;  %s6589_s27 = sld [smem:[#allocation4 + $0x21a]] }
 0x441   :  { %s6593_s5 = sld [smem:[#allocation4 + $0x191]] }
 0x443   :  { %2904 = vrot.lane.b32.xlu0 %v2902_v15, %s7123_s12  ;;  %2896 = vrot.lane.b32.xlu1 %v2894_v25, %s7123_s12  ;;  %v6490_v15 = vmul.f32 %v3304_v31, %v6460_v46  ;;  %v6493_v25 = vmul.f32 %v3325_v5, %v6463_v7 }
 0x447   :  { %2920 = vrot.lane.b32.xlu0 %v2918_v55, %s7123_s12  ;;  %2912 = vrot.lane.b32.xlu1 %v2910_v45, %s7123_s12  ;;  %v2390_v55 = vstv %s6438_s16  ;;  %v6505_v45 = vmul.f32 %v3367_v38, %v6472_v8  ;;  %v2454_v38 = vstv %s6469_s7  ;;  %s6621_s16 = sld [smem:[#allocation4 + $0x1cd]] }
 0x448   :  { %v2391_v53 = vmul.f32 %v2390_v55, %v6250_v59  ;;  %v2397_v55 = vmul.f32 %v2396_v26, %v6250_v59  ;;  %s6639_s7 = sld [smem:[#allocation4 + $0x1e1]] }
 0x44b   :  { %2957 = vrot.lane.b32.xlu0 %v2955_v63, %s7123_s12  ;;  %2928 = vrot.lane.b32.xlu1 %v2926_v16, %s7123_s12  ;;  %v6516_v63 = vmul.f32 %v3409_v61, %v6483_v29  ;;  %v6518_v16 = vld [vmem:[#allocation2 + $0x67] sm:$0xff] }
 0x44c   :  { %v6542_v23 = vmul.f32 %v3451_v0, %v6518_v16 }
 0x44f   :  { %2973 = vrot.lane.b32.xlu0 %v2971_v56, %s7123_s12  ;;  %2965 = vrot.lane.b32.xlu1 %v2963_v13, %s7123_s12  ;;  %v3472_v56 = vstv %s6384_s29  ;;  %v2446_v13 = vstv %s6441_s13  ;;  %s6573_s29 = sld [smem:[#allocation4 + $0x1cb]] }
 0x450   :  { %v6545_v11 = vmul.f32 %v3472_v56, %v6521_v34  ;;  %v2447_v5 = vmul.f32 %v2446_v13, %v6258_v58  ;;  %s6617_s13 = sld [smem:[#allocation4 + $0x1b9]] }
 0x453   :  { %2989 = vrot.lane.b32.xlu0 %v2987_v44, %s7123_s12  ;;  %2981 = vrot.lane.b32.xlu1 %v2979_v42, %s7123_s12  ;;  %s6434_s12 = sld [smem:[#allocation4 + $0x19f]]  ;;  %v3493_v44 = vstv %s6388_s20 }
 0x454   :  { %v6558_v61 = vmul.f32 %v3493_v44, %v6534_v3  ;;  %s6577_s20 = sld [smem:[#allocation4 + $0x1df]] }
 0x459   :  { %v2393_v36 = vstv %s6434_s12  ;;  %s6526_s12 = sld [smem:[#allocation4 + $0x18f]] }
 0x45a   :  { %v2394_v42 = vmul.f32 %v2393_v36, %v6250_v59  ;;  %v2400_v36 = vmul.f32 %v2399_v48, %v6250_v59  ;;  %v2462_v48 = vstv %s6510_s3  ;;  %s6668_s3 = sld [smem:[#allocation4 + $0x1bb]] }
 0x45f   :  { %v2507_v26 = vstv %s6526_s12  ;;  %s6678_s12 = sld [smem:[#allocation4 + $0x221]] }
 0x465   :  { %v2417_v62 = vpop.permute.xlu0 %2416  ;;  %v2409_v41 = vpop.permute.xlu1 %2408 }
 0x466   :  { %v2419_v18 = vadd.f32 %v2417_v62, %v2394_v42  ;;  %v2411_v31 = vadd.f32 %v2409_v41, %v2391_v53  ;;  %v6565_v42 = vmul.f32 %v3514_v32, %v3512_v50  ;;  %v2455_v62 = vmul.f32 %v2454_v38, %v6258_v58 }
 0x467   :  { %v2459_v41 = vmul.f32 %v2458_v27, %v6258_v58  ;;  %v3285_v32 = vadd.f32 %v6487_v20, %v3264_v60  ;;  %v3187_v50 = vmul.f32 %v3186_v21, %v6420_v14  ;;  %v2511_v21 = vstv %s6551_s15  ;;  %s6686_s15 = sld [smem:[#allocation4 + $0x222]] }
 0x468   :  { %v2448_v30 = vadd.f32 %v2447_v5, %v2411_v31  ;;  %v2452_v0 = vadd.f32 %v2451_v12, %v2419_v18  ;;  %v3228_v18 = vstv %s6398_s6  ;;  %v2403_v31 = vmul.f32 %v2402_v28, %v6250_v59  ;;  %s7254_s6 = sld [smem:[#allocation25_spill]] }
 0x469   :  { %v2433_v56 = vpop.permute.xlu0 %2432  ;;  %v2425_v13 = vpop.permute.xlu1 %2424  ;;  %v2463_v59 = vmul.f32 %v2462_v48, %v6258_v58  ;;  %v2508_v28 = vmul.f32 %v2507_v26, %v6274_v19 }
 0x46a   :  { %v2435_v44 = vadd.f32 %v2433_v56, %v2400_v36  ;;  %v2427_v53 = vadd.f32 %v2425_v13, %v2397_v55  ;;  %v3208_v36 = vmul.f32 %v3207_v10, %v6432_v35  ;;  %v3249_v55 = vstv %s6400_s25  ;;  %s6603_s25 = sld [smem:[#allocation4 + $0x21b]] }
 0x46b   :  { %v3270_v56 = vstv %s6402_s19  ;;  %v3291_v13 = vstv %s6404_s0  ;;  %v3306_v10 = vadd.f32 %v6490_v15, %v3285_v32  ;;  %v3250_v58 = vmul.f32 %v3249_v55, %v6443_v51  ;;  %s7255_s19 = sld [smem:[#allocation29_spill]] }
 0x46c   :  { %v2456_v5 = vadd.f32 %v2455_v62, %v2427_v53  ;;  %v2460_v12 = vadd.f32 %v2459_v41, %v2435_v44  ;;  %v2515_v44 = vstv %s6555_s23  ;;  %v3188_v53 = vadd.f32 %v3187_v50, %v5991_v40  ;;  %s6613_s0 = sld [smem:[#allocation4 + $0x21c]] }
 0x46d   :  { %v2470_v38 = vpop.permute.xlu0 %2469  ;;  %v2441_v27 = vpop.permute.xlu1 %2440  ;;  %v3312_v15 = vstv %s6408_s9  ;;  %v2512_v50 = vmul.f32 %v2511_v21, %v6274_v19  ;;  %v2519_v55 = vstv %s6573_s29  ;;  %s6628_s9 = sld [smem:[#allocation4 + $0x21d]] }
 0x46e   :  { %v2472_v20 = vadd.f32 %v2470_v38, %v2448_v30  ;;  %v2443_v60 = vadd.f32 %v2441_v27, %v2403_v31  ;;  %v3229_v30 = vmul.f32 %v6448_v54, %v3228_v18  ;;  %v6606_v31 = vmul.f32 %v6477_v39, %v3270_v56  ;;  %s6694_s23 = sld [smem:[#allocation4 + $0x1e3]] }
 0x46f   :  { %v6609_v38 = vmul.f32 %v3291_v13, %v6452_v52  ;;  %v3333_v40 = vstv %s7254_s6  ;;  %v2516_v27 = vmul.f32 %v2515_v44, %v6274_v19  ;;  %v2523_v56 = vstv %s6577_s20  ;;  %s6718_s29 = sld [smem:[#allocation4 + $0x1a9]] }
 0x470   :  { %v2464_v62 = vadd.f32 %v2463_v59, %v2443_v60  ;;  %v2509_v41 = vadd.f32 %v2508_v28, %v2472_v20  ;;  %v3327_v13 = vadd.f32 %v6493_v25, %v3306_v10  ;;  %v3209_v20 = vadd.f32 %v3208_v36, %v3188_v53  ;;  %s6736_s20 = sld [smem:[#allocation4 + $0x1bd]] }
 0x471   :  { %v2486_v48 = vpop.permute.xlu0 %2485  ;;  %v2478_v26 = vpop.permute.xlu1 %2477  ;;  %v3396_v25 = vstv %s6418_s26  ;;  %v2520_v53 = vmul.f32 %v2519_v55, %v6274_v19  ;;  %s6660_s26 = sld [smem:[#allocation4 + $0x220]] }
 0x472   :  { %v2488_v32 = vadd.f32 %v2486_v48, %v2456_v5  ;;  %v2480_v18 = vadd.f32 %v2478_v26, %v2452_v0  ;;  %v6625_v0 = vmul.f32 %v3312_v15, %v6460_v46  ;;  %v3354_v5 = vstv %s7255_s19  ;;  %s6759_s6 = sld [smem:[#allocation4 + $0x1e5]] }
 0x473   :  { %v3230_v44 = vadd.f32 %v3229_v30, %v3209_v20  ;;  %v6631_v48 = vmul.f32 %v3333_v40, %v6463_v7  ;;  %v3375_v26 = vstv %s6414_s1  ;;  %v2524_v15 = vmul.f32 %v2523_v56, %v6274_v19  ;;  %s6653_s1 = sld [smem:[#allocation4 + $0x21f]] }
 0x474   :  { %v2513_v60 = vadd.f32 %v2512_v50, %v2480_v18  ;;  %v2517_v59 = vadd.f32 %v2516_v27, %v2488_v32  ;;  %v2568_v32 = vstv %s6593_s5  ;;  %v2572_v30 = vstv %s6597_s24  ;;  %s6755_s5 = sld [smem:[#allocation4 + $0x248]] }
 0x475   :  { %v2502_v28 = vpop.permute.xlu0 %2501  ;;  %v2494_v21 = vpop.permute.xlu1 %2493  ;;  %v3348_v40 = vadd.f32 %v6496_v57, %v3327_v13  ;;  %v6647_v18 = vmul.f32 %v3354_v5, %v6466_v47  ;;  %v3417_v19 = vstv %s6423_s11  ;;  %v3251_v56 = vadd.f32 %v3250_v58, %v3230_v44  ;;  %s6664_s11 = sld [smem:[#allocation4 + $0x1a7]] }
 0x476   :  { %v2504_v36 = vadd.f32 %v2502_v28, %v2464_v62  ;;  %v2496_v10 = vadd.f32 %v2494_v21, %v2460_v12  ;;  %v6650_v12 = vmul.f32 %v3375_v26, %v6472_v8  ;;  %v6656_v20 = vmul.f32 %v3396_v25, %v6480_v4  ;;  %s6763_s24 = sld [smem:[#allocation4 + $0x197]] }
 0x477   :  { %v3438_v57 = vstv %s7256_s18  ;;  %v3459_v13 = vstv %s7257_s14  ;;  %v2569_v21 = vmul.f32 %v2568_v32, %v6286_v6  ;;  %v2573_v26 = vmul.f32 %v2572_v30, %v6286_v6  ;;  %s6784_s19 = sld [smem:[#allocation4 + $0x224]] }
 0x478   :  { %v2521_v50 = vadd.f32 %v2520_v53, %v2496_v10  ;;  %v2525_v62 = vadd.f32 %v2524_v15, %v2504_v36  ;;  %v2576_v36 = vstv %s6617_s13  ;;  %v2580_v58 = vstv %s6621_s16  ;;  %s6792_s13 = sld [smem:[#allocation4 + $0x1bf]] }
 0x479   :  { %v2539_v27 = vpop.permute.xlu0 %2538  ;;  %v2531_v55 = vpop.permute.xlu1 %2530  ;;  %v3369_v44 = vadd.f32 %v6505_v45, %v3348_v40  ;;  %v6672_v25 = vmul.f32 %v3417_v19, %v6483_v29  ;;  %v3480_v53 = vstv %s6430_s17  ;;  %v3272_v30 = vadd.f32 %v6606_v31, %v3251_v56  ;;  %s6690_s17 = sld [smem:[#allocation4 + $0x1cf]] }
 0x47a   :  { %v2541_v5 = vadd.f32 %v2539_v27, %v2513_v60  ;;  %v2533_v28 = vadd.f32 %v2531_v55, %v2509_v41  ;;  %v6675_v41 = vmul.f32 %v3438_v57, %v6507_v9  ;;  %v6682_v27 = vmul.f32 %v3459_v13, %v6518_v16  ;;  %s6799_s16 = sld [smem:[#allocation4 + $0x263]] }
 0x47b   :  { %v3501_v45 = vstv %s6498_s2  ;;  %v3182_v40 = vstv %s6537_s8  ;;  %v2577_v57 = vmul.f32 %v2576_v36, %v6286_v6  ;;  %v2629_v31 = vstv %s6643_s22  ;;  %s6704_s2 = sld [smem:[#allocation4 + $0x223]] }
 0x47c   :  { %v2570_v10 = vadd.f32 %v2569_v21, %v2533_v28  ;;  %v2574_v60 = vadd.f32 %v2573_v26, %v2541_v5  ;;  %v2581_v5 = vmul.f32 %v2580_v58, %v6286_v6  ;;  %v2584_v28 = vstv %s6639_s7  ;;  %s6710_s8 = sld [smem:[#allocation4 + $0x260]] }
 0x47d   :  { %v2555_v15 = vpop.permute.xlu0 %2554  ;;  %v2547_v32 = vpop.permute.xlu1 %2546  ;;  %v3390_v56 = vadd.f32 %v6513_v37, %v3369_v44  ;;  %v6698_v13 = vmul.f32 %v3480_v53, %v6521_v34  ;;  %v3203_v26 = vstv %s6547_s4  ;;  %v3224_v37 = vstv %s6562_s21  ;;  %s6714_s4 = sld [smem:[#allocation4 + $0x195]] }
 0x47e   :  { %v2557_v19 = vadd.f32 %v2555_v15, %v2521_v50  ;;  %v2549_v55 = vadd.f32 %v2547_v32, %v2517_v59  ;;  %v6701_v59 = vmul.f32 %v3501_v45, %v6534_v3  ;;  %v3293_v15 = vadd.f32 %v6609_v38, %v3272_v30  ;;  %s6724_s21 = sld [smem:[#allocation4 + $0x261]] }
 0x47f   :  { %v3183_v32 = vmul.f32 %v3182_v40, %v6420_v14  ;;  %v3245_v34 = vstv %s6569_s28  ;;  %v2585_v3 = vmul.f32 %v2584_v28, %v6286_v6  ;;  %v2630_v45 = vmul.f32 %v2629_v31, %v6304_v24  ;;  %s6732_s28 = sld [smem:[#allocation4 + $0x262]] }
 0x480   :  { %v2578_v21 = vadd.f32 %v2577_v57, %v2549_v55  ;;  %v2582_v50 = vadd.f32 %v2581_v5, %v2557_v19  ;;  %v2633_v19 = vstv %s6664_s11  ;;  %v2637_v55 = vstv %s6668_s3  ;;  %s6816_s18 = sld [smem:[#allocation4 + $0x1e7]] }
 0x481   :  { %v2592_v36 = vpop.permute.xlu0 %2591  ;;  %v2563_v58 = vpop.permute.xlu1 %2562  ;;  %v3411_v38 = vadd.f32 %v6516_v63, %v3390_v56  ;;  %v3204_v30 = vmul.f32 %v3203_v26, %v6432_v35  ;;  %v3266_v6 = vstv %s6583_s10  ;;  %v3314_v28 = vadd.f32 %v6625_v0, %v3293_v15  ;;  %s6740_s10 = sld [smem:[#allocation4 + $0x1d1]] }
 0x482   :  { %v2594_v44 = vadd.f32 %v2592_v36, %v2570_v10  ;;  %v2565_v53 = vadd.f32 %v2563_v58, %v2525_v62  ;;  %v3225_v62 = vmul.f32 %v6448_v54, %v3224_v37  ;;  %v3184_v31 = vadd.f32 %v3183_v32, %v6015_v2  ;;  %s6820_s7 = sld [smem:[#allocation4 + $0x264]] }
 0x483   :  { %v6729_v63 = vmul.f32 %v3245_v34, %v6443_v51  ;;  %v3287_v56 = vstv %s6589_s27  ;;  %v2634_v58 = vmul.f32 %v2633_v19, %v6304_v24  ;;  %v2638_v37 = vmul.f32 %v2637_v55, %v6304_v24  ;;  %s6748_s27 = sld [smem:[#allocation4 + $0x247]] }
 0x484   :  { %v2586_v40 = vadd.f32 %v2585_v3, %v2565_v53  ;;  %v2631_v57 = vadd.f32 %v2630_v45, %v2594_v44  ;;  %v2641_v0 = vstv %s6690_s17  ;;  %v2645_v15 = vstv %s6694_s23  ;;  %s6827_s14 = sld [smem:[#allocation4 + $0x24b]] }
 0x485   :  { %v2608_v10 = vpop.permute.xlu0 %2607  ;;  %v2600_v5 = vpop.permute.xlu1 %2599  ;;  %v3432_v2 = vadd.f32 %v6532_v43, %v3411_v38  ;;  %v6744_v32 = vmul.f32 %v6477_v39, %v3266_v6  ;;  %v3335_v45 = vadd.f32 %v6631_v48, %v3314_v28  ;;  %v3205_v19 = vadd.f32 %v3204_v30, %v3184_v31  ;;  %s6831_s22 = sld [smem:[#allocation4 + $0x199]] }
 0x486   :  { %v2610_v26 = vadd.f32 %v2608_v10, %v2578_v21  ;;  %v2602_v36 = vadd.f32 %v2600_v5, %v2574_v60  ;;  %v3308_v60 = vstv %s6603_s25  ;;  %v3329_v21 = vstv %s6613_s0  ;;  %s6771_s25 = sld [smem:[#allocation4 + $0x249]] }
 0x487   :  { %v6752_v55 = vmul.f32 %v3287_v56, %v6452_v52  ;;  %v3350_v43 = vstv %s6628_s9  ;;  %v2642_v10 = vmul.f32 %v2641_v0, %v6304_v24  ;;  %v2646_v5 = vmul.f32 %v2645_v15, %v6304_v24  ;;  %s6788_s0 = sld [smem:[#allocation4 + $0x1ab]] }
 0x488   :  { %v2635_v34 = vadd.f32 %v2634_v58, %v2602_v36  ;;  %v2639_v44 = vadd.f32 %v2638_v37, %v2610_v26  ;;  %v2690_v26 = vstv %s6714_s4  ;;  %v2694_v36 = vstv %s6718_s29  ;;  %s6808_s9 = sld [smem:[#allocation4 + $0x24a]] }
 0x489   :  { %v2624_v53 = vpop.permute.xlu0 %2623  ;;  %v2616_v3 = vpop.permute.xlu1 %2615  ;;  %v3453_v48 = vadd.f32 %v6542_v23, %v3432_v2  ;;  %v6767_v30 = vmul.f32 %v3308_v60, %v6460_v46  ;;  %v6774_v58 = vadd.f32 %v6647_v18, %v3335_v45  ;;  %v6776_v37 = vadd.f32 %v3225_v62, %v3205_v19  ;;  %s6835_s11 = sld [smem:[#allocation4 + $0x1ad]] }
 0x48a   :  { %v2626_v38 = vadd.f32 %v2624_v53, %v2586_v40  ;;  %v2618_v6 = vadd.f32 %v2616_v3, %v2582_v50  ;;  %v3371_v40 = vstv %s6635_s30  ;;  %v3194_v50 = vstv %s6710_s8  ;;  %s6812_s30 = sld [smem:[#allocation4 + $0x1d3]] }
 0x48b   :  { %v6779_v23 = vmul.f32 %v3329_v21, %v6463_v7  ;;  %v6782_v0 = vmul.f32 %v3350_v43, %v6466_v47  ;;  %v2691_v60 = vmul.f32 %v2690_v26, %v6314_v17  ;;  %v2695_v18 = vmul.f32 %v2694_v36, %v6314_v17  ;;  %s6841_s3 = sld [smem:[#allocation4 + $0x265]] }
 0x48c   :  { %v2643_v28 = vadd.f32 %v2642_v10, %v2618_v6  ;;  %v2647_v31 = vadd.f32 %v2646_v5, %v2626_v38  ;;  %v2698_v62 = vstv %s6736_s20  ;;  %v2702_v53 = vstv %s6740_s10  ;;  %s6846_s17 = sld [smem:[#allocation4 + $0x24c]] }
 0x48d   :  { %v2661_v24 = vpop.permute.xlu0 %2660  ;;  %v2653_v56 = vpop.permute.xlu1 %2652  ;;  %v6795_v21 = vmul.f32 %v3371_v40, %v6472_v8  ;;  %v3195_v3 = vmul.f32 %v3194_v50, %v6420_v14  ;;  %v3190_v19 = vstv %s6748_s27  ;;  %v6803_v6 = vadd.f32 %v6545_v11, %v3453_v48  ;;  %s6850_s23 = sld [smem:[#allocation4 + $0x1c1]] }
 0x48e   :  { %v2663_v15 = vadd.f32 %v2661_v24, %v2635_v34  ;;  %v2655_v2 = vadd.f32 %v2653_v56, %v2631_v57  ;;  %v3215_v57 = vstv %s6724_s21  ;;  %v3392_v10 = vstv %s6653_s1  ;;  %s6854_s8 = sld [smem:[#allocation4 + $0x1d5]] }
 0x48f   :  { %v3196_v5 = vadd.f32 %v3195_v3, %v6040_v22  ;;  %v3236_v26 = vstv %s6732_s28  ;;  %v2699_v50 = vmul.f32 %v2698_v62, %v6314_v17  ;;  %v2703_v24 = vmul.f32 %v2702_v53, %v6314_v17  ;;  %s6862_s4 = sld [smem:[#allocation4 + $0x266]] }
 0x490   :  { %v2692_v45 = vadd.f32 %v2691_v60, %v2655_v2  ;;  %v2696_v34 = vadd.f32 %v2695_v18, %v2663_v15  ;;  %v2706_v56 = vstv %s6759_s6  ;;  %v2751_v11 = vstv %s6763_s24  ;;  %s6867_s29 = sld [smem:[#allocation4 + $0x24d]] }
 0x491   :  { %v2677_v43 = vpop.permute.xlu0 %2676  ;;  %v2669_v38 = vpop.permute.xlu1 %2668  ;;  %v3216_v22 = vmul.f32 %v3215_v57, %v6432_v35  ;;  %v3191_v48 = vmul.f32 %v3190_v19, %v6420_v14  ;;  %v3413_v62 = vstv %s6660_s26  ;;  %v3237_v3 = vmul.f32 %v6448_v54, %v3236_v26  ;;  %s6871_s21 = sld [smem:[#allocation4 + $0x1e9]] }
 0x492   :  { %v2679_v36 = vadd.f32 %v2677_v43, %v2643_v28  ;;  %v2671_v40 = vadd.f32 %v2669_v38, %v2639_v44  ;;  %v3211_v44 = vstv %s6755_s5  ;;  %v3232_v28 = vstv %s6771_s25  ;;  %s6875_s28 = sld [smem:[#allocation4 + $0x19b]] }
 0x493   :  { %v3217_v53 = vadd.f32 %v3216_v22, %v3196_v5  ;;  %v3192_v57 = vadd.f32 %v3191_v48, %v6060_v33  ;;  %v2707_v43 = vmul.f32 %v2706_v56, %v6314_v17  ;;  %v2752_v38 = vmul.f32 %v2751_v11, %v6330_v49  ;;  %s6884_s20 = sld [smem:[#allocation4 + $0x267]] }
 0x494   :  { %v2700_v15 = vadd.f32 %v2699_v50, %v2671_v40  ;;  %v2704_v2 = vadd.f32 %v2703_v24, %v2679_v36  ;;  %v2755_v36 = vstv %s6788_s0  ;;  %v2759_v40 = vstv %s6792_s13  ;;  %s6889_s10 = sld [smem:[#allocation4 + $0x24e]] }
 0x495   :  { %v2714_v60 = vpop.permute.xlu0 %2713  ;;  %v2685_v18 = vpop.permute.xlu1 %2684  ;;  %v3212_v5 = vmul.f32 %v3211_v44, %v6432_v35  ;;  %v3233_v26 = vmul.f32 %v6448_v54, %v3232_v28  ;;  %v3247_v56 = vadd.f32 %v6729_v63, %v6776_v37  ;;  %v3238_v11 = vadd.f32 %v3237_v3, %v3217_v53  ;;  %s6893_s1 = sld [smem:[#allocation4 + $0x1af]] }
 0x496   :  { %v2716_v14 = vadd.f32 %v2714_v60, %v2692_v45  ;;  %v2687_v19 = vadd.f32 %v2685_v18, %v2647_v31  ;;  %v3434_v45 = vstv %s6678_s12  ;;  %v3257_v31 = vstv %s6799_s16  ;;  %s6897_s27 = sld [smem:[#allocation4 + $0x1c3]] }
 0x497   :  { %v3213_v22 = vadd.f32 %v3212_v5, %v3192_v57  ;;  %v3253_v48 = vstv %s6808_s9  ;;  %v2756_v44 = vmul.f32 %v2755_v36, %v6330_v49  ;;  %v2760_v28 = vmul.f32 %v2759_v40, %v6330_v49  ;;  %s6906_s5 = sld [smem:[#allocation4 + $0x268]] }
 0x498   :  { %v2708_v33 = vadd.f32 %v2707_v43, %v2687_v19  ;;  %v2753_v50 = vadd.f32 %v2752_v38, %v2716_v14  ;;  %v2763_v60 = vstv %s6812_s30  ;;  %v2767_v18 = vstv %s6816_s18  ;;  %s6911_s6 = sld [smem:[#allocation4 + $0x24f]] }
 0x499   :  { %v2730_v17 = vpop.permute.xlu0 %2729  ;;  %v2722_v24 = vpop.permute.xlu1 %2721  ;;  %v3258_v63 = vmul.f32 %v3257_v31, %v6443_v51  ;;  %v3234_v37 = vadd.f32 %v3233_v26, %v3213_v22  ;;  %v3268_v19 = vadd.f32 %v6744_v32, %v3247_v56  ;;  %v3254_v38 = vmul.f32 %v3253_v48, %v6443_v51  ;;  %s6913_s26 = sld [smem:[#allocation4 + $0x1d7]] }
 0x49a   :  { %v2732_v35 = vadd.f32 %v2730_v17, %v2700_v15  ;;  %v2724_v54 = vadd.f32 %v2722_v24, %v2696_v34  ;;  %v6859_v34 = vadd.f32 %v6650_v12, %v6774_v58  ;;  %v3278_v15 = vstv %s6820_s7  ;;  %s6917_s24 = sld [smem:[#allocation4 + $0x1eb]] }
 0x49b   :  { %v3259_v43 = vadd.f32 %v3258_v63, %v3238_v11  ;;  %v3274_v36 = vstv %s6827_s14  ;;  %v2764_v12 = vmul.f32 %v2763_v60, %v6330_v49  ;;  %v2768_v58 = vmul.f32 %v2767_v18, %v6330_v49  ;;  %s6925_s25 = sld [smem:[#allocation4 + $0x269]] }
 0x49c   :  { %v2757_v53 = vadd.f32 %v2756_v44, %v2724_v54  ;;  %v2761_v3 = vadd.f32 %v2760_v28, %v2732_v35  ;;  %v2812_v26 = vstv %s6831_s22  ;;  %v2816_v31 = vstv %s6835_s11  ;;  %s6930_s0 = sld [smem:[#allocation4 + $0x250]] }
 0x49d   :  { %v2746_v57 = vpop.permute.xlu0 %2745  ;;  %v2738_v14 = vpop.permute.xlu1 %2737  ;;  %v3279_v32 = vmul.f32 %v6477_v39, %v3278_v15  ;;  %v3255_v51 = vadd.f32 %v3254_v38, %v3234_v37  ;;  %v3289_v11 = vadd.f32 %v6752_v55, %v3268_v19  ;;  %v3275_v48 = vmul.f32 %v6477_v39, %v3274_v36  ;;  %s6932_s13 = sld [smem:[#allocation4 + $0x19d]] }
 0x49e   :  { %v2748_v40 = vadd.f32 %v2746_v57, %v2708_v33  ;;  %v2740_v5 = vadd.f32 %v2738_v14, %v2704_v2  ;;  %v6881_v2 = vmul.f32 %v3392_v10, %v6480_v4  ;;  %v3299_v33 = vstv %s6841_s3  ;;  %s6936_s16 = sld [smem:[#allocation4 + $0x1b1]] }
 0x49f   :  { %v3280_v22 = vadd.f32 %v3279_v32, %v3259_v43  ;;  %v3295_v35 = vstv %s6846_s17  ;;  %v2813_v10 = vmul.f32 %v2812_v26, %v6348_v1  ;;  %v2817_v28 = vmul.f32 %v2816_v31, %v6348_v1  ;;  %s6945_s9 = sld [smem:[#allocation4 + $0x26a]] }
 0x4a0   :  { %v2765_v17 = vadd.f32 %v2764_v12, %v2740_v5  ;;  %v2769_v24 = vadd.f32 %v2768_v58, %v2748_v40  ;;  %v2820_v60 = vstv %s6850_s23  ;;  %v2824_v18 = vstv %s6854_s8  ;;  %s6950_s30 = sld [smem:[#allocation4 + $0x251]] }
 0x4a1   :  { %v2783_v49 = vpop.permute.xlu0 %2782  ;;  %v2775_v56 = vpop.permute.xlu1 %2774  ;;  %v3300_v55 = vmul.f32 %v3299_v33, %v6452_v52  ;;  %v3276_v39 = vadd.f32 %v3275_v48, %v3255_v51  ;;  %v3310_v57 = vadd.f32 %v6767_v30, %v3289_v11  ;;  %v3296_v19 = vmul.f32 %v3295_v35, %v6452_v52  ;;  %s6952_s12 = sld [smem:[#allocation4 + $0x1c5]] }
 0x4a2   :  { %v2785_v54 = vadd.f32 %v2783_v49, %v2757_v53  ;;  %v2777_v44 = vadd.f32 %v2775_v56, %v2753_v50  ;;  %v6903_v53 = vmul.f32 %v3413_v62, %v6483_v29  ;;  %v3320_v50 = vstv %s6862_s4  ;;  %v4296_v29 = vld [vmem:[#allocation3 + $0x50] sm:$0xff]  ;;  %s6956_s18 = sld [smem:[#allocation4 + $0x1d9]] }
 0x4a3   :  { %v3301_v14 = vadd.f32 %v3300_v55, %v3280_v22  ;;  %v3316_v43 = vstv %s6867_s29  ;;  %v2821_v62 = vmul.f32 %v4296_v29, %v2820_v60  ;;  %v2825_v40 = vmul.f32 %v4296_v29, %v2824_v18  ;;  %v4297_v22 = vld [vmem:[#allocation3 + $0x66] sm:$0xff]  ;;  %s6962_s7 = sld [smem:[#allocation4 + $0x26b]] }
 0x4a4   :  { %v2814_v63 = vadd.f32 %v2813_v10, %v2777_v44  ;;  %v2818_v37 = vadd.f32 %v2817_v28, %v2785_v54  ;;  %v2828_v5 = vstv %s6871_s21  ;;  %v2873_v12 = vstv %s6875_s28  ;;  %s6967_s14 = sld [smem:[#allocation4 + $0x252]] }
 0x4a5   :  { %v2799_v1 = vpop.permute.xlu0 %2798  ;;  %v2791_v15 = vpop.permute.xlu1 %2790  ;;  %v3321_v30 = vmul.f32 %v3320_v50, %v6460_v46  ;;  %v3297_v58 = vadd.f32 %v3296_v19, %v3276_v39  ;;  %v6922_v31 = vadd.f32 %v6558_v61, %v6803_v6  ;;  %v3317_v49 = vmul.f32 %v3316_v43, %v6460_v46  ;;  %s6969_s22 = sld [smem:[#allocation4 + $0x26c]] }
 0x4a6   :  { %v2801_v38 = vadd.f32 %v2799_v1, %v2765_v17  ;;  %v2793_v36 = vadd.f32 %v2791_v15, %v2761_v3  ;;  %v3341_v3 = vstv %s6884_s20  ;;  %v3331_v17 = vadd.f32 %v6779_v23, %v3310_v57  ;;  %s6973_s11 = sld [smem:[#allocation4 + $0x1ed]] }
 0x4a7   :  { %v3322_v33 = vadd.f32 %v3321_v30, %v3301_v14  ;;  %v3337_v56 = vstv %s6889_s10  ;;  %v2829_v6 = vmul.f32 %v4296_v29, %v2828_v5  ;;  %v2874_v48 = vmul.f32 %v4297_v22, %v2873_v12  ;;  %s6978_s3 = sld [smem:[#allocation4 + $0x253]] }
 0x4a8   :  { %v2822_v52 = vadd.f32 %v2821_v62, %v2793_v36  ;;  %v2826_v26 = vadd.f32 %v2825_v40, %v2801_v38  ;;  %v2877_v35 = vstv %s6893_s1  ;;  %v2881_v54 = vstv %s6897_s27  ;;  %s6980_s17 = sld [smem:[#allocation4 + $0x1ef]] }
 0x4a9   :  { %v2836_v32 = vpop.permute.xlu0 %2835  ;;  %v2807_v51 = vpop.permute.xlu1 %2806  ;;  %v3342_v23 = vmul.f32 %v3341_v3, %v6463_v7  ;;  %v3318_v46 = vadd.f32 %v3317_v49, %v3297_v58  ;;  %v6942_v28 = vmul.f32 %v3434_v45, %v6507_v9  ;;  %v3352_v55 = vadd.f32 %v6782_v0, %v3331_v17  ;;  %s6985_s23 = sld [smem:[#allocation4 + $0x26d]] }
 0x4aa   :  { %v2838_v11 = vadd.f32 %v2836_v32, %v2814_v63  ;;  %v2809_v61 = vadd.f32 %v2807_v51, %v2769_v24  ;;  %v3362_v24 = vstv %s6906_s5  ;;  %v3338_v63 = vmul.f32 %v3337_v56, %v6463_v7  ;;  %s6990_s8 = sld [smem:[#allocation4 + $0x254]] }
 0x4ab   :  { %v3343_v39 = vadd.f32 %v3342_v23, %v3322_v33  ;;  %v3358_v50 = vstv %s6911_s6  ;;  %v2878_v57 = vmul.f32 %v4297_v22, %v2877_v35  ;;  %v2882_v9 = vmul.f32 %v4297_v22, %v2881_v54  ;;  %s6992_s4 = sld [smem:[#allocation4 + $0x1f1]] }
 0x4ac   :  { %v2830_v44 = vadd.f32 %v2829_v6, %v2809_v61  ;;  %v2875_v10 = vadd.f32 %v2874_v48, %v2838_v11  ;;  %v2885_v45 = vstv %s6913_s26  ;;  %v2889_v14 = vstv %s6917_s24  ;;  %s6996_s29 = sld [smem:[#allocation4 + $0x1f0]] }
 0x4ad   :  { %v2852_v60 = vpop.permute.xlu0 %2851  ;;  %v2844_v18 = vpop.permute.xlu1 %2843  ;;  %v3363_v0 = vmul.f32 %v3362_v24, %v6466_v47  ;;  %v3339_v19 = vadd.f32 %v3338_v63, %v3318_v46  ;;  %v3398_v38 = vadd.f32 %v6656_v20, %v6859_v34  ;;  %v3373_v62 = vadd.f32 %v6795_v21, %v3352_v55  ;;  %s7001_s21 = sld [smem:[#allocation4 + $0x26e]] }
 0x4ae   :  { %v2854_v1 = vadd.f32 %v2852_v60, %v2822_v52  ;;  %v2846_v15 = vadd.f32 %v2844_v18, %v2818_v37  ;;  %v3383_v37 = vstv %s6925_s25  ;;  %v3359_v5 = vmul.f32 %v3358_v50, %v6466_v47  ;;  %s7012_s28 = sld [smem:[#allocation4 + $0x1f2]] }
 0x4af   :  { %v3364_v40 = vadd.f32 %v3363_v0, %v3343_v39  ;;  %v3379_v12 = vstv %s6930_s0  ;;  %v2886_v52 = vmul.f32 %v4297_v22, %v2885_v45  ;;  %v2890_v3 = vmul.f32 %v4297_v22, %v2889_v14  ;;  %s7017_s20 = sld [smem:[#allocation4 + $0x23e]] }
 0x4b0   :  { %v2879_v43 = vadd.f32 %v2878_v57, %v2846_v15  ;;  %v2883_v7 = vadd.f32 %v2882_v9, %v2854_v1  ;;  %v2934_v20 = vstv %s6932_s13  ;;  %v2938_v34 = vstv %s6936_s16  ;;  %s7020_s10 = sld [smem:[#allocation4 + $0x225]]  ;;  %s7258_s13 = smov 126  }
 0x4b1   :  { %v2868_v36 = vpop.permute.xlu0 %2867  ;;  %v2860_v29 = vpop.permute.xlu1 %2859  ;;  %v3384_v21 = vmul.f32 %v3383_v37, %v6472_v8  ;;  %v3360_v32 = vadd.f32 %v3359_v5, %v3339_v19  ;;  %v3419_v17 = vadd.f32 %v6672_v25, %v3398_v38  ;;  %v3404_v33 = vstv %s6945_s9  ;;  %v4298_v25 = vld [vmem:[#allocation3 + $0x68] sm:$0xff]  ;;  %v4299_v37 = vld [vmem:[#allocation2 + $0x52] sm:$0xff]  ;;  %s7025_s1 = sld [smem:[#allocation4 + $0x26f]]  ;;  %s4368_s16 = smov [#allocation9]  }
 0x4b2   :  { %v2870_v30 = vadd.f32 %v2868_v36, %v2830_v44  ;;  %v2862_v58 = vadd.f32 %v2860_v29, %v2826_v26  ;;  %v3394_v56 = vadd.f32 %v6881_v2, %v3373_v62  ;;  %v3380_v61 = vmul.f32 %v3379_v12, %v6472_v8  ;;  %s7028_s27 = sld [smem:[#allocation4 + $0x256]]  ;;  %s3599_s9 = sshll.u32 %s4368_s16, 4  ;;  %s3600_s9 = int_to_ptr.vmem [resolvable:$true] %s3599_s9 }
 0x4b3   :  { %v3385_v11 = vadd.f32 %v3384_v21, %v3364_v40  ;;  %v3400_v6 = vstv %s6950_s30  ;;  %v2935_v35 = vmul.f32 %v4298_v25, %v2934_v20  ;;  %v2939_v54 = vmul.f32 %v4298_v25, %v2938_v34  ;;  %v4300_v20 = vld [vmem:[#allocation2 + $0x68] sm:$0xff]  ;;  %s7030_s5 = sld [smem:[#allocation4 + $0x271]]  ;;  %s4333_s30 = scalar_lea.vmem %s3600_s9, 640 }
 0x4b4   :  { %v2887_v51 = vadd.f32 %v2886_v52, %v2862_v58  ;;  %v2891_v47 = vadd.f32 %v2890_v3, %v2870_v30  ;;  %v2942_v23 = vstv %s6952_s12  ;;  %v2946_v46 = vstv %s6956_s18  ;;  %s7037_s6 = sld [smem:[#allocation4 + $0x270]]  ;;  %p4334_p5 = scmp.ne.s32.totalorder %s3600_s9, %s4333_s30 }
 0x4b5   :  { %v2905_v26 = vpop.permute.xlu0 %2904  ;;  %v2897_v49 = vpop.permute.xlu1 %2896  ;;  %v3405_v44 = vmul.f32 %v3404_v33, %v6480_v4  ;;  %v3381_v2 = vadd.f32 %v3380_v61, %v3360_v32  ;;  %v3476_v60 = vstv %s6704_s2  ;;  %v3425_v63 = vstv %s6962_s7  ;;  %s7008_s2 = sld [smem:[#allocation4 + $0x1f3]]  ;;  %p4338_p6 = scmp.lt.s32.totalorder %s3600_s9, %s3600_s9 }
 0x4b6   :  { %v2907_v22 = vadd.f32 %v2905_v26, %v2879_v43  ;;  %v2899_v48 = vadd.f32 %v2897_v49, %v2875_v10  ;;  %v3455_v10 = vstv %s6686_s15  ;;  %v3401_v50 = vmul.f32 %v3400_v6, %v6480_v4  ;;  %s7006_s15 = sld [smem:[#allocation4 + $0x255]]  ;;  %p4339_p7 = scmp.lt.s32.totalorder %s4333_s30, %s4333_s30 }
 0x4b7   :  { %v3406_v39 = vadd.f32 %v3405_v44, %v3385_v11  ;;  %v3421_v1 = vstv %s6967_s14  ;;  %v2943_v9 = vmul.f32 %v4298_v25, %v2942_v23  ;;  %v2947_v45 = vmul.f32 %v4298_v25, %v2946_v46  ;;  %v4302_v44 = vld [vmem:[#allocation2 + $0x67] sm:$0xff]  ;;  %s7043_s26 = sld [smem:[#allocation4 + $0x273]] }
 0x4b8   :  { %v2936_v8 = vadd.f32 %v2935_v35, %v2899_v48  ;;  %v2940_v24 = vadd.f32 %v2939_v54, %v2907_v22  ;;  %v2950_v14 = vstv %s6973_s11  ;;  %v3440_v0 = vadd.f32 %v6675_v41, %v3419_v17  ;;  %v4301_v17 = vld [vmem:[#allocation2 + $0x66] sm:$0xff]  ;;  %s7047_s24 = sld [smem:[#allocation4 + $0x272]]  ;;  %p4340_p8 = por %p4339_p7, %p4338_p6 }
 0x4b9   :  { %v2921_v18 = vpop.permute.xlu0 %2920  ;;  %v2913_v55 = vpop.permute.xlu1 %2912  ;;  %v3415_v19 = vadd.f32 %v6903_v53, %v3394_v56  ;;  %v3402_v43 = vadd.f32 %v3401_v50, %v3381_v2  ;;  %v3426_v36 = vmul.f32 %v4299_v37, %v3425_v63  ;;  %v2994_v29 = vstv %s6980_s17  ;;  %s7054_s25 = sld [smem:[#allocation4 + $0x275]] }
 0x4ba   :  { %v2923_v15 = vadd.f32 %v2921_v18, %v2887_v51  ;;  %v2915_v57 = vadd.f32 %v2913_v55, %v2883_v7  ;;  %v3456_v7 = vmul.f32 %v3455_v10, %v6518_v16  ;;  %v3446_v41 = vstv %s6969_s22  ;;  %s7056_s0 = sld [smem:[#allocation4 + $0x274]]  ;;  %p4341_p9 = pnand %p4340_p8, %p4334_p5 }
 0x4bb   :  { %v3422_v5 = vmul.f32 %v4299_v37, %v3421_v1  ;;  %v3442_v12 = vstv %s6978_s3  ;;  %v2951_v58 = vmul.f32 %v4298_v25, %v2950_v14  ;;  %v3427_v52 = vadd.f32 %v3426_v36, %v3406_v39 }
 0x4bc   :  { %v2944_v38 = vadd.f32 %v2943_v9, %v2915_v57  ;;  %v2948_v4 = vadd.f32 %v2947_v45, %v2923_v15  ;;  %v3461_v3 = vadd.f32 %v6682_v27, %v3440_v0  ;;  %v3436_v16 = vadd.f32 %v6942_v28, %v3415_v19  ;;  %v4303_v19 = vld [vmem:[#allocation2 + $0x69] sm:$0xff] }
 0x4bd   :  { %v2958_v62 = vpop.permute.xlu0 %2957  ;;  %v2929_v40 = vpop.permute.xlu1 %2928  ;;  %v3477_v34 = vmul.f32 %v4300_v20, %v3476_v60  ;;  %v3423_v21 = vadd.f32 %v3422_v5, %v3402_v43  ;;  %v3447_v33 = vmul.f32 %v4301_v17, %v3446_v41  ;;  %v3002_v26 = vstv %s6992_s4 }
 0x4be   :  { %v2960_v53 = vadd.f32 %v2958_v62, %v2936_v8  ;;  %v2931_v30 = vadd.f32 %v2929_v40, %v2891_v47  ;;  %v3467_v47 = vstv %s6985_s23  ;;  %v2998_v56 = vstv %s6996_s29 }
 0x4bf   :  { %v3443_v11 = vmul.f32 %v4301_v17, %v3442_v12  ;;  %v3463_v28 = vstv %s6990_s8  ;;  %v3448_v22 = vadd.f32 %v3447_v33, %v3427_v52  ;;  %v3482_v48 = vadd.f32 %v6698_v13, %v3461_v3 }
 0x4c0   :  { %v2995_v32 = vadd.f32 %v2994_v29, %v2960_v53  ;;  %v2952_v51 = vadd.f32 %v2951_v58, %v2931_v30  ;;  %v3457_v25 = vadd.f32 %v3456_v7, %v3436_v16  ;;  %v3497_v35 = vstv %s6784_s19  ;;  %s7040_s19 = sld [smem:[#allocation4 + $0x257]] }
 0x4c1   :  { %v2974_v49 = vpop.permute.xlu0 %2973  ;;  %v2966_v27 = vpop.permute.xlu1 %2965  ;;  %v3444_v54 = vadd.f32 %v3443_v11, %v3423_v21  ;;  %v3468_v2 = vmul.f32 %v4302_v44, %v3467_v47  ;;  %v3488_v8 = vstv %s7001_s21  ;;  %v3010_v10 = vstv %s7008_s2 }
 0x4c2   :  { %4281 = vtanh.f32 %v2995_v32  ;;  %v2976_v61 = vadd.f32 %v2974_v49, %v2944_v38  ;;  %v2968_v6 = vadd.f32 %v2966_v27, %v2940_v24  ;;  %v3006_v24 = vstv %s7012_s28 }
 0x4c3   :  { %v3464_v55 = vmul.f32 %v4302_v44, %v3463_v28  ;;  %v3484_v39 = vstv %s7006_s15  ;;  %v3469_v50 = vadd.f32 %v3468_v2, %v3448_v22  ;;  %v3522_v1 = vstv %s7017_s20 }
 0x4c4   :  { %v3003_v23 = vadd.f32 %v3002_v26, %v2976_v61  ;;  %v2999_v46 = vadd.f32 %v2998_v56, %v2968_v6  ;;  %v3478_v15 = vadd.f32 %v3477_v34, %v3457_v25  ;;  %v3516_v14 = vadd.f32 %v6565_v42, %v6922_v31  ;;  %v4304_v31 = vld [vmem:[#allocation2 + $0x6a] sm:$0xff] }
 0x4c5   :  { %v2990_v60 = vpop.permute.xlu0 %2989  ;;  %v2982_v18 = vpop.permute.xlu1 %2981  ;;  %v3465_v57 = vadd.f32 %v3464_v55, %v3444_v54  ;;  %v3489_v0 = vmul.f32 %v4300_v20, %v3488_v8  ;;  %v3498_v43 = vmul.f32 %v4303_v19, %v3497_v35  ;;  %v3518_v38 = vstv %s7020_s10 }
 0x4c6   :  { %4283 = vtanh.f32 %v3003_v23  ;;  %v2992_v63 = vadd.f32 %v2990_v60, %v2952_v51  ;;  %v2984_v13 = vadd.f32 %v2982_v18, %v2948_v4  ;;  %v3509_v4 = vstv %s7025_s1 }
 0x4c7   :  { %4285 = vtanh.f32 %v2999_v46  ;;  %v3485_v7 = vmul.f32 %v4300_v20, %v3484_v39  ;;  %v3503_v37 = vadd.f32 %v6701_v59, %v3482_v48  ;;  %v3490_v36 = vadd.f32 %v3489_v0, %v3469_v50 }
 0x4c8   :  { %v3011_v9 = vadd.f32 %v3010_v10, %v2992_v63  ;;  %v3007_v45 = vadd.f32 %v3006_v24, %v2984_v13  ;;  %v3505_v29 = vstv %s7028_s27  ;;  %v3534_v62 = vstv %s7030_s5 }
 0x4c9   :  { %v3499_v40 = vadd.f32 %v3498_v43, %v3478_v15  ;;  %v3486_v42 = vadd.f32 %v3485_v7, %v3465_v57  ;;  %v3523_v41 = vmul.f32 %v4304_v31, %v3522_v1  ;;  %v3510_v5 = vmul.f32 %v4303_v19, %v3509_v4 }
 0x4ca   :  { %4287 = vtanh.f32 %v3011_v9  ;;  %v3519_v12 = vmul.f32 %v4304_v31, %v3518_v38  ;;  %v3530_v53 = vstv %s7037_s6  ;;  %v3506_v30 = vmul.f32 %v4303_v19, %v3505_v29 }
 0x4cb   :  { %4289 = vtanh.f32 %v3007_v45  ;;  %v3535_v59 = vadd.f32 %v3534_v62, %v3516_v14  ;;  %v3524_v58 = vadd.f32 %v3523_v41, %v3503_v37  ;;  %v3511_v52 = vadd.f32 %v3510_v5, %v3490_v36 }
 0x4cc   :  { %v3526_v3 = vstv %s7040_s19  ;;  %v3544_v20 = vstv %s7043_s26  ;;  %v3520_v34 = vadd.f32 %v3519_v12, %v3499_v40  ;;  %v3507_v21 = vadd.f32 %v3506_v30, %v3486_v42 }
 0x4cd   :  { %v3539_v51 = vstv %s7047_s24  ;;  %v3531_v17 = vmul.f32 %v4304_v31, %v3530_v53  ;;  %v3527_v33 = vmul.f32 %v4304_v31, %v3526_v3  ;;  %v3545_v26 = vadd.f32 %v3544_v20, %v3524_v58 }
 0x4ce   :  { %v3540_v27 = vadd.f32 %v3539_v51, %v3520_v34  ;;  %v3554_v11 = vstv %s7054_s25  ;;  %v3549_v22 = vstv %s7056_s0 }
 0x4cf   :  { %v4282_v16 = vpop.eup %4281  ;;  %v3532_v49 = vadd.f32 %v3531_v17, %v3511_v52  ;;  %v3528_v28 = vadd.f32 %v3527_v33, %v3507_v21 }
 0x4d0   :  { %v3536_v32 = vadd.f32 %v4282_v16, %v3535_v59 }
 0x4d1   :  { %v3555_v35 = vadd.f32 %v3554_v11, %v3532_v49  ;;  %v3550_v46 = vadd.f32 %v3549_v22, %v3528_v28 }
 0x4d2   :  { %v3537_v47 = vmax.f32 %v3536_v32, 0.0 }
 0x4d3   :  { %v4284_v56 = vpop.eup %4283 }
 0x4d4   :  { %v4286_v61 = vpop.eup %4285  ;;  %3561 = vrot.lane.b32.xlu1 %v3537_v47, %s7258_s13  ;;  %v3546_v6 = vadd.f32 %v4284_v56, %v3545_v26  ;;  %3559 = vst.msk [vmem:[#allocation9] sm:$0xff] %vm3558_vm8, %v3537_v47 }
 0x4d5   :  { %v3541_v48 = vadd.f32 %v4286_v61, %v3540_v27 }
 0x4d6   :  { %v3547_v25 = vmax.f32 %v3546_v6, 0.0 }
 0x4d7   :  { %v4288_v54 = vpop.eup %4287  ;;  %v3542_v23 = vmax.f32 %v3541_v48, 0.0 }
 0x4d8   :  { %v4290_v44 = vpop.eup %4289  ;;  %3576 = vrot.lane.b32.xlu1 %v3547_v25, %s7258_s13  ;;  %v3556_v2 = vadd.f32 %v4288_v54, %v3555_v35  ;;  %3574 = vst.msk [vmem:[#allocation9 + $0x10] sm:$0xff] %vm3558_vm8, %v3547_v25 }
 0x4d9   :  { %3569 = vrot.lane.b32.xlu0 %v3542_v23, %s7258_s13  ;;  %v3551_v8 = vadd.f32 %v4290_v44, %v3550_v46  ;;  %3567 = vst.msk [vmem:[#allocation9 + $0x8] sm:$0xff] %vm3558_vm8, %v3542_v23 }
 0x4da   :  { %v3557_v10 = vmax.f32 %v3556_v2, 0.0 }
 0x4db   :  { %v3552_v60 = vmax.f32 %v3551_v8, 0.0 }
 0x4dc   :  { %3590 = vrot.lane.b32.xlu1 %v3557_v10, %s7258_s13  ;;  %3588 = vst.msk [vmem:[#allocation9 + $0x20] sm:$0xff] %vm3558_vm8, %v3557_v10 }
 0x4dd   :  { %3583 = vrot.lane.b32.xlu0 %v3552_v60, %s7258_s13  ;;  %3581 = vst.msk [vmem:[#allocation9 + $0x18] sm:$0xff] %vm3558_vm8, %v3552_v60 }
 0x546   :  { %v3562_v24 = vpop.permute.xlu1 %3561 }
 0x547   :  { %3565 = vst.msk [vmem:[#allocation9] sm:$0xff] %vm3564_vm9, %v3562_v24 }
 0x54a   :  { %v3577_v18 = vpop.permute.xlu1 %3576 }
 0x54b   :  { %v3570_v55 = vpop.permute.xlu0 %3569  ;;  %3579 = vst.msk [vmem:[#allocation9 + $0x10] sm:$0xff] %vm3564_vm9, %v3577_v18 }
 0x54c   :  { %3572 = vst.msk [vmem:[#allocation9 + $0x8] sm:$0xff] %vm3564_vm9, %v3570_v55 }
 0x54e   :  { %v3591_v39 = vpop.permute.xlu1 %3590 }
 0x54f   :  { %v3584_v63 = vpop.permute.xlu0 %3583  ;;  %3593 = vst.msk [vmem:[#allocation9 + $0x20] sm:$0xff] %vm3564_vm9, %v3591_v39 }
 0x550   :  { %3586 = vst.msk [vmem:[#allocation9 + $0x18] sm:$0xff] %vm3564_vm9, %v3584_v63 }
 0x551   :  { %4344 = shalt.err (!%p4341_p9)
}
 0x552   :  { %s7259_s12 = smov 8   ;;  %s7260_s18 = smov 128  }
 0x553   :  { %s7261_s22 = sld [smem:[#allocation61_spill]] }
 0x559   :  { %3605 = dma.vmem_to_hbm [thread:$0]  %s3600_s9, 640, %s7261_s22, [#allocation6], %s7260_s18, %s7260_s18, %s7259_s12  }
 0x55a   :  { %4357 = dma.done.wait [#allocation6], 640  }
 0x55b   :  { %4358 = vsyncadd [#allocation6], 4294966656 }
 0x55c   :  { %3609 = vsyncpa [#allocation5], 1 }
 0x55d   :  { %3610 = vsyncpa [#allocation6], 1 }
 0x55e   :  { %3611 = vsyncpa [#allocation7], 1 }

</bundles_post_ra>
